<compile_context>
chip_gen: v5e
topology: v5e:2x2
jax: 0.10.0
libtpu: 0.0.40
codegen_flags: <defaults>
</compile_context>

<pallas_src>
import numpy as np
import jax
import jax.numpy as jnp
from jax import lax
from jax.experimental import pallas as pl
from jax.experimental.pallas import tpu as pltpu

BN_EPS = 1e-5


# ----------------------------- in-kernel helpers ---------------------------

def _conv_layer(x, bwide, sel_ref, y_ref, *, cb):
    """Transposed conv in merged-row layout.

    x       : (h_in*n, W_in*C_in) bf16, rows ordered (iy, n).
    bwide   : (W_in*C_in, K*cb) bf16 -- per-ky block-banded W mixers.
    sel_ref : (K, rows_out, h_in*n) f32 0/1 row-scatter matrices.
    y_ref   : f32 VMEM scratch, at least (h_in*n, K*cb).
    Returns (rows_out, cb) f32.
    """
    rows_in = x.shape[0]
    k = sel_ref.shape[0]
    rows_out = sel_ref.shape[1]

    # One wide MXU pass over every (iy, ky) partial product; lane-dense store.
    y_ref[:rows_in, :k * cb] = jnp.dot(x, bwide,
                                       preferred_element_type=jnp.float32)

    # H-direction scatter: K tiny 0/1 row-selection matmuls, full-block f32.
    acc = jnp.zeros((rows_out, cb), jnp.float32)
    for ky in range(k):
        yk = y_ref[:rows_in, ky * cb:(ky + 1) * cb]
        acc = acc + jnp.dot(sel_ref[ky], yk,
                            preferred_element_type=jnp.float32)
    return acc


def _bn_relu(acc, gamma_row, beta_row, *, w, c, count):
    """Train-mode BatchNorm (biased var, single pass) + ReLU -> bf16 block.

    acc rows cover (H_out, N); lanes are (W_out, C) merged, so the remaining
    spatial reduce is a circular lane fold by multiples of C (pltpu.roll);
    the folded result is already re-tiled across W_out.
    """
    assert (w & (w - 1)) == 0, "W must be a power of two for the lane fold"
    s1 = jnp.sum(acc, axis=0, keepdims=True)           # per-(ox, ch) sums
    s2 = jnp.sum(acc * acc, axis=0, keepdims=True)
    off = c
    while off < w * c:
        s1 = s1 + pltpu.roll(s1, off, axis=1)
        s2 = s2 + pltpu.roll(s2, off, axis=1)
        off *= 2
    inv = 1.0 / float(count)
    mean = s1 * inv
    var = s2 * inv - mean * mean                        # biased, single pass
    scale = gamma_row * lax.rsqrt(var + BN_EPS)
    shift = beta_row - mean * scale
    return jnp.maximum(acc * scale + shift, 0.0).astype(jnp.bfloat16)


# --------------------------------- kernel ----------------------------------

def _generator_kernel(z_ref, b1_ref, b2_ref, b3_hbm, b4_hbm,
                      s1_ref, s2_ref, s3_ref, s4_ref,
                      aff1_ref, aff2_ref, aff3_ref, bias4_ref,
                      out_ref,
                      b3_buf, b4_buf, y_ref,
                      act1_ref, act2_ref, act3_ref, dma_sems):
    n = z_ref.shape[0]

    # Start layer-3/4 weight fetches so their HBM DMA overlaps layer-1/2 work.
    cp3 = pltpu.make_async_copy(b3_hbm, b3_buf, dma_sems.at[0])
    cp4 = pltpu.make_async_copy(b4_hbm, b4_buf, dma_sems.at[1])
    cp3.start()
    cp4.start()

    # layer 1: ConvT(i_dim -> 128, k4 s1 p0) + BN + ReLU      (1x1 -> 4x4)
    acc = _conv_layer(z_ref[...], b1_ref[...], s1_ref, y_ref, cb=512)
    act1_ref[...] = _bn_relu(acc, aff1_ref[0:1, :], aff1_ref[1:2, :],
                             w=4, c=128, count=n * 4 * 4)

    # layer 2: ConvT(128 -> 64, k4 s2 p1) + BN + ReLU         (4x4 -> 8x8)
    acc = _conv_layer(act1_ref[...], b2_ref[...], s2_ref, y_ref, cb=512)
    act2_ref[...] = _bn_relu(acc, aff2_ref[0:1, :], aff2_ref[1:2, :],
                             w=8, c=64, count=n * 8 * 8)

    # layer 3: ConvT(64 -> 32, k4 s2 p1) + BN + ReLU          (8x8 -> 16x16)
    cp3.wait()
    acc = _conv_layer(act2_ref[...], b3_buf[...], s3_ref, y_ref, cb=512)
    act3_ref[...] = _bn_relu(acc, aff3_ref[0:1, :], aff3_ref[1:2, :],
                             w=16, c=32, count=n * 16 * 16)

    # layer 4: ConvT(32 -> 1, k2 s2 p2) + Tanh                 (16x16 -> 28x28)
    cp4.wait()
    acc = _conv_layer(act3_ref[...], b4_buf[...], s4_ref, y_ref, cb=128)
    # rows are batch-major (n, oy); one full-block tanh + store.
    out_ref[...] = jnp.tanh(acc[:, :28] + bias4_ref[...])


# ---------------------- host-side one-time weight repack --------------------

def _wide_mixer(w, w_in, w_out, stride, pad):
    """ConvTranspose2d weight (Ci, Co, K, K) -> (W_in*Ci, K*cb) bf16 where
    column block ky holds the block-banded W-direction mixer:
    B[ix*Ci+ci, ky*cb + ox*Co + co] = w[ci, co, ky, kx], ox = ix*stride-pad+kx.
    cb is W_out*Co rounded up to a lane multiple (128)."""
    w = np.asarray(w, np.float32)
    ci, co, k, _ = w.shape
    cb = -(-(w_out * co) // 128) * 128
    b = np.zeros((w_in * ci, k * cb), np.float32)
    for ky in range(k):
        for ix in range(w_in):
            for kx in range(k):
                ox = ix * stride - pad + kx
                if 0 <= ox < w_out:
                    b[ix * ci:(ix + 1) * ci,
                      ky * cb + ox * co: ky * cb + (ox + 1) * co] = w[:, :, ky, kx]
    return jnp.asarray(b, jnp.bfloat16)


def _tile_lanes(v, w_out):
    """(Co,) per-channel vector -> (1, W_out*Co) row tiled over spatial W."""
    return np.tile(np.asarray(v, np.float32), w_out)[None, :]


def _row_scatter(k, stride, pad, h_in, h_out, n, batch_major=False):
    """0/1 row-scatter tensors S (K, rows_out, h_in*n):
    S[ky, r, iy*n + b] = 1 iff oy = iy*stride - pad + ky is in range and
    r = oy*n + b  (or r = b*h_out + oy when batch_major)."""
    s = np.zeros((k, h_out * n, h_in * n), np.float32)
    for ky in range(k):
        for iy in range(h_in):
            oy = iy * stride - pad + ky
            if 0 <= oy < h_out:
                for b in range(n):
                    r = b * h_out + oy if batch_major else oy * n + b
                    s[ky, r, iy * n + b] = 1.0
    return jnp.asarray(s, jnp.float32)


def pack_generator_params(params):
    """One-time repack of PyTorch-layout parameters into kernel operands."""
    cfg = [  # (K, stride, pad, W_in, W_out)  -- H == W everywhere
        (4, 1, 0, 1, 4),
        (4, 2, 1, 4, 8),
        (4, 2, 1, 8, 16),
        (2, 2, 2, 16, 28),
    ]
    packed = {}
    for i, (k, s, p, w_in, w_out) in enumerate(cfg, start=1):
        packed[f"B{i}"] = _wide_mixer(params[f"w{i}"], w_in, w_out, s, p)
        if i <= 3:
            # Conv bias is dropped for layers 1-3: train-mode BatchNorm mean
            # subtraction cancels it exactly.  rows = [gamma_t, beta_t].
            aff = np.concatenate([_tile_lanes(params[f"g{i}"], w_out),
                                  _tile_lanes(params[f"beta{i}"], w_out)],
                                 axis=0)
            packed[f"aff{i}"] = jnp.asarray(aff, jnp.float32)   # (2, W*Co)
        else:
            packed["bias4"] = jnp.asarray(_tile_lanes(params["b4"], w_out),
                                          jnp.float32)          # (1, 28)
    return packed


# --------------------------------- forward ---------------------------------

def generator_forward(z, packed):
    """z: (N, i_dim, 1, 1) f32 -> (N, 1, 28, 28) f32 in [-1, 1]."""
    n = z.shape[0]
    z2d = z.reshape(n, -1).astype(jnp.bfloat16)

    # Tiny host-built 0/1 row-scatter tensors (depend only on n).
    s1 = _row_scatter(4, 1, 0, 1, 4, n)
    s2 = _row_scatter(4, 2, 1, 4, 8, n)
    s3 = _row_scatter(4, 2, 1, 8, 16, n)
    s4 = _row_scatter(2, 2, 2, 16, 28, n, batch_major=True)

    vmem = pl.BlockSpec(memory_space=pltpu.MemorySpace.VMEM)
    hbm = pl.BlockSpec(memory_space=pl.ANY)
    y_cols = max(packed[f"B{i}"].shape[1] for i in (1, 2, 3, 4))

    out2d = pl.pallas_call(
        _generator_kernel,
        out_shape=jax.ShapeDtypeStruct((28 * n, 28), jnp.float32),
        in_specs=[vmem, vmem, vmem, hbm, hbm,
                  vmem, vmem, vmem, vmem,
                  vmem, vmem, vmem, vmem],
        out_specs=vmem,
        scratch_shapes=[
            pltpu.VMEM(packed["B3"].shape, jnp.bfloat16),   # layer-3 weight buf
            pltpu.VMEM(packed["B4"].shape, jnp.bfloat16),   # layer-4 weight buf
            pltpu.VMEM((16 * n, y_cols), jnp.float32),      # wide matmul results
            pltpu.VMEM((4 * n, 512), jnp.bfloat16),         # post-ReLU act 1
            pltpu.VMEM((8 * n, 512), jnp.bfloat16),         # post-ReLU act 2
            pltpu.VMEM((16 * n, 512), jnp.bfloat16),        # post-ReLU act 3
            pltpu.SemaphoreType.DMA((2,)),
        ],
        compiler_params=pltpu.CompilerParams(
            vmem_limit_bytes=32 * 1024 * 1024),
    )(z2d,
      packed["B1"], packed["B2"], packed["B3"], packed["B4"],
      s1, s2, s3, s4,
      packed["aff1"], packed["aff2"], packed["aff3"], packed["bias4"])

    # rows are already batch-major (n, oy); only a reshape back to NCHW.
    return out2d.reshape(n, 1, 28, 28)


# ------------------------------ synthetic params ----------------------------

def init_params(key, i_dim):
    """Deterministic synthetic parameters matching the module's shapes."""
    specs = [  # (Ci, Co, K) for the four ConvTranspose2d layers
        (i_dim, 128, 4),
        (128, 64, 4),
        (64, 32, 4),
        (32, 1, 2),
    ]
    params = {}
    keys = jax.random.split(key, 16)
    k = 0
    for i, (ci, co, kk) in enumerate(specs, start=1):
        params[f"w{i}"] = 0.05 * jax.random.normal(
            keys[k], (ci, co, kk, kk), jnp.float32); k += 1
        params[f"b{i}"] = 0.05 * jax.random.normal(
            keys[k], (co,), jnp.float32); k += 1
        if i <= 3:  # BatchNorm affine params for the first three layers
            params[f"g{i}"] = 1.0 + 0.05 * jax.random.normal(
                keys[k], (co,), jnp.float32); k += 1
            params[f"beta{i}"] = 0.05 * jax.random.normal(
                keys[k], (co,), jnp.float32); k += 1
    return params


if __name__ == "__main__":
    # Small but shape-consistent config: z_dim=20, cc_dim=2, dc_dim=10 -> i_dim=32
    N, z_dim, cc_dim, dc_dim = 2, 20, 2, 10
    i_dim = z_dim + cc_dim + dc_dim

    key = jax.random.PRNGKey(0)
    kz, kp = jax.random.split(key)
    z = jax.random.normal(kz, (N, i_dim, 1, 1), jnp.float32)
    params = init_params(kp, i_dim)
    packed = pack_generator_params(params)      # one-time host-side repack

    out = jax.jit(generator_forward)(z, packed)
    out = jax.block_until_ready(out)

    assert out.shape == (N, 1, 28, 28), out.shape
    assert bool(jnp.all(jnp.isfinite(out)))
    assert bool(jnp.all(jnp.abs(out) <= 1.0 + 1e-6))
    print("KERNEL_OK")
</pallas_src>

<mosaic_0001>
module attributes {stable_mosaic.version = 11 : i64} {
  func.func @_generator_kernel(%arg0: memref<2x32xbf16, #tpu.memory_space<vmem>>, %arg1: memref<32x2048xbf16, #tpu.memory_space<vmem>>, %arg2: memref<512x2048xbf16, #tpu.memory_space<vmem>>, %arg3: memref<512x2048xbf16, #tpu.memory_space<any>>, %arg4: memref<512x256xbf16, #tpu.memory_space<any>>, %arg5: memref<4x8x2xf32, #tpu.memory_space<vmem>>, %arg6: memref<4x16x8xf32, #tpu.memory_space<vmem>>, %arg7: memref<4x32x16xf32, #tpu.memory_space<vmem>>, %arg8: memref<2x56x32xf32, #tpu.memory_space<vmem>>, %arg9: memref<2x512xf32, #tpu.memory_space<vmem>>, %arg10: memref<2x512xf32, #tpu.memory_space<vmem>>, %arg11: memref<2x512xf32, #tpu.memory_space<vmem>>, %arg12: memref<1x28xf32, #tpu.memory_space<vmem>>, %arg13: memref<56x28xf32, #tpu.memory_space<vmem>>, %arg14: memref<512x2048xbf16, #tpu.memory_space<vmem>>, %arg15: memref<512x256xbf16, #tpu.memory_space<vmem>>, %arg16: memref<32x2048xf32, #tpu.memory_space<vmem>>, %arg17: memref<8x512xbf16, #tpu.memory_space<vmem>>, %arg18: memref<16x512xbf16, #tpu.memory_space<vmem>>, %arg19: memref<32x512xbf16, #tpu.memory_space<vmem>>, %arg20: memref<2x!tpu.dma_semaphore, #tpu.memory_space<semaphore_mem>>) attributes {dimension_semantics = [], scalar_prefetch = 0 : i64, scratch_operands = 7 : i64, tpu.core_type = #tpu.core_type<tc>} {
    %c0_i32 = arith.constant 0 : i32
    %0 = tpu.memref_slice %arg20[%c0_i32] : memref<2x!tpu.dma_semaphore, #tpu.memory_space<semaphore_mem>> -> memref<1x!tpu.dma_semaphore, #tpu.memory_space<semaphore_mem>>
    %1 = tpu.memref_squeeze %0 : memref<1x!tpu.dma_semaphore, #tpu.memory_space<semaphore_mem>> -> memref<!tpu.dma_semaphore, #tpu.memory_space<semaphore_mem>>
    tpu.enqueue_dma source(%arg3 : memref<512x2048xbf16, #tpu.memory_space<any>>) target(%arg14 : memref<512x2048xbf16, #tpu.memory_space<vmem>>) target_semaphore(%1 : memref<!tpu.dma_semaphore, #tpu.memory_space<semaphore_mem>>)
    %c1_i32 = arith.constant 1 : i32
    %2 = tpu.memref_slice %arg20[%c1_i32] : memref<2x!tpu.dma_semaphore, #tpu.memory_space<semaphore_mem>> -> memref<1x!tpu.dma_semaphore, #tpu.memory_space<semaphore_mem>>
    %3 = tpu.memref_squeeze %2 : memref<1x!tpu.dma_semaphore, #tpu.memory_space<semaphore_mem>> -> memref<!tpu.dma_semaphore, #tpu.memory_space<semaphore_mem>>
    tpu.enqueue_dma source(%arg4 : memref<512x256xbf16, #tpu.memory_space<any>>) target(%arg15 : memref<512x256xbf16, #tpu.memory_space<vmem>>) target_semaphore(%3 : memref<!tpu.dma_semaphore, #tpu.memory_space<semaphore_mem>>)
    %c0 = arith.constant 0 : index
    %c0_0 = arith.constant 0 : index
    %4 = vector.load %arg0[%c0, %c0_0] : memref<2x32xbf16, #tpu.memory_space<vmem>>, vector<2x32xbf16>
    %c0_1 = arith.constant 0 : index
    %c0_2 = arith.constant 0 : index
    %5 = vector.load %arg1[%c0_1, %c0_2] : memref<32x2048xbf16, #tpu.memory_space<vmem>>, vector<32x2048xbf16>
    %cst = arith.constant dense<0.000000e+00> : vector<2x2048xf32>
    %6 = tpu.matmul %4, %5, %cst {dimension_numbers = #tpu.dot_dimension_numbers<[1], [0], [0], [1], [0, 0, 1, 1], [], []>} : vector<2x32xbf16>, vector<32x2048xbf16>, vector<2x2048xf32> -> vector<2x2048xf32>
    %c0_3 = arith.constant 0 : index
    %c0_4 = arith.constant 0 : index
    %7 = vector.load %arg16[%c0_3, %c0_4] : memref<32x2048xf32, #tpu.memory_space<vmem>>, vector<2x2048xf32>
    tpu.vector_store %arg16[%c0_3, %c0_4], %6 {strides = array<i32>} : memref<32x2048xf32, #tpu.memory_space<vmem>>, vector<2x2048xf32>,
    %cst_5 = arith.constant 0.000000e+00 : f32
    %8 = vector.broadcast %cst_5 : f32 to vector<8x512xf32>
    %c0_6 = arith.constant 0 : index
    %c0_7 = arith.constant 0 : index
    %9 = vector.load %arg16[%c0_6, %c0_7] : memref<32x2048xf32, #tpu.memory_space<vmem>>, vector<2x512xf32>
    %c0_8 = arith.constant 0 : index
    %c0_9 = arith.constant 0 : index
    %c0_10 = arith.constant 0 : index
    %10 = vector.load %arg5[%c0_8, %c0_9, %c0_10] : memref<4x8x2xf32, #tpu.memory_space<vmem>>, vector<1x8x2xf32>
    %11 = vector.shape_cast %10 : vector<1x8x2xf32> to vector<8x2xf32>
    %cst_11 = arith.constant dense<0.000000e+00> : vector<8x512xf32>
    %12 = tpu.matmul %11, %9, %cst_11 {dimension_numbers = #tpu.dot_dimension_numbers<[1], [0], [0], [1], [0, 0, 1, 1], [], []>} : vector<8x2xf32>, vector<2x512xf32>, vector<8x512xf32> -> vector<8x512xf32>
    %13 = arith.addf %8, %12 : vector<8x512xf32>
    %c0_12 = arith.constant 0 : index
    %c512 = arith.constant 512 : index
    %14 = vector.load %arg16[%c0_12, %c512] : memref<32x2048xf32, #tpu.memory_space<vmem>>, vector<2x512xf32>
    %c1 = arith.constant 1 : index
    %c0_13 = arith.constant 0 : index
    %c0_14 = arith.constant 0 : index
    %15 = vector.load %arg5[%c1, %c0_13, %c0_14] : memref<4x8x2xf32, #tpu.memory_space<vmem>>, vector<1x8x2xf32>
    %16 = vector.shape_cast %15 : vector<1x8x2xf32> to vector<8x2xf32>
    %cst_15 = arith.constant dense<0.000000e+00> : vector<8x512xf32>
    %17 = tpu.matmul %16, %14, %cst_15 {dimension_numbers = #tpu.dot_dimension_numbers<[1], [0], [0], [1], [0, 0, 1, 1], [], []>} : vector<8x2xf32>, vector<2x512xf32>, vector<8x512xf32> -> vector<8x512xf32>
    %18 = arith.addf %13, %17 : vector<8x512xf32>
    %c0_16 = arith.constant 0 : index
    %c1024 = arith.constant 1024 : index
    %19 = vector.load %arg16[%c0_16, %c1024] : memref<32x2048xf32, #tpu.memory_space<vmem>>, vector<2x512xf32>
    %c2 = arith.constant 2 : index
    %c0_17 = arith.constant 0 : index
    %c0_18 = arith.constant 0 : index
    %20 = vector.load %arg5[%c2, %c0_17, %c0_18] : memref<4x8x2xf32, #tpu.memory_space<vmem>>, vector<1x8x2xf32>
    %21 = vector.shape_cast %20 : vector<1x8x2xf32> to vector<8x2xf32>
    %cst_19 = arith.constant dense<0.000000e+00> : vector<8x512xf32>
    %22 = tpu.matmul %21, %19, %cst_19 {dimension_numbers = #tpu.dot_dimension_numbers<[1], [0], [0], [1], [0, 0, 1, 1], [], []>} : vector<8x2xf32>, vector<2x512xf32>, vector<8x512xf32> -> vector<8x512xf32>
    %23 = arith.addf %18, %22 : vector<8x512xf32>
    %c0_20 = arith.constant 0 : index
    %c1536 = arith.constant 1536 : index
    %24 = vector.load %arg16[%c0_20, %c1536] : memref<32x2048xf32, #tpu.memory_space<vmem>>, vector<2x512xf32>
    %c3 = arith.constant 3 : index
    %c0_21 = arith.constant 0 : index
    %c0_22 = arith.constant 0 : index
    %25 = vector.load %arg5[%c3, %c0_21, %c0_22] : memref<4x8x2xf32, #tpu.memory_space<vmem>>, vector<1x8x2xf32>
    %26 = vector.shape_cast %25 : vector<1x8x2xf32> to vector<8x2xf32>
    %cst_23 = arith.constant dense<0.000000e+00> : vector<8x512xf32>
    %27 = tpu.matmul %26, %24, %cst_23 {dimension_numbers = #tpu.dot_dimension_numbers<[1], [0], [0], [1], [0, 0, 1, 1], [], []>} : vector<8x2xf32>, vector<2x512xf32>, vector<8x512xf32> -> vector<8x512xf32>
    %28 = arith.addf %23, %27 : vector<8x512xf32>
    %c0_24 = arith.constant 0 : index
    %c0_25 = arith.constant 0 : index
    %29 = vector.load %arg9[%c0_24, %c0_25] : memref<2x512xf32, #tpu.memory_space<vmem>>, vector<1x512xf32>
    %c1_26 = arith.constant 1 : index
    %c0_27 = arith.constant 0 : index
    %30 = vector.load %arg9[%c1_26, %c0_27] : memref<2x512xf32, #tpu.memory_space<vmem>>, vector<1x512xf32>
    %cst_28 = arith.constant dense<0.000000e+00> : vector<512xf32>
    %31 = vector.multi_reduction <add>, %28, %cst_28 [0] : vector<8x512xf32> to vector<512xf32>
    %32 = vector.shape_cast %31 : vector<512xf32> to vector<1x512xf32>
    %33 = arith.mulf %28, %28 : vector<8x512xf32>
    %cst_29 = arith.constant dense<0.000000e+00> : vector<512xf32>
    %34 = vector.multi_reduction <add>, %33, %cst_29 [0] : vector<8x512xf32> to vector<512xf32>
    %35 = vector.shape_cast %34 : vector<512xf32> to vector<1x512xf32>
    %c128_i32 = arith.constant 128 : i32
    %36 = tpu.dynamic_rotate %32 by %c128_i32 dim 1 : vector<1x512xf32>, i32 -> vector<1x512xf32>
    %37 = arith.addf %32, %36 : vector<1x512xf32>
    %c128_i32_30 = arith.constant 128 : i32
    %38 = tpu.dynamic_rotate %35 by %c128_i32_30 dim 1 : vector<1x512xf32>, i32 -> vector<1x512xf32>
    %39 = arith.addf %35, %38 : vector<1x512xf32>
    %c256_i32 = arith.constant 256 : i32
    %40 = tpu.dynamic_rotate %37 by %c256_i32 dim 1 : vector<1x512xf32>, i32 -> vector<1x512xf32>
    %41 = arith.addf %37, %40 : vector<1x512xf32>
    %c256_i32_31 = arith.constant 256 : i32
    %42 = tpu.dynamic_rotate %39 by %c256_i32_31 dim 1 : vector<1x512xf32>, i32 -> vector<1x512xf32>
    %43 = arith.addf %39, %42 : vector<1x512xf32>
    %cst_32 = arith.constant 3.125000e-02 : f32
    %44 = vector.broadcast %cst_32 : f32 to vector<1x512xf32>
    %45 = arith.mulf %41, %44 : vector<1x512xf32>
    %cst_33 = arith.constant 3.125000e-02 : f32
    %46 = vector.broadcast %cst_33 : f32 to vector<1x512xf32>
    %47 = arith.mulf %43, %46 : vector<1x512xf32>
    %48 = arith.mulf %45, %45 : vector<1x512xf32>
    %49 = arith.subf %47, %48 : vector<1x512xf32>
    %cst_34 = arith.constant 9.99999974E-6 : f32
    %50 = vector.broadcast %cst_34 : f32 to vector<1x512xf32>
    %51 = arith.addf %49, %50 : vector<1x512xf32>
    %52 = math.rsqrt %51 : vector<1x512xf32>
    %53 = arith.mulf %29, %52 : vector<1x512xf32>
    %54 = arith.mulf %45, %53 : vector<1x512xf32>
    %55 = arith.subf %30, %54 : vector<1x512xf32>
    %56 = vector.broadcast %53 : vector<1x512xf32> to vector<8x512xf32>
    %57 = arith.mulf %28, %56 : vector<8x512xf32>
    %58 = vector.broadcast %55 : vector<1x512xf32> to vector<8x512xf32>
    %59 = arith.addf %57, %58 : vector<8x512xf32>
    %cst_35 = arith.constant 0.000000e+00 : f32
    %60 = vector.broadcast %cst_35 : f32 to vector<8x512xf32>
    %61 = arith.maximumf %59, %60 : vector<8x512xf32>
    %62 = arith.truncf %61 : vector<8x512xf32> to vector<8x512xbf16>
    %c0_36 = arith.constant 0 : index
    %c0_37 = arith.constant 0 : index
    %63 = vector.load %arg17[%c0_36, %c0_37] : memref<8x512xbf16, #tpu.memory_space<vmem>>, vector<8x512xbf16>
    tpu.vector_store %arg17[%c0_36, %c0_37], %62 {strides = array<i32>} : memref<8x512xbf16, #tpu.memory_space<vmem>>, vector<8x512xbf16>,
    %c0_38 = arith.constant 0 : index
    %c0_39 = arith.constant 0 : index
    %64 = vector.load %arg17[%c0_38, %c0_39] : memref<8x512xbf16, #tpu.memory_space<vmem>>, vector<8x512xbf16>
    %c0_40 = arith.constant 0 : index
    %c0_41 = arith.constant 0 : index
    %65 = vector.load %arg2[%c0_40, %c0_41] : memref<512x2048xbf16, #tpu.memory_space<vmem>>, vector<512x2048xbf16>
    %cst_42 = arith.constant dense<0.000000e+00> : vector<8x2048xf32>
    %66 = tpu.matmul %64, %65, %cst_42 {dimension_numbers = #tpu.dot_dimension_numbers<[1], [0], [0], [1], [0, 0, 1, 1], [], []>} : vector<8x512xbf16>, vector<512x2048xbf16>, vector<8x2048xf32> -> vector<8x2048xf32>
    %c0_43 = arith.constant 0 : index
    %c0_44 = arith.constant 0 : index
    %67 = vector.load %arg16[%c0_43, %c0_44] : memref<32x2048xf32, #tpu.memory_space<vmem>>, vector<8x2048xf32>
    tpu.vector_store %arg16[%c0_43, %c0_44], %66 {strides = array<i32>} : memref<32x2048xf32, #tpu.memory_space<vmem>>, vector<8x2048xf32>,
    %cst_45 = arith.constant 0.000000e+00 : f32
    %68 = vector.broadcast %cst_45 : f32 to vector<16x512xf32>
    %c0_46 = arith.constant 0 : index
    %c0_47 = arith.constant 0 : index
    %69 = vector.load %arg16[%c0_46, %c0_47] : memref<32x2048xf32, #tpu.memory_space<vmem>>, vector<8x512xf32>
    %c0_48 = arith.constant 0 : index
    %c0_49 = arith.constant 0 : index
    %c0_50 = arith.constant 0 : index
    %70 = vector.load %arg6[%c0_48, %c0_49, %c0_50] : memref<4x16x8xf32, #tpu.memory_space<vmem>>, vector<1x16x8xf32>
    %71 = vector.shape_cast %70 : vector<1x16x8xf32> to vector<16x8xf32>
    %cst_51 = arith.constant dense<0.000000e+00> : vector<16x512xf32>
    %72 = tpu.matmul %71, %69, %cst_51 {dimension_numbers = #tpu.dot_dimension_numbers<[1], [0], [0], [1], [0, 0, 1, 1], [], []>} : vector<16x8xf32>, vector<8x512xf32>, vector<16x512xf32> -> vector<16x512xf32>
    %73 = arith.addf %68, %72 : vector<16x512xf32>
    %c0_52 = arith.constant 0 : index
    %c512_53 = arith.constant 512 : index
    %74 = vector.load %arg16[%c0_52, %c512_53] : memref<32x2048xf32, #tpu.memory_space<vmem>>, vector<8x512xf32>
    %c1_54 = arith.constant 1 : index
    %c0_55 = arith.constant 0 : index
    %c0_56 = arith.constant 0 : index
    %75 = vector.load %arg6[%c1_54, %c0_55, %c0_56] : memref<4x16x8xf32, #tpu.memory_space<vmem>>, vector<1x16x8xf32>
    %76 = vector.shape_cast %75 : vector<1x16x8xf32> to vector<16x8xf32>
    %cst_57 = arith.constant dense<0.000000e+00> : vector<16x512xf32>
    %77 = tpu.matmul %76, %74, %cst_57 {dimension_numbers = #tpu.dot_dimension_numbers<[1], [0], [0], [1], [0, 0, 1, 1], [], []>} : vector<16x8xf32>, vector<8x512xf32>, vector<16x512xf32> -> vector<16x512xf32>
    %78 = arith.addf %73, %77 : vector<16x512xf32>
    %c0_58 = arith.constant 0 : index
    %c1024_59 = arith.constant 1024 : index
    %79 = vector.load %arg16[%c0_58, %c1024_59] : memref<32x2048xf32, #tpu.memory_space<vmem>>, vector<8x512xf32>
    %c2_60 = arith.constant 2 : index
    %c0_61 = arith.constant 0 : index
    %c0_62 = arith.constant 0 : index
    %80 = vector.load %arg6[%c2_60, %c0_61, %c0_62] : memref<4x16x8xf32, #tpu.memory_space<vmem>>, vector<1x16x8xf32>
    %81 = vector.shape_cast %80 : vector<1x16x8xf32> to vector<16x8xf32>
    %cst_63 = arith.constant dense<0.000000e+00> : vector<16x512xf32>
    %82 = tpu.matmul %81, %79, %cst_63 {dimension_numbers = #tpu.dot_dimension_numbers<[1], [0], [0], [1], [0, 0, 1, 1], [], []>} : vector<16x8xf32>, vector<8x512xf32>, vector<16x512xf32> -> vector<16x512xf32>
    %83 = arith.addf %78, %82 : vector<16x512xf32>
    %c0_64 = arith.constant 0 : index
    %c1536_65 = arith.constant 1536 : index
    %84 = vector.load %arg16[%c0_64, %c1536_65] : memref<32x2048xf32, #tpu.memory_space<vmem>>, vector<8x512xf32>
    %c3_66 = arith.constant 3 : index
    %c0_67 = arith.constant 0 : index
    %c0_68 = arith.constant 0 : index
    %85 = vector.load %arg6[%c3_66, %c0_67, %c0_68] : memref<4x16x8xf32, #tpu.memory_space<vmem>>, vector<1x16x8xf32>
    %86 = vector.shape_cast %85 : vector<1x16x8xf32> to vector<16x8xf32>
    %cst_69 = arith.constant dense<0.000000e+00> : vector<16x512xf32>
    %87 = tpu.matmul %86, %84, %cst_69 {dimension_numbers = #tpu.dot_dimension_numbers<[1], [0], [0], [1], [0, 0, 1, 1], [], []>} : vector<16x8xf32>, vector<8x512xf32>, vector<16x512xf32> -> vector<16x512xf32>
    %88 = arith.addf %83, %87 : vector<16x512xf32>
    %c0_70 = arith.constant 0 : index
    %c0_71 = arith.constant 0 : index
    %89 = vector.load %arg10[%c0_70, %c0_71] : memref<2x512xf32, #tpu.memory_space<vmem>>, vector<1x512xf32>
    %c1_72 = arith.constant 1 : index
    %c0_73 = arith.constant 0 : index
    %90 = vector.load %arg10[%c1_72, %c0_73] : memref<2x512xf32, #tpu.memory_space<vmem>>, vector<1x512xf32>
    %cst_74 = arith.constant dense<0.000000e+00> : vector<512xf32>
    %91 = vector.multi_reduction <add>, %88, %cst_74 [0] : vector<16x512xf32> to vector<512xf32>
    %92 = vector.shape_cast %91 : vector<512xf32> to vector<1x512xf32>
    %93 = arith.mulf %88, %88 : vector<16x512xf32>
    %cst_75 = arith.constant dense<0.000000e+00> : vector<512xf32>
    %94 = vector.multi_reduction <add>, %93, %cst_75 [0] : vector<16x512xf32> to vector<512xf32>
    %95 = vector.shape_cast %94 : vector<512xf32> to vector<1x512xf32>
    %c64_i32 = arith.constant 64 : i32
    %96 = tpu.dynamic_rotate %92 by %c64_i32 dim 1 : vector<1x512xf32>, i32 -> vector<1x512xf32>
    %97 = arith.addf %92, %96 : vector<1x512xf32>
    %c64_i32_76 = arith.constant 64 : i32
    %98 = tpu.dynamic_rotate %95 by %c64_i32_76 dim 1 : vector<1x512xf32>, i32 -> vector<1x512xf32>
    %99 = arith.addf %95, %98 : vector<1x512xf32>
    %c128_i32_77 = arith.constant 128 : i32
    %100 = tpu.dynamic_rotate %97 by %c128_i32_77 dim 1 : vector<1x512xf32>, i32 -> vector<1x512xf32>
    %101 = arith.addf %97, %100 : vector<1x512xf32>
    %c128_i32_78 = arith.constant 128 : i32
    %102 = tpu.dynamic_rotate %99 by %c128_i32_78 dim 1 : vector<1x512xf32>, i32 -> vector<1x512xf32>
    %103 = arith.addf %99, %102 : vector<1x512xf32>
    %c256_i32_79 = arith.constant 256 : i32
    %104 = tpu.dynamic_rotate %101 by %c256_i32_79 dim 1 : vector<1x512xf32>, i32 -> vector<1x512xf32>
    %105 = arith.addf %101, %104 : vector<1x512xf32>
    %c256_i32_80 = arith.constant 256 : i32
    %106 = tpu.dynamic_rotate %103 by %c256_i32_80 dim 1 : vector<1x512xf32>, i32 -> vector<1x512xf32>
    %107 = arith.addf %103, %106 : vector<1x512xf32>
    %cst_81 = arith.constant 7.812500e-03 : f32
    %108 = vector.broadcast %cst_81 : f32 to vector<1x512xf32>
    %109 = arith.mulf %105, %108 : vector<1x512xf32>
    %cst_82 = arith.constant 7.812500e-03 : f32
    %110 = vector.broadcast %cst_82 : f32 to vector<1x512xf32>
    %111 = arith.mulf %107, %110 : vector<1x512xf32>
    %112 = arith.mulf %109, %109 : vector<1x512xf32>
    %113 = arith.subf %111, %112 : vector<1x512xf32>
    %cst_83 = arith.constant 9.99999974E-6 : f32
    %114 = vector.broadcast %cst_83 : f32 to vector<1x512xf32>
    %115 = arith.addf %113, %114 : vector<1x512xf32>
    %116 = math.rsqrt %115 : vector<1x512xf32>
    %117 = arith.mulf %89, %116 : vector<1x512xf32>
    %118 = arith.mulf %109, %117 : vector<1x512xf32>
    %119 = arith.subf %90, %118 : vector<1x512xf32>
    %120 = vector.broadcast %117 : vector<1x512xf32> to vector<16x512xf32>
    %121 = arith.mulf %88, %120 : vector<16x512xf32>
    %122 = vector.broadcast %119 : vector<1x512xf32> to vector<16x512xf32>
    %123 = arith.addf %121, %122 : vector<16x512xf32>
    %cst_84 = arith.constant 0.000000e+00 : f32
    %124 = vector.broadcast %cst_84 : f32 to vector<16x512xf32>
    %125 = arith.maximumf %123, %124 : vector<16x512xf32>
    %126 = arith.truncf %125 : vector<16x512xf32> to vector<16x512xbf16>
    %c0_85 = arith.constant 0 : index
    %c0_86 = arith.constant 0 : index
    %127 = vector.load %arg18[%c0_85, %c0_86] : memref<16x512xbf16, #tpu.memory_space<vmem>>, vector<16x512xbf16>
    tpu.vector_store %arg18[%c0_85, %c0_86], %126 {strides = array<i32>} : memref<16x512xbf16, #tpu.memory_space<vmem>>, vector<16x512xbf16>,
    %c0_i32_87 = arith.constant 0 : i32
    %128 = tpu.memref_slice %arg20[%c0_i32_87] : memref<2x!tpu.dma_semaphore, #tpu.memory_space<semaphore_mem>> -> memref<1x!tpu.dma_semaphore, #tpu.memory_space<semaphore_mem>>
    %129 = tpu.memref_squeeze %128 : memref<1x!tpu.dma_semaphore, #tpu.memory_space<semaphore_mem>> -> memref<!tpu.dma_semaphore, #tpu.memory_space<semaphore_mem>>
    tpu.wait_dma2 semaphore(%129 : memref<!tpu.dma_semaphore, #tpu.memory_space<semaphore_mem>>) src(%arg3 : memref<512x2048xbf16, #tpu.memory_space<any>>) dst(%arg14 : memref<512x2048xbf16, #tpu.memory_space<vmem>>)
    %c0_88 = arith.constant 0 : index
    %c0_89 = arith.constant 0 : index
    %130 = vector.load %arg18[%c0_88, %c0_89] : memref<16x512xbf16, #tpu.memory_space<vmem>>, vector<16x512xbf16>
    %c0_90 = arith.constant 0 : index
    %c0_91 = arith.constant 0 : index
    %131 = vector.load %arg14[%c0_90, %c0_91] : memref<512x2048xbf16, #tpu.memory_space<vmem>>, vector<512x2048xbf16>
    %cst_92 = arith.constant dense<0.000000e+00> : vector<16x2048xf32>
    %132 = tpu.matmul %130, %131, %cst_92 {dimension_numbers = #tpu.dot_dimension_numbers<[1], [0], [0], [1], [0, 0, 1, 1], [], []>} : vector<16x512xbf16>, vector<512x2048xbf16>, vector<16x2048xf32> -> vector<16x2048xf32>
    %c0_93 = arith.constant 0 : index
    %c0_94 = arith.constant 0 : index
    %133 = vector.load %arg16[%c0_93, %c0_94] : memref<32x2048xf32, #tpu.memory_space<vmem>>, vector<16x2048xf32>
    tpu.vector_store %arg16[%c0_93, %c0_94], %132 {strides = array<i32>} : memref<32x2048xf32, #tpu.memory_space<vmem>>, vector<16x2048xf32>,
    %cst_95 = arith.constant 0.000000e+00 : f32
    %134 = vector.broadcast %cst_95 : f32 to vector<32x512xf32>
    %c0_96 = arith.constant 0 : index
    %c0_97 = arith.constant 0 : index
    %135 = vector.load %arg16[%c0_96, %c0_97] : memref<32x2048xf32, #tpu.memory_space<vmem>>, vector<16x512xf32>
    %c0_98 = arith.constant 0 : index
    %c0_99 = arith.constant 0 : index
    %c0_100 = arith.constant 0 : index
    %136 = vector.load %arg7[%c0_98, %c0_99, %c0_100] : memref<4x32x16xf32, #tpu.memory_space<vmem>>, vector<1x32x16xf32>
    %137 = vector.shape_cast %136 : vector<1x32x16xf32> to vector<32x16xf32>
    %cst_101 = arith.constant dense<0.000000e+00> : vector<32x512xf32>
    %138 = tpu.matmul %137, %135, %cst_101 {dimension_numbers = #tpu.dot_dimension_numbers<[1], [0], [0], [1], [0, 0, 1, 1], [], []>} : vector<32x16xf32>, vector<16x512xf32>, vector<32x512xf32> -> vector<32x512xf32>
    %139 = arith.addf %134, %138 : vector<32x512xf32>
    %c0_102 = arith.constant 0 : index
    %c512_103 = arith.constant 512 : index
    %140 = vector.load %arg16[%c0_102, %c512_103] : memref<32x2048xf32, #tpu.memory_space<vmem>>, vector<16x512xf32>
    %c1_104 = arith.constant 1 : index
    %c0_105 = arith.constant 0 : index
    %c0_106 = arith.constant 0 : index
    %141 = vector.load %arg7[%c1_104, %c0_105, %c0_106] : memref<4x32x16xf32, #tpu.memory_space<vmem>>, vector<1x32x16xf32>
    %142 = vector.shape_cast %141 : vector<1x32x16xf32> to vector<32x16xf32>
    %cst_107 = arith.constant dense<0.000000e+00> : vector<32x512xf32>
    %143 = tpu.matmul %142, %140, %cst_107 {dimension_numbers = #tpu.dot_dimension_numbers<[1], [0], [0], [1], [0, 0, 1, 1], [], []>} : vector<32x16xf32>, vector<16x512xf32>, vector<32x512xf32> -> vector<32x512xf32>
    %144 = arith.addf %139, %143 : vector<32x512xf32>
    %c0_108 = arith.constant 0 : index
    %c1024_109 = arith.constant 1024 : index
    %145 = vector.load %arg16[%c0_108, %c1024_109] : memref<32x2048xf32, #tpu.memory_space<vmem>>, vector<16x512xf32>
    %c2_110 = arith.constant 2 : index
    %c0_111 = arith.constant 0 : index
    %c0_112 = arith.constant 0 : index
    %146 = vector.load %arg7[%c2_110, %c0_111, %c0_112] : memref<4x32x16xf32, #tpu.memory_space<vmem>>, vector<1x32x16xf32>
    %147 = vector.shape_cast %146 : vector<1x32x16xf32> to vector<32x16xf32>
    %cst_113 = arith.constant dense<0.000000e+00> : vector<32x512xf32>
    %148 = tpu.matmul %147, %145, %cst_113 {dimension_numbers = #tpu.dot_dimension_numbers<[1], [0], [0], [1], [0, 0, 1, 1], [], []>} : vector<32x16xf32>, vector<16x512xf32>, vector<32x512xf32> -> vector<32x512xf32>
    %149 = arith.addf %144, %148 : vector<32x512xf32>
    %c0_114 = arith.constant 0 : index
    %c1536_115 = arith.constant 1536 : index
    %150 = vector.load %arg16[%c0_114, %c1536_115] : memref<32x2048xf32, #tpu.memory_space<vmem>>, vector<16x512xf32>
    %c3_116 = arith.constant 3 : index
    %c0_117 = arith.constant 0 : index
    %c0_118 = arith.constant 0 : index
    %151 = vector.load %arg7[%c3_116, %c0_117, %c0_118] : memref<4x32x16xf32, #tpu.memory_space<vmem>>, vector<1x32x16xf32>
    %152 = vector.shape_cast %151 : vector<1x32x16xf32> to vector<32x16xf32>
    %cst_119 = arith.constant dense<0.000000e+00> : vector<32x512xf32>
    %153 = tpu.matmul %152, %150, %cst_119 {dimension_numbers = #tpu.dot_dimension_numbers<[1], [0], [0], [1], [0, 0, 1, 1], [], []>} : vector<32x16xf32>, vector<16x512xf32>, vector<32x512xf32> -> vector<32x512xf32>
    %154 = arith.addf %149, %153 : vector<32x512xf32>
    %c0_120 = arith.constant 0 : index
    %c0_121 = arith.constant 0 : index
    %155 = vector.load %arg11[%c0_120, %c0_121] : memref<2x512xf32, #tpu.memory_space<vmem>>, vector<1x512xf32>
    %c1_122 = arith.constant 1 : index
    %c0_123 = arith.constant 0 : index
    %156 = vector.load %arg11[%c1_122, %c0_123] : memref<2x512xf32, #tpu.memory_space<vmem>>, vector<1x512xf32>
    %cst_124 = arith.constant dense<0.000000e+00> : vector<512xf32>
    %157 = vector.multi_reduction <add>, %154, %cst_124 [0] : vector<32x512xf32> to vector<512xf32>
    %158 = vector.shape_cast %157 : vector<512xf32> to vector<1x512xf32>
    %159 = arith.mulf %154, %154 : vector<32x512xf32>
    %cst_125 = arith.constant dense<0.000000e+00> : vector<512xf32>
    %160 = vector.multi_reduction <add>, %159, %cst_125 [0] : vector<32x512xf32> to vector<512xf32>
    %161 = vector.shape_cast %160 : vector<512xf32> to vector<1x512xf32>
    %c32_i32 = arith.constant 32 : i32
    %162 = tpu.dynamic_rotate %158 by %c32_i32 dim 1 : vector<1x512xf32>, i32 -> vector<1x512xf32>
    %163 = arith.addf %158, %162 : vector<1x512xf32>
    %c32_i32_126 = arith.constant 32 : i32
    %164 = tpu.dynamic_rotate %161 by %c32_i32_126 dim 1 : vector<1x512xf32>, i32 -> vector<1x512xf32>
    %165 = arith.addf %161, %164 : vector<1x512xf32>
    %c64_i32_127 = arith.constant 64 : i32
    %166 = tpu.dynamic_rotate %163 by %c64_i32_127 dim 1 : vector<1x512xf32>, i32 -> vector<1x512xf32>
    %167 = arith.addf %163, %166 : vector<1x512xf32>
    %c64_i32_128 = arith.constant 64 : i32
    %168 = tpu.dynamic_rotate %165 by %c64_i32_128 dim 1 : vector<1x512xf32>, i32 -> vector<1x512xf32>
    %169 = arith.addf %165, %168 : vector<1x512xf32>
    %c128_i32_129 = arith.constant 128 : i32
    %170 = tpu.dynamic_rotate %167 by %c128_i32_129 dim 1 : vector<1x512xf32>, i32 -> vector<1x512xf32>
    %171 = arith.addf %167, %170 : vector<1x512xf32>
    %c128_i32_130 = arith.constant 128 : i32
    %172 = tpu.dynamic_rotate %169 by %c128_i32_130 dim 1 : vector<1x512xf32>, i32 -> vector<1x512xf32>
    %173 = arith.addf %169, %172 : vector<1x512xf32>
    %c256_i32_131 = arith.constant 256 : i32
    %174 = tpu.dynamic_rotate %171 by %c256_i32_131 dim 1 : vector<1x512xf32>, i32 -> vector<1x512xf32>
    %175 = arith.addf %171, %174 : vector<1x512xf32>
    %c256_i32_132 = arith.constant 256 : i32
    %176 = tpu.dynamic_rotate %173 by %c256_i32_132 dim 1 : vector<1x512xf32>, i32 -> vector<1x512xf32>
    %177 = arith.addf %173, %176 : vector<1x512xf32>
    %cst_133 = arith.constant 0.001953125 : f32
    %178 = vector.broadcast %cst_133 : f32 to vector<1x512xf32>
    %179 = arith.mulf %175, %178 : vector<1x512xf32>
    %cst_134 = arith.constant 0.001953125 : f32
    %180 = vector.broadcast %cst_134 : f32 to vector<1x512xf32>
    %181 = arith.mulf %177, %180 : vector<1x512xf32>
    %182 = arith.mulf %179, %179 : vector<1x512xf32>
    %183 = arith.subf %181, %182 : vector<1x512xf32>
    %cst_135 = arith.constant 9.99999974E-6 : f32
    %184 = vector.broadcast %cst_135 : f32 to vector<1x512xf32>
    %185 = arith.addf %183, %184 : vector<1x512xf32>
    %186 = math.rsqrt %185 : vector<1x512xf32>
    %187 = arith.mulf %155, %186 : vector<1x512xf32>
    %188 = arith.mulf %179, %187 : vector<1x512xf32>
    %189 = arith.subf %156, %188 : vector<1x512xf32>
    %190 = vector.broadcast %187 : vector<1x512xf32> to vector<32x512xf32>
    %191 = arith.mulf %154, %190 : vector<32x512xf32>
    %192 = vector.broadcast %189 : vector<1x512xf32> to vector<32x512xf32>
    %193 = arith.addf %191, %192 : vector<32x512xf32>
    %cst_136 = arith.constant 0.000000e+00 : f32
    %194 = vector.broadcast %cst_136 : f32 to vector<32x512xf32>
    %195 = arith.maximumf %193, %194 : vector<32x512xf32>
    %196 = arith.truncf %195 : vector<32x512xf32> to vector<32x512xbf16>
    %c0_137 = arith.constant 0 : index
    %c0_138 = arith.constant 0 : index
    %197 = vector.load %arg19[%c0_137, %c0_138] : memref<32x512xbf16, #tpu.memory_space<vmem>>, vector<32x512xbf16>
    tpu.vector_store %arg19[%c0_137, %c0_138], %196 {strides = array<i32>} : memref<32x512xbf16, #tpu.memory_space<vmem>>, vector<32x512xbf16>,
    %c1_i32_139 = arith.constant 1 : i32
    %198 = tpu.memref_slice %arg20[%c1_i32_139] : memref<2x!tpu.dma_semaphore, #tpu.memory_space<semaphore_mem>> -> memref<1x!tpu.dma_semaphore, #tpu.memory_space<semaphore_mem>>
    %199 = tpu.memref_squeeze %198 : memref<1x!tpu.dma_semaphore, #tpu.memory_space<semaphore_mem>> -> memref<!tpu.dma_semaphore, #tpu.memory_space<semaphore_mem>>
    tpu.wait_dma2 semaphore(%199 : memref<!tpu.dma_semaphore, #tpu.memory_space<semaphore_mem>>) src(%arg4 : memref<512x256xbf16, #tpu.memory_space<any>>) dst(%arg15 : memref<512x256xbf16, #tpu.memory_space<vmem>>)
    %c0_140 = arith.constant 0 : index
    %c0_141 = arith.constant 0 : index
    %200 = vector.load %arg19[%c0_140, %c0_141] : memref<32x512xbf16, #tpu.memory_space<vmem>>, vector<32x512xbf16>
    %c0_142 = arith.constant 0 : index
    %c0_143 = arith.constant 0 : index
    %201 = vector.load %arg15[%c0_142, %c0_143] : memref<512x256xbf16, #tpu.memory_space<vmem>>, vector<512x256xbf16>
    %cst_144 = arith.constant dense<0.000000e+00> : vector<32x256xf32>
    %202 = tpu.matmul %200, %201, %cst_144 {dimension_numbers = #tpu.dot_dimension_numbers<[1], [0], [0], [1], [0, 0, 1, 1], [], []>} : vector<32x512xbf16>, vector<512x256xbf16>, vector<32x256xf32> -> vector<32x256xf32>
    %c0_145 = arith.constant 0 : index
    %c0_146 = arith.constant 0 : index
    %203 = vector.load %arg16[%c0_145, %c0_146] : memref<32x2048xf32, #tpu.memory_space<vmem>>, vector<32x256xf32>
    tpu.vector_store %arg16[%c0_145, %c0_146], %202 {strides = array<i32>} : memref<32x2048xf32, #tpu.memory_space<vmem>>, vector<32x256xf32>,
    %cst_147 = arith.constant 0.000000e+00 : f32
    %204 = vector.broadcast %cst_147 : f32 to vector<56x128xf32>
    %c0_148 = arith.constant 0 : index
    %c0_149 = arith.constant 0 : index
    %205 = vector.load %arg16[%c0_148, %c0_149] : memref<32x2048xf32, #tpu.memory_space<vmem>>, vector<32x128xf32>
    %c0_150 = arith.constant 0 : index
    %c0_151 = arith.constant 0 : index
    %c0_152 = arith.constant 0 : index
    %206 = vector.load %arg8[%c0_150, %c0_151, %c0_152] : memref<2x56x32xf32, #tpu.memory_space<vmem>>, vector<1x56x32xf32>
    %207 = vector.shape_cast %206 : vector<1x56x32xf32> to vector<56x32xf32>
    %cst_153 = arith.constant dense<0.000000e+00> : vector<56x128xf32>
    %208 = tpu.matmul %207, %205, %cst_153 {dimension_numbers = #tpu.dot_dimension_numbers<[1], [0], [0], [1], [0, 0, 1, 1], [], []>} : vector<56x32xf32>, vector<32x128xf32>, vector<56x128xf32> -> vector<56x128xf32>
    %209 = arith.addf %204, %208 : vector<56x128xf32>
    %c0_154 = arith.constant 0 : index
    %c128 = arith.constant 128 : index
    %210 = vector.load %arg16[%c0_154, %c128] : memref<32x2048xf32, #tpu.memory_space<vmem>>, vector<32x128xf32>
    %c1_155 = arith.constant 1 : index
    %c0_156 = arith.constant 0 : index
    %c0_157 = arith.constant 0 : index
    %211 = vector.load %arg8[%c1_155, %c0_156, %c0_157] : memref<2x56x32xf32, #tpu.memory_space<vmem>>, vector<1x56x32xf32>
    %212 = vector.shape_cast %211 : vector<1x56x32xf32> to vector<56x32xf32>
    %cst_158 = arith.constant dense<0.000000e+00> : vector<56x128xf32>
    %213 = tpu.matmul %212, %210, %cst_158 {dimension_numbers = #tpu.dot_dimension_numbers<[1], [0], [0], [1], [0, 0, 1, 1], [], []>} : vector<56x32xf32>, vector<32x128xf32>, vector<56x128xf32> -> vector<56x128xf32>
    %214 = arith.addf %209, %213 : vector<56x128xf32>
    %215 = vector.extract_strided_slice %214 {offsets = [0, 0], sizes = [56, 28], strides = [1, 1]} : vector<56x128xf32> to vector<56x28xf32>
    %c0_159 = arith.constant 0 : index
    %c0_160 = arith.constant 0 : index
    %216 = vector.load %arg12[%c0_159, %c0_160] : memref<1x28xf32, #tpu.memory_space<vmem>>, vector<1x28xf32>
    %217 = vector.broadcast %216 : vector<1x28xf32> to vector<56x28xf32>
    %218 = arith.addf %215, %217 : vector<56x28xf32>
    %219 = math.tanh %218 : vector<56x28xf32>
    %c0_161 = arith.constant 0 : index
    %c0_162 = arith.constant 0 : index
    %220 = vector.load %arg13[%c0_161, %c0_162] : memref<56x28xf32, #tpu.memory_space<vmem>>, vector<56x28xf32>
    tpu.vector_store %arg13[%c0_161, %c0_162], %219 {strides = array<i32>} : memref<56x28xf32, #tpu.memory_space<vmem>>, vector<56x28xf32>,
    return
  }
}

</mosaic_0001>

<bundles_post_ra>
// kernel: generator_forward.1
= control target key start
LH: loop header
LB: loop body
LE: loop exit
PB: predicated region body
PF: predicated region fallthrough
CT: control target
= control target key end

     0   :  { %18 = vsyncpa [#allocation10], 0  ;;  %s18744_s0 = inlined_call_operand.vmem [shape: bf16[2,32], index: 0, kind: input, shape index: {}]   ;;  %s18745_s1 = inlined_call_operand.hbm [shape: bf16[32,2048], index: 1, kind: input, shape index: {}]   ;;  %s18746_s2 = inlined_call_operand.hbm [shape: bf16[512,2048], index: 2, kind: input, shape index: {}]   ;;  %s18747_s3 = inlined_call_operand.hbm [shape: bf16[512,2048], index: 3, kind: input, shape index: {}]   ;;  %s18748_s4 = inlined_call_operand.hbm [shape: bf16[512,256], index: 4, kind: input, shape index: {}]   ;;  %s18749_s5 = inlined_call_operand.hbm [shape: f32[4,8,2], index: 5, kind: input, shape index: {}]   ;;  %s18750_s6 = inlined_call_operand.hbm [shape: f32[4,16,8], index: 6, kind: input, shape index: {}]   ;;  %s18751_s7 = inlined_call_operand.hbm [shape: f32[4,32,16], index: 7, kind: input, shape index: {}]   ;;  %s18752_s8 = inlined_call_operand.hbm [shape: f32[2,56,32], index: 8, kind: input, shape index: {}]   ;;  %s18753_s9 = inlined_call_operand.hbm [shape: f32[2,512], index: 9, kind: input, shape index: {}]   ;;  %s18754_s10 = inlined_call_operand.hbm [shape: f32[2,512], index: 10, kind: input, shape index: {}]   ;;  %s18755_s11 = inlined_call_operand.hbm [shape: f32[2,512], index: 11, kind: input, shape index: {}]   ;;  %s18756_s12 = inlined_call_operand.hbm [shape: f32[1,28], index: 12, kind: input, shape index: {}]   ;;  %s18757_s13 = inlined_call_operand.hbm [shape: f32[56,28], index: 13, kind: output, shape index: {}]  }
   0x1   :  { %19 = vsyncpa [#allocation13], 0 }
   0x2   :  { %20 = vsyncpa [#allocation16], 0 }
   0x3   :  { %21 = vsyncpa [#allocation19], 0 }
   0x4   :  { %22 = vsyncpa [#allocation22], 0 }
   0x5   :  { %23 = vsyncpa [#allocation25], 0 }
   0x6   :  { %24 = vsyncpa [#allocation11], 0  ;;  %s44_s27 = sshll.u32 %s18746_s2, 4  ;;  %s17727_s28 = smov [#allocation12]   ;;  %s45_s27 = int_to_ptr.hbm [resolvable:$true] %s44_s27 }
   0x7   :  { %s46_s29 = sshll.u32 %s17727_s28, 4  ;;  %s17728_s30 = smov 1024   ;;  %s47_s29 = int_to_ptr.vmem [resolvable:$true] %s46_s29 }
   0x8   :  { %s17729_s14 = smov 64   ;;  %s70_s17 = sshll.u32 %s18750_s6, 4  ;;  %s71_s17 = int_to_ptr.hbm [resolvable:$true] %s70_s17 }
   0x9   :  { %52 = dma.hbm_to_vmem [thread:$0]  %s45_s27, 65536, %s47_s29, [#allocation13], %s17728_s30, %s17728_s30, %s17729_s14  }
   0xa   :  { %s17730_s18 = smov [#allocation15]   ;;  %s96_s2 = sshll.u32 %s18752_s8, 4  ;;  %s97_s2 = int_to_ptr.hbm [resolvable:$true] %s96_s2 }
   0xb   :  { %s72_s19 = sshll.u32 %s17730_s18, 4  ;;  %s17731_s22 = smov 128   ;;  %s73_s19 = int_to_ptr.vmem [resolvable:$true] %s72_s19 }
   0xc   :  { %s17732_s23 = smov 8   ;;  %s121_s26 = sshll.u32 %s18754_s10, 4  ;;  %s122_s26 = int_to_ptr.hbm [resolvable:$true] %s121_s26 }
   0xd   :  { %78 = dma.hbm_to_vmem [thread:$0]  %s71_s17, 1024, %s73_s19, [#allocation16], %s17731_s22, %s17731_s22, %s17732_s23  }
   0xe   :  { %s17733_s6 = smov [#allocation18]   ;;  %s17734_s8 = smov [#allocation21]  }
   0xf   :  { %s98_s27 = sshll.u32 %s17733_s6, 4  ;;  %s123_s28 = sshll.u32 %s17734_s8, 4  ;;  %s99_s27 = int_to_ptr.vmem [resolvable:$true] %s98_s27  ;;  %s124_s28 = int_to_ptr.vmem [resolvable:$true] %s123_s28 }
  0x10   :  { %104 = dma.hbm_to_vmem [thread:$0]  %s97_s2, 1792, %s99_s27, [#allocation19], %s17731_s22, %s17731_s22, %s17732_s23  }
  0x11   :  { %s31_s16 = sshll.u32 %s18745_s1, 4  ;;  %s57_s10 = sshll.u32 %s18749_s5, 4  ;;  %s32_s16 = int_to_ptr.hbm [resolvable:$true] %s31_s16  ;;  %s58_s10 = int_to_ptr.hbm [resolvable:$true] %s57_s10 }
  0x12   :  { %126 = dma.hbm_to_vmem [thread:$0]  %s122_s26, 128, %s124_s28, [#allocation22]  }
  0x13   :  { %s17735_s19 = smov [#allocation9]   ;;  %s17736_s21 = smov [#allocation14]  }
  0x14   :  { %s33_s20 = sshll.u32 %s17735_s19, 4  ;;  %s59_s2 = sshll.u32 %s17736_s21, 4  ;;  %s34_s20 = int_to_ptr.vmem [resolvable:$true] %s33_s20  ;;  %s60_s2 = int_to_ptr.vmem [resolvable:$true] %s59_s2 }
  0x15   :  { %39 = dma.hbm_to_vmem [thread:$0]  %s32_s16, 4096, %s34_s20, [#allocation10], %s17728_s30, %s17728_s30, %s17729_s14  }
  0x16   :  { %s83_s1 = sshll.u32 %s18751_s7, 4  ;;  %s110_s6 = sshll.u32 %s18753_s9, 4  ;;  %s84_s1 = int_to_ptr.hbm [resolvable:$true] %s83_s1  ;;  %s111_s6 = int_to_ptr.hbm [resolvable:$true] %s110_s6 }
  0x17   :  { %65 = dma.hbm_to_vmem [thread:$0]  %s58_s10, 512, %s60_s2, [#allocation13], %s17731_s22, %s17731_s22, %s17732_s23  }
  0x18   :  { %s17737_s27 = smov [#allocation17]   ;;  %s17738_s30 = smov [#allocation20]  }
  0x19   :  { %s85_s8 = sshll.u32 %s17737_s27, 4  ;;  %s112_s7 = sshll.u32 %s17738_s30, 4  ;;  %s86_s8 = int_to_ptr.vmem [resolvable:$true] %s85_s8  ;;  %s113_s7 = int_to_ptr.vmem [resolvable:$true] %s112_s7 }
  0x1a   :  { %91 = dma.hbm_to_vmem [thread:$0]  %s84_s1, 2048, %s86_s8, [#allocation16], %s17731_s22, %s17731_s22, %s17732_s23  }
  0x1b   :  { %s132_s15 = sshll.u32 %s18755_s11, 4  ;;  %s143_s9 = sshll.u32 %s18756_s12, 4  ;;  %s133_s15 = int_to_ptr.hbm [resolvable:$true] %s132_s15  ;;  %s144_s9 = int_to_ptr.hbm [resolvable:$true] %s143_s9 }
  0x1c   :  { %115 = dma.hbm_to_vmem [thread:$0]  %s111_s6, 128, %s113_s7, [#allocation19]  }
  0x1d   :  { %s17739_s18 = smov [#allocation23]   ;;  %s17740_s19 = smov [#allocation24]  }
  0x1e   :  { %s134_s10 = sshll.u32 %s17739_s18, 4  ;;  %s145_s20 = sshll.u32 %s17740_s19, 4  ;;  %s135_s10 = int_to_ptr.vmem [resolvable:$true] %s134_s10  ;;  %s146_s20 = int_to_ptr.vmem [resolvable:$true] %s145_s20 }
  0x1f   :  { %137 = dma.hbm_to_vmem [thread:$0]  %s133_s15, 128, %s135_s10, [#allocation22]  }
  0x20   :  { %148 = dma.hbm_to_vmem [thread:$0]  %s144_s9, 16, %s146_s20, [#allocation25]  }
  0x21   :  { %17709 = dma.done.wait [#allocation10], 4096  }
  0x22   :  { %17710 = vsyncadd [#allocation10], 4294963200 }
  0x23   :  { %17711 = dma.done.wait [#allocation13], 66048  }
  0x24   :  { %17712 = vsyncadd [#allocation13], 4294901248 }
  0x25   :  { %17713 = dma.done.wait [#allocation16], 3072  }
  0x26   :  { %17714 = vsyncadd [#allocation16], 4294964224 }
  0x27   :  { %17715 = dma.done.wait [#allocation19], 1920  }
  0x28   :  { %17716 = vsyncadd [#allocation19], 4294965376 }
  0x29   :  { %17717 = dma.done.wait [#allocation22], 256  }
  0x2a   :  { %17718 = vsyncadd [#allocation22], 4294967040 }
  0x2b   :  { %17719 = dma.done.wait [#allocation25], 16  }
  0x2c   :  { %17720 = vsyncadd [#allocation25], 4294967280  ;;  %vm410_vm0 = vcmask 261120   ;;  %v11597_v0 = vld [vmem:[#allocation9 + $0x80] sm:$0xf]  ;;  %vm653_vm1 = vcmask 1041408  }
  0x2d   :  { %v16243_v1 = vld [vmem:[#allocation9 + $0xbc] sm:$0xf0]  ;;  %v16235_v2 = vld [vmem:[#allocation9 + $0x84] sm:$0xf]  ;;  %v11605_v5 = vld [vmem:[#allocation9 + $0x88] sm:$0xf] }
  0x2e   :  { %v11598_v3 = vor.u32 %v16243_v1, %v11597_v0  ;;  %v11599_v4 = vld [vmem:[#allocation9 + $0xc0] sm:$0xf0]  ;;  %v16244_v6 = vld [vmem:[#allocation9 + $0xc4] sm:$0xf0]  ;;  %v16236_v9 = vld [vmem:[#allocation9 + $0x8c] sm:$0xf] }
  0x2f   :  { %v11602_v7 = vor.u32 %v16235_v2, %v11599_v4  ;;  %v11606_v8 = vor.u32 %v16244_v6, %v11605_v5  ;;  %v11607_v10 = vld [vmem:[#allocation9 + $0xc8] sm:$0xf0]  ;;  %v11533_v11 = vld [vmem:[#allocation9] sm:$0xf]  ;;  %v16219_v14 = vld [vmem:[#allocation9 + $0x4] sm:$0xf] }
  0x30   :  { %420 = vmatpush.bf16.msra.mxu0 %v11598_v3  ;;  %v11610_v12 = vor.u32 %v16236_v9, %v11607_v10  ;;  %v16227_v13 = vld [vmem:[#allocation9 + $0x3c] sm:$0xf0]  ;;  %v11535_v15 = vld [vmem:[#allocation9 + $0x40] sm:$0xf0]  ;;  %v11541_v18 = vld [vmem:[#allocation9 + $0x8] sm:$0xf] }
  0x31   :  { %433 = vmatpush.bf16.msra.mxu1 %v11602_v7  ;;  %446 = vmatpush.bf16.msra.mxu2 %v11606_v8  ;;  %v11534_v16 = vor.u32 %v16227_v13, %v11533_v11  ;;  %v11538_v17 = vor.u32 %v16219_v14, %v11535_v15  ;;  %v16228_v19 = vld [vmem:[#allocation9 + $0x44] sm:$0xf0]  ;;  %v16220_v20 = vld [vmem:[#allocation9 + $0xc] sm:$0xf]  ;;  %v17866_v23 = vld [vmem:[%s18744_s0] sm:$0x1] }
  0x32   :  { %459 = vmatpush.bf16.msra.mxu3 %v11610_v12  ;;  %v11542_v21 = vor.u32 %v16228_v19, %v11541_v18  ;;  %v11543_v22 = vld [vmem:[#allocation9 + $0x48] sm:$0xf0]  ;;  %v11613_v24 = vld [vmem:[#allocation9 + $0x90] sm:$0xf]  ;;  %v16237_v27 = vld [vmem:[#allocation9 + $0x94] sm:$0xf] }
  0x33   :  { %v11546_v25 = vor.u32 %v16220_v20, %v11543_v22  ;;  %v16245_v26 = vld [vmem:[#allocation9 + $0xcc] sm:$0xf0]  ;;  %v11615_v28 = vld [vmem:[#allocation9 + $0xd0] sm:$0xf0]  ;;  %v11621_v31 = vld [vmem:[#allocation9 + $0x98] sm:$0xf] }
  0x34   :  { %421 = vmatpush.bf16.msra.mxu0 %v11534_v16  ;;  %v11614_v29 = vor.u32 %v16245_v26, %v11613_v24  ;;  %v11618_v30 = vor.u32 %v16237_v27, %v11615_v28  ;;  %v16246_v32 = vld [vmem:[#allocation9 + $0xd4] sm:$0xf0]  ;;  %v16238_v33 = vld [vmem:[#allocation9 + $0x9c] sm:$0xf]  ;;  %v11549_v36 = vld [vmem:[#allocation9 + $0x10] sm:$0xf] }
  0x35   :  { %434 = vmatpush.bf16.msra.mxu1 %v11538_v17  ;;  %447 = vmatpush.bf16.msra.mxu2 %v11542_v21  ;;  %v11622_v34 = vor.u32 %v16246_v32, %v11621_v31  ;;  %v11623_v35 = vld [vmem:[#allocation9 + $0xd8] sm:$0xf0]  ;;  %v16229_v37 = vld [vmem:[#allocation9 + $0x4c] sm:$0xf0]  ;;  %v16221_v40 = vld [vmem:[#allocation9 + $0x14] sm:$0xf] }
  0x36   :  { %460 = vmatpush.bf16.msra.mxu3 %v11546_v25  ;;  %v11626_v38 = vor.u32 %v16238_v33, %v11623_v35  ;;  %v11550_v39 = vor.u32 %v16229_v37, %v11549_v36  ;;  %v11551_v41 = vld [vmem:[#allocation9 + $0x50] sm:$0xf0]  ;;  %v11557_v42 = vld [vmem:[#allocation9 + $0x18] sm:$0xf]  ;;  %v16222_v45 = vld [vmem:[#allocation9 + $0x1c] sm:$0xf] }
  0x37   :  { %11659 = vmatmul.msk.bf16.vlgmr.msra.gmra.mxu0 %vm410_vm0, %v17866_v23  ;;  %v11554_v43 = vor.u32 %v16221_v40, %v11551_v41  ;;  %v16230_v44 = vld [vmem:[#allocation9 + $0x54] sm:$0xf0]  ;;  %v11559_v46 = vld [vmem:[#allocation9 + $0x58] sm:$0xf0]  ;;  %v11629_v47 = vld [vmem:[#allocation9 + $0xa0] sm:$0xf] }
  0x38   :  { %472 = vmatpush.bf16.msrb.mxu0 %v11614_v29  ;;  %11660 = vmatmul.msk.bf16.vlgmr.msra.gmra.mxu1 %vm410_vm0, %v17866_v23  ;;  %v16247_v48 = vld [vmem:[#allocation9 + $0xdc] sm:$0xf0]  ;;  %v16239_v49 = vld [vmem:[#allocation9 + $0xa4] sm:$0xf]  ;;  %v11558_v50 = vor.u32 %v16230_v44, %v11557_v42  ;;  %v11637_v53 = vld [vmem:[#allocation9 + $0xa8] sm:$0xf]  ;;  %v11562_v55 = vor.u32 %v16222_v45, %v11559_v46 }
  0x39   :  { %485 = vmatpush.bf16.msrb.mxu1 %v11618_v30  ;;  %11661 = vmatmul.msk.bf16.vlgmr.msra.gmra.mxu2 %vm410_vm0, %v17866_v23  ;;  %v11630_v51 = vor.u32 %v16247_v48, %v11629_v47  ;;  %v11631_v52 = vld [vmem:[#allocation9 + $0xe0] sm:$0xf0]  ;;  %v16248_v54 = vld [vmem:[#allocation9 + $0xe4] sm:$0xf0]  ;;  %v16240_v58 = vld [vmem:[#allocation9 + $0xac] sm:$0xf] }
  0x3a   :  { %11662 = vmatmul.msk.bf16.vlgmr.msra.gmra.mxu3 %vm410_vm0, %v17866_v23  ;;  %498 = vmatpush.bf16.msrb.mxu2 %v11622_v34  ;;  %v11634_v56 = vor.u32 %v16239_v49, %v11631_v52  ;;  %v11638_v57 = vor.u32 %v16248_v54, %v11637_v53  ;;  %v11639_v59 = vld [vmem:[#allocation9 + $0xe8] sm:$0xf0]  ;;  %v11565_v60 = vld [vmem:[#allocation9 + $0x20] sm:$0xf]  ;;  %v16223_v63 = vld [vmem:[#allocation9 + $0x24] sm:$0xf] }
  0x3b   :  { %511 = vmatpush.bf16.msrb.mxu3 %v11626_v38  ;;  %v11642_v61 = vor.u32 %v16240_v58, %v11639_v59  ;;  %v16231_v62 = vld [vmem:[#allocation9 + $0x5c] sm:$0xf0]  ;;  %v11567_v0 = vld [vmem:[#allocation9 + $0x60] sm:$0xf0]  ;;  %v11573_v3 = vld [vmem:[#allocation9 + $0x28] sm:$0xf] }
  0x3c   :  { %473 = vmatpush.bf16.msrb.mxu0 %v11550_v39  ;;  %v11566_v1 = vor.u32 %v16231_v62, %v11565_v60  ;;  %v11570_v2 = vor.u32 %v16223_v63, %v11567_v0  ;;  %v16232_v4 = vld [vmem:[#allocation9 + $0x64] sm:$0xf0]  ;;  %v16224_v5 = vld [vmem:[#allocation9 + $0x2c] sm:$0xf]  ;;  %v11645_v9 = vld [vmem:[#allocation9 + $0xb0] sm:$0xf] }
  0x3d   :  { %486 = vmatpush.bf16.msrb.mxu1 %v11554_v43  ;;  %v11575_v6 = vld [vmem:[#allocation9 + $0x68] sm:$0xf0]  ;;  %v11574_v7 = vor.u32 %v16232_v4, %v11573_v3  ;;  %v16249_v10 = vld [vmem:[#allocation9 + $0xec] sm:$0xf0]  ;;  %v16241_v11 = vld [vmem:[#allocation9 + $0xb4] sm:$0xf] }
  0x3e   :  { %499 = vmatpush.bf16.msrb.mxu2 %v11558_v50  ;;  %v11578_v8 = vor.u32 %v16224_v5, %v11575_v6  ;;  %v11647_v12 = vld [vmem:[#allocation9 + $0xf0] sm:$0xf0]  ;;  %v11653_v13 = vld [vmem:[#allocation9 + $0xb8] sm:$0xf]  ;;  %v16242_v15 = vld [vmem:[#allocation9 + $0xbc] sm:$0xf]  ;;  %v11646_v17 = vor.u32 %v16249_v10, %v11645_v9 }
  0x3f   :  { %512 = vmatpush.bf16.msrb.mxu3 %v11562_v55  ;;  %v16250_v14 = vld [vmem:[#allocation9 + $0xf4] sm:$0xf0]  ;;  %v11655_v16 = vld [vmem:[#allocation9 + $0xf8] sm:$0xf0]  ;;  %v11650_v18 = vor.u32 %v16241_v11, %v11647_v12  ;;  %v11581_v20 = vld [vmem:[#allocation9 + $0x30] sm:$0xf] }
  0x40   :  { %524 = vmatpush.bf16.msra.mxu0 %v11630_v51  ;;  %v11654_v19 = vor.u32 %v16250_v14, %v11653_v13  ;;  %v16233_v21 = vld [vmem:[#allocation9 + $0x6c] sm:$0xf0]  ;;  %v16225_v22 = vld [vmem:[#allocation9 + $0x34] sm:$0xf]  ;;  %v11658_v24 = vor.u32 %v16242_v15, %v11655_v16  ;;  %v11589_v26 = vld [vmem:[#allocation9 + $0x38] sm:$0xf] }
  0x41   :  { %537 = vmatpush.bf16.msra.mxu1 %v11634_v56  ;;  %v11583_v25 = vld [vmem:[#allocation9 + $0x70] sm:$0xf0]  ;;  %v16234_v27 = vld [vmem:[#allocation9 + $0x74] sm:$0xf0]  ;;  %v16226_v28 = vld [vmem:[#allocation9 + $0x3c] sm:$0xf]  ;;  %v11582_v30 = vor.u32 %v16233_v21, %v11581_v20 }
  0x42   :  { %550 = vmatpush.bf16.msra.mxu2 %v11638_v57  ;;  %v11591_v29 = vld [vmem:[#allocation9 + $0x78] sm:$0xf0]  ;;  %v11586_v31 = vor.u32 %v16225_v22, %v11583_v25  ;;  %v11590_v32 = vor.u32 %v16234_v27, %v11589_v26  ;;  %v648_v47 = vld [vmem:[#allocation14 + $0x8] sm:$0xff]  ;;  %vm649_vm2 = vcmask 15360   ;;  %v642_v57 = vld [vmem:[#allocation14] sm:$0xff]  ;;  %vm1153_vm9 = vcmask 1040384  }
  0x43   :  { %563 = vmatpush.bf16.msra.mxu3 %v11642_v61  ;;  %v11594_v33 = vor.u32 %v16226_v28, %v11591_v29  ;;  %v951_v11 = vld [vmem:[#allocation14 + $0x18] sm:$0xff]  ;;  %vm1155_vm10 = vcmask 1042434   ;;  %vm5159_vm11 = vcmask 64512   ;;  %s197_s2 = sshll.u32 %s18747_s3, 4  ;;  %s17741_s24 = smov [#allocation2]   ;;  %s198_s2 = int_to_ptr.hbm [resolvable:$true] %s197_s2 }
  0x44   :  { %525 = vmatpush.bf16.msra.mxu0 %v11566_v1  ;;  %v846_v1 = vld [vmem:[#allocation14 + $0x10] sm:$0xff]  ;;  %s199_s25 = sshll.u32 %s17741_s24, 4  ;;  %s211_s26 = sshll.u32 %s18748_s4, 4  ;;  %s200_s25 = int_to_ptr.vmem [resolvable:$true] %s199_s25  ;;  %s212_s26 = int_to_ptr.hbm [resolvable:$true] %s211_s26 }
  0x45   :  { %538 = vmatpush.bf16.msra.mxu1 %v11570_v2  ;;  %202 = dma.hbm_to_vmem [thread:$0]  %s198_s2, 65536, %s200_s25, [#allocation8] }
  0x46   :  { %551 = vmatpush.bf16.msra.mxu2 %v11574_v7  ;;  %s17742_s6 = smov [#allocation3]  }
  0x47   :  { %564 = vmatpush.bf16.msra.mxu3 %v11578_v8  ;;  %11663 = vmatmul.msk.bf16.vlgmr.msrb.gmra.mxu0 %vm410_vm0, %v17866_v23  ;;  %s213_s27 = sshll.u32 %s17742_s6, 4  ;;  %s214_s27 = int_to_ptr.vmem [resolvable:$true] %s213_s27 }
  0x48   :  { %11664 = vmatmul.msk.bf16.vlgmr.msrb.gmra.mxu1 %vm410_vm0, %v17866_v23  ;;  %576 = vmatpush.bf16.msrb.mxu0 %v11646_v17  ;;  %216 = dma.hbm_to_vmem [thread:$0]  %s212_s26, 8192, %s214_s27, [#allocation8 + $0x1] }
  0x49   :  { %11665 = vmatmul.msk.bf16.vlgmr.msrb.gmra.mxu2 %vm410_vm0, %v17866_v23  ;;  %589 = vmatpush.bf16.msrb.mxu1 %v11650_v18 }
  0x4a   :  { %11666 = vmatmul.msk.bf16.vlgmr.msrb.gmra.mxu3 %vm410_vm0, %v17866_v23  ;;  %602 = vmatpush.bf16.msrb.mxu2 %v11654_v19 }
  0x4b   :  { %615 = vmatpush.bf16.msrb.mxu3 %v11658_v24 }
  0x4c   :  { %577 = vmatpush.bf16.msrb.mxu0 %v11582_v30 }
  0x4d   :  { %590 = vmatpush.bf16.msrb.mxu1 %v11586_v31 }
  0x4e   :  { %603 = vmatpush.bf16.msrb.mxu2 %v11590_v32 }
  0x4f   :  { %616 = vmatpush.bf16.msrb.mxu3 %v11594_v33 }
  0x57   :  { %11667 = vmatmul.msk.bf16.vlgmr.msra.gmra.mxu0 %vm410_vm0, %v17866_v23 }
  0x58   :  { %11668 = vmatmul.msk.bf16.vlgmr.msra.gmra.mxu1 %vm410_vm0, %v17866_v23 }
  0x59   :  { %11669 = vmatmul.msk.bf16.vlgmr.msra.gmra.mxu2 %vm410_vm0, %v17866_v23 }
  0x5a   :  { %11670 = vmatmul.msk.bf16.vlgmr.msra.gmra.mxu3 %vm410_vm0, %v17866_v23 }
  0x67   :  { %11671 = vmatmul.msk.bf16.vlgmr.msrb.gmra.mxu0 %vm410_vm0, %v17866_v23 }
  0x68   :  { %11672 = vmatmul.msk.bf16.vlgmr.msrb.gmra.mxu1 %vm410_vm0, %v17866_v23 }
  0x69   :  { %11673 = vmatmul.msk.bf16.vlgmr.msrb.gmra.mxu2 %vm410_vm0, %v17866_v23 }
  0x6a   :  { %11674 = vmatmul.msk.bf16.vlgmr.msrb.gmra.mxu3 %vm410_vm0, %v17866_v23 }
  0xb4   :  { %v423_v34 = vpop.f32.mrf.mxu0 }
  0xb5   :  { %622 = vst [vmem:[#allocation4 + $0xb0] sm:$0x3] %v423_v34  ;;  %v436_v35 = vpop.f32.mrf.mxu1  ;;  %v12157_v34 = vld [vmem:[#allocation12 + $0x380] sm:$0xf] }
  0xb6   :  { %623 = vst [vmem:[#allocation4 + $0xd0] sm:$0x3] %v436_v35  ;;  %v16371_v35 = vld [vmem:[#allocation12 + $0x3bc] sm:$0xf0] }
  0xbc   :  { %v449_v36 = vpop.f32.mrf.mxu2  ;;  %v425_v38 = vpop.f32.mrf.mxu0  ;;  %v638_v50 = vld [vmem:[#allocation4 + $0xb0] sm:$0x3] }
  0xbd   :  { %624 = vst [vmem:[#allocation4 + $0x10] sm:$0x3] %v449_v36  ;;  %v462_v37 = vpop.f32.mrf.mxu3  ;;  %v438_v39 = vpop.f32.mrf.mxu1  ;;  %v639_v51 = vld [vmem:[#allocation4 + $0xd0] sm:$0x3]  ;;  %v12669_v36 = vld [vmem:[#allocation12 + $0x780] sm:$0xf] }
  0xbe   :  { %625 = vst [vmem:[#allocation4 + $0x48] sm:$0x3] %v462_v37  ;;  %v12158_v37 = vor.u32 %v16371_v35, %v12157_v34  ;;  %v16499_v38 = vld [vmem:[#allocation12 + $0x7bc] sm:$0xf0]  ;;  %v16363_v39 = vld [vmem:[#allocation12 + $0x384] sm:$0xf] }
  0xbf   :  { %v16315_v35 = vld [vmem:[#allocation12 + $0x204] sm:$0xf] }
  0xc4   :  { %v451_v40 = vpop.f32.mrf.mxu2  ;;  %v475_v42 = vpop.f32.mrf.mxu0  ;;  %v640_v59 = vld [vmem:[#allocation4 + $0x10] sm:$0x3] }
  0xc5   :  { %v464_v41 = vpop.f32.mrf.mxu3  ;;  %626 = vst [vmem:[#allocation4 + $0x108] sm:$0x3] %v475_v42  ;;  %v488_v43 = vpop.f32.mrf.mxu1  ;;  %v641_v60 = vld [vmem:[#allocation4 + $0x48] sm:$0x3]  ;;  %v12159_v40 = vld [vmem:[#allocation12 + $0x3c0] sm:$0xf0] }
  0xc6   :  { %627 = vst [vmem:[#allocation4 + $0x68] sm:$0x3] %v488_v43  ;;  %v12670_v41 = vor.u32 %v16499_v38, %v12669_v36  ;;  %v12162_v42 = vor.u32 %v16363_v39, %v12159_v40  ;;  %v11967_v36 = vld [vmem:[#allocation12 + $0x240] sm:$0xf0] }
  0xc7   :  { %v11970_v39 = vor.u32 %v16315_v35, %v11967_v36  ;;  %v16443_v40 = vld [vmem:[#allocation12 + $0x604] sm:$0xf]  ;;  %v12285_v36 = vld [vmem:[#allocation12 + $0x480] sm:$0xf] }
  0xcc   :  { %v501_v44 = vpop.f32.mrf.mxu2  ;;  %v477_v45 = vpop.f32.mrf.mxu0  ;;  %v643_v46 = vld [vmem:[#allocation4 + $0x108] sm:$0x3] }
  0xcd   :  { %628 = vst [vmem:[#allocation4 + $0x30] sm:$0x3] %v501_v44  ;;  %v514_v23 = vpop.f32.mrf.mxu3  ;;  %v490_v48 = vpop.f32.mrf.mxu1  ;;  %11675 = vmatpush.msk.msra.mxu0 %vm653_vm1, %v643_v46  ;;  %v644_v49 = vld [vmem:[#allocation4 + $0x68] sm:$0x3]  ;;  %v16491_v44 = vld [vmem:[#allocation12 + $0x784] sm:$0xf] }
  0xce   :  { %629 = vst [vmem:[#allocation4 + $0x18] sm:$0x3] %v514_v23  ;;  %11677 = vmatpush.msk.msra.mxu1 %vm653_vm1, %v644_v49  ;;  %11676 = vmatmul.msk.f32.vlgmr.msra.gmra.mxu0 %vm649_vm2, %v648_v47  ;;  %v12671_v23 = vld [vmem:[#allocation12 + $0x7c0] sm:$0xf0]  ;;  %v12093_v48 = vld [vmem:[#allocation12 + $0x300] sm:$0xf] }
  0xcf   :  { %11683 = vmatpush.msk.msrb.mxu0 %vm653_vm1, %v638_v50  ;;  %11678 = vmatmul.msk.f32.vlgmr.msra.gmra.mxu1 %vm649_vm2, %v648_v47  ;;  %v16355_v49 = vld [vmem:[#allocation12 + $0x33c] sm:$0xf0] }
  0xd0   :  { %11685 = vmatpush.msk.msrb.mxu1 %vm653_vm1, %v639_v51  ;;  %v12605_v50 = vld [vmem:[#allocation12 + $0x700] sm:$0xf] }
  0xd4   :  { %v503_v52 = vpop.f32.mrf.mxu2  ;;  %v645_v53 = vld [vmem:[#allocation4 + $0x30] sm:$0x3]  ;;  %v527_v56 = vpop.f32.mrf.mxu0 }
  0xd5   :  { %v516_v54 = vpop.f32.mrf.mxu3  ;;  %11679 = vmatpush.msk.msra.mxu2 %vm653_vm1, %v645_v53  ;;  %v646_v55 = vld [vmem:[#allocation4 + $0x18] sm:$0x3]  ;;  %630 = vst [vmem:[#allocation4 + $0x80] sm:$0x3] %v527_v56  ;;  %v540_v58 = vpop.f32.mrf.mxu1  ;;  %v12094_v53 = vor.u32 %v16355_v49, %v12093_v48  ;;  %v12095_v56 = vld [vmem:[#allocation12 + $0x340] sm:$0xf0] }
  0xd6   :  { %11681 = vmatpush.msk.msra.mxu3 %vm653_vm1, %v646_v55  ;;  %11680 = vmatmul.msk.f32.vlgmr.msra.gmra.mxu2 %vm649_vm2, %v648_v47  ;;  %631 = vst [vmem:[#allocation4 + $0x180] sm:$0x3] %v540_v58  ;;  %v16483_v54 = vld [vmem:[#allocation12 + $0x73c] sm:$0xf0]  ;;  %v16347_v55 = vld [vmem:[#allocation12 + $0x304] sm:$0xf] }
  0xd7   :  { %11682 = vmatmul.msk.f32.vlgmr.msra.gmra.mxu3 %vm649_vm2, %v648_v47  ;;  %11687 = vmatpush.msk.msrb.mxu2 %vm653_vm1, %v640_v59  ;;  %v12674_v47 = vor.u32 %v16491_v44, %v12671_v23  ;;  %v12606_v58 = vor.u32 %v16483_v54, %v12605_v50  ;;  %v12098_v59 = vor.u32 %v16347_v55, %v12095_v56  ;;  %v12413_v48 = vld [vmem:[#allocation12 + $0x580] sm:$0xf]  ;;  %v11903_v54 = vld [vmem:[#allocation12 + $0x1c0] sm:$0xf0] }
  0xd8   :  { %11689 = vmatpush.msk.msrb.mxu3 %vm653_vm1, %v641_v60  ;;  %11684 = vmatmul.msk.f32.vlgmr.msrb.gmra.mxu0 %vm649_vm2, %v642_v57  ;;  %v16475_v60 = vld [vmem:[#allocation12 + $0x704] sm:$0xf]  ;;  %v16435_v49 = vld [vmem:[#allocation12 + $0x5bc] sm:$0xf0] }
  0xd9   :  { %11686 = vmatmul.msk.f32.vlgmr.msrb.gmra.mxu1 %vm649_vm2, %v642_v57 }
  0xdc   :  { %v553_v61 = vpop.f32.mrf.mxu2  ;;  %v529_v63 = vpop.f32.mrf.mxu0  ;;  %v841_v0 = vld [vmem:[#allocation4 + $0x80] sm:$0x3] }
  0xdd   :  { %632 = vst [vmem:[#allocation4 + $0x188] sm:$0x3] %v553_v61  ;;  %v566_v62 = vpop.f32.mrf.mxu3  ;;  %v542_v2 = vpop.f32.mrf.mxu1  ;;  %11691 = vmatpush.msk.msra.mxu0 %vm653_vm1, %v841_v0  ;;  %v842_v3 = vld [vmem:[#allocation4 + $0x180] sm:$0x3]  ;;  %v12607_v61 = vld [vmem:[#allocation12 + $0x740] sm:$0xf0] }
  0xde   :  { %633 = vst [vmem:[#allocation4 + $0x98] sm:$0x3] %v566_v62  ;;  %11688 = vmatmul.msk.f32.vlgmr.msrb.gmra.mxu2 %vm649_vm2, %v642_v57  ;;  %11693 = vmatpush.msk.msra.mxu1 %vm653_vm1, %v842_v3  ;;  %v12610_v0 = vor.u32 %v16475_v60, %v12607_v61  ;;  %v12029_v3 = vld [vmem:[#allocation12 + $0x280] sm:$0xf]  ;;  %v12415_v60 = vld [vmem:[#allocation12 + $0x5c0] sm:$0xf0] }
  0xdf   :  { %11690 = vmatmul.msk.f32.vlgmr.msrb.gmra.mxu3 %vm649_vm2, %v642_v57 }
  0xe0   :  { %11692 = vmatmul.msk.f32.vlgmr.msra.gmra.mxu0 %vm649_vm2, %v846_v1 }
  0xe1   :  { %11694 = vmatmul.msk.f32.vlgmr.msra.gmra.mxu1 %vm649_vm2, %v846_v1 }
  0xe4   :  { %v555_v4 = vpop.f32.mrf.mxu2  ;;  %v843_v5 = vld [vmem:[#allocation4 + $0x188] sm:$0x3]  ;;  %v579_v8 = vpop.f32.mrf.mxu0 }
  0xe5   :  { %v568_v6 = vpop.f32.mrf.mxu3  ;;  %11695 = vmatpush.msk.msra.mxu2 %vm653_vm1, %v843_v5  ;;  %v844_v7 = vld [vmem:[#allocation4 + $0x98] sm:$0x3]  ;;  %634 = vst [vmem:[#allocation4 + $0xf8] sm:$0x3] %v579_v8  ;;  %v592_v9 = vpop.f32.mrf.mxu1  ;;  %v16339_v4 = vld [vmem:[#allocation12 + $0x2bc] sm:$0xf0] }
  0xe6   :  { %11697 = vmatpush.msk.msra.mxu3 %vm653_vm1, %v844_v7  ;;  %11696 = vmatmul.msk.f32.vlgmr.msra.gmra.mxu2 %vm649_vm2, %v846_v1  ;;  %635 = vst [vmem:[#allocation4 + $0x38] sm:$0x3] %v592_v9  ;;  %v12030_v7 = vor.u32 %v16339_v4, %v12029_v3  ;;  %v12541_v8 = vld [vmem:[#allocation12 + $0x680] sm:$0xf] }
  0xe7   :  { %11698 = vmatmul.msk.f32.vlgmr.msra.gmra.mxu3 %vm649_vm2, %v846_v1  ;;  %v16467_v9 = vld [vmem:[#allocation12 + $0x6bc] sm:$0xf0] }
  0xec   :  { %v605_v10 = vpop.f32.mrf.mxu2  ;;  %v946_v13 = vld [vmem:[#allocation4 + $0xf8] sm:$0x3]  ;;  %v581_v14 = vpop.f32.mrf.mxu0 }
  0xed   :  { %636 = vst [vmem:[#allocation4 + $0x8] sm:$0x3] %v605_v10  ;;  %v618_v12 = vpop.f32.mrf.mxu3  ;;  %11699 = vmatpush.msk.msrb.mxu0 %vm653_vm1, %v946_v13  ;;  %v947_v15 = vld [vmem:[#allocation4 + $0x38] sm:$0x3]  ;;  %v594_v16 = vpop.f32.mrf.mxu1  ;;  %v16331_v13 = vld [vmem:[#allocation12 + $0x284] sm:$0xf] }
  0xee   :  { %637 = vst [vmem:[#allocation4 + $0x78] sm:$0x3] %v618_v12  ;;  %11701 = vmatpush.msk.msrb.mxu1 %vm653_vm1, %v947_v15  ;;  %11700 = vmatmul.msk.f32.vlgmr.msrb.gmra.mxu0 %vm649_vm2, %v951_v11  ;;  %v12542_v12 = vor.u32 %v16467_v9, %v12541_v8  ;;  %v12031_v14 = vld [vmem:[#allocation12 + $0x2c0] sm:$0xf0]  ;;  %v16419_v8 = vld [vmem:[#allocation12 + $0x53c] sm:$0xf0] }
  0xef   :  { %11702 = vmatmul.msk.f32.vlgmr.msrb.gmra.mxu1 %vm649_vm2, %v951_v11  ;;  %4350 = vmatpush.bf16.msra.mxu0 %v12162_v42  ;;  %v12034_v16 = vor.u32 %v16331_v13, %v12031_v14  ;;  %v16283_v13 = vld [vmem:[#allocation12 + $0x104] sm:$0xf] }
  0xf0   :  { %4363 = vmatpush.bf16.msra.mxu1 %v12674_v47  ;;  %v11839_v14 = vld [vmem:[#allocation12 + $0x140] sm:$0xf0] }
  0xf3   :  { %4351 = vmatpush.bf16.msra.mxu0 %v12098_v59  ;;  %v16427_v59 = vld [vmem:[#allocation12 + $0x584] sm:$0xf] }
  0xf4   :  { %v607_v17 = vpop.f32.mrf.mxu2  ;;  %v948_v18 = vld [vmem:[#allocation4 + $0x8] sm:$0x3]  ;;  %4364 = vmatpush.bf16.msra.mxu1 %v12610_v0 }
  0xf5   :  { %v620_v19 = vpop.f32.mrf.mxu3  ;;  %11703 = vmatpush.msk.msrb.mxu2 %vm653_vm1, %v948_v18  ;;  %v949_v20 = vld [vmem:[#allocation4 + $0x78] sm:$0x3]  ;;  %v16459_v17 = vld [vmem:[#allocation12 + $0x684] sm:$0xf] }
  0xf6   :  { %11705 = vmatpush.msk.msrb.mxu3 %vm653_vm1, %v949_v20  ;;  %11704 = vmatmul.msk.f32.vlgmr.msrb.gmra.mxu2 %vm649_vm2, %v951_v11  ;;  %v12543_v18 = vld [vmem:[#allocation12 + $0x6c0] sm:$0xf0] }
  0xf7   :  { %11706 = vmatmul.msk.f32.vlgmr.msrb.gmra.mxu3 %vm649_vm2, %v951_v11  ;;  %4298 = vmatpush.bf16.msra.mxu2 %v12158_v37 }
  0xf8   :  { %4311 = vmatpush.bf16.msra.mxu3 %v12670_v41  ;;  %4352 = vmatpush.bf16.msra.mxu0 %v12034_v16  ;;  %v12479_v41 = vld [vmem:[#allocation12 + $0x640] sm:$0xf0] }
  0xf9   :  { %v12482_v23 = vor.u32 %v16443_v40, %v12479_v41 }
  0xfb   :  { %4299 = vmatpush.bf16.msra.mxu2 %v12094_v53  ;;  %v16299_v53 = vld [vmem:[#allocation12 + $0x184] sm:$0xf] }
  0xfc   :  { %4312 = vmatpush.bf16.msra.mxu3 %v12606_v58  ;;  %4353 = vmatpush.bf16.msra.mxu0 %v11970_v39  ;;  %v11906_v58 = vor.u32 %v16299_v53, %v11903_v54 }
  0xff   :  { %4300 = vmatpush.bf16.msra.mxu2 %v12030_v7  ;;  %v12349_v7 = vld [vmem:[#allocation12 + $0x500] sm:$0xf] }
 0x100   :  { %4313 = vmatpush.bf16.msra.mxu3 %v12542_v12  ;;  %4354 = vmatpush.bf16.msra.mxu0 %v11906_v58  ;;  %v12350_v12 = vor.u32 %v16419_v8, %v12349_v7  ;;  %v16379_v7 = vld [vmem:[#allocation12 + $0x404] sm:$0xf] }
 0x101   :  { %v12223_v8 = vld [vmem:[#allocation12 + $0x440] sm:$0xf0] }
 0x14b   :  { %v683_v21 = vpop.f32.mrf.mxu0 }
 0x14c   :  { %v703_v22 = vpop.f32.mrf.mxu1 }
 0x155   :  { %v778_v24 = vpop.f32.mrf.mxu0 }
 0x156   :  { %v798_v25 = vpop.f32.mrf.mxu1  ;;  %v779_v30 = vadd.f32 %v778_v24, %v683_v21  ;;  %v12546_v21 = vor.u32 %v16459_v17, %v12543_v18  ;;  %v16323_v24 = vld [vmem:[#allocation12 + $0x23c] sm:$0xf0]  ;;  %v11842_v18 = vor.u32 %v16283_v13, %v11839_v14 }
 0x157   :  { %v799_v32 = vadd.f32 %v798_v25, %v703_v22  ;;  %v11965_v22 = vld [vmem:[#allocation12 + $0x200] sm:$0xf] }
 0x158   :  { %v11966_v25 = vor.u32 %v16323_v24, %v11965_v22  ;;  %4365 = vmatpush.bf16.msra.mxu1 %v12546_v21  ;;  %4355 = vmatpush.bf16.msra.mxu0 %v11842_v18  ;;  %v16627_v13 = vld [vmem:[#allocation12 + $0xbbc] sm:$0xf0] }
 0x159   :  { %v17932_v26 = vpop.f32.mrf.mxu2  ;;  %v16755_v18 = vld [vmem:[#allocation12 + $0xfbc] sm:$0xf0] }
 0x15a   :  { %v17934_v27 = vpop.f32.mrf.mxu3  ;;  %4301 = vmatpush.bf16.msra.mxu2 %v11966_v25 }
 0x15c   :  { %4366 = vmatpush.bf16.msra.mxu1 %v12482_v23 }
 0x15d   :  { %v879_v28 = vpop.f32.mrf.mxu0 }
 0x15e   :  { %v899_v29 = vpop.f32.mrf.mxu1  ;;  %v942_v43 = vadd.f32 %v879_v28, %v779_v30  ;;  %v12477_v28 = vld [vmem:[#allocation12 + $0x600] sm:$0xf] }
 0x15f   :  { %v943_v45 = vadd.f32 %v899_v29, %v799_v32  ;;  %v16451_v29 = vld [vmem:[#allocation12 + $0x63c] sm:$0xf0] }
 0x160   :  { %v12478_v34 = vor.u32 %v16451_v29, %v12477_v28  ;;  %v11773_v28 = vld [vmem:[#allocation12 + $0x80] sm:$0xf] }
 0x161   :  { %v17936_v31 = vpop.f32.mrf.mxu2  ;;  %v16275_v29 = vld [vmem:[#allocation12 + $0xbc] sm:$0xf0] }
 0x162   :  { %v17938_v33 = vpop.f32.mrf.mxu3  ;;  %v819_v30 = vadd.f32 %v17936_v31, %v17932_v26  ;;  %4314 = vmatpush.bf16.msra.mxu3 %v12478_v34  ;;  %v16307_v26 = vld [vmem:[#allocation12 + $0x1bc] sm:$0xf0]  ;;  %v11774_v35 = vor.u32 %v16275_v29, %v11773_v28  ;;  %v12677_v28 = vld [vmem:[#allocation12 + $0x788] sm:$0xf] }
 0x163   :  { %v839_v37 = vadd.f32 %v17938_v33, %v17934_v27 }
 0x169   :  { %v919_v5 = vpop.f32.mrf.mxu2 }
 0x16a   :  { %v939_v10 = vpop.f32.mrf.mxu3  ;;  %v944_v42 = vadd.f32 %v919_v5, %v819_v30  ;;  %v12418_v5 = vor.u32 %v16427_v59, %v12415_v60  ;;  %v12221_v59 = vld [vmem:[#allocation12 + $0x400] sm:$0xf] }
 0x16b   :  { %v984_v46 = vpop.f32.mrf.mxu0  ;;  %v945_v31 = vadd.f32 %v939_v10, %v839_v37  ;;  %v16403_v37 = vld [vmem:[#allocation12 + $0x4bc] sm:$0xf0] }
 0x16c   :  { %v17940_v51 = vadd.f32 %v984_v46, %v942_v43  ;;  %v1004_v52 = vpop.f32.mrf.mxu1  ;;  %4367 = vmatpush.bf16.msra.mxu1 %v12418_v5  ;;  %v12286_v41 = vor.u32 %v16403_v37, %v12285_v36  ;;  %v16387_v60 = vld [vmem:[#allocation12 + $0x43c] sm:$0xf0] }
 0x16d   :  { %v17942_v57 = vadd.f32 %v1004_v52, %v943_v45  ;;  %v11901_v45 = vld [vmem:[#allocation12 + $0x180] sm:$0xf]  ;;  %v12414_v52 = vor.u32 %v16435_v49, %v12413_v48 }
 0x16e   :  { %v1054_v62 = vrot.slane %v17940_v51, 4  ;;  %v1078_v63 = vmul.f32 %v17940_v51, %v17940_v51  ;;  %v11902_v47 = vor.u32 %v16307_v26, %v11901_v45  ;;  %v13117_v36 = vld [vmem:[#allocation12 + $0xb00] sm:$0xf] }
 0x16f   :  { %v1060_v1 = vrot.slane %v17942_v57, 4  ;;  %v1079_v2 = vmul.f32 %v17942_v57, %v17942_v57  ;;  %4315 = vmatpush.bf16.msra.mxu3 %v12414_v52  ;;  %v16259_v52 = vld [vmem:[#allocation12 + $0x3c] sm:$0xf0] }
 0x170   :  { %v1082_v6 = vrot.slane %v1078_v63, 4  ;;  %v1055_v15 = vadd.f32 %v1054_v62, %v17940_v51  ;;  %4302 = vmatpush.bf16.msra.mxu2 %v11902_v47  ;;  %v16611_v37 = vld [vmem:[#allocation12 + $0xb3c] sm:$0xf0] }
 0x171   :  { %v1088_v11 = vrot.slane %v1079_v2, 4  ;;  %v1061_v20 = vadd.f32 %v1060_v1, %v17942_v57  ;;  %v11837_v1 = vld [vmem:[#allocation12 + $0x100] sm:$0xf] }
 0x172   :  { %v1083_v19 = vadd.f32 %v1082_v6, %v1078_v63  ;;  %v1056_v38 = vrot.slane %v1055_v15, 2 }
 0x173   :  { %v1089_v32 = vadd.f32 %v1088_v11, %v1079_v2  ;;  %v1062_v44 = vrot.slane %v1061_v20, 2  ;;  %v16291_v2 = vld [vmem:[#allocation12 + $0x13c] sm:$0xf0]  ;;  %4316 = vmatpush.bf16.msra.mxu3 %v12350_v12 }
 0x174   :  { %v1084_v43 = vrot.slane %v1083_v19, 2  ;;  %v1057_v55 = vadd.f32 %v1056_v38, %v1055_v15  ;;  %v11838_v6 = vor.u32 %v16291_v2, %v11837_v1  ;;  %v12222_v2 = vor.u32 %v16387_v60, %v12221_v59  ;;  %v13181_v12 = vld [vmem:[#allocation12 + $0xb80] sm:$0xf] }
 0x175   :  { %v1090_v50 = vrot.slane %v1089_v32, 2  ;;  %v1063_v62 = vadd.f32 %v1062_v44, %v1061_v20  ;;  %v12351_v20 = vld [vmem:[#allocation12 + $0x540] sm:$0xf0]  ;;  %v16723_v59 = vld [vmem:[#allocation12 + $0xebc] sm:$0xf0] }
 0x176   :  { %v17960_v61 = vadd.f32 %v1084_v43, %v1083_v19  ;;  %v1058_v15 = vrot.slane %v1057_v55, 1  ;;  %4303 = vmatpush.bf16.msra.mxu2 %v11838_v6  ;;  %v16411_v19 = vld [vmem:[#allocation12 + $0x504] sm:$0xf] }
 0x177   :  { %v1091_v9 = vadd.f32 %v1090_v50, %v1089_v32  ;;  %v1064_v21 = vrot.slane %v1063_v62, 1  ;;  %v12354_v25 = vor.u32 %v16411_v19, %v12351_v20  ;;  %v11775_v43 = vld [vmem:[#allocation12 + $0xc0] sm:$0xf0]  ;;  %4317 = vmatpush.bf16.msra.mxu3 %v12286_v41  ;;  %v13629_v41 = vld [vmem:[#allocation12 + $0xf00] sm:$0xf] }
 0x178   :  { %v1086_v30 = vrot.slane %v17960_v61, 1  ;;  %v1059_v44 = vadd.f32 %v1058_v15, %v1057_v55 }
 0x179   :  { %v1024_v46 = vpop.f32.mrf.mxu2  ;;  %v1092_v38 = vrot.slane %v1091_v9, 1  ;;  %4368 = vmatpush.bf16.msra.mxu1 %v12354_v25  ;;  %v1065_v47 = vadd.f32 %v1064_v21, %v1063_v62  ;;  %v11711_v62 = vld [vmem:[#allocation12 + $0x40] sm:$0xf0]  ;;  %v13182_v21 = vor.u32 %v16627_v13, %v13181_v12  ;;  %v16372_v25 = vld [vmem:[#allocation12 + $0x3c4] sm:$0xf0] }
 0x17a   :  { %v17956_v27 = vadd.f32 %v1024_v46, %v944_v42  ;;  %v1044_v33 = vpop.f32.mrf.mxu3  ;;  %v16267_v42 = vld [vmem:[#allocation12 + $0x84] sm:$0xf]  ;;  %4304 = vmatpush.bf16.msra.mxu2 %v11774_v35  ;;  %v1087_v53 = vadd.f32 %v1086_v30, %v17960_v61  ;;  %v16500_v35 = vld [vmem:[#allocation12 + $0x7c4] sm:$0xf0] }
 0x17b   :  { %v17958_v56 = vadd.f32 %v1044_v33, %v945_v31  ;;  %v11778_v26 = vor.u32 %v16267_v42, %v11775_v43  ;;  %v16395_v31 = vld [vmem:[#allocation12 + $0x484] sm:$0xf]  ;;  %v11709_v33 = vld [vmem:[#allocation12] sm:$0xf]  ;;  %4318 = vmatpush.bf16.msra.mxu3 %v12222_v2  ;;  %v1107_v14 = vadd.f32 %v1065_v47, %v1059_v44  ;;  %v12101_v43 = vld [vmem:[#allocation12 + $0x308] sm:$0xf] }
 0x17c   :  { %v1066_v63 = vrot.slane %v17956_v27, 4  ;;  %v1080_v0 = vmul.f32 %v17956_v27, %v17956_v27  ;;  %v12287_v46 = vld [vmem:[#allocation12 + $0x4c0] sm:$0xf0]  ;;  %v11710_v55 = vor.u32 %v16259_v52, %v11709_v33  ;;  %v16739_v42 = vld [vmem:[#allocation12 + $0xf3c] sm:$0xf0] }
 0x17d   :  { %v1072_v3 = vrot.slane %v17958_v56, 4  ;;  %v1081_v4 = vmul.f32 %v17958_v56, %v17958_v56  ;;  %v12290_v50 = vor.u32 %v16395_v31, %v12287_v46  ;;  %4356 = vmatpush.bf16.msra.mxu0 %v11778_v26  ;;  %v16356_v31 = vld [vmem:[#allocation12 + $0x344] sm:$0xf0]  ;;  %v16595_v33 = vld [vmem:[#allocation12 + $0xabc] sm:$0xf0] }
 0x17e   :  { %v1067_v10 = vadd.f32 %v1066_v63, %v17956_v27  ;;  %v1094_v11 = vrot.slane %v1080_v0, 4  ;;  %v1093_v63 = vadd.f32 %v1092_v38, %v1091_v9  ;;  %4305 = vmatpush.bf16.msra.mxu2 %v11710_v55  ;;  %v12613_v46 = vld [vmem:[#allocation12 + $0x708] sm:$0xf]  ;;  %v13565_v55 = vld [vmem:[#allocation12 + $0xe80] sm:$0xf] }
 0x17f   :  { %v1073_v16 = vadd.f32 %v1072_v3, %v17958_v56  ;;  %v1100_v17 = vrot.slane %v1081_v4, 4  ;;  %v16251_v3 = vld [vmem:[#allocation12 + $0x4] sm:$0xf]  ;;  %4369 = vmatpush.bf16.msra.mxu1 %v12290_v50  ;;  %v13053_v50 = vld [vmem:[#allocation12 + $0xa80] sm:$0xf] }
 0x180   :  { %v1068_v22 = vrot.slane %v1067_v10, 2  ;;  %v1095_v24 = vadd.f32 %v1094_v11, %v1080_v0  ;;  %v11714_v6 = vor.u32 %v16251_v3, %v11711_v62  ;;  %v12226_v11 = vor.u32 %v16379_v7, %v12223_v8  ;;  %v16340_v2 = vld [vmem:[#allocation12 + $0x2c4] sm:$0xf0]  ;;  %v16579_v7 = vld [vmem:[#allocation12 + $0xa3c] sm:$0xf0] }
 0x181   :  { %v1074_v32 = vrot.slane %v1073_v16, 2  ;;  %v1101_v34 = vadd.f32 %v1100_v17, %v1081_v4  ;;  %v13693_v17 = vld [vmem:[#allocation12 + $0xf80] sm:$0xf]  ;;  %v1111_v19 = vadd.f32 %v1093_v63, %v1087_v53  ;;  %v12549_v3 = vld [vmem:[#allocation12 + $0x688] sm:$0xf] }
 0x182   :  { %v1069_v39 = vadd.f32 %v1068_v22, %v1067_v10  ;;  %v1096_v40 = vrot.slane %v1095_v24, 2  ;;  %4357 = vmatpush.bf16.msra.mxu0 %v11714_v6  ;;  %v13694_v22 = vor.u32 %v16755_v18, %v13693_v17  ;;  %4324 = vmatpush.bf16.msrb.mxu2 %v13182_v21  ;;  %v12989_v6 = vld [vmem:[#allocation12 + $0xa00] sm:$0xf]  ;;  %v11973_v12 = vld [vmem:[#allocation12 + $0x208] sm:$0xf] }
 0x183   :  { %v1075_v23 = vadd.f32 %v1074_v32, %v1073_v16  ;;  %v1102_v45 = vrot.slane %v1101_v34, 2  ;;  %4370 = vmatpush.bf16.msra.mxu1 %v12226_v11  ;;  %v16707_v11 = vld [vmem:[#allocation12 + $0xe3c] sm:$0xf0]  ;;  %v12485_v17 = vld [vmem:[#allocation12 + $0x608] sm:$0xf] }
 0x184   :  { %v1070_v48 = vrot.slane %v1069_v39, 1  ;;  %v1097_v49 = vadd.f32 %v1096_v40, %v1095_v24  ;;  %v12165_v24 = vld [vmem:[#allocation12 + $0x388] sm:$0xf]  ;;  %4337 = vmatpush.bf16.msrb.mxu3 %v13694_v22  ;;  %v13118_v40 = vor.u32 %v16611_v37, %v13117_v36  ;;  %v13437_v21 = vld [vmem:[#allocation12 + $0xd80] sm:$0xf] }
 0x185   :  { %v1076_v54 = vrot.slane %v1075_v23, 1  ;;  %v1103_v58 = vadd.f32 %v1102_v45, %v1101_v34  ;;  %v12166_v38 = vor.u32 %v16372_v25, %v12165_v24  ;;  %v16452_v18 = vld [vmem:[#allocation12 + $0x644] sm:$0xf0]  ;;  %v16691_v25 = vld [vmem:[#allocation12 + $0xdbc] sm:$0xf0] }
 0x186   :  { %v1071_v0 = vadd.f32 %v1070_v48, %v1069_v39  ;;  %v1098_v1 = vrot.slane %v1097_v49, 1  ;;  %v12678_v39 = vor.u32 %v16500_v35, %v12677_v28  ;;  %v12102_v48 = vor.u32 %v16356_v31, %v12101_v43  ;;  %4325 = vmatpush.bf16.msrb.mxu2 %v13118_v40  ;;  %v11909_v28 = vld [vmem:[#allocation12 + $0x188] sm:$0xf]  ;;  %v12861_v36 = vld [vmem:[#allocation12 + $0x900] sm:$0xf] }
 0x187   :  { %v1077_v4 = vadd.f32 %v1076_v54, %v1075_v23  ;;  %v1104_v5 = vrot.slane %v1103_v58, 1  ;;  %4402 = vmatpush.bf16.msrb.mxu0 %v12166_v38  ;;  %v12486_v24 = vor.u32 %v16452_v18, %v12485_v17  ;;  %v13438_v35 = vor.u32 %v16691_v25, %v13437_v21  ;;  %v16547_v37 = vld [vmem:[#allocation12 + $0x93c] sm:$0xf0]  ;;  %v16420_v31 = vld [vmem:[#allocation12 + $0x544] sm:$0xf0] }
 0x188   :  { %v1099_v61 = vadd.f32 %v1098_v1, %v1097_v49  ;;  %v1108_v10 = vadd.f32 %v1071_v0, %v1065_v47  ;;  %4415 = vmatpush.bf16.msrb.mxu1 %v12678_v39  ;;  %v13630_v47 = vor.u32 %v16739_v42, %v13629_v41  ;;  %v16484_v49 = vld [vmem:[#allocation12 + $0x744] sm:$0xf0]  ;;  %v13373_v38 = vld [vmem:[#allocation12 + $0xd00] sm:$0xf] }
 0x189   :  { %v1105_v9 = vadd.f32 %v1104_v5, %v1103_v58  ;;  %v1106_v15 = vadd.f32 %v1077_v4, %v1059_v44  ;;  %v1109_v16 = vadd.f32 %v1077_v4, %v1071_v0  ;;  %v12614_v60 = vor.u32 %v16484_v49, %v12613_v46  ;;  %v12037_v1 = vld [vmem:[#allocation12 + $0x288] sm:$0xf]  ;;  %v16675_v41 = vld [vmem:[#allocation12 + $0xd3c] sm:$0xf0] }
 0x18a   :  { %v1112_v20 = vadd.f32 %v1099_v61, %v1093_v63  ;;  %4338 = vmatpush.bf16.msrb.mxu3 %v13630_v47  ;;  %v13054_v63 = vor.u32 %v16595_v33, %v13053_v50  ;;  %v13566_v0 = vor.u32 %v16723_v59, %v13565_v55  ;;  %v16468_v5 = vld [vmem:[#allocation12 + $0x6c4] sm:$0xf0]  ;;  %v12038_v8 = vor.u32 %v16340_v2, %v12037_v1  ;;  %v12797_v33 = vld [vmem:[#allocation12 + $0x880] sm:$0xf] }
 0x18b   :  { %v1110_v29 = vadd.f32 %v1105_v9, %v1087_v53  ;;  %v1113_v30 = vadd.f32 %v1105_v9, %v1099_v61  ;;  %v1114_v32 = vadd.f32 %v1108_v10, %v1106_v15  ;;  %v1115_v34 = vadd.f32 %v1109_v16, %v1107_v14  ;;  %4403 = vmatpush.bf16.msrb.mxu0 %v12102_v48  ;;  %v13501_v10 = vld [vmem:[#allocation12 + $0xe00] sm:$0xf]  ;;  %v16324_v9 = vld [vmem:[#allocation12 + $0x244] sm:$0xf0] }
 0x18c   :  { %4416 = vmatpush.bf16.msrb.mxu1 %v12614_v60  ;;  %v12550_v61 = vor.u32 %v16468_v5, %v12549_v3  ;;  %4326 = vmatpush.bf16.msrb.mxu2 %v13054_v63  ;;  %v12990_v15 = vor.u32 %v16579_v7, %v12989_v6  ;;  %v13502_v16 = vor.u32 %v16707_v11, %v13501_v10  ;;  %v11845_v42 = vld [vmem:[#allocation12 + $0x108] sm:$0xf]  ;;  %v13309_v55 = vld [vmem:[#allocation12 + $0xc80] sm:$0xf] }
 0x18d   :  { %v1116_v44 = vadd.f32 %v1112_v20, %v1110_v29  ;;  %v1117_v23 = vadd.f32 %v1113_v30, %v1111_v19  ;;  %v17972_v45 = vmul.f32 0.03125, %v1114_v32  ;;  %v17974_v26 = vmul.f32 0.03125, %v1115_v34  ;;  %v12925_v19 = vld [vmem:[#allocation12 + $0x980] sm:$0xf]  ;;  %v16308_v29 = vld [vmem:[#allocation12 + $0x1c4] sm:$0xf0] }
 0x18e   :  { %4339 = vmatpush.bf16.msrb.mxu3 %v13566_v0  ;;  %v16563_v20 = vld [vmem:[#allocation12 + $0x9bc] sm:$0xf0]  ;;  %v11974_v22 = vor.u32 %v16324_v9, %v11973_v12  ;;  %v12421_v30 = vld [vmem:[#allocation12 + $0x588] sm:$0xf]  ;;  %v11910_v39 = vor.u32 %v16308_v29, %v11909_v28  ;;  %v12862_v48 = vor.u32 %v16547_v37, %v12861_v36  ;;  %v13374_v49 = vor.u32 %v16675_v41, %v13373_v38 }
 0x18f   :  { %v1120_v52 = vmul.f32 0.03125, %v1116_v44  ;;  %v1121_v53 = vmul.f32 0.03125, %v1117_v23  ;;  %v1122_v54 = vmul.f32 %v17972_v45, %v17972_v45  ;;  %v1123_v58 = vmul.f32 %v17974_v26, %v17974_v26  ;;  %4404 = vmatpush.bf16.msrb.mxu0 %v12038_v8  ;;  %v16436_v32 = vld [vmem:[#allocation12 + $0x5c4] sm:$0xf0]  ;;  %v16659_v59 = vld [vmem:[#allocation12 + $0xcbc] sm:$0xf0] }
 0x190   :  { %4417 = vmatpush.bf16.msrb.mxu1 %v12550_v61  ;;  %4327 = vmatpush.bf16.msrb.mxu2 %v12990_v15  ;;  %v12926_v34 = vor.u32 %v16563_v20, %v12925_v19  ;;  %v12422_v40 = vor.u32 %v16436_v32, %v12421_v30  ;;  %v16292_v44 = vld [vmem:[#allocation12 + $0x144] sm:$0xf0]  ;;  %v12733_v6 = vld [vmem:[#allocation12 + $0x800] sm:$0xf] }
 0x191   :  { %v1124_v62 = vsub.f32 %v1120_v52, %v1122_v54  ;;  %v1125_v4 = vsub.f32 %v1121_v53, %v1123_v58  ;;  %v12357_v23 = vld [vmem:[#allocation12 + $0x508] sm:$0xf]  ;;  %v16531_v52 = vld [vmem:[#allocation12 + $0x8bc] sm:$0xf0]  ;;  %v11846_v54 = vor.u32 %v16292_v44, %v11845_v42 }
 0x192   :  { %4340 = vmatpush.bf16.msrb.mxu3 %v13502_v16  ;;  %v12358_v58 = vor.u32 %v16420_v31, %v12357_v23  ;;  %v11781_v63 = vld [vmem:[#allocation12 + $0x88] sm:$0xf]  ;;  %v12798_v3 = vor.u32 %v16531_v52, %v12797_v33  ;;  %v16515_v7 = vld [vmem:[#allocation12 + $0x83c] sm:$0xf0] }
 0x193   :  { %v17980_v13 = vadd.f32 1e-05, %v1124_v62  ;;  %v17982_v14 = vadd.f32 1e-05, %v1125_v4  ;;  %4405 = vmatpush.bf16.msrb.mxu0 %v11974_v22  ;;  %v16276_v0 = vld [vmem:[#allocation12 + $0xc4] sm:$0xf0]  ;;  %v13310_v62 = vor.u32 %v16659_v59, %v13309_v55  ;;  %v12734_v18 = vor.u32 %v16515_v7, %v12733_v6 }
 0x194   :  { %4418 = vmatpush.bf16.msrb.mxu1 %v12486_v24  ;;  %4328 = vmatpush.bf16.msrb.mxu2 %v12926_v34  ;;  %v12293_v1 = vld [vmem:[#allocation12 + $0x488] sm:$0xf]  ;;  %v11782_v61 = vor.u32 %v16276_v0, %v11781_v63  ;;  %v13245_v11 = vld [vmem:[#allocation12 + $0xc00] sm:$0xf]  ;;  %v13183_v7 = vld [vmem:[#allocation12 + $0xbc0] sm:$0xf0] }
 0x195   :  { %17369 = vrsqrt.f32 %v17980_v13  ;;  %v16404_v4 = vld [vmem:[#allocation12 + $0x4c4] sm:$0xf0]  ;;  %v16643_v12 = vld [vmem:[#allocation12 + $0xc3c] sm:$0xf0]  ;;  %vm1134_vm5 = vweird.f32 %v17980_v13  ;;  %vm1144_vm7 = vweird.f32 %v17982_v14 }
 0x196   :  { %17371 = vrsqrt.f32 %v17982_v14  ;;  %4341 = vmatpush.bf16.msrb.mxu3 %v13438_v35  ;;  %v12294_v10 = vor.u32 %v16404_v4, %v12293_v1  ;;  %v11717_v15 = vld [vmem:[#allocation12 + $0x8] sm:$0xf]  ;;  %v13246_v19 = vor.u32 %v16643_v12, %v13245_v11  ;;  %v1051_v34 = vld [vmem:[#allocation20] ss:$2 sm:$0xf] }
 0x197   :  { %4406 = vmatpush.bf16.msrb.mxu0 %v11910_v39  ;;  %v16260_v16 = vld [vmem:[#allocation12 + $0x44] sm:$0xf0]  ;;  %v12167_v11 = vld [vmem:[#allocation12 + $0x3c8] sm:$0xf0] }
 0x198   :  { %4419 = vmatpush.bf16.msrb.mxu1 %v12422_v40  ;;  %4329 = vmatpush.bf16.msrb.mxu2 %v12862_v48  ;;  %v12229_v20 = vld [vmem:[#allocation12 + $0x408] sm:$0xf]  ;;  %v11718_v25 = vor.u32 %v16260_v16, %v11717_v15  ;;  %v1053_v48 = vld [vmem:[#allocation20 + $0x1] ss:$2 sm:$0xf] }
 0x199   :  { %v16388_v21 = vld [vmem:[#allocation12 + $0x444] sm:$0xf0]  ;;  %v16492_v12 = vld [vmem:[#allocation12 + $0x78c] sm:$0xf] }
 0x19a   :  { %4342 = vmatpush.bf16.msrb.mxu3 %v13374_v49  ;;  %v12230_v28 = vor.u32 %v16388_v21, %v12229_v20  ;;  %v13119_v20 = vld [vmem:[#allocation12 + $0xb40] sm:$0xf0] }
 0x19b   :  { %v17370_v43 = vpop.eup %17369  ;;  %4407 = vmatpush.bf16.msrb.mxu0 %v11846_v54 }
 0x19c   :  { %v17372_v46 = vpop.eup %17371  ;;  %v1129_v47 = vmul.f32 %v17370_v43, %v17980_v13  ;;  %vm1135_vm3 = vweird.f32 %v17370_v43  ;;  %4420 = vmatpush.bf16.msrb.mxu1 %v12358_v58  ;;  %4330 = vmatpush.bf16.msrb.mxu2 %v12798_v3 }
 0x19d   :  { %v1139_v50 = vmul.f32 %v17372_v46, %v17982_v14  ;;  %vm1145_vm4 = vweird.f32 %v17372_v46  ;;  %vm1136_vm6 = vmor %vm1134_vm5, %vm1135_vm3 }
 0x19e   :  { %v1130_v53 = vmul.f32 %v17370_v43, %v1129_v47  ;;  %4343 = vmatpush.bf16.msrb.mxu3 %v13310_v62  ;;  %vm1146_vm8 = vmor %vm1144_vm7, %vm1145_vm4 }
 0x19f   :  { %v1140_v60 = vmul.f32 %v17372_v46, %v1139_v50  ;;  %4408 = vmatpush.bf16.msrb.mxu0 %v11782_v61 }
 0x1a0   :  { %v1131_v2 = vmul.f32 0.5, %v1130_v53  ;;  %4421 = vmatpush.bf16.msrb.mxu1 %v12294_v10  ;;  %4331 = vmatpush.bf16.msrb.mxu2 %v12734_v18 }
 0x1a1   :  { %v1141_v5 = vmul.f32 0.5, %v1140_v60 }
 0x1a2   :  { %v1132_v8 = vsub.f32 1.5, %v1131_v2  ;;  %4344 = vmatpush.bf16.msrb.mxu3 %v13246_v19  ;;  %v16603_v19 = vld [vmem:[#allocation12 + $0xb04] sm:$0xf] }
 0x1a3   :  { %v1142_v9 = vsub.f32 1.5, %v1141_v5  ;;  %4409 = vmatpush.bf16.msrb.mxu0 %v11718_v25  ;;  %v13631_v25 = vld [vmem:[#allocation12 + $0xf40] sm:$0xf0] }
 0x1a4   :  { %v1133_v17 = vmul.f32 %v17370_v43, %v1132_v8  ;;  %4422 = vmatpush.bf16.msrb.mxu1 %v12230_v28  ;;  %v13695_v8 = vld [vmem:[#allocation12 + $0xfc0] sm:$0xf0]  ;;  %v16348_v28 = vld [vmem:[#allocation12 + $0x30c] sm:$0xf] }
 0x1a5   :  { %v1143_v22 = vmul.f32 %v17372_v46, %v1142_v9  ;;  %v12679_v9 = vld [vmem:[#allocation12 + $0x7c8] sm:$0xf0] }
 0x1a6   :  { %v1137_v24 = vsel %vm1136_vm6, %v17370_v43, %v1133_v17 }
 0x1a7   :  { %v1147_v29 = vsel %vm1146_vm8, %v17372_v46, %v1143_v22  ;;  %v1151_v13 = vrot.slane %v1137_v24, 6  ;;  %v12682_v22 = vor.u32 %v16492_v12, %v12679_v9  ;;  %v16284_v12 = vld [vmem:[#allocation12 + $0x10c] sm:$0xf] }
 0x1a8   :  { %v1150_v30 = vrot.slane %v1147_v29, 7  ;;  %v1152_v32 = vrot.slane %v1147_v29, 5  ;;  %v12103_v29 = vld [vmem:[#allocation12 + $0x348] sm:$0xf0] }
 0x1a9   :  { %v11847_v9 = vld [vmem:[#allocation12 + $0x148] sm:$0xf0] }
 0x1aa   :  { %v1154_v35 = vsel %vm1153_vm9, %v1137_v24, %v1150_v30  ;;  %v1156_v14 = vsel %vm1155_vm10, %v1151_v13, %v1152_v32  ;;  %v16731_v24 = vld [vmem:[#allocation12 + $0xf04] sm:$0xf]  ;;  %v16476_v13 = vld [vmem:[#allocation12 + $0x70c] sm:$0xf]  ;;  %v13122_v32 = vor.u32 %v16603_v19, %v13119_v20 }
 0x1ab   :  { %v1157_v36 = vsel %vm653_vm1, %v1154_v35, %v1156_v14  ;;  %v12615_v30 = vld [vmem:[#allocation12 + $0x748] sm:$0xf0]  ;;  %v16587_v35 = vld [vmem:[#allocation12 + $0xa84] sm:$0xf] }
 0x1ac   :  { %v1159_v37 = vmul.f32 %v1157_v36, %v1051_v34  ;;  %v13634_v34 = vor.u32 %v16731_v24, %v13631_v25  ;;  %v13055_v14 = vld [vmem:[#allocation12 + $0xac0] sm:$0xf0]  ;;  %v12106_v36 = vor.u32 %v16348_v28, %v12103_v29  ;;  %v11850_v24 = vor.u32 %v16284_v12, %v11847_v9  ;;  %v12045_v12 = vld [vmem:[#allocation12 + $0x290] sm:$0xf] }
 0x1ad   :  { %v16651_v28 = vld [vmem:[#allocation12 + $0xc84] sm:$0xf]  ;;  %v16341_v9 = vld [vmem:[#allocation12 + $0x2cc] sm:$0xf0] }
 0x1ae   :  { %v1161_v38 = vperm.slane %v1159_v37, 0  ;;  %v1162_v39 = vperm.slane %v1159_v37, 1  ;;  %v1163_v40 = vperm.slane %v1159_v37, 2  ;;  %v1164_v41 = vperm.slane %v1159_v37, 3  ;;  %v13311_v29 = vld [vmem:[#allocation12 + $0xcc0] sm:$0xf0] }
 0x1af   :  { %v12618_v37 = vor.u32 %v16476_v13, %v12615_v30  ;;  %v16268_v13 = vld [vmem:[#allocation12 + $0x8c] sm:$0xf] }
 0x1b0   :  { %v1170_v42 = vmul.f32 %v1162_v39, %v17974_v26  ;;  %v1171_v43 = vmul.f32 %v1163_v40, %v17972_v45  ;;  %v1172_v44 = vmul.f32 %v1164_v41, %v17974_v26  ;;  %v1169_v23 = vmul.f32 %v1161_v38, %v17972_v45  ;;  %v11783_v30 = vld [vmem:[#allocation12 + $0xc8] sm:$0xf0] }
 0x1b1   :  { %v1185_v53 = vmul.f32 %v1161_v38, %v17940_v51  ;;  %v1186_v54 = vmul.f32 %v1162_v39, %v17942_v57  ;;  %v1187_v58 = vmul.f32 %v1163_v40, %v17956_v27  ;;  %v1188_v26 = vmul.f32 %v1164_v41, %v17958_v56  ;;  %v16619_v57 = vld [vmem:[#allocation12 + $0xb84] sm:$0xf]  ;;  %v16364_v56 = vld [vmem:[#allocation12 + $0x38c] sm:$0xf] }
 0x1b2   :  { %v1177_v31 = vrot.slane %v1170_v42, 7  ;;  %v1178_v46 = vrot.slane %v1171_v43, 6  ;;  %v1179_v47 = vrot.slane %v1172_v44, 5  ;;  %v16747_v27 = vld [vmem:[#allocation12 + $0xf84] sm:$0xf]  ;;  %v13186_v17 = vor.u32 %v16619_v57, %v13183_v7 }
 0x1b3   :  { %v13698_v18 = vor.u32 %v16747_v27, %v13695_v8  ;;  %v12170_v21 = vor.u32 %v16364_v56, %v12167_v11  ;;  %v16715_v38 = vld [vmem:[#allocation12 + $0xe84] sm:$0xf]  ;;  %v16332_v40 = vld [vmem:[#allocation12 + $0x28c] sm:$0xf]  ;;  %v13058_v44 = vor.u32 %v16587_v35, %v13055_v14 }
 0x1b4   :  { %v1180_v49 = vsel %vm1153_vm9, %v1169_v23, %v1177_v31  ;;  %v1181_v50 = vsel %vm1155_vm10, %v1178_v46, %v1179_v47  ;;  %v13567_v39 = vld [vmem:[#allocation12 + $0xec0] sm:$0xf0]  ;;  %v12039_v41 = vld [vmem:[#allocation12 + $0x2c8] sm:$0xf0] }
 0x1b5   :  { %v1182_v33 = vsel %vm653_vm1, %v1180_v49, %v1181_v50  ;;  %v16460_v42 = vld [vmem:[#allocation12 + $0x68c] sm:$0xf]  ;;  %v13570_v23 = vor.u32 %v16715_v38, %v13567_v39  ;;  %v16571_v31 = vld [vmem:[#allocation12 + $0xa04] sm:$0xf]  ;;  %v12042_v47 = vor.u32 %v16332_v40, %v12039_v41  ;;  %v11786_v40 = vor.u32 %v16268_v13, %v11783_v30  ;;  %v11981_v13 = vld [vmem:[#allocation12 + $0x210] sm:$0xf] }
 0x1b6   :  { %v1184_v52 = vsub.f32 %v1053_v48, %v1182_v33  ;;  %v12551_v43 = vld [vmem:[#allocation12 + $0x6c8] sm:$0xf0]  ;;  %v12991_v46 = vld [vmem:[#allocation12 + $0xa40] sm:$0xf0]  ;;  %v16325_v30 = vld [vmem:[#allocation12 + $0x24c] sm:$0xf0] }
 0x1b7   :  { %v12554_v48 = vor.u32 %v16460_v42, %v12551_v43  ;;  %v16699_v49 = vld [vmem:[#allocation12 + $0xe04] sm:$0xf]  ;;  %v16316_v33 = vld [vmem:[#allocation12 + $0x20c] sm:$0xf] }
 0x1b8   :  { %v1190_v45 = vperm.slane %v1184_v52, 0  ;;  %v1191_v55 = vperm.slane %v1184_v52, 1  ;;  %v1192_v59 = vperm.slane %v1184_v52, 2  ;;  %v1193_v60 = vperm.slane %v1184_v52, 3  ;;  %v13503_v50 = vld [vmem:[#allocation12 + $0xe40] sm:$0xf0] }
 0x1b9   :  { %v11975_v52 = vld [vmem:[#allocation12 + $0x248] sm:$0xf0]  ;;  %v16539_v27 = vld [vmem:[#allocation12 + $0x904] sm:$0xf] }
 0x1ba   :  { %v1198_v63 = vadd.f32 %v1190_v45, %v1185_v53  ;;  %v1199_v0 = vadd.f32 %v1191_v55, %v1186_v54  ;;  %v1200_v1 = vadd.f32 %v1192_v59, %v1187_v58  ;;  %v1201_v2 = vadd.f32 %v1193_v60, %v1188_v26  ;;  %v16444_v53 = vld [vmem:[#allocation12 + $0x60c] sm:$0xf]  ;;  %v16555_v59 = vld [vmem:[#allocation12 + $0x984] sm:$0xf] }
 0x1bb   :  { %v12487_v54 = vld [vmem:[#allocation12 + $0x648] sm:$0xf0]  ;;  %v12994_v45 = vor.u32 %v16571_v31, %v12991_v46  ;;  %v13506_v55 = vor.u32 %v16699_v49, %v13503_v50  ;;  %v12927_v60 = vld [vmem:[#allocation12 + $0x9c0] sm:$0xf0]  ;;  %v13189_v31 = vld [vmem:[#allocation12 + $0xb88] sm:$0xf] }
 0x1bc   :  { %v1202_v3 = vmax.f32 %v1198_v63, 0.0  ;;  %v1203_v62 = vmax.f32 %v1199_v0, 0.0  ;;  %v1204_v4 = vmax.f32 %v1200_v1, 0.0  ;;  %v1205_v5 = vmax.f32 %v1201_v2, 0.0  ;;  %v16683_v1 = vld [vmem:[#allocation12 + $0xd84] sm:$0xf] }
 0x1bd   :  { %v11978_v63 = vor.u32 %v16316_v33, %v11975_v52  ;;  %v12490_v0 = vor.u32 %v16444_v53, %v12487_v54  ;;  %v13439_v2 = vld [vmem:[#allocation12 + $0xdc0] sm:$0xf0]  ;;  %v16252_v42 = vld [vmem:[#allocation12 + $0xc] sm:$0xf]  ;;  %v16628_v46 = vld [vmem:[#allocation12 + $0xbc4] sm:$0xf0] }
 0x1be   :  { %v1206_v6 = vpack.c.bf16 %v1203_v62, %v1202_v3  ;;  %v18006_v51 = vpack.c.bf16 %v1205_v5, %v1204_v4  ;;  %v16300_v3 = vld [vmem:[#allocation12 + $0x18c] sm:$0xf]  ;;  %v13442_v7 = vor.u32 %v16683_v1, %v13439_v2  ;;  %v12863_v8 = vld [vmem:[#allocation12 + $0x940] sm:$0xf0]  ;;  %v12173_v49 = vld [vmem:[#allocation12 + $0x390] sm:$0xf] }
 0x1bf   :  { %v11911_v62 = vld [vmem:[#allocation12 + $0x1c8] sm:$0xf0]  ;;  %v13375_v11 = vld [vmem:[#allocation12 + $0xd40] sm:$0xf0]  ;;  %v12866_v19 = vor.u32 %v16539_v27, %v12863_v8  ;;  %v16373_v52 = vld [vmem:[#allocation12 + $0x3cc] sm:$0xf0] }
 0x1c0   :  { %v1726_v61 = vunpack.c.l.b16 %v1206_v6  ;;  %v1727_v10 = vunpack.c.h.b16 %v1206_v6  ;;  %v1728_v58 = vunpack.c.l.b16 %v18006_v51  ;;  %v1729_v26 = vunpack.c.h.b16 %v18006_v51  ;;  %v16428_v4 = vld [vmem:[#allocation12 + $0x58c] sm:$0xf]  ;;  %v16507_v35 = vld [vmem:[#allocation12 + $0x804] sm:$0xf]  ;;  %v12685_v53 = vld [vmem:[#allocation12 + $0x790] sm:$0xf] }
 0x1c1   :  { %v12423_v5 = vld [vmem:[#allocation12 + $0x5c8] sm:$0xf0]  ;;  %v12930_v6 = vor.u32 %v16555_v59, %v12927_v60  ;;  %v11914_v56 = vor.u32 %v16300_v3, %v11911_v62  ;;  %v16635_v38 = vld [vmem:[#allocation12 + $0xc04] sm:$0xf]  ;;  %v16501_v54 = vld [vmem:[#allocation12 + $0x7cc] sm:$0xf0] }
 0x1c2   :  { %v18008_v15 = vpack.c.b16 %v1726_v61, %v1726_v61  ;;  %v18010_v16 = vpack.c.b16 %v1727_v10, %v1727_v10  ;;  %v18018_v57 = vpack.c.b16 %v1728_v58, %v1728_v58  ;;  %v18020_v51 = vpack.c.b16 %v1729_v26, %v1729_v26  ;;  %v16667_v10 = vld [vmem:[#allocation12 + $0xd04] sm:$0xf]  ;;  %v11719_v43 = vld [vmem:[#allocation12 + $0x48] sm:$0xf0]  ;;  %v13125_v59 = vld [vmem:[#allocation12 + $0xb08] sm:$0xf] }
 0x1c3   :  { %v12426_v61 = vor.u32 %v16428_v4, %v12423_v5  ;;  %v13378_v20 = vor.u32 %v16667_v10, %v13375_v11  ;;  %v13247_v39 = vld [vmem:[#allocation12 + $0xc40] sm:$0xf0]  ;;  %v11722_v58 = vor.u32 %v16252_v42, %v11719_v43  ;;  %v16612_v60 = vld [vmem:[#allocation12 + $0xb44] sm:$0xf0]  ;;  %v12109_v3 = vld [vmem:[#allocation12 + $0x310] sm:$0xf] }
 0x1c4   :  { %4306 = vmatmul.bf16.vlgmr.msra.gmra.mxu2 %v18008_v15  ;;  %4319 = vmatmul.bf16.vlgmr.msra.gmra.mxu3 %v18010_v16  ;;  %v13250_v33 = vor.u32 %v16635_v38, %v13247_v39  ;;  %v13637_v1 = vld [vmem:[#allocation12 + $0xf08] sm:$0xf]  ;;  %v16357_v62 = vld [vmem:[#allocation12 + $0x34c] sm:$0xf0]  ;;  %v11982_v38 = vor.u32 %v16325_v30, %v11981_v13  ;;  %v16493_v13 = vld [vmem:[#allocation12 + $0x794] sm:$0xf] }
 0x1c5   :  { %4358 = vmatmul.bf16.vlgmr.msra.gmra.mxu0 %v18008_v15  ;;  %4371 = vmatmul.bf16.vlgmr.msra.gmra.mxu1 %v18010_v16  ;;  %v16740_v2 = vld [vmem:[#allocation12 + $0xf44] sm:$0xf0]  ;;  %v12621_v4 = vld [vmem:[#allocation12 + $0x710] sm:$0xf]  ;;  %v12687_v30 = vld [vmem:[#allocation12 + $0x7d0] sm:$0xf0] }
 0x1c6   :  { %4376 = vmatpush.bf16.msra.mxu2 %v13186_v17  ;;  %4389 = vmatpush.bf16.msra.mxu3 %v13698_v18  ;;  %v16412_v17 = vld [vmem:[#allocation12 + $0x50c] sm:$0xf]  ;;  %v16485_v5 = vld [vmem:[#allocation12 + $0x74c] sm:$0xf0]  ;;  %v13061_v27 = vld [vmem:[#allocation12 + $0xa88] sm:$0xf] }
 0x1c7   :  { %4454 = vmatpush.bf16.msra.mxu0 %v12170_v21  ;;  %4467 = vmatpush.bf16.msra.mxu1 %v12682_v22  ;;  %v12359_v18 = vld [vmem:[#allocation12 + $0x548] sm:$0xf0]  ;;  %v16523_v21 = vld [vmem:[#allocation12 + $0x884] sm:$0xf]  ;;  %v16596_v8 = vld [vmem:[#allocation12 + $0xac4] sm:$0xf0] }
 0x1c8   :  { %v12799_v22 = vld [vmem:[#allocation12 + $0x8c0] sm:$0xf0]  ;;  %v12362_v25 = vor.u32 %v16412_v17, %v12359_v18  ;;  %v13573_v10 = vld [vmem:[#allocation12 + $0xe88] sm:$0xf]  ;;  %v12557_v17 = vld [vmem:[#allocation12 + $0x690] sm:$0xf] }
 0x1c9   :  { %v12802_v14 = vor.u32 %v16523_v21, %v12799_v22  ;;  %v16724_v11 = vld [vmem:[#allocation12 + $0xec4] sm:$0xf0]  ;;  %v16469_v18 = vld [vmem:[#allocation12 + $0x6cc] sm:$0xf0] }
 0x1ca   :  { %4377 = vmatpush.bf16.msra.mxu2 %v13122_v32  ;;  %4390 = vmatpush.bf16.msra.mxu3 %v13634_v34  ;;  %v16396_v32 = vld [vmem:[#allocation12 + $0x48c] sm:$0xf]  ;;  %v12997_v21 = vld [vmem:[#allocation12 + $0xa08] sm:$0xf]  ;;  %v11917_v42 = vld [vmem:[#allocation12 + $0x190] sm:$0xf] }
 0x1cb   :  { %4455 = vmatpush.bf16.msra.mxu0 %v12106_v36  ;;  %4468 = vmatpush.bf16.msra.mxu1 %v12618_v37  ;;  %v12295_v34 = vld [vmem:[#allocation12 + $0x4c8] sm:$0xf0]  ;;  %v13314_v36 = vor.u32 %v16651_v28, %v13311_v29  ;;  %v12735_v37 = vld [vmem:[#allocation12 + $0x840] sm:$0xf0]  ;;  %v16580_v22 = vld [vmem:[#allocation12 + $0xa44] sm:$0xf0] }
 0x1cc   :  { %v12298_v41 = vor.u32 %v16396_v32, %v12295_v34  ;;  %v12738_v50 = vor.u32 %v16507_v35, %v12735_v37  ;;  %v13509_v28 = vld [vmem:[#allocation12 + $0xe08] sm:$0xf]  ;;  %v12493_v32 = vld [vmem:[#allocation12 + $0x610] sm:$0xf]  ;;  %v12998_v35 = vor.u32 %v16580_v22, %v12997_v21  ;;  %v16748_v21 = vld [vmem:[#allocation12 + $0xf8c] sm:$0xf] }
 0x1cd   :  { %v16708_v29 = vld [vmem:[#allocation12 + $0xe44] sm:$0xf0]  ;;  %v16453_v34 = vld [vmem:[#allocation12 + $0x64c] sm:$0xf0]  ;;  %v13703_v22 = vld [vmem:[#allocation12 + $0xfc8] sm:$0xf0] }
 0x1ce   :  { %4378 = vmatpush.bf16.msra.mxu2 %v13058_v44  ;;  %4391 = vmatpush.bf16.msra.mxu3 %v13570_v23  ;;  %v16380_v44 = vld [vmem:[#allocation12 + $0x40c] sm:$0xf]  ;;  %v16564_v37 = vld [vmem:[#allocation12 + $0x9c4] sm:$0xf0]  ;;  %v12494_v39 = vor.u32 %v16453_v34, %v12493_v32  ;;  %v16309_v43 = vld [vmem:[#allocation12 + $0x1cc] sm:$0xf0] }
 0x1cf   :  { %4456 = vmatpush.bf16.msra.mxu0 %v12042_v47  ;;  %4469 = vmatpush.bf16.msra.mxu1 %v12554_v48  ;;  %v12231_v23 = vld [vmem:[#allocation12 + $0x448] sm:$0xf0]  ;;  %v13701_v47 = vld [vmem:[#allocation12 + $0xf88] sm:$0xf] }
 0x1d0   :  { %v16756_v48 = vld [vmem:[#allocation12 + $0xfc4] sm:$0xf0]  ;;  %v12234_v26 = vor.u32 %v16380_v44, %v12231_v23  ;;  %v12429_v44 = vld [vmem:[#allocation12 + $0x590] sm:$0xf] }
 0x1d1   :  { %v16437_v23 = vld [vmem:[#allocation12 + $0x5cc] sm:$0xf0] }
 0x1d2   :  { %4379 = vmatpush.bf16.msra.mxu2 %v12994_v45  ;;  %4392 = vmatpush.bf16.msra.mxu3 %v13506_v55  ;;  %v13190_v45 = vor.u32 %v16628_v46, %v13189_v31  ;;  %v13702_v55 = vor.u32 %v16756_v48, %v13701_v47  ;;  %v12869_v47 = vld [vmem:[#allocation12 + $0x908] sm:$0xf] }
 0x1d3   :  { %4457 = vmatpush.bf16.msra.mxu0 %v11978_v63  ;;  %4470 = vmatpush.bf16.msra.mxu1 %v12490_v0  ;;  %v12174_v63 = vor.u32 %v16373_v52, %v12173_v49  ;;  %v12686_v0 = vor.u32 %v16501_v54, %v12685_v53  ;;  %v16548_v48 = vld [vmem:[#allocation12 + $0x944] sm:$0xf0]  ;;  %v11918_v49 = vor.u32 %v16309_v43, %v11917_v42  ;;  %v11853_v53 = vld [vmem:[#allocation12 + $0x110] sm:$0xf]  ;;  %v16349_v42 = vld [vmem:[#allocation12 + $0x314] sm:$0xf] }
 0x1d4   :  { %4332 = vmatmul.bf16.vlgmr.msrb.gmra.mxu2 %v18018_v57  ;;  %4345 = vmatmul.bf16.vlgmr.msrb.gmra.mxu3 %v18020_v51  ;;  %v16676_v52 = vld [vmem:[#allocation12 + $0xd44] sm:$0xf0]  ;;  %v16293_v54 = vld [vmem:[#allocation12 + $0x14c] sm:$0xf0]  ;;  %v12111_v43 = vld [vmem:[#allocation12 + $0x350] sm:$0xf0] }
 0x1d5   :  { %4410 = vmatmul.bf16.vlgmr.msrb.gmra.mxu0 %v18008_v15  ;;  %4423 = vmatmul.bf16.vlgmr.msrb.gmra.mxu1 %v18010_v16 }
 0x1d6   :  { %4380 = vmatpush.bf16.msra.mxu2 %v12930_v6  ;;  %4393 = vmatpush.bf16.msra.mxu3 %v13442_v7  ;;  %v13126_v6 = vor.u32 %v16612_v60, %v13125_v59  ;;  %v13638_v7 = vor.u32 %v16740_v2, %v13637_v1  ;;  %v12805_v59 = vld [vmem:[#allocation12 + $0x888] sm:$0xf] }
 0x1d7   :  { %4458 = vmatpush.bf16.msra.mxu0 %v11914_v56  ;;  %4471 = vmatpush.bf16.msra.mxu1 %v12426_v61  ;;  %v12110_v56 = vor.u32 %v16357_v62, %v12109_v3  ;;  %v12622_v61 = vor.u32 %v16485_v5, %v12621_v4  ;;  %v16532_v60 = vld [vmem:[#allocation12 + $0x8c4] sm:$0xf0]  ;;  %v11789_v3 = vld [vmem:[#allocation12 + $0x90] sm:$0xf] }
 0x1d8   :  { %v13317_v1 = vld [vmem:[#allocation12 + $0xc88] sm:$0xf]  ;;  %v16277_v62 = vld [vmem:[#allocation12 + $0xcc] sm:$0xf0] }
 0x1d9   :  { %v16660_v2 = vld [vmem:[#allocation12 + $0xcc4] sm:$0xf0]  ;;  %v12301_v4 = vld [vmem:[#allocation12 + $0x490] sm:$0xf] }
 0x1da   :  { %4381 = vmatpush.bf16.msra.mxu2 %v12866_v19  ;;  %4394 = vmatpush.bf16.msra.mxu3 %v13378_v20  ;;  %v13062_v19 = vor.u32 %v16596_v8, %v13061_v27  ;;  %v13574_v20 = vor.u32 %v16724_v11, %v13573_v10  ;;  %v16405_v5 = vld [vmem:[#allocation12 + $0x4cc] sm:$0xf0]  ;;  %v13318_v27 = vor.u32 %v16660_v2, %v13317_v1  ;;  %v16516_v8 = vld [vmem:[#allocation12 + $0x844] sm:$0xf0]  ;;  %v16700_v1 = vld [vmem:[#allocation12 + $0xe0c] sm:$0xf] }
 0x1db   :  { %4459 = vmatpush.bf16.msra.mxu0 %v11850_v24  ;;  %4472 = vmatpush.bf16.msra.mxu1 %v12362_v25  ;;  %v12046_v24 = vor.u32 %v16341_v9, %v12045_v12  ;;  %v12558_v25 = vor.u32 %v16469_v18, %v12557_v17  ;;  %v11790_v10 = vor.u32 %v16277_v62, %v11789_v3  ;;  %v11725_v12 = vld [vmem:[#allocation12 + $0x10] sm:$0xf]  ;;  %v13511_v2 = vld [vmem:[#allocation12 + $0xe48] sm:$0xf0]  ;;  %v16317_v3 = vld [vmem:[#allocation12 + $0x214] sm:$0xf] }
 0x1dc   :  { %v12302_v11 = vor.u32 %v16405_v5, %v12301_v4  ;;  %v16261_v9 = vld [vmem:[#allocation12 + $0x4c] sm:$0xf0]  ;;  %v11983_v62 = vld [vmem:[#allocation12 + $0x250] sm:$0xf0] }
 0x1dd   :  { %v12237_v17 = vld [vmem:[#allocation12 + $0x410] sm:$0xf]  ;;  %v11726_v32 = vor.u32 %v16261_v9, %v11725_v12  ;;  %v16445_v4 = vld [vmem:[#allocation12 + $0x614] sm:$0xf] }
 0x1de   :  { %4382 = vmatpush.bf16.msra.mxu2 %v12802_v14  ;;  %4395 = vmatpush.bf16.msra.mxu3 %v13314_v36  ;;  %v13510_v14 = vor.u32 %v16708_v29, %v13509_v28  ;;  %v12933_v36 = vld [vmem:[#allocation12 + $0x988] sm:$0xf]  ;;  %v16389_v18 = vld [vmem:[#allocation12 + $0x44c] sm:$0xf0]  ;;  %v12175_v29 = vld [vmem:[#allocation12 + $0x3d0] sm:$0xf0] }
 0x1df   :  { %4460 = vmatpush.bf16.msra.mxu0 %v11786_v40  ;;  %4473 = vmatpush.bf16.msra.mxu1 %v12298_v41  ;;  %v13445_v40 = vld [vmem:[#allocation12 + $0xd88] sm:$0xf]  ;;  %v12934_v31 = vor.u32 %v16564_v37, %v12933_v36  ;;  %v12238_v34 = vor.u32 %v16389_v18, %v12237_v17  ;;  %v16604_v36 = vld [vmem:[#allocation12 + $0xb0c] sm:$0xf]  ;;  %v12495_v5 = vld [vmem:[#allocation12 + $0x650] sm:$0xf0] }
 0x1e0   :  { %v16692_v41 = vld [vmem:[#allocation12 + $0xdc4] sm:$0xf0]  ;;  %v13127_v37 = vld [vmem:[#allocation12 + $0xb48] sm:$0xf0]  ;;  %v16301_v12 = vld [vmem:[#allocation12 + $0x194] sm:$0xf] }
 0x1e1   :  { %v13446_v46 = vor.u32 %v16692_v41, %v13445_v40  ;;  %v16732_v40 = vld [vmem:[#allocation12 + $0xf0c] sm:$0xf]  ;;  %v11919_v9 = vld [vmem:[#allocation12 + $0x1d0] sm:$0xf0] }
 0x1e2   :  { %4383 = vmatpush.bf16.msra.mxu2 %v12738_v50  ;;  %4396 = vmatpush.bf16.msra.mxu3 %v13250_v33  ;;  %v12430_v50 = vor.u32 %v16437_v23, %v12429_v44  ;;  %v13381_v33 = vld [vmem:[#allocation12 + $0xd08] sm:$0xf]  ;;  %v13639_v41 = vld [vmem:[#allocation12 + $0xf48] sm:$0xf0]  ;;  %v16477_v44 = vld [vmem:[#allocation12 + $0x714] sm:$0xf] }
 0x1e3   :  { %4461 = vmatpush.bf16.msra.mxu0 %v11722_v58  ;;  %4474 = vmatpush.bf16.msra.mxu1 %v12234_v26  ;;  %v12365_v58 = vld [vmem:[#allocation12 + $0x510] sm:$0xf]  ;;  %v12623_v23 = vld [vmem:[#allocation12 + $0x750] sm:$0xf0] }
 0x1e4   :  { %v16421_v26 = vld [vmem:[#allocation12 + $0x54c] sm:$0xf0]  ;;  %v16429_v17 = vld [vmem:[#allocation12 + $0x594] sm:$0xf] }
 0x1e5   :  { %4384 = vmatmul.bf16.vlgmr.msra.gmra.mxu2 %v18018_v57  ;;  %4397 = vmatmul.bf16.vlgmr.msra.gmra.mxu3 %v18020_v51  ;;  %v12431_v18 = vld [vmem:[#allocation12 + $0x5d0] sm:$0xf0] }
 0x1e6   :  { %4428 = vmatpush.bf16.msrb.mxu2 %v13190_v45  ;;  %4441 = vmatpush.bf16.msrb.mxu3 %v13702_v55  ;;  %v12870_v45 = vor.u32 %v16548_v48, %v12869_v47  ;;  %v13382_v55 = vor.u32 %v16676_v52, %v13381_v33  ;;  %v16588_v47 = vld [vmem:[#allocation12 + $0xa8c] sm:$0xf] }
 0x1e7   :  { %4506 = vmatpush.bf16.msrb.mxu0 %v12174_v63  ;;  %4519 = vmatpush.bf16.msrb.mxu1 %v12686_v0  ;;  %v11854_v63 = vor.u32 %v16293_v54, %v11853_v53  ;;  %v12366_v0 = vor.u32 %v16421_v26, %v12365_v58  ;;  %v13063_v48 = vld [vmem:[#allocation12 + $0xac8] sm:$0xf0]  ;;  %v16333_v53 = vld [vmem:[#allocation12 + $0x294] sm:$0xf] }
 0x1e8   :  { %4462 = vmatmul.bf16.vlgmr.msra.gmra.mxu0 %v18008_v15  ;;  %4475 = vmatmul.bf16.vlgmr.msra.gmra.mxu1 %v18010_v16  ;;  %v16716_v33 = vld [vmem:[#allocation12 + $0xe8c] sm:$0xf]  ;;  %v12047_v54 = vld [vmem:[#allocation12 + $0x2d0] sm:$0xf0] }
 0x1e9   :  { %v13575_v52 = vld [vmem:[#allocation12 + $0xec8] sm:$0xf0]  ;;  %v16461_v58 = vld [vmem:[#allocation12 + $0x694] sm:$0xf] }
 0x1ea   :  { %4429 = vmatpush.bf16.msrb.mxu2 %v13126_v6  ;;  %4442 = vmatpush.bf16.msrb.mxu3 %v13638_v7  ;;  %v12741_v6 = vld [vmem:[#allocation12 + $0x808] sm:$0xf]  ;;  %v12806_v7 = vor.u32 %v16532_v60, %v12805_v59  ;;  %v12559_v26 = vld [vmem:[#allocation12 + $0x6d0] sm:$0xf0]  ;;  %v16572_v59 = vld [vmem:[#allocation12 + $0xa0c] sm:$0xf] }
 0x1eb   :  { %4507 = vmatpush.bf16.msrb.mxu0 %v12110_v56  ;;  %4520 = vmatpush.bf16.msrb.mxu1 %v12622_v61  ;;  %v13253_v56 = vld [vmem:[#allocation12 + $0xc08] sm:$0xf]  ;;  %v12999_v60 = vld [vmem:[#allocation12 + $0xa48] sm:$0xf0] }
 0x1ec   :  { %v16644_v61 = vld [vmem:[#allocation12 + $0xc44] sm:$0xf0] }
 0x1ed   :  { %v13254_v28 = vor.u32 %v16644_v61, %v13253_v56  ;;  %v11986_v56 = vor.u32 %v16317_v3, %v11983_v62  ;;  %v12498_v61 = vor.u32 %v16445_v4, %v12495_v5  ;;  %v12693_v3 = vld [vmem:[#allocation12 + $0x798] sm:$0xf] }
 0x1ee   :  { %4430 = vmatpush.bf16.msrb.mxu2 %v13062_v19  ;;  %4443 = vmatpush.bf16.msrb.mxu3 %v13574_v20  ;;  %v16620_v19 = vld [vmem:[#allocation12 + $0xb8c] sm:$0xf]  ;;  %v16502_v62 = vld [vmem:[#allocation12 + $0x7d4] sm:$0xf0] }
 0x1ef   :  { %4508 = vmatpush.bf16.msrb.mxu0 %v12046_v24  ;;  %4521 = vmatpush.bf16.msrb.mxu1 %v12558_v25  ;;  %v13191_v20 = vld [vmem:[#allocation12 + $0xbc8] sm:$0xf0]  ;;  %v16365_v24 = vld [vmem:[#allocation12 + $0x394] sm:$0xf]  ;;  %v12742_v25 = vor.u32 %v16516_v8, %v12741_v6  ;;  %v13002_v6 = vor.u32 %v16572_v59, %v12999_v60  ;;  %v13709_v59 = vld [vmem:[#allocation12 + $0xf90] sm:$0xf] }
 0x1f0   :  { %v12935_v8 = vld [vmem:[#allocation12 + $0x9c8] sm:$0xf0]  ;;  %v16757_v60 = vld [vmem:[#allocation12 + $0xfcc] sm:$0xf0] }
 0x1f2   :  { %4431 = vmatpush.bf16.msrb.mxu2 %v12998_v35  ;;  %4444 = vmatpush.bf16.msrb.mxu3 %v13510_v14  ;;  %v13194_v35 = vor.u32 %v16620_v19, %v13191_v20  ;;  %v13706_v14 = vor.u32 %v16748_v21, %v13703_v22  ;;  %v16540_v21 = vld [vmem:[#allocation12 + $0x90c] sm:$0xf] }
 0x1f3   :  { %4509 = vmatpush.bf16.msrb.mxu0 %v11982_v38  ;;  %4522 = vmatpush.bf16.msrb.mxu1 %v12494_v39  ;;  %v12178_v38 = vor.u32 %v16365_v24, %v12175_v29  ;;  %v12690_v39 = vor.u32 %v16493_v13, %v12687_v30  ;;  %v12871_v22 = vld [vmem:[#allocation12 + $0x948] sm:$0xf0]  ;;  %v11922_v24 = vor.u32 %v16301_v12, %v11919_v9  ;;  %v16285_v13 = vld [vmem:[#allocation12 + $0x114] sm:$0xf]  ;;  %v12117_v12 = vld [vmem:[#allocation12 + $0x318] sm:$0xf] }
 0x1f4   :  { %v13383_v29 = vld [vmem:[#allocation12 + $0xd48] sm:$0xf0]  ;;  %v11855_v30 = vld [vmem:[#allocation12 + $0x150] sm:$0xf0]  ;;  %v16358_v9 = vld [vmem:[#allocation12 + $0x354] sm:$0xf0] }
 0x1f6   :  { %4432 = vmatpush.bf16.msrb.mxu2 %v12934_v31  ;;  %4445 = vmatpush.bf16.msrb.mxu3 %v13446_v46  ;;  %v13130_v31 = vor.u32 %v16604_v36, %v13127_v37  ;;  %v13642_v46 = vor.u32 %v16732_v40, %v13639_v41  ;;  %v16524_v36 = vld [vmem:[#allocation12 + $0x88c] sm:$0xf] }
 0x1f7   :  { %4510 = vmatpush.bf16.msrb.mxu0 %v11918_v49  ;;  %4523 = vmatpush.bf16.msrb.mxu1 %v12430_v50  ;;  %v12114_v49 = vor.u32 %v16349_v42, %v12111_v43  ;;  %v12626_v50 = vor.u32 %v16477_v44, %v12623_v23  ;;  %v12807_v37 = vld [vmem:[#allocation12 + $0x8c8] sm:$0xf0]  ;;  %v16269_v42 = vld [vmem:[#allocation12 + $0x94] sm:$0xf] }
 0x1f8   :  { %v16652_v40 = vld [vmem:[#allocation12 + $0xc8c] sm:$0xf]  ;;  %v11791_v43 = vld [vmem:[#allocation12 + $0xd0] sm:$0xf0] }
 0x1f9   :  { %v13319_v41 = vld [vmem:[#allocation12 + $0xcc8] sm:$0xf0]  ;;  %v16397_v44 = vld [vmem:[#allocation12 + $0x494] sm:$0xf] }
 0x1fa   :  { %4433 = vmatpush.bf16.msrb.mxu2 %v12870_v45  ;;  %4446 = vmatpush.bf16.msrb.mxu3 %v13382_v55  ;;  %v13066_v45 = vor.u32 %v16588_v47, %v13063_v48  ;;  %v13578_v55 = vor.u32 %v16716_v33, %v13575_v52  ;;  %v12303_v23 = vld [vmem:[#allocation12 + $0x4d0] sm:$0xf0]  ;;  %v13322_v47 = vor.u32 %v16652_v40, %v13319_v41  ;;  %v12743_v48 = vld [vmem:[#allocation12 + $0x848] sm:$0xf0]  ;;  %v13517_v40 = vld [vmem:[#allocation12 + $0xe10] sm:$0xf] }
 0x1fb   :  { %4511 = vmatpush.bf16.msrb.mxu0 %v11854_v63  ;;  %4524 = vmatpush.bf16.msrb.mxu1 %v12366_v0  ;;  %v12050_v63 = vor.u32 %v16333_v53, %v12047_v54  ;;  %v12562_v0 = vor.u32 %v16461_v58, %v12559_v26  ;;  %v11794_v33 = vor.u32 %v16269_v42, %v11791_v43  ;;  %v16253_v53 = vld [vmem:[#allocation12 + $0x14] sm:$0xf]  ;;  %v16709_v41 = vld [vmem:[#allocation12 + $0xe4c] sm:$0xf0]  ;;  %v11989_v42 = vld [vmem:[#allocation12 + $0x218] sm:$0xf] }
 0x1fc   :  { %v12306_v52 = vor.u32 %v16397_v44, %v12303_v23  ;;  %v11727_v54 = vld [vmem:[#allocation12 + $0x50] sm:$0xf0]  ;;  %v16326_v43 = vld [vmem:[#allocation12 + $0x254] sm:$0xf0] }
 0x1fd   :  { %v16381_v58 = vld [vmem:[#allocation12 + $0x414] sm:$0xf]  ;;  %v11730_v4 = vor.u32 %v16253_v53, %v11727_v54  ;;  %v12501_v44 = vld [vmem:[#allocation12 + $0x618] sm:$0xf] }
 0x1fe   :  { %4434 = vmatpush.bf16.msrb.mxu2 %v12806_v7  ;;  %4447 = vmatpush.bf16.msrb.mxu3 %v13318_v27  ;;  %v13514_v7 = vor.u32 %v16700_v1, %v13511_v2  ;;  %v16556_v27 = vld [vmem:[#allocation12 + $0x98c] sm:$0xf]  ;;  %v12239_v26 = vld [vmem:[#allocation12 + $0x450] sm:$0xf0]  ;;  %v16374_v2 = vld [vmem:[#allocation12 + $0x3d4] sm:$0xf0] }
 0x1ff   :  { %4512 = vmatpush.bf16.msrb.mxu0 %v11790_v10  ;;  %4525 = vmatpush.bf16.msrb.mxu1 %v12302_v11  ;;  %v16684_v10 = vld [vmem:[#allocation12 + $0xd8c] sm:$0xf]  ;;  %v12938_v19 = vor.u32 %v16556_v27, %v12935_v8  ;;  %v12242_v5 = vor.u32 %v16381_v58, %v12239_v26  ;;  %v13133_v27 = vld [vmem:[#allocation12 + $0xb10] sm:$0xf]  ;;  %v16454_v23 = vld [vmem:[#allocation12 + $0x654] sm:$0xf0] }
 0x200   :  { %v13447_v11 = vld [vmem:[#allocation12 + $0xdc8] sm:$0xf0]  ;;  %v16613_v8 = vld [vmem:[#allocation12 + $0xb4c] sm:$0xf0]  ;;  %v11925_v53 = vld [vmem:[#allocation12 + $0x198] sm:$0xf] }
 0x201   :  { %v13450_v20 = vor.u32 %v16684_v10, %v13447_v11  ;;  %v13645_v10 = vld [vmem:[#allocation12 + $0xf10] sm:$0xf]  ;;  %v16310_v54 = vld [vmem:[#allocation12 + $0x1d4] sm:$0xf0] }
 0x202   :  { %4435 = vmatpush.bf16.msrb.mxu2 %v12742_v25  ;;  %4448 = vmatpush.bf16.msrb.mxu3 %v13254_v28  ;;  %v12434_v25 = vor.u32 %v16429_v17, %v12431_v18  ;;  %v16668_v28 = vld [vmem:[#allocation12 + $0xd0c] sm:$0xf]  ;;  %v16741_v11 = vld [vmem:[#allocation12 + $0xf4c] sm:$0xf0]  ;;  %v12629_v17 = vld [vmem:[#allocation12 + $0x718] sm:$0xf] }
 0x203   :  { %4513 = vmatpush.bf16.msrb.mxu0 %v11726_v32  ;;  %4526 = vmatpush.bf16.msrb.mxu1 %v12238_v34  ;;  %v16413_v32 = vld [vmem:[#allocation12 + $0x514] sm:$0xf]  ;;  %v16486_v18 = vld [vmem:[#allocation12 + $0x754] sm:$0xf0] }
 0x204   :  { %v12367_v34 = vld [vmem:[#allocation12 + $0x550] sm:$0xf0]  ;;  %v12437_v58 = vld [vmem:[#allocation12 + $0x598] sm:$0xf] }
 0x205   :  { %4436 = vmatmul.bf16.vlgmr.msrb.gmra.mxu2 %v18018_v57  ;;  %4449 = vmatmul.bf16.vlgmr.msrb.gmra.mxu3 %v18020_v51  ;;  %v16438_v26 = vld [vmem:[#allocation12 + $0x5d4] sm:$0xf0] }
 0x206   :  { %4480 = vmatpush.bf16.msra.mxu2 %v13194_v35  ;;  %4493 = vmatpush.bf16.msra.mxu3 %v13706_v14  ;;  %v12874_v35 = vor.u32 %v16540_v21, %v12871_v22  ;;  %v13386_v14 = vor.u32 %v16668_v28, %v13383_v29  ;;  %v13069_v21 = vld [vmem:[#allocation12 + $0xa90] sm:$0xf] }
 0x207   :  { %4558 = vmatpush.bf16.msra.mxu0 %v12178_v38  ;;  %4571 = vmatpush.bf16.msra.mxu1 %v12690_v39  ;;  %v11858_v38 = vor.u32 %v16285_v13, %v11855_v30  ;;  %v12370_v39 = vor.u32 %v16413_v32, %v12367_v34  ;;  %v16597_v22 = vld [vmem:[#allocation12 + $0xacc] sm:$0xf0]  ;;  %v12053_v13 = vld [vmem:[#allocation12 + $0x298] sm:$0xf] }
 0x208   :  { %4514 = vmatmul.bf16.vlgmr.msrb.gmra.mxu0 %v18008_v15  ;;  %4527 = vmatmul.bf16.vlgmr.msrb.gmra.mxu1 %v18010_v16  ;;  %v13581_v28 = vld [vmem:[#allocation12 + $0xe90] sm:$0xf]  ;;  %v16342_v30 = vld [vmem:[#allocation12 + $0x2d4] sm:$0xf0] }
 0x209   :  { %v16725_v29 = vld [vmem:[#allocation12 + $0xecc] sm:$0xf0]  ;;  %v12565_v32 = vld [vmem:[#allocation12 + $0x698] sm:$0xf] }
 0x20a   :  { %4481 = vmatpush.bf16.msra.mxu2 %v13130_v31  ;;  %4494 = vmatpush.bf16.msra.mxu3 %v13642_v46  ;;  %v16508_v31 = vld [vmem:[#allocation12 + $0x80c] sm:$0xf]  ;;  %v12810_v46 = vor.u32 %v16524_v36, %v12807_v37  ;;  %v16470_v34 = vld [vmem:[#allocation12 + $0x6d4] sm:$0xf0]  ;;  %v13005_v36 = vld [vmem:[#allocation12 + $0xa10] sm:$0xf] }
 0x20b   :  { %4559 = vmatpush.bf16.msra.mxu0 %v12114_v49  ;;  %4572 = vmatpush.bf16.msra.mxu1 %v12626_v50  ;;  %v16636_v49 = vld [vmem:[#allocation12 + $0xc0c] sm:$0xf]  ;;  %v16581_v37 = vld [vmem:[#allocation12 + $0xa4c] sm:$0xf0] }
 0x20c   :  { %v13255_v50 = vld [vmem:[#allocation12 + $0xc48] sm:$0xf0] }
 0x20d   :  { %v13258_v1 = vor.u32 %v16636_v49, %v13255_v50  ;;  %v11990_v49 = vor.u32 %v16326_v43, %v11989_v42  ;;  %v12502_v50 = vor.u32 %v16454_v23, %v12501_v44  ;;  %v16494_v42 = vld [vmem:[#allocation12 + $0x79c] sm:$0xf] }
 0x20e   :  { %4482 = vmatpush.bf16.msra.mxu2 %v13066_v45  ;;  %4495 = vmatpush.bf16.msra.mxu3 %v13578_v55  ;;  %v13197_v45 = vld [vmem:[#allocation12 + $0xb90] sm:$0xf]  ;;  %v12695_v43 = vld [vmem:[#allocation12 + $0x7d8] sm:$0xf0] }
 0x20f   :  { %4560 = vmatpush.bf16.msra.mxu0 %v12050_v63  ;;  %4573 = vmatpush.bf16.msra.mxu1 %v12562_v0  ;;  %v16629_v55 = vld [vmem:[#allocation12 + $0xbcc] sm:$0xf0]  ;;  %v12181_v63 = vld [vmem:[#allocation12 + $0x398] sm:$0xf]  ;;  %v12746_v0 = vor.u32 %v16508_v31, %v12743_v48  ;;  %v13006_v31 = vor.u32 %v16581_v37, %v13005_v36  ;;  %v16749_v36 = vld [vmem:[#allocation12 + $0xf94] sm:$0xf] }
 0x210   :  { %v16565_v48 = vld [vmem:[#allocation12 + $0x9cc] sm:$0xf0]  ;;  %v13711_v37 = vld [vmem:[#allocation12 + $0xfd0] sm:$0xf0] }
 0x212   :  { %4483 = vmatpush.bf16.msra.mxu2 %v13002_v6  ;;  %4496 = vmatpush.bf16.msra.mxu3 %v13514_v7  ;;  %v13198_v6 = vor.u32 %v16629_v55, %v13197_v45  ;;  %v13710_v7 = vor.u32 %v16757_v60, %v13709_v59  ;;  %v12877_v59 = vld [vmem:[#allocation12 + $0x910] sm:$0xf] }
 0x213   :  { %4561 = vmatpush.bf16.msra.mxu0 %v11986_v56  ;;  %4574 = vmatpush.bf16.msra.mxu1 %v12498_v61  ;;  %v12182_v56 = vor.u32 %v16374_v2, %v12181_v63  ;;  %v12694_v61 = vor.u32 %v16502_v62, %v12693_v3  ;;  %v16549_v60 = vld [vmem:[#allocation12 + $0x94c] sm:$0xf0]  ;;  %v11926_v63 = vor.u32 %v16310_v54, %v11925_v53  ;;  %v11861_v3 = vld [vmem:[#allocation12 + $0x118] sm:$0xf]  ;;  %v16350_v53 = vld [vmem:[#allocation12 + $0x31c] sm:$0xf] }
 0x214   :  { %v16677_v2 = vld [vmem:[#allocation12 + $0xd4c] sm:$0xf0]  ;;  %v16294_v62 = vld [vmem:[#allocation12 + $0x154] sm:$0xf0]  ;;  %v12119_v54 = vld [vmem:[#allocation12 + $0x358] sm:$0xf0] }
 0x216   :  { %4484 = vmatpush.bf16.msra.mxu2 %v12938_v19  ;;  %4497 = vmatpush.bf16.msra.mxu3 %v13450_v20  ;;  %v13134_v19 = vor.u32 %v16613_v8, %v13133_v27  ;;  %v13646_v20 = vor.u32 %v16741_v11, %v13645_v10  ;;  %v12813_v27 = vld [vmem:[#allocation12 + $0x890] sm:$0xf] }
 0x217   :  { %4562 = vmatpush.bf16.msra.mxu0 %v11922_v24  ;;  %4575 = vmatpush.bf16.msra.mxu1 %v12434_v25  ;;  %v12118_v24 = vor.u32 %v16358_v9, %v12117_v12  ;;  %v12630_v25 = vor.u32 %v16486_v18, %v12629_v17  ;;  %v16533_v8 = vld [vmem:[#allocation12 + $0x8cc] sm:$0xf0]  ;;  %v11797_v12 = vld [vmem:[#allocation12 + $0x98] sm:$0xf] }
 0x218   :  { %v13325_v10 = vld [vmem:[#allocation12 + $0xc90] sm:$0xf]  ;;  %v16278_v9 = vld [vmem:[#allocation12 + $0xd4] sm:$0xf0] }
 0x219   :  { %v16661_v11 = vld [vmem:[#allocation12 + $0xccc] sm:$0xf0]  ;;  %v12309_v17 = vld [vmem:[#allocation12 + $0x498] sm:$0xf] }
 0x21a   :  { %4485 = vmatpush.bf16.msra.mxu2 %v12874_v35  ;;  %4498 = vmatpush.bf16.msra.mxu3 %v13386_v14  ;;  %v13070_v35 = vor.u32 %v16597_v22, %v13069_v21  ;;  %v13582_v14 = vor.u32 %v16725_v29, %v13581_v28  ;;  %v16406_v18 = vld [vmem:[#allocation12 + $0x4d4] sm:$0xf0]  ;;  %v13326_v21 = vor.u32 %v16661_v11, %v13325_v10  ;;  %v16517_v22 = vld [vmem:[#allocation12 + $0x84c] sm:$0xf0] }
 0x21b   :  { %4563 = vmatpush.bf16.msra.mxu0 %v11858_v38  ;;  %4576 = vmatpush.bf16.msra.mxu1 %v12370_v39  ;;  %v12054_v38 = vor.u32 %v16342_v30, %v12053_v13  ;;  %v12566_v39 = vor.u32 %v16470_v34, %v12565_v32  ;;  %v11798_v28 = vor.u32 %v16278_v9, %v11797_v12  ;;  %v11733_v13 = vld [vmem:[#allocation12 + $0x18] sm:$0xf]  ;;  %v16701_v12 = vld [vmem:[#allocation12 + $0xe14] sm:$0xf] }
 0x21c   :  { %v12310_v29 = vor.u32 %v16406_v18, %v12309_v17  ;;  %v16262_v30 = vld [vmem:[#allocation12 + $0x54] sm:$0xf0]  ;;  %v13519_v9 = vld [vmem:[#allocation12 + $0xe50] sm:$0xf0]  ;;  %v16318_v17 = vld [vmem:[#allocation12 + $0x21c] sm:$0xf] }
 0x21d   :  { %v12245_v32 = vld [vmem:[#allocation12 + $0x418] sm:$0xf]  ;;  %v11734_v44 = vor.u32 %v16262_v30, %v11733_v13  ;;  %v11991_v18 = vld [vmem:[#allocation12 + $0x258] sm:$0xf0] }
 0x21e   :  { %4486 = vmatpush.bf16.msra.mxu2 %v12810_v46  ;;  %4499 = vmatpush.bf16.msra.mxu3 %v13322_v47  ;;  %v13518_v46 = vor.u32 %v16709_v41, %v13517_v40  ;;  %v12941_v47 = vld [vmem:[#allocation12 + $0x990] sm:$0xf]  ;;  %v16390_v34 = vld [vmem:[#allocation12 + $0x454] sm:$0xf0]  ;;  %v12183_v41 = vld [vmem:[#allocation12 + $0x3d8] sm:$0xf0] }
 0x21f   :  { %4564 = vmatpush.bf16.msra.mxu0 %v11794_v33  ;;  %4577 = vmatpush.bf16.msra.mxu1 %v12306_v52  ;;  %v13453_v33 = vld [vmem:[#allocation12 + $0xd90] sm:$0xf]  ;;  %v12942_v45 = vor.u32 %v16565_v48, %v12941_v47  ;;  %v12246_v23 = vor.u32 %v16390_v34, %v12245_v32  ;;  %v16605_v47 = vld [vmem:[#allocation12 + $0xb14] sm:$0xf] }
 0x220   :  { %v16693_v52 = vld [vmem:[#allocation12 + $0xdcc] sm:$0xf0]  ;;  %v13135_v48 = vld [vmem:[#allocation12 + $0xb50] sm:$0xf0] }
 0x221   :  { %v13454_v55 = vor.u32 %v16693_v52, %v13453_v33  ;;  %v16733_v33 = vld [vmem:[#allocation12 + $0xf14] sm:$0xf] }
 0x222   :  { %4487 = vmatpush.bf16.msra.mxu2 %v12746_v0  ;;  %4500 = vmatpush.bf16.msra.mxu3 %v13258_v1  ;;  %v12438_v0 = vor.u32 %v16438_v26, %v12437_v58  ;;  %v13389_v1 = vld [vmem:[#allocation12 + $0xd10] sm:$0xf]  ;;  %v13647_v52 = vld [vmem:[#allocation12 + $0xf50] sm:$0xf0]  ;;  %v16478_v58 = vld [vmem:[#allocation12 + $0x71c] sm:$0xf] }
 0x223   :  { %4565 = vmatpush.bf16.msra.mxu0 %v11730_v4  ;;  %4578 = vmatpush.bf16.msra.mxu1 %v12242_v5  ;;  %v12373_v4 = vld [vmem:[#allocation12 + $0x518] sm:$0xf]  ;;  %v12631_v26 = vld [vmem:[#allocation12 + $0x758] sm:$0xf0]  ;;  %v16685_v32 = vld [vmem:[#allocation12 + $0xd94] sm:$0xf] }
 0x224   :  { %v16422_v5 = vld [vmem:[#allocation12 + $0x554] sm:$0xf0]  ;;  %v13455_v34 = vld [vmem:[#allocation12 + $0xdd0] sm:$0xf0] }
 0x225   :  { %4488 = vmatmul.bf16.vlgmr.msra.gmra.mxu2 %v18018_v57  ;;  %4501 = vmatmul.bf16.vlgmr.msra.gmra.mxu3 %v18020_v51 }
 0x226   :  { %4532 = vmatpush.bf16.msrb.mxu2 %v13198_v6  ;;  %4545 = vmatpush.bf16.msrb.mxu3 %v13710_v7  ;;  %v12878_v6 = vor.u32 %v16549_v60, %v12877_v59  ;;  %v13390_v7 = vor.u32 %v16677_v2, %v13389_v1  ;;  %v16589_v59 = vld [vmem:[#allocation12 + $0xa94] sm:$0xf] }
 0x227   :  { %4610 = vmatpush.bf16.msrb.mxu0 %v12182_v56  ;;  %4623 = vmatpush.bf16.msrb.mxu1 %v12694_v61  ;;  %v11862_v56 = vor.u32 %v16294_v62, %v11861_v3  ;;  %v12374_v61 = vor.u32 %v16422_v5, %v12373_v4  ;;  %v13071_v60 = vld [vmem:[#allocation12 + $0xad0] sm:$0xf0]  ;;  %v16334_v3 = vld [vmem:[#allocation12 + $0x29c] sm:$0xf] }
 0x228   :  { %4566 = vmatmul.bf16.vlgmr.msra.gmra.mxu0 %v18008_v15  ;;  %4579 = vmatmul.bf16.vlgmr.msra.gmra.mxu1 %v18010_v16  ;;  %v16717_v1 = vld [vmem:[#allocation12 + $0xe94] sm:$0xf]  ;;  %v12055_v62 = vld [vmem:[#allocation12 + $0x2d8] sm:$0xf0] }
 0x229   :  { %v13583_v2 = vld [vmem:[#allocation12 + $0xed0] sm:$0xf0]  ;;  %v16462_v4 = vld [vmem:[#allocation12 + $0x69c] sm:$0xf]  ;;  %v12058_v10 = vor.u32 %v16334_v3, %v12055_v62 }
 0x22a   :  { %4533 = vmatpush.bf16.msrb.mxu2 %v13134_v19  ;;  %4546 = vmatpush.bf16.msrb.mxu3 %v13646_v20  ;;  %v12749_v19 = vld [vmem:[#allocation12 + $0x810] sm:$0xf]  ;;  %v12814_v20 = vor.u32 %v16533_v8, %v12813_v27  ;;  %v12567_v5 = vld [vmem:[#allocation12 + $0x6d8] sm:$0xf0]  ;;  %v16509_v3 = vld [vmem:[#allocation12 + $0x814] sm:$0xf] }
 0x22b   :  { %4611 = vmatpush.bf16.msrb.mxu0 %v12118_v24  ;;  %4624 = vmatpush.bf16.msrb.mxu1 %v12630_v25  ;;  %v13261_v24 = vld [vmem:[#allocation12 + $0xc10] sm:$0xf]  ;;  %v12570_v11 = vor.u32 %v16462_v4, %v12567_v5 }
 0x22c   :  { %v16645_v25 = vld [vmem:[#allocation12 + $0xc4c] sm:$0xf0] }
 0x22d   :  { %v13262_v40 = vor.u32 %v16645_v25, %v13261_v24  ;;  %v16557_v24 = vld [vmem:[#allocation12 + $0x994] sm:$0xf] }
 0x22e   :  { %4534 = vmatpush.bf16.msrb.mxu2 %v13070_v35  ;;  %4547 = vmatpush.bf16.msrb.mxu3 %v13582_v14  ;;  %v16621_v35 = vld [vmem:[#allocation12 + $0xb94] sm:$0xf] }
 0x22f   :  { %4612 = vmatpush.bf16.msrb.mxu0 %v12054_v38  ;;  %4625 = vmatpush.bf16.msrb.mxu1 %v12566_v39  ;;  %v13199_v14 = vld [vmem:[#allocation12 + $0xbd0] sm:$0xf0]  ;;  %v16366_v38 = vld [vmem:[#allocation12 + $0x39c] sm:$0xf]  ;;  %v12750_v39 = vor.u32 %v16517_v22, %v12749_v19  ;;  %v13522_v22 = vor.u32 %v16701_v12, %v13519_v9 }
 0x230   :  { %v16446_v19 = vld [vmem:[#allocation12 + $0x61c] sm:$0xf]  ;;  %v12943_v25 = vld [vmem:[#allocation12 + $0x9d0] sm:$0xf0] }
 0x231   :  { %v16254_v12 = vld [vmem:[#allocation12 + $0x1c] sm:$0xf] }
 0x232   :  { %4535 = vmatpush.bf16.msrb.mxu2 %v13006_v31  ;;  %4548 = vmatpush.bf16.msrb.mxu3 %v13518_v46  ;;  %v13202_v31 = vor.u32 %v16621_v35, %v13199_v14  ;;  %v13714_v46 = vor.u32 %v16749_v36, %v13711_v37  ;;  %v16302_v35 = vld [vmem:[#allocation12 + $0x19c] sm:$0xf] }
 0x233   :  { %4613 = vmatpush.bf16.msrb.mxu0 %v11990_v49  ;;  %4626 = vmatpush.bf16.msrb.mxu1 %v12502_v50  ;;  %v12186_v49 = vor.u32 %v16366_v38, %v12183_v41  ;;  %v12698_v50 = vor.u32 %v16494_v42, %v12695_v43  ;;  %v11927_v14 = vld [vmem:[#allocation12 + $0x1d8] sm:$0xf0]  ;;  %v12946_v38 = vor.u32 %v16557_v24, %v12943_v25  ;;  %v16541_v42 = vld [vmem:[#allocation12 + $0x914] sm:$0xf]  ;;  %v12189_v24 = vld [vmem:[#allocation12 + $0x3a0] sm:$0xf] }
 0x234   :  { %v16430_v36 = vld [vmem:[#allocation12 + $0x59c] sm:$0xf]  ;;  %v12879_v43 = vld [vmem:[#allocation12 + $0x950] sm:$0xf0] }
 0x235   :  { %v12439_v37 = vld [vmem:[#allocation12 + $0x5d8] sm:$0xf0] }
 0x236   :  { %4536 = vmatpush.bf16.msrb.mxu2 %v12942_v45  ;;  %4549 = vmatpush.bf16.msrb.mxu3 %v13454_v55  ;;  %v13138_v45 = vor.u32 %v16605_v47, %v13135_v48  ;;  %v13650_v55 = vor.u32 %v16733_v33, %v13647_v52  ;;  %v16286_v47 = vld [vmem:[#allocation12 + $0x11c] sm:$0xf]  ;;  %v12882_v33 = vor.u32 %v16541_v42, %v12879_v43  ;;  %v13141_v42 = vld [vmem:[#allocation12 + $0xb18] sm:$0xf] }
 0x237   :  { %4614 = vmatpush.bf16.msrb.mxu0 %v11926_v63  ;;  %4627 = vmatpush.bf16.msrb.mxu1 %v12438_v0  ;;  %v12122_v63 = vor.u32 %v16350_v53, %v12119_v54  ;;  %v12634_v0 = vor.u32 %v16478_v58, %v12631_v26  ;;  %v11863_v48 = vld [vmem:[#allocation12 + $0x158] sm:$0xf0]  ;;  %v16525_v53 = vld [vmem:[#allocation12 + $0x894] sm:$0xf]  ;;  %v16614_v43 = vld [vmem:[#allocation12 + $0xb54] sm:$0xf0] }
 0x238   :  { %v12815_v54 = vld [vmem:[#allocation12 + $0x8d0] sm:$0xf0]  ;;  %v11866_v58 = vor.u32 %v16286_v47, %v11863_v48  ;;  %v11735_v9 = vld [vmem:[#allocation12 + $0x58] sm:$0xf0] }
 0x239   :  { %v12818_v62 = vor.u32 %v16525_v53, %v12815_v54  ;;  %v13077_v54 = vld [vmem:[#allocation12 + $0xa98] sm:$0xf] }
 0x23a   :  { %4537 = vmatpush.bf16.msrb.mxu2 %v12878_v6  ;;  %4550 = vmatpush.bf16.msrb.mxu3 %v13390_v7  ;;  %v13074_v6 = vor.u32 %v16589_v59, %v13071_v60  ;;  %v13586_v7 = vor.u32 %v16717_v1, %v13583_v2  ;;  %v16653_v59 = vld [vmem:[#allocation12 + $0xc94] sm:$0xf]  ;;  %v16398_v1 = vld [vmem:[#allocation12 + $0x49c] sm:$0xf] }
 0x23b   :  { %4615 = vmatpush.bf16.msrb.mxu0 %v11862_v56  ;;  %4628 = vmatpush.bf16.msrb.mxu1 %v12374_v61  ;;  %v16573_v56 = vld [vmem:[#allocation12 + $0xa14] sm:$0xf]  ;;  %v12311_v2 = vld [vmem:[#allocation12 + $0x4d8] sm:$0xf0] }
 0x23c   :  { %v13007_v61 = vld [vmem:[#allocation12 + $0xa50] sm:$0xf0] }
 0x23d   :  { %v13327_v60 = vld [vmem:[#allocation12 + $0xcd0] sm:$0xf0] }
 0x23e   :  { %4538 = vmatpush.bf16.msrb.mxu2 %v12814_v20  ;;  %4551 = vmatpush.bf16.msrb.mxu3 %v13326_v21  ;;  %v12503_v20 = vld [vmem:[#allocation12 + $0x658] sm:$0xf0]  ;;  %v13010_v21 = vor.u32 %v16573_v56, %v13007_v61  ;;  %v13330_v4 = vor.u32 %v16653_v59, %v13327_v60  ;;  %v16637_v56 = vld [vmem:[#allocation12 + $0xc14] sm:$0xf]  ;;  %v16726_v59 = vld [vmem:[#allocation12 + $0xed4] sm:$0xf0] }
 0x23f   :  { %4616 = vmatpush.bf16.msrb.mxu0 %v11798_v28  ;;  %4629 = vmatpush.bf16.msrb.mxu1 %v12310_v29  ;;  %v11994_v28 = vor.u32 %v16318_v17, %v11991_v18  ;;  %v12506_v29 = vor.u32 %v16446_v19, %v12503_v20  ;;  %v13263_v61 = vld [vmem:[#allocation12 + $0xc50] sm:$0xf0]  ;;  %v16382_v17 = vld [vmem:[#allocation12 + $0x41c] sm:$0xf]  ;;  %v13205_v19 = vld [vmem:[#allocation12 + $0xb98] sm:$0xf] }
 0x240   :  { %v12247_v18 = vld [vmem:[#allocation12 + $0x458] sm:$0xf0]  ;;  %v16630_v20 = vld [vmem:[#allocation12 + $0xbd4] sm:$0xf0]  ;;  %v12061_v60 = vld [vmem:[#allocation12 + $0x2a0] sm:$0xf] }
 0x242   :  { %4539 = vmatpush.bf16.msrb.mxu2 %v12750_v39  ;;  %4552 = vmatpush.bf16.msrb.mxu3 %v13262_v40  ;;  %v18042_v27 = vpop.f32.mrf.mxu0  ;;  %v18044_v8 = vpop.f32.mrf.mxu1  ;;  %v13458_v39 = vor.u32 %v16685_v32, %v13455_v34  ;;  %v16375_v32 = vld [vmem:[#allocation12 + $0x3dc] sm:$0xf0] }
 0x243   :  { %4617 = vmatpush.bf16.msrb.mxu0 %v11734_v44  ;;  %4630 = vmatpush.bf16.msrb.mxu1 %v12246_v23  ;;  %v11930_v44 = vor.u32 %v16302_v35, %v11927_v14  ;;  %v12442_v23 = vor.u32 %v16430_v36, %v12439_v37  ;;  %v12701_v34 = vld [vmem:[#allocation12 + $0x7a0] sm:$0xf]  ;;  %v11738_v14 = vor.u32 %v16254_v12, %v11735_v9  ;;  %v16710_v12 = vld [vmem:[#allocation12 + $0xe54] sm:$0xf0] }
 0x244   :  { %v16503_v35 = vld [vmem:[#allocation12 + $0x7dc] sm:$0xf0]  ;;  %v12250_v36 = vor.u32 %v16382_v17, %v12247_v18 }
 0x245   :  { %4540 = vmatmul.bf16.vlgmr.msrb.gmra.mxu2 %v18018_v57  ;;  %4553 = vmatmul.bf16.vlgmr.msrb.gmra.mxu3 %v18020_v51  ;;  %v11997_v9 = vld [vmem:[#allocation12 + $0x220] sm:$0xf] }
 0x246   :  { %4584 = vmatpush.bf16.msra.mxu2 %v13202_v31  ;;  %4597 = vmatpush.bf16.msra.mxu3 %v13714_v46  ;;  %v16669_v31 = vld [vmem:[#allocation12 + $0xd14] sm:$0xf]  ;;  %v16327_v17 = vld [vmem:[#allocation12 + $0x25c] sm:$0xf0] }
 0x247   :  { %4662 = vmatpush.bf16.msra.mxu0 %v12186_v49  ;;  %4675 = vmatpush.bf16.msra.mxu1 %v12698_v50  ;;  %v18046_v13 = vpop.f32.mrf.mxu2  ;;  %v18048_v30 = vpop.f32.mrf.mxu3  ;;  %v13391_v46 = vld [vmem:[#allocation12 + $0xd50] sm:$0xf0]  ;;  %v16414_v49 = vld [vmem:[#allocation12 + $0x51c] sm:$0xf]  ;;  %v12509_v18 = vld [vmem:[#allocation12 + $0x620] sm:$0xf] }
 0x248   :  { %4618 = vmatmul.bf16.vlgmr.msrb.gmra.mxu0 %v18008_v15  ;;  %4631 = vmatmul.bf16.vlgmr.msrb.gmra.mxu1 %v18010_v16  ;;  %v12375_v50 = vld [vmem:[#allocation12 + $0x558] sm:$0xf0]  ;;  %v13394_v52 = vor.u32 %v16669_v31, %v13391_v46  ;;  %v4321_v25 = vadd.f32 %v18048_v30, %v18046_v13  ;;  %v12702_v13 = vor.u32 %v16503_v35, %v12701_v34  ;;  %v13653_v30 = vld [vmem:[#allocation12 + $0xf18] sm:$0xf]  ;;  %v12125_v31 = vld [vmem:[#allocation12 + $0x320] sm:$0xf] }
 0x249   :  { %v12378_v26 = vor.u32 %v16414_v49, %v12375_v50  ;;  %v16359_v49 = vld [vmem:[#allocation12 + $0x35c] sm:$0xf0]  ;;  %v13461_v34 = vld [vmem:[#allocation12 + $0xd98] sm:$0xf] }
 0x24a   :  { %4585 = vmatpush.bf16.msra.mxu2 %v13138_v45  ;;  %4598 = vmatpush.bf16.msra.mxu3 %v13650_v55  ;;  %v4361_v40 = vpop.f32.mrf.mxu0  ;;  %v4374_v41 = vpop.f32.mrf.mxu1  ;;  %v12637_v50 = vld [vmem:[#allocation12 + $0x720] sm:$0xf]  ;;  %v16694_v35 = vld [vmem:[#allocation12 + $0xdd4] sm:$0xf0] }
 0x24b   :  { %4663 = vmatpush.bf16.msra.mxu0 %v12122_v63  ;;  %4676 = vmatpush.bf16.msra.mxu1 %v12634_v0  ;;  %v16270_v63 = vld [vmem:[#allocation12 + $0x9c] sm:$0xf] }
 0x24c   :  { %v11799_v0 = vld [vmem:[#allocation12 + $0xd8] sm:$0xf0] }
 0x24e   :  { %4586 = vmatpush.bf16.msra.mxu2 %v13074_v6  ;;  %4599 = vmatpush.bf16.msra.mxu3 %v13586_v7  ;;  %v12751_v7 = vld [vmem:[#allocation12 + $0x850] sm:$0xf0] }
 0x24f   :  { %4664 = vmatpush.bf16.msra.mxu0 %v12058_v10  ;;  %4677 = vmatpush.bf16.msra.mxu1 %v12570_v11  ;;  %v4309_v45 = vpop.f32.mrf.mxu2  ;;  %v4322_v55 = vpop.f32.mrf.mxu3  ;;  %v11802_v10 = vor.u32 %v16270_v63, %v11799_v0  ;;  %v12314_v11 = vor.u32 %v16398_v1, %v12311_v2  ;;  %v16343_v63 = vld [vmem:[#allocation12 + $0x2dc] sm:$0xf0] }
 0x250   :  { %v13589_v55 = vld [vmem:[#allocation12 + $0xe98] sm:$0xf]  ;;  %v12573_v0 = vld [vmem:[#allocation12 + $0x6a0] sm:$0xf] }
 0x251   :  { %v16471_v1 = vld [vmem:[#allocation12 + $0x6dc] sm:$0xf0] }
 0x252   :  { %4587 = vmatpush.bf16.msra.mxu2 %v13010_v21  ;;  %4600 = vmatpush.bf16.msra.mxu3 %v13522_v22  ;;  %v18050_v5 = vpop.f32.mrf.mxu0  ;;  %v18052_v6 = vpop.f32.mrf.mxu1  ;;  %v13717_v21 = vld [vmem:[#allocation12 + $0xf98] sm:$0xf] }
 0x253   :  { %4665 = vmatpush.bf16.msra.mxu0 %v11994_v28  ;;  %4678 = vmatpush.bf16.msra.mxu1 %v12506_v29  ;;  %v16758_v22 = vld [vmem:[#allocation12 + $0xfd4] sm:$0xf0]  ;;  %v12754_v28 = vor.u32 %v16509_v3, %v12751_v7  ;;  %v13266_v29 = vor.u32 %v16637_v56, %v13263_v61  ;;  %v12062_v61 = vor.u32 %v16343_v63, %v12061_v60  ;;  %v11805_v63 = vld [vmem:[#allocation12 + $0xa0] sm:$0xf] }
 0x254   :  { %v13718_v40 = vor.u32 %v16758_v22, %v13717_v21  ;;  %v13013_v7 = vld [vmem:[#allocation12 + $0xa18] sm:$0xf] }
 0x255   :  { %v16582_v56 = vld [vmem:[#allocation12 + $0xa54] sm:$0xf0] }
 0x256   :  { %4588 = vmatpush.bf16.msra.mxu2 %v12946_v38  ;;  %4601 = vmatpush.bf16.msra.mxu3 %v13458_v39  ;;  %v13206_v39 = vor.u32 %v16630_v20, %v13205_v19  ;;  %v16455_v19 = vld [vmem:[#allocation12 + $0x65c] sm:$0xf0]  ;;  %v13014_v22 = vor.u32 %v16582_v56, %v13013_v7  ;;  %v16662_v60 = vld [vmem:[#allocation12 + $0xcd4] sm:$0xf0] }
 0x257   :  { %4666 = vmatpush.bf16.msra.mxu0 %v11930_v44  ;;  %4679 = vmatpush.bf16.msra.mxu1 %v12442_v23  ;;  %v4333_v37 = vpop.f32.mrf.mxu2  ;;  %v4346_v38 = vpop.f32.mrf.mxu3  ;;  %v12190_v44 = vor.u32 %v16375_v32, %v12189_v24  ;;  %v16742_v23 = vld [vmem:[#allocation12 + $0xf54] sm:$0xf0]  ;;  %v12510_v32 = vor.u32 %v16455_v19, %v12509_v18  ;;  %v16263_v18 = vld [vmem:[#allocation12 + $0x5c] sm:$0xf0] }
 0x258   :  { %v4334_v41 = vadd.f32 %v4333_v37, %v4321_v25  ;;  %v13654_v53 = vor.u32 %v16742_v23, %v13653_v30  ;;  %v12949_v25 = vld [vmem:[#allocation12 + $0x998] sm:$0xf]  ;;  %v12445_v37 = vld [vmem:[#allocation12 + $0x5a0] sm:$0xf] }
 0x259   :  { %v16518_v7 = vld [vmem:[#allocation12 + $0x854] sm:$0xf0]  ;;  %v12253_v19 = vld [vmem:[#allocation12 + $0x420] sm:$0xf] }
 0x25a   :  { %4589 = vmatpush.bf16.msra.mxu2 %v12882_v33  ;;  %4602 = vmatpush.bf16.msra.mxu3 %v13394_v52  ;;  %v4347_v46 = vadd.f32 %v4346_v38, %v4334_v41  ;;  %v4413_v47 = vpop.f32.mrf.mxu0  ;;  %v4426_v48 = vpop.f32.mrf.mxu1  ;;  %v16487_v33 = vld [vmem:[#allocation12 + $0x75c] sm:$0xf0]  ;;  %v13142_v52 = vor.u32 %v16614_v43, %v13141_v42  ;;  %v13462_v41 = vor.u32 %v16694_v35, %v13461_v34  ;;  %v12885_v42 = vld [vmem:[#allocation12 + $0x918] sm:$0xf] }
 0x25b   :  { %4667 = vmatpush.bf16.msra.mxu0 %v11866_v58  ;;  %4680 = vmatpush.bf16.msra.mxu1 %v12378_v26  ;;  %v16598_v58 = vld [vmem:[#allocation12 + $0xad4] sm:$0xf0]  ;;  %v12126_v26 = vor.u32 %v16359_v49, %v12125_v31  ;;  %v12638_v45 = vor.u32 %v16487_v33, %v12637_v50  ;;  %v16439_v38 = vld [vmem:[#allocation12 + $0x5dc] sm:$0xf0] }
 0x25c   :  { %5130 = vst [vmem:[#allocation4 + $0xb0] sm:$0xff] %v4347_v46  ;;  %v16550_v43 = vld [vmem:[#allocation12 + $0x954] sm:$0xf0]  ;;  %v11869_v47 = vld [vmem:[#allocation12 + $0x120] sm:$0xf] }
 0x25d   :  { %v13397_v31 = vld [vmem:[#allocation12 + $0xd18] sm:$0xf]  ;;  %v16295_v49 = vld [vmem:[#allocation12 + $0x15c] sm:$0xf0] }
 0x25e   :  { %4590 = vmatpush.bf16.msra.mxu2 %v12818_v62  ;;  %4603 = vmatpush.bf16.msra.mxu3 %v13330_v4  ;;  %v13078_v62 = vor.u32 %v16598_v58, %v13077_v54  ;;  %v13590_v4 = vor.u32 %v16726_v59, %v13589_v55  ;;  %v16678_v46 = vld [vmem:[#allocation12 + $0xd54] sm:$0xf0]  ;;  %v12381_v50 = vld [vmem:[#allocation12 + $0x520] sm:$0xf]  ;;  %v11870_v55 = vor.u32 %v16295_v49, %v11869_v47  ;;  %v16479_v47 = vld [vmem:[#allocation12 + $0x724] sm:$0xf] }
 0x25f   :  { %4668 = vmatpush.bf16.msra.mxu0 %v11802_v10  ;;  %4681 = vmatpush.bf16.msra.mxu1 %v12314_v11  ;;  %v4335_v2 = vpop.f32.mrf.mxu2  ;;  %v4348_v3 = vpop.f32.mrf.mxu3  ;;  %v12574_v10 = vor.u32 %v16471_v1, %v12573_v0  ;;  %v13525_v11 = vld [vmem:[#allocation12 + $0xe18] sm:$0xf]  ;;  %v16423_v33 = vld [vmem:[#allocation12 + $0x55c] sm:$0xf0]  ;;  %v13398_v54 = vor.u32 %v16678_v46, %v13397_v31  ;;  %v16351_v31 = vld [vmem:[#allocation12 + $0x324] sm:$0xf] }
 0x260   :  { %v13526_v24 = vor.u32 %v16710_v12, %v13525_v11  ;;  %v12821_v58 = vld [vmem:[#allocation12 + $0x898] sm:$0xf]  ;;  %v12382_v59 = vor.u32 %v16423_v33, %v12381_v50  ;;  %v16279_v0 = vld [vmem:[#allocation12 + $0xdc] sm:$0xf0]  ;;  %v12127_v46 = vld [vmem:[#allocation12 + $0x360] sm:$0xf0] }
 0x261   :  { %v12317_v1 = vld [vmem:[#allocation12 + $0x4a0] sm:$0xf]  ;;  %v12757_v3 = vld [vmem:[#allocation12 + $0x818] sm:$0xf]  ;;  %v16590_v33 = vld [vmem:[#allocation12 + $0xa9c] sm:$0xf] }
 0x262   :  { %4591 = vmatpush.bf16.msra.mxu2 %v12754_v28  ;;  %4604 = vmatpush.bf16.msra.mxu3 %v13266_v29  ;;  %v16566_v28 = vld [vmem:[#allocation12 + $0x9d4] sm:$0xf0]  ;;  %v11998_v29 = vor.u32 %v16327_v17, %v11997_v9  ;;  %v16407_v2 = vld [vmem:[#allocation12 + $0x4dc] sm:$0xf0]  ;;  %v12758_v34 = vor.u32 %v16518_v7, %v12757_v3  ;;  %v16702_v3 = vld [vmem:[#allocation12 + $0xe1c] sm:$0xf] }
 0x263   :  { %4669 = vmatpush.bf16.msra.mxu0 %v11738_v14  ;;  %4682 = vmatpush.bf16.msra.mxu1 %v12250_v36  ;;  %v11933_v14 = vld [vmem:[#allocation12 + $0x1a0] sm:$0xf]  ;;  %v13269_v56 = vld [vmem:[#allocation12 + $0xc18] sm:$0xf]  ;;  %v12318_v11 = vor.u32 %v16407_v2, %v12317_v1  ;;  %v11999_v7 = vld [vmem:[#allocation12 + $0x260] sm:$0xf0] }
 0x264   :  { %v16311_v36 = vld [vmem:[#allocation12 + $0x1dc] sm:$0xf0] }
 0x265   :  { %4592 = vmatmul.bf16.vlgmr.msra.gmra.mxu2 %v18018_v57  ;;  %4605 = vmatmul.bf16.vlgmr.msra.gmra.mxu3 %v18020_v51  ;;  %v18060_v20 = vpop.f32.mrf.mxu0  ;;  %v18062_v21 = vpop.f32.mrf.mxu1  ;;  %v11741_v17 = vld [vmem:[#allocation12 + $0x20] sm:$0xf] }
 0x266   :  { %4636 = vmatpush.bf16.msrb.mxu2 %v13206_v39  ;;  %4649 = vmatpush.bf16.msrb.mxu3 %v13718_v40  ;;  %v4373_v39 = vadd.f32 %v18044_v8, %v18042_v27  ;;  %v12950_v40 = vor.u32 %v16566_v28, %v12949_v25  ;;  %v13207_v25 = vld [vmem:[#allocation12 + $0xbd8] sm:$0xf0] }
 0x267   :  { %4714 = vmatpush.bf16.msrb.mxu0 %v12190_v44  ;;  %4727 = vmatpush.bf16.msrb.mxu1 %v12702_v13  ;;  %v11934_v44 = vor.u32 %v16311_v36, %v11933_v14  ;;  %v12446_v13 = vor.u32 %v16439_v38, %v12445_v37  ;;  %v16750_v28 = vld [vmem:[#allocation12 + $0xf9c] sm:$0xf]  ;;  %v12191_v14 = vld [vmem:[#allocation12 + $0x3e0] sm:$0xf0]  ;;  %v11742_v38 = vor.u32 %v16263_v18, %v11741_v17 }
 0x268   :  { %4670 = vmatmul.bf16.vlgmr.msra.gmra.mxu0 %v18008_v15  ;;  %4683 = vmatmul.bf16.vlgmr.msra.gmra.mxu1 %v18010_v16  ;;  %v4385_v30 = vpop.f32.mrf.mxu2  ;;  %v4398_v23 = vpop.f32.mrf.mxu3  ;;  %v16495_v36 = vld [vmem:[#allocation12 + $0x7a4] sm:$0xf]  ;;  %v16558_v17 = vld [vmem:[#allocation12 + $0x99c] sm:$0xf] }
 0x269   :  { %v4386_v48 = vadd.f32 %v4385_v30, %v4373_v39  ;;  %v12703_v37 = vld [vmem:[#allocation12 + $0x7e0] sm:$0xf0]  ;;  %v16734_v30 = vld [vmem:[#allocation12 + $0xf1c] sm:$0xf] }
 0x26a   :  { %4637 = vmatpush.bf16.msrb.mxu2 %v13142_v52  ;;  %4650 = vmatpush.bf16.msrb.mxu3 %v13654_v53  ;;  %v12886_v53 = vor.u32 %v16550_v43, %v12885_v42  ;;  %v16606_v42 = vld [vmem:[#allocation12 + $0xb1c] sm:$0xf] }
 0x26b   :  { %4715 = vmatpush.bf16.msrb.mxu0 %v12126_v26  ;;  %4728 = vmatpush.bf16.msrb.mxu1 %v12638_v45  ;;  %v4399_v27 = vadd.f32 %v4398_v23, %v4386_v48  ;;  %v16534_v26 = vld [vmem:[#allocation12 + $0x8d4] sm:$0xf0]  ;;  %v13143_v43 = vld [vmem:[#allocation12 + $0xb58] sm:$0xf0]  ;;  %v12639_v48 = vld [vmem:[#allocation12 + $0x760] sm:$0xf0] }
 0x26c   :  { %v13333_v45 = vld [vmem:[#allocation12 + $0xc98] sm:$0xf]  ;;  %v13655_v23 = vld [vmem:[#allocation12 + $0xf58] sm:$0xf0]  ;;  %v13146_v49 = vor.u32 %v16606_v42, %v13143_v43 }
 0x26d   :  { %v4465_v8 = vpop.f32.mrf.mxu0  ;;  %v4478_v52 = vpop.f32.mrf.mxu1  ;;  %5131 = vst [vmem:[#allocation4 + $0xd0] sm:$0xff] %v4399_v27  ;;  %v13658_v50 = vor.u32 %v16734_v30, %v13655_v23  ;;  %v13079_v27 = vld [vmem:[#allocation12 + $0xad8] sm:$0xf0]  ;;  %v11871_v23 = vld [vmem:[#allocation12 + $0x160] sm:$0xf0] }
 0x26e   :  { %4638 = vmatpush.bf16.msrb.mxu2 %v13078_v62  ;;  %4651 = vmatpush.bf16.msrb.mxu3 %v13590_v4  ;;  %v12822_v62 = vor.u32 %v16534_v26, %v12821_v58  ;;  %v13334_v4 = vor.u32 %v16662_v60, %v13333_v45  ;;  %v12130_v8 = vor.u32 %v16351_v31, %v12127_v46  ;;  %v16335_v58 = vld [vmem:[#allocation12 + $0x2a4] sm:$0xf]  ;;  %v12951_v18 = vld [vmem:[#allocation12 + $0x9d8] sm:$0xf0] }
 0x26f   :  { %4716 = vmatpush.bf16.msrb.mxu0 %v12062_v61  ;;  %4729 = vmatpush.bf16.msrb.mxu1 %v12574_v10  ;;  %v16646_v61 = vld [vmem:[#allocation12 + $0xc54] sm:$0xf0]  ;;  %v11806_v10 = vor.u32 %v16279_v0, %v11805_v63  ;;  %v12642_v52 = vor.u32 %v16479_v47, %v12639_v48  ;;  %v12063_v26 = vld [vmem:[#allocation12 + $0x2e0] sm:$0xf0]  ;;  %v16574_v63 = vld [vmem:[#allocation12 + $0xa1c] sm:$0xf] }
 0x270   :  { %v4387_v12 = vpop.f32.mrf.mxu2  ;;  %v4400_v9 = vpop.f32.mrf.mxu3  ;;  %v13270_v35 = vor.u32 %v16646_v61, %v13269_v56  ;;  %v16463_v45 = vld [vmem:[#allocation12 + $0x6a4] sm:$0xf]  ;;  %v13015_v0 = vld [vmem:[#allocation12 + $0xa58] sm:$0xf0]  ;;  %v12066_v1 = vor.u32 %v16335_v58, %v12063_v26 }
 0x271   :  { %v16447_v56 = vld [vmem:[#allocation12 + $0x624] sm:$0xf]  ;;  %v13018_v12 = vor.u32 %v16574_v63, %v13015_v0  ;;  %v16670_v43 = vld [vmem:[#allocation12 + $0xd1c] sm:$0xf] }
 0x272   :  { %4639 = vmatpush.bf16.msrb.mxu2 %v13014_v22  ;;  %4652 = vmatpush.bf16.msrb.mxu3 %v13526_v24  ;;  %v16391_v22 = vld [vmem:[#allocation12 + $0x45c] sm:$0xf0]  ;;  %v16622_v24 = vld [vmem:[#allocation12 + $0xb9c] sm:$0xf]  ;;  %v12511_v61 = vld [vmem:[#allocation12 + $0x660] sm:$0xf0] }
 0x273   :  { %4717 = vmatpush.bf16.msrb.mxu0 %v11998_v29  ;;  %4730 = vmatpush.bf16.msrb.mxu1 %v12510_v32  ;;  %v13719_v29 = vld [vmem:[#allocation12 + $0xfd8] sm:$0xf0]  ;;  %v16367_v32 = vld [vmem:[#allocation12 + $0x3a4] sm:$0xf]  ;;  %v12254_v39 = vor.u32 %v16391_v22, %v12253_v19  ;;  %v12514_v22 = vor.u32 %v16447_v56, %v12511_v61 }
 0x274   :  { %v16415_v31 = vld [vmem:[#allocation12 + $0x524] sm:$0xf]  ;;  %v12759_v63 = vld [vmem:[#allocation12 + $0x858] sm:$0xf0] }
 0x275   :  { %v12383_v46 = vld [vmem:[#allocation12 + $0x560] sm:$0xf0]  ;;  %v16638_v0 = vld [vmem:[#allocation12 + $0xc1c] sm:$0xf] }
 0x276   :  { %4640 = vmatpush.bf16.msrb.mxu2 %v12950_v40  ;;  %4653 = vmatpush.bf16.msrb.mxu3 %v13462_v41  ;;  %v13210_v40 = vor.u32 %v16622_v24, %v13207_v25  ;;  %v13722_v41 = vor.u32 %v16750_v28, %v13719_v29  ;;  %v16686_v24 = vld [vmem:[#allocation12 + $0xd9c] sm:$0xf]  ;;  %v16303_v28 = vld [vmem:[#allocation12 + $0x1a4] sm:$0xf] }
 0x277   :  { %4718 = vmatpush.bf16.msrb.mxu0 %v11934_v44  ;;  %4731 = vmatpush.bf16.msrb.mxu1 %v12446_v13  ;;  %v12194_v44 = vor.u32 %v16367_v32, %v12191_v14  ;;  %v12706_v13 = vor.u32 %v16495_v36, %v12703_v37  ;;  %v13463_v25 = vld [vmem:[#allocation12 + $0xdd8] sm:$0xf0]  ;;  %v11935_v29 = vld [vmem:[#allocation12 + $0x1e0] sm:$0xf0]  ;;  %v12954_v14 = vor.u32 %v16558_v17, %v12951_v18  ;;  %v16631_v17 = vld [vmem:[#allocation12 + $0xbdc] sm:$0xf0] }
 0x278   :  { %v16431_v32 = vld [vmem:[#allocation12 + $0x5a4] sm:$0xf]  ;;  %v13466_v36 = vor.u32 %v16686_v24, %v13463_v25  ;;  %v16542_v37 = vld [vmem:[#allocation12 + $0x91c] sm:$0xf]  ;;  %v13725_v18 = vld [vmem:[#allocation12 + $0xfa0] sm:$0xf] }
 0x279   :  { %v11807_v58 = vld [vmem:[#allocation12 + $0xe0] sm:$0xf0] }
 0x27a   :  { %4641 = vmatpush.bf16.msrb.mxu2 %v12886_v53  ;;  %4654 = vmatpush.bf16.msrb.mxu3 %v13398_v54  ;;  %v16718_v53 = vld [vmem:[#allocation12 + $0xe9c] sm:$0xf]  ;;  %v16399_v26 = vld [vmem:[#allocation12 + $0x4a4] sm:$0xf] }
 0x27b   :  { %4719 = vmatpush.bf16.msrb.mxu0 %v11870_v55  ;;  %4732 = vmatpush.bf16.msrb.mxu1 %v12382_v59  ;;  %v13591_v54 = vld [vmem:[#allocation12 + $0xed8] sm:$0xf0]  ;;  %v12575_v55 = vld [vmem:[#allocation12 + $0x6e0] sm:$0xf0]  ;;  %v13082_v59 = vor.u32 %v16590_v33, %v13079_v27 }
 0x27c   :  { %v13594_v60 = vor.u32 %v16718_v53, %v13591_v54  ;;  %v12578_v2 = vor.u32 %v16463_v45, %v12575_v55  ;;  %v12823_v33 = vld [vmem:[#allocation12 + $0x8d8] sm:$0xf0]  ;;  %v16271_v54 = vld [vmem:[#allocation12 + $0xa4] sm:$0xf] }
 0x27d   :  { %v16654_v27 = vld [vmem:[#allocation12 + $0xc9c] sm:$0xf]  ;;  %v12319_v45 = vld [vmem:[#allocation12 + $0x4e0] sm:$0xf0] }
 0x27e   :  { %4642 = vmatpush.bf16.msrb.mxu2 %v12822_v62  ;;  %4655 = vmatpush.bf16.msrb.mxu3 %v13334_v4  ;;  %v13527_v62 = vld [vmem:[#allocation12 + $0xe58] sm:$0xf0]  ;;  %v16319_v4 = vld [vmem:[#allocation12 + $0x224] sm:$0xf] }
 0x27f   :  { %4720 = vmatpush.bf16.msrb.mxu0 %v11806_v10  ;;  %4733 = vmatpush.bf16.msrb.mxu1 %v12318_v11  ;;  %v13530_v9 = vor.u32 %v16702_v3, %v13527_v62  ;;  %v12002_v19 = vor.u32 %v16319_v4, %v11999_v7  ;;  %v13335_v53 = vld [vmem:[#allocation12 + $0xcd8] sm:$0xf0]  ;;  %v12322_v3 = vor.u32 %v16399_v26, %v12319_v45  ;;  %v16255_v7 = vld [vmem:[#allocation12 + $0x24] sm:$0xf] }
 0x280   :  { %v16510_v55 = vld [vmem:[#allocation12 + $0x81c] sm:$0xf]  ;;  %v11743_v56 = vld [vmem:[#allocation12 + $0x60] sm:$0xf0] }
 0x281   :  { %v16383_v61 = vld [vmem:[#allocation12 + $0x424] sm:$0xf]  ;;  %v12762_v24 = vor.u32 %v16510_v55, %v12759_v63  ;;  %v13533_v55 = vld [vmem:[#allocation12 + $0xe20] sm:$0xf]  ;;  %v16328_v63 = vld [vmem:[#allocation12 + $0x264] sm:$0xf0] }
 0x282   :  { %4643 = vmatpush.bf16.msrb.mxu2 %v12758_v34  ;;  %4656 = vmatpush.bf16.msrb.mxu3 %v13270_v35  ;;  %v12447_v34 = vld [vmem:[#allocation12 + $0x5e0] sm:$0xf0]  ;;  %v4425_v35 = vadd.f32 %v18052_v6, %v18050_v5 }
 0x283   :  { %4721 = vmatpush.bf16.msrb.mxu0 %v11742_v38  ;;  %4734 = vmatpush.bf16.msrb.mxu1 %v12254_v39  ;;  %v12887_v38 = vld [vmem:[#allocation12 + $0x958] sm:$0xf0]  ;;  %v11938_v39 = vor.u32 %v16303_v28, %v11935_v29  ;;  %v16376_v28 = vld [vmem:[#allocation12 + $0x3e4] sm:$0xf0] }
 0x284   :  { %v12890_v48 = vor.u32 %v16542_v37, %v12887_v38  ;;  %v12709_v29 = vld [vmem:[#allocation12 + $0x7a8] sm:$0xf]  ;;  %v13149_v37 = vld [vmem:[#allocation12 + $0xb20] sm:$0xf] }
 0x285   :  { %4644 = vmatmul.bf16.vlgmr.msrb.gmra.mxu2 %v18018_v57  ;;  %4657 = vmatmul.bf16.vlgmr.msrb.gmra.mxu3 %v18020_v51  ;;  %v18070_v10 = vpop.f32.mrf.mxu0  ;;  %v18072_v11 = vpop.f32.mrf.mxu1  ;;  %v16615_v38 = vld [vmem:[#allocation12 + $0xb5c] sm:$0xf0] }
 0x286   :  { %4688 = vmatpush.bf16.msra.mxu2 %v13210_v40  ;;  %4701 = vmatpush.bf16.msra.mxu3 %v13722_v41  ;;  %v12450_v40 = vor.u32 %v16431_v32, %v12447_v34  ;;  %v16504_v32 = vld [vmem:[#allocation12 + $0x7e4] sm:$0xf0]  ;;  %v11746_v34 = vor.u32 %v16255_v7, %v11743_v56  ;;  %v12957_v7 = vld [vmem:[#allocation12 + $0x9a0] sm:$0xf] }
 0x287   :  { %4766 = vmatpush.bf16.msra.mxu0 %v12194_v44  ;;  %4779 = vmatpush.bf16.msra.mxu1 %v12706_v13  ;;  %v13399_v44 = vld [vmem:[#allocation12 + $0xd58] sm:$0xf0]  ;;  %v16287_v13 = vld [vmem:[#allocation12 + $0x124] sm:$0xf]  ;;  %v16567_v56 = vld [vmem:[#allocation12 + $0x9dc] sm:$0xf0] }
 0x288   :  { %4722 = vmatmul.bf16.vlgmr.msrb.gmra.mxu0 %v18008_v15  ;;  %4735 = vmatmul.bf16.vlgmr.msrb.gmra.mxu1 %v18010_v16  ;;  %v4437_v41 = vpop.f32.mrf.mxu2  ;;  %v4450_v42 = vpop.f32.mrf.mxu3 }
 0x289   :  { %v4438_v30 = vadd.f32 %v4437_v41, %v4425_v35  ;;  %v13661_v41 = vld [vmem:[#allocation12 + $0xf20] sm:$0xf] }
 0x28a   :  { %4689 = vmatpush.bf16.msra.mxu2 %v13146_v49  ;;  %4702 = vmatpush.bf16.msra.mxu3 %v13658_v50  ;;  %v13402_v49 = vor.u32 %v16670_v43, %v13399_v44  ;;  %v16526_v50 = vld [vmem:[#allocation12 + $0x89c] sm:$0xf]  ;;  %v12133_v43 = vld [vmem:[#allocation12 + $0x328] sm:$0xf] }
 0x28b   :  { %4767 = vmatpush.bf16.msra.mxu0 %v12130_v8  ;;  %4780 = vmatpush.bf16.msra.mxu1 %v12642_v52  ;;  %v4451_v5 = vadd.f32 %v4450_v42, %v4438_v30  ;;  %v11874_v8 = vor.u32 %v16287_v13, %v11871_v23  ;;  %v12386_v52 = vor.u32 %v16415_v31, %v12383_v46  ;;  %v16743_v42 = vld [vmem:[#allocation12 + $0xf5c] sm:$0xf0]  ;;  %v16360_v44 = vld [vmem:[#allocation12 + $0x364] sm:$0xf0] }
 0x28c   :  { %v12645_v13 = vld [vmem:[#allocation12 + $0x728] sm:$0xf]  ;;  %v13150_v23 = vor.u32 %v16615_v38, %v13149_v37  ;;  %v13662_v31 = vor.u32 %v16743_v42, %v13661_v41  ;;  %v13085_v46 = vld [vmem:[#allocation12 + $0xaa0] sm:$0xf] }
 0x28d   :  { %v4517_v6 = vpop.f32.mrf.mxu0  ;;  %v4530_v47 = vpop.f32.mrf.mxu1  ;;  %5132 = vst [vmem:[#allocation4 + $0x10] sm:$0xff] %v4451_v5  ;;  %v16488_v30 = vld [vmem:[#allocation12 + $0x764] sm:$0xf0]  ;;  %v16599_v5 = vld [vmem:[#allocation12 + $0xadc] sm:$0xf0] }
 0x28e   :  { %4690 = vmatpush.bf16.msra.mxu2 %v13082_v59  ;;  %4703 = vmatpush.bf16.msra.mxu3 %v13594_v60  ;;  %v12826_v59 = vor.u32 %v16526_v50, %v12823_v33  ;;  %v13338_v60 = vor.u32 %v16654_v27, %v13335_v53  ;;  %v12134_v6 = vor.u32 %v16360_v44, %v12133_v43  ;;  %v12069_v50 = vld [vmem:[#allocation12 + $0x2a8] sm:$0xf]  ;;  %v13405_v38 = vld [vmem:[#allocation12 + $0xd20] sm:$0xf] }
 0x28f   :  { %4768 = vmatpush.bf16.msra.mxu0 %v12066_v1  ;;  %4781 = vmatpush.bf16.msra.mxu1 %v12578_v2  ;;  %v13271_v1 = vld [vmem:[#allocation12 + $0xc58] sm:$0xf0]  ;;  %v11810_v2 = vor.u32 %v16271_v54, %v11807_v58  ;;  %v12646_v47 = vor.u32 %v16488_v30, %v12645_v13  ;;  %v16344_v33 = vld [vmem:[#allocation12 + $0x2e4] sm:$0xf0]  ;;  %v13021_v54 = vld [vmem:[#allocation12 + $0xa20] sm:$0xf] }
 0x290   :  { %v4439_v62 = vpop.f32.mrf.mxu2  ;;  %v4452_v4 = vpop.f32.mrf.mxu3  ;;  %v13274_v25 = vor.u32 %v16638_v0, %v13271_v1  ;;  %v12581_v27 = vld [vmem:[#allocation12 + $0x6a8] sm:$0xf]  ;;  %v16583_v58 = vld [vmem:[#allocation12 + $0xa5c] sm:$0xf0]  ;;  %v12070_v26 = vor.u32 %v16344_v33, %v12069_v50 }
 0x291   :  { %v12517_v0 = vld [vmem:[#allocation12 + $0x628] sm:$0xf]  ;;  %v13022_v62 = vor.u32 %v16583_v58, %v13021_v54  ;;  %v16519_v54 = vld [vmem:[#allocation12 + $0x85c] sm:$0xf0] }
 0x292   :  { %4691 = vmatpush.bf16.msra.mxu2 %v13018_v12  ;;  %4704 = vmatpush.bf16.msra.mxu3 %v13530_v9  ;;  %v12255_v12 = vld [vmem:[#allocation12 + $0x460] sm:$0xf0]  ;;  %v13213_v9 = vld [vmem:[#allocation12 + $0xba0] sm:$0xf]  ;;  %v16456_v1 = vld [vmem:[#allocation12 + $0x664] sm:$0xf0] }
 0x293   :  { %4769 = vmatpush.bf16.msra.mxu0 %v12002_v19  ;;  %4782 = vmatpush.bf16.msra.mxu1 %v12514_v22  ;;  %v16759_v19 = vld [vmem:[#allocation12 + $0xfdc] sm:$0xf0]  ;;  %v12197_v22 = vld [vmem:[#allocation12 + $0x3a8] sm:$0xf]  ;;  %v12258_v35 = vor.u32 %v16383_v61, %v12255_v12  ;;  %v12518_v12 = vor.u32 %v16456_v1, %v12517_v0 }
 0x294   :  { %v16296_v42 = vld [vmem:[#allocation12 + $0x164] sm:$0xf0]  ;;  %v13277_v58 = vld [vmem:[#allocation12 + $0xc20] sm:$0xf] }
 0x295   :  { %v12389_v43 = vld [vmem:[#allocation12 + $0x528] sm:$0xf] }
 0x296   :  { %4692 = vmatpush.bf16.msra.mxu2 %v12954_v14  ;;  %4705 = vmatpush.bf16.msra.mxu3 %v13466_v36  ;;  %v13214_v14 = vor.u32 %v16631_v17, %v13213_v9  ;;  %v13726_v36 = vor.u32 %v16759_v19, %v13725_v18  ;;  %v13469_v9 = vld [vmem:[#allocation12 + $0xda0] sm:$0xf]  ;;  %v11941_v18 = vld [vmem:[#allocation12 + $0x1a8] sm:$0xf] }
 0x297   :  { %4770 = vmatpush.bf16.msra.mxu0 %v11938_v39  ;;  %4783 = vmatpush.bf16.msra.mxu1 %v12450_v40  ;;  %v12198_v39 = vor.u32 %v16376_v28, %v12197_v22  ;;  %v12710_v40 = vor.u32 %v16504_v32, %v12709_v29  ;;  %v16695_v17 = vld [vmem:[#allocation12 + $0xddc] sm:$0xf0]  ;;  %v16312_v19 = vld [vmem:[#allocation12 + $0x1e4] sm:$0xf0]  ;;  %v12958_v28 = vor.u32 %v16567_v56, %v12957_v7  ;;  %v13215_v7 = vld [vmem:[#allocation12 + $0xbe0] sm:$0xf0] }
 0x298   :  { %v12453_v22 = vld [vmem:[#allocation12 + $0x5a8] sm:$0xf]  ;;  %v13470_v29 = vor.u32 %v16695_v17, %v13469_v9  ;;  %v12893_v32 = vld [vmem:[#allocation12 + $0x920] sm:$0xf]  ;;  %v16751_v56 = vld [vmem:[#allocation12 + $0xfa4] sm:$0xf] }
 0x299   :  { %v16424_v44 = vld [vmem:[#allocation12 + $0x564] sm:$0xf0] }
 0x29a   :  { %4693 = vmatpush.bf16.msra.mxu2 %v12890_v48  ;;  %4706 = vmatpush.bf16.msra.mxu3 %v13402_v49  ;;  %v13597_v48 = vld [vmem:[#allocation12 + $0xea0] sm:$0xf]  ;;  %v16280_v50 = vld [vmem:[#allocation12 + $0xe4] sm:$0xf0] }
 0x29b   :  { %4771 = vmatpush.bf16.msra.mxu0 %v11874_v8  ;;  %4784 = vmatpush.bf16.msra.mxu1 %v12386_v52  ;;  %v16727_v49 = vld [vmem:[#allocation12 + $0xedc] sm:$0xf0]  ;;  %v16472_v8 = vld [vmem:[#allocation12 + $0x6e4] sm:$0xf0]  ;;  %v13086_v52 = vor.u32 %v16599_v5, %v13085_v46 }
 0x29c   :  { %v13598_v53 = vor.u32 %v16727_v49, %v13597_v48  ;;  %v12582_v45 = vor.u32 %v16472_v8, %v12581_v27  ;;  %v16535_v46 = vld [vmem:[#allocation12 + $0x8dc] sm:$0xf0]  ;;  %v11813_v49 = vld [vmem:[#allocation12 + $0xa8] sm:$0xf] }
 0x29d   :  { %v13341_v5 = vld [vmem:[#allocation12 + $0xca0] sm:$0xf]  ;;  %v12325_v33 = vld [vmem:[#allocation12 + $0x4a8] sm:$0xf] }
 0x29e   :  { %4694 = vmatpush.bf16.msra.mxu2 %v12826_v59  ;;  %4707 = vmatpush.bf16.msra.mxu3 %v13338_v60  ;;  %v16711_v59 = vld [vmem:[#allocation12 + $0xe5c] sm:$0xf0]  ;;  %v12005_v60 = vld [vmem:[#allocation12 + $0x228] sm:$0xf] }
 0x29f   :  { %4772 = vmatpush.bf16.msra.mxu0 %v11810_v2  ;;  %4785 = vmatpush.bf16.msra.mxu1 %v12322_v3  ;;  %v13534_v4 = vor.u32 %v16711_v59, %v13533_v55  ;;  %v12006_v61 = vor.u32 %v16328_v63, %v12005_v60  ;;  %v16663_v48 = vld [vmem:[#allocation12 + $0xcdc] sm:$0xf0]  ;;  %v16408_v27 = vld [vmem:[#allocation12 + $0x4e4] sm:$0xf0] }
 0x2a0   :  { %v12765_v8 = vld [vmem:[#allocation12 + $0x820] sm:$0xf]  ;;  %v12326_v55 = vor.u32 %v16408_v27, %v12325_v33  ;;  %v11749_v63 = vld [vmem:[#allocation12 + $0x28] sm:$0xf] }
 0x2a1   :  { %v16264_v0 = vld [vmem:[#allocation12 + $0x64] sm:$0xf0]  ;;  %v12766_v9 = vor.u32 %v16519_v54, %v12765_v8  ;;  %v16703_v8 = vld [vmem:[#allocation12 + $0xe24] sm:$0xf]  ;;  %v12007_v54 = vld [vmem:[#allocation12 + $0x268] sm:$0xf0] }
 0x2a2   :  { %4695 = vmatpush.bf16.msra.mxu2 %v12762_v24  ;;  %4708 = vmatpush.bf16.msra.mxu3 %v13274_v25  ;;  %v16440_v24 = vld [vmem:[#allocation12 + $0x5e4] sm:$0xf0]  ;;  %v4477_v25 = vadd.f32 %v18062_v21, %v18060_v20 }
 0x2a3   :  { %4773 = vmatpush.bf16.msra.mxu0 %v11746_v34  ;;  %4786 = vmatpush.bf16.msra.mxu1 %v12258_v35  ;;  %v16551_v34 = vld [vmem:[#allocation12 + $0x95c] sm:$0xf0]  ;;  %v11942_v35 = vor.u32 %v16312_v19, %v11941_v18  ;;  %v12261_v1 = vld [vmem:[#allocation12 + $0x428] sm:$0xf]  ;;  %v12199_v18 = vld [vmem:[#allocation12 + $0x3e8] sm:$0xf0] }
 0x2a4   :  { %v12894_v30 = vor.u32 %v16551_v34, %v12893_v32  ;;  %v16496_v19 = vld [vmem:[#allocation12 + $0x7ac] sm:$0xf]  ;;  %v16607_v32 = vld [vmem:[#allocation12 + $0xb24] sm:$0xf] }
 0x2a5   :  { %4696 = vmatmul.bf16.vlgmr.msra.gmra.mxu2 %v18018_v57  ;;  %4709 = vmatmul.bf16.vlgmr.msra.gmra.mxu3 %v18020_v51  ;;  %v18080_v2 = vpop.f32.mrf.mxu0  ;;  %v18082_v3 = vpop.f32.mrf.mxu1  ;;  %v13151_v34 = vld [vmem:[#allocation12 + $0xb60] sm:$0xf0] }
 0x2a6   :  { %4740 = vmatpush.bf16.msrb.mxu2 %v13214_v14  ;;  %4753 = vmatpush.bf16.msrb.mxu3 %v13726_v36  ;;  %v12454_v14 = vor.u32 %v16440_v24, %v12453_v22  ;;  %v12711_v22 = vld [vmem:[#allocation12 + $0x7e8] sm:$0xf0]  ;;  %v11750_v24 = vor.u32 %v16264_v0, %v11749_v63  ;;  %v16559_v63 = vld [vmem:[#allocation12 + $0x9a4] sm:$0xf] }
 0x2a7   :  { %4818 = vmatpush.bf16.msrb.mxu0 %v12198_v39  ;;  %4831 = vmatpush.bf16.msrb.mxu1 %v12710_v40  ;;  %v16679_v39 = vld [vmem:[#allocation12 + $0xd5c] sm:$0xf0]  ;;  %v11877_v40 = vld [vmem:[#allocation12 + $0x128] sm:$0xf]  ;;  %v12959_v0 = vld [vmem:[#allocation12 + $0x9e0] sm:$0xf0] }
 0x2a8   :  { %4774 = vmatmul.bf16.vlgmr.msra.gmra.mxu0 %v18008_v15  ;;  %4787 = vmatmul.bf16.vlgmr.msra.gmra.mxu1 %v18010_v16  ;;  %v4489_v36 = vpop.f32.mrf.mxu2  ;;  %v4502_v37 = vpop.f32.mrf.mxu3 }
 0x2a9   :  { %v4490_v41 = vadd.f32 %v4489_v36, %v4477_v25  ;;  %v16735_v36 = vld [vmem:[#allocation12 + $0xf24] sm:$0xf] }
 0x2aa   :  { %4741 = vmatpush.bf16.msrb.mxu2 %v13150_v23  ;;  %4754 = vmatpush.bf16.msrb.mxu3 %v13662_v31  ;;  %v13406_v23 = vor.u32 %v16679_v39, %v13405_v38  ;;  %v12829_v31 = vld [vmem:[#allocation12 + $0x8a0] sm:$0xf]  ;;  %v16352_v38 = vld [vmem:[#allocation12 + $0x32c] sm:$0xf] }
 0x2ab   :  { %4819 = vmatpush.bf16.msrb.mxu0 %v12134_v6  ;;  %4832 = vmatpush.bf16.msrb.mxu1 %v12646_v47  ;;  %v4503_v20 = vadd.f32 %v4502_v37, %v4490_v41  ;;  %v11878_v6 = vor.u32 %v16296_v42, %v11877_v40  ;;  %v12390_v47 = vor.u32 %v16424_v44, %v12389_v43  ;;  %v13663_v37 = vld [vmem:[#allocation12 + $0xf60] sm:$0xf0]  ;;  %v12135_v39 = vld [vmem:[#allocation12 + $0x368] sm:$0xf0] }
 0x2ac   :  { %v16480_v40 = vld [vmem:[#allocation12 + $0x72c] sm:$0xf]  ;;  %v13154_v42 = vor.u32 %v16607_v32, %v13151_v34  ;;  %v13666_v43 = vor.u32 %v16735_v36, %v13663_v37  ;;  %v16591_v44 = vld [vmem:[#allocation12 + $0xaa4] sm:$0xf] }
 0x2ad   :  { %v4569_v21 = vpop.f32.mrf.mxu0  ;;  %v4582_v13 = vpop.f32.mrf.mxu1  ;;  %5133 = vst [vmem:[#allocation4 + $0x48] sm:$0xff] %v4503_v20  ;;  %v12647_v41 = vld [vmem:[#allocation12 + $0x768] sm:$0xf0]  ;;  %v13087_v20 = vld [vmem:[#allocation12 + $0xae0] sm:$0xf0] }
 0x2ae   :  { %4742 = vmatpush.bf16.msrb.mxu2 %v13086_v52  ;;  %4755 = vmatpush.bf16.msrb.mxu3 %v13598_v53  ;;  %v12830_v52 = vor.u32 %v16535_v46, %v12829_v31  ;;  %v13342_v53 = vor.u32 %v16663_v48, %v13341_v5  ;;  %v12138_v21 = vor.u32 %v16352_v38, %v12135_v39  ;;  %v16336_v31 = vld [vmem:[#allocation12 + $0x2ac] sm:$0xf]  ;;  %v16671_v34 = vld [vmem:[#allocation12 + $0xd24] sm:$0xf] }
 0x2af   :  { %4820 = vmatpush.bf16.msrb.mxu0 %v12070_v26  ;;  %4833 = vmatpush.bf16.msrb.mxu1 %v12582_v45  ;;  %v16647_v26 = vld [vmem:[#allocation12 + $0xc5c] sm:$0xf0]  ;;  %v11814_v45 = vor.u32 %v16280_v50, %v11813_v49  ;;  %v12650_v13 = vor.u32 %v16480_v40, %v12647_v41  ;;  %v12071_v46 = vld [vmem:[#allocation12 + $0x2e8] sm:$0xf0]  ;;  %v16575_v49 = vld [vmem:[#allocation12 + $0xa24] sm:$0xf] }
 0x2b0   :  { %v4491_v59 = vpop.f32.mrf.mxu2  ;;  %v4504_v60 = vpop.f32.mrf.mxu3  ;;  %v13278_v17 = vor.u32 %v16647_v26, %v13277_v58  ;;  %v16464_v5 = vld [vmem:[#allocation12 + $0x6ac] sm:$0xf]  ;;  %v13023_v50 = vld [vmem:[#allocation12 + $0xa60] sm:$0xf0]  ;;  %v12074_v33 = vor.u32 %v16336_v31, %v12071_v46 }
 0x2b1   :  { %v16448_v58 = vld [vmem:[#allocation12 + $0x62c] sm:$0xf]  ;;  %v13026_v59 = vor.u32 %v16575_v49, %v13023_v50  ;;  %v12767_v49 = vld [vmem:[#allocation12 + $0x860] sm:$0xf0] }
 0x2b2   :  { %4743 = vmatpush.bf16.msrb.mxu2 %v13022_v62  ;;  %4756 = vmatpush.bf16.msrb.mxu3 %v13534_v4  ;;  %v16392_v62 = vld [vmem:[#allocation12 + $0x464] sm:$0xf0]  ;;  %v16623_v4 = vld [vmem:[#allocation12 + $0xba4] sm:$0xf]  ;;  %v12519_v26 = vld [vmem:[#allocation12 + $0x668] sm:$0xf0] }
 0x2b3   :  { %4821 = vmatpush.bf16.msrb.mxu0 %v12006_v61  ;;  %4834 = vmatpush.bf16.msrb.mxu1 %v12518_v12  ;;  %v13727_v61 = vld [vmem:[#allocation12 + $0xfe0] sm:$0xf0]  ;;  %v16368_v12 = vld [vmem:[#allocation12 + $0x3ac] sm:$0xf]  ;;  %v12262_v25 = vor.u32 %v16392_v62, %v12261_v1  ;;  %v12522_v62 = vor.u32 %v16448_v58, %v12519_v26 }
 0x2b4   :  { %v11879_v37 = vld [vmem:[#allocation12 + $0x168] sm:$0xf0]  ;;  %v16639_v50 = vld [vmem:[#allocation12 + $0xc24] sm:$0xf] }
 0x2b5   :  { %v16416_v38 = vld [vmem:[#allocation12 + $0x52c] sm:$0xf] }
 0x2b6   :  { %4744 = vmatpush.bf16.msrb.mxu2 %v12958_v28  ;;  %4757 = vmatpush.bf16.msrb.mxu3 %v13470_v29  ;;  %v13218_v28 = vor.u32 %v16623_v4, %v13215_v7  ;;  %v13730_v29 = vor.u32 %v16751_v56, %v13727_v61  ;;  %v16687_v4 = vld [vmem:[#allocation12 + $0xda4] sm:$0xf]  ;;  %v16304_v56 = vld [vmem:[#allocation12 + $0x1ac] sm:$0xf] }
 0x2b7   :  { %4822 = vmatpush.bf16.msrb.mxu0 %v11942_v35  ;;  %4835 = vmatpush.bf16.msrb.mxu1 %v12454_v14  ;;  %v12202_v35 = vor.u32 %v16368_v12, %v12199_v18  ;;  %v12714_v14 = vor.u32 %v16496_v19, %v12711_v22  ;;  %v13471_v7 = vld [vmem:[#allocation12 + $0xde0] sm:$0xf0]  ;;  %v11943_v61 = vld [vmem:[#allocation12 + $0x1e8] sm:$0xf0]  ;;  %v12962_v18 = vor.u32 %v16559_v63, %v12959_v0  ;;  %v16632_v63 = vld [vmem:[#allocation12 + $0xbe4] sm:$0xf0] }
 0x2b8   :  { %v16432_v12 = vld [vmem:[#allocation12 + $0x5ac] sm:$0xf]  ;;  %v13474_v19 = vor.u32 %v16687_v4, %v13471_v7  ;;  %v16543_v22 = vld [vmem:[#allocation12 + $0x924] sm:$0xf]  ;;  %v13733_v0 = vld [vmem:[#allocation12 + $0xfa8] sm:$0xf] }
 0x2b9   :  { %v12391_v39 = vld [vmem:[#allocation12 + $0x568] sm:$0xf0] }
 0x2ba   :  { %4745 = vmatpush.bf16.msrb.mxu2 %v12894_v30  ;;  %4758 = vmatpush.bf16.msrb.mxu3 %v13406_v23  ;;  %v16719_v30 = vld [vmem:[#allocation12 + $0xea4] sm:$0xf]  ;;  %v11815_v31 = vld [vmem:[#allocation12 + $0xe8] sm:$0xf0] }
 0x2bb   :  { %4823 = vmatpush.bf16.msrb.mxu0 %v11878_v6  ;;  %4836 = vmatpush.bf16.msrb.mxu1 %v12390_v47  ;;  %v13599_v23 = vld [vmem:[#allocation12 + $0xee0] sm:$0xf0]  ;;  %v12583_v6 = vld [vmem:[#allocation12 + $0x6e8] sm:$0xf0]  ;;  %v13090_v47 = vor.u32 %v16591_v44, %v13087_v20 }
 0x2bc   :  { %v13602_v48 = vor.u32 %v16719_v30, %v13599_v23  ;;  %v12586_v27 = vor.u32 %v16464_v5, %v12583_v6  ;;  %v12831_v44 = vld [vmem:[#allocation12 + $0x8e0] sm:$0xf0]  ;;  %v16272_v23 = vld [vmem:[#allocation12 + $0xac] sm:$0xf] }
 0x2bd   :  { %v16655_v20 = vld [vmem:[#allocation12 + $0xca4] sm:$0xf]  ;;  %v16400_v46 = vld [vmem:[#allocation12 + $0x4ac] sm:$0xf] }
 0x2be   :  { %4746 = vmatpush.bf16.msrb.mxu2 %v12830_v52  ;;  %4759 = vmatpush.bf16.msrb.mxu3 %v13342_v53  ;;  %v13535_v52 = vld [vmem:[#allocation12 + $0xe60] sm:$0xf0]  ;;  %v16320_v53 = vld [vmem:[#allocation12 + $0x22c] sm:$0xf] }
 0x2bf   :  { %4824 = vmatpush.bf16.msrb.mxu0 %v11814_v45  ;;  %4837 = vmatpush.bf16.msrb.mxu1 %v12326_v55  ;;  %v13538_v60 = vor.u32 %v16703_v8, %v13535_v52  ;;  %v12010_v1 = vor.u32 %v16320_v53, %v12007_v54  ;;  %v13343_v30 = vld [vmem:[#allocation12 + $0xce0] sm:$0xf0]  ;;  %v12327_v5 = vld [vmem:[#allocation12 + $0x4e8] sm:$0xf0] }
 0x2c0   :  { %v16511_v6 = vld [vmem:[#allocation12 + $0x824] sm:$0xf]  ;;  %v12330_v8 = vor.u32 %v16400_v46, %v12327_v5  ;;  %v16256_v54 = vld [vmem:[#allocation12 + $0x2c] sm:$0xf] }
 0x2c1   :  { %v11751_v58 = vld [vmem:[#allocation12 + $0x68] sm:$0xf0]  ;;  %v12770_v4 = vor.u32 %v16511_v6, %v12767_v49  ;;  %v13541_v6 = vld [vmem:[#allocation12 + $0xe28] sm:$0xf]  ;;  %v16329_v49 = vld [vmem:[#allocation12 + $0x26c] sm:$0xf0] }
 0x2c2   :  { %4747 = vmatpush.bf16.msrb.mxu2 %v12766_v9  ;;  %4760 = vmatpush.bf16.msrb.mxu3 %v13278_v17  ;;  %v12455_v9 = vld [vmem:[#allocation12 + $0x5e8] sm:$0xf0]  ;;  %v4529_v17 = vadd.f32 %v18072_v11, %v18070_v10 }
 0x2c3   :  { %4825 = vmatpush.bf16.msrb.mxu0 %v11750_v24  ;;  %4838 = vmatpush.bf16.msrb.mxu1 %v12262_v25  ;;  %v12895_v24 = vld [vmem:[#allocation12 + $0x960] sm:$0xf0]  ;;  %v11946_v25 = vor.u32 %v16304_v56, %v11943_v61  ;;  %v16384_v26 = vld [vmem:[#allocation12 + $0x42c] sm:$0xf]  ;;  %v16377_v56 = vld [vmem:[#allocation12 + $0x3ec] sm:$0xf0] }
 0x2c4   :  { %v12898_v41 = vor.u32 %v16543_v22, %v12895_v24  ;;  %v12717_v61 = vld [vmem:[#allocation12 + $0x7b0] sm:$0xf]  ;;  %v13157_v22 = vld [vmem:[#allocation12 + $0xb28] sm:$0xf] }
 0x2c5   :  { %4748 = vmatmul.bf16.vlgmr.msrb.gmra.mxu2 %v18018_v57  ;;  %4761 = vmatmul.bf16.vlgmr.msrb.gmra.mxu3 %v18020_v51  ;;  %v18090_v45 = vpop.f32.mrf.mxu0  ;;  %v18092_v55 = vpop.f32.mrf.mxu1  ;;  %v16616_v24 = vld [vmem:[#allocation12 + $0xb64] sm:$0xf0] }
 0x2c6   :  { %4792 = vmatpush.bf16.msra.mxu2 %v13218_v28  ;;  %4805 = vmatpush.bf16.msra.mxu3 %v13730_v29  ;;  %v12458_v28 = vor.u32 %v16432_v12, %v12455_v9  ;;  %v16505_v12 = vld [vmem:[#allocation12 + $0x7ec] sm:$0xf0]  ;;  %v11754_v9 = vor.u32 %v16256_v54, %v11751_v58  ;;  %v12965_v54 = vld [vmem:[#allocation12 + $0x9a8] sm:$0xf] }
 0x2c7   :  { %4870 = vmatpush.bf16.msra.mxu0 %v12202_v35  ;;  %4883 = vmatpush.bf16.msra.mxu1 %v12714_v14  ;;  %v13407_v35 = vld [vmem:[#allocation12 + $0xd60] sm:$0xf0]  ;;  %v16288_v14 = vld [vmem:[#allocation12 + $0x12c] sm:$0xf]  ;;  %v16568_v58 = vld [vmem:[#allocation12 + $0x9e4] sm:$0xf0] }
 0x2c8   :  { %4826 = vmatmul.bf16.vlgmr.msrb.gmra.mxu0 %v18008_v15  ;;  %4839 = vmatmul.bf16.vlgmr.msrb.gmra.mxu1 %v18010_v16  ;;  %v4541_v29 = vpop.f32.mrf.mxu2  ;;  %v4554_v32 = vpop.f32.mrf.mxu3 }
 0x2c9   :  { %v4542_v36 = vadd.f32 %v4541_v29, %v4529_v17  ;;  %v13669_v29 = vld [vmem:[#allocation12 + $0xf28] sm:$0xf] }
 0x2ca   :  { %4793 = vmatpush.bf16.msra.mxu2 %v13154_v42  ;;  %4806 = vmatpush.bf16.msra.mxu3 %v13666_v43  ;;  %v13410_v42 = vor.u32 %v16671_v34, %v13407_v35  ;;  %v16527_v43 = vld [vmem:[#allocation12 + $0x8a4] sm:$0xf]  ;;  %v12141_v34 = vld [vmem:[#allocation12 + $0x330] sm:$0xf] }
 0x2cb   :  { %4871 = vmatpush.bf16.msra.mxu0 %v12138_v21  ;;  %4884 = vmatpush.bf16.msra.mxu1 %v12650_v13  ;;  %v4555_v10 = vadd.f32 %v4554_v32, %v4542_v36  ;;  %v11882_v21 = vor.u32 %v16288_v14, %v11879_v37  ;;  %v12394_v13 = vor.u32 %v16416_v38, %v12391_v39  ;;  %v16744_v32 = vld [vmem:[#allocation12 + $0xf64] sm:$0xf0]  ;;  %v16361_v35 = vld [vmem:[#allocation12 + $0x36c] sm:$0xf0] }
 0x2cc   :  { %v12653_v14 = vld [vmem:[#allocation12 + $0x730] sm:$0xf]  ;;  %v13158_v37 = vor.u32 %v16616_v24, %v13157_v22  ;;  %v13670_v38 = vor.u32 %v16744_v32, %v13669_v29  ;;  %v13093_v39 = vld [vmem:[#allocation12 + $0xaa8] sm:$0xf] }
 0x2cd   :  { %v4621_v11 = vpop.f32.mrf.mxu0  ;;  %v4634_v40 = vpop.f32.mrf.mxu1  ;;  %5134 = vst [vmem:[#allocation4 + $0x108] sm:$0xff] %v4555_v10  ;;  %v16489_v36 = vld [vmem:[#allocation12 + $0x76c] sm:$0xf0]  ;;  %v16600_v10 = vld [vmem:[#allocation12 + $0xae4] sm:$0xf0] }
 0x2ce   :  { %4794 = vmatpush.bf16.msra.mxu2 %v13090_v47  ;;  %4807 = vmatpush.bf16.msra.mxu3 %v13602_v48  ;;  %v12834_v47 = vor.u32 %v16527_v43, %v12831_v44  ;;  %v13346_v48 = vor.u32 %v16655_v20, %v13343_v30  ;;  %v12142_v11 = vor.u32 %v16361_v35, %v12141_v34  ;;  %v12077_v43 = vld [vmem:[#allocation12 + $0x2b0] sm:$0xf]  ;;  %v13413_v24 = vld [vmem:[#allocation12 + $0xd28] sm:$0xf] }
 0x2cf   :  { %4872 = vmatpush.bf16.msra.mxu0 %v12074_v33  ;;  %4885 = vmatpush.bf16.msra.mxu1 %v12586_v27  ;;  %v13279_v33 = vld [vmem:[#allocation12 + $0xc60] sm:$0xf0]  ;;  %v11818_v27 = vor.u32 %v16272_v23, %v11815_v31  ;;  %v12654_v40 = vor.u32 %v16489_v36, %v12653_v14  ;;  %v16345_v44 = vld [vmem:[#allocation12 + $0x2ec] sm:$0xf0]  ;;  %v13029_v23 = vld [vmem:[#allocation12 + $0xa28] sm:$0xf] }
 0x2d0   :  { %v4543_v52 = vpop.f32.mrf.mxu2  ;;  %v4556_v53 = vpop.f32.mrf.mxu3  ;;  %v13282_v7 = vor.u32 %v16639_v50, %v13279_v33  ;;  %v12589_v20 = vld [vmem:[#allocation12 + $0x6b0] sm:$0xf]  ;;  %v16584_v31 = vld [vmem:[#allocation12 + $0xa64] sm:$0xf0]  ;;  %v12078_v46 = vor.u32 %v16345_v44, %v12077_v43 }
 0x2d1   :  { %v12525_v50 = vld [vmem:[#allocation12 + $0x630] sm:$0xf]  ;;  %v13030_v52 = vor.u32 %v16584_v31, %v13029_v23  ;;  %v16520_v23 = vld [vmem:[#allocation12 + $0x864] sm:$0xf0] }
 0x2d2   :  { %4795 = vmatpush.bf16.msra.mxu2 %v13026_v59  ;;  %4808 = vmatpush.bf16.msra.mxu3 %v13538_v60  ;;  %v12263_v59 = vld [vmem:[#allocation12 + $0x468] sm:$0xf0]  ;;  %v13221_v60 = vld [vmem:[#allocation12 + $0xba8] sm:$0xf]  ;;  %v16457_v33 = vld [vmem:[#allocation12 + $0x66c] sm:$0xf0] }
 0x2d3   :  { %4873 = vmatpush.bf16.msra.mxu0 %v12010_v1  ;;  %4886 = vmatpush.bf16.msra.mxu1 %v12522_v62  ;;  %v16760_v1 = vld [vmem:[#allocation12 + $0xfe4] sm:$0xf0]  ;;  %v12205_v62 = vld [vmem:[#allocation12 + $0x3b0] sm:$0xf]  ;;  %v12266_v17 = vor.u32 %v16384_v26, %v12263_v59  ;;  %v12526_v59 = vor.u32 %v16457_v33, %v12525_v50 }
 0x2d4   :  { %v16297_v32 = vld [vmem:[#allocation12 + $0x16c] sm:$0xf0]  ;;  %v13285_v31 = vld [vmem:[#allocation12 + $0xc28] sm:$0xf] }
 0x2d5   :  { %v12397_v34 = vld [vmem:[#allocation12 + $0x530] sm:$0xf] }
 0x2d6   :  { %4796 = vmatpush.bf16.msra.mxu2 %v12962_v18  ;;  %4809 = vmatpush.bf16.msra.mxu3 %v13474_v19  ;;  %v13222_v18 = vor.u32 %v16632_v63, %v13221_v60  ;;  %v13734_v19 = vor.u32 %v16760_v1, %v13733_v0  ;;  %v13477_v60 = vld [vmem:[#allocation12 + $0xda8] sm:$0xf]  ;;  %v11949_v0 = vld [vmem:[#allocation12 + $0x1b0] sm:$0xf] }
 0x2d7   :  { %4874 = vmatpush.bf16.msra.mxu0 %v11946_v25  ;;  %4887 = vmatpush.bf16.msra.mxu1 %v12458_v28  ;;  %v12206_v25 = vor.u32 %v16377_v56, %v12205_v62  ;;  %v12718_v28 = vor.u32 %v16505_v12, %v12717_v61  ;;  %v16696_v63 = vld [vmem:[#allocation12 + $0xde4] sm:$0xf0]  ;;  %v16313_v1 = vld [vmem:[#allocation12 + $0x1ec] sm:$0xf0]  ;;  %v12966_v56 = vor.u32 %v16568_v58, %v12965_v54  ;;  %v13223_v54 = vld [vmem:[#allocation12 + $0xbe8] sm:$0xf0] }
 0x2d8   :  { %v12461_v62 = vld [vmem:[#allocation12 + $0x5b0] sm:$0xf]  ;;  %v13478_v61 = vor.u32 %v16696_v63, %v13477_v60  ;;  %v12901_v12 = vld [vmem:[#allocation12 + $0x928] sm:$0xf]  ;;  %v16752_v58 = vld [vmem:[#allocation12 + $0xfac] sm:$0xf] }
 0x2d9   :  { %v16425_v35 = vld [vmem:[#allocation12 + $0x56c] sm:$0xf0] }
 0x2da   :  { %4797 = vmatpush.bf16.msra.mxu2 %v12898_v41  ;;  %4810 = vmatpush.bf16.msra.mxu3 %v13410_v42  ;;  %v13605_v41 = vld [vmem:[#allocation12 + $0xea8] sm:$0xf]  ;;  %v16281_v43 = vld [vmem:[#allocation12 + $0xec] sm:$0xf0] }
 0x2db   :  { %4875 = vmatpush.bf16.msra.mxu0 %v11882_v21  ;;  %4888 = vmatpush.bf16.msra.mxu1 %v12394_v13  ;;  %v16728_v42 = vld [vmem:[#allocation12 + $0xee4] sm:$0xf0]  ;;  %v16473_v21 = vld [vmem:[#allocation12 + $0x6ec] sm:$0xf0]  ;;  %v13094_v13 = vor.u32 %v16600_v10, %v13093_v39 }
 0x2dc   :  { %v13606_v30 = vor.u32 %v16728_v42, %v13605_v41  ;;  %v12590_v5 = vor.u32 %v16473_v21, %v12589_v20  ;;  %v16536_v39 = vld [vmem:[#allocation12 + $0x8e4] sm:$0xf0]  ;;  %v11821_v42 = vld [vmem:[#allocation12 + $0xb0] sm:$0xf] }
 0x2dd   :  { %v13349_v10 = vld [vmem:[#allocation12 + $0xca8] sm:$0xf]  ;;  %v12333_v44 = vld [vmem:[#allocation12 + $0x4b0] sm:$0xf] }
 0x2de   :  { %4798 = vmatpush.bf16.msra.mxu2 %v12834_v47  ;;  %4811 = vmatpush.bf16.msra.mxu3 %v13346_v48  ;;  %v16712_v47 = vld [vmem:[#allocation12 + $0xe64] sm:$0xf0]  ;;  %v12013_v48 = vld [vmem:[#allocation12 + $0x230] sm:$0xf] }
 0x2df   :  { %4876 = vmatpush.bf16.msra.mxu0 %v11818_v27  ;;  %4889 = vmatpush.bf16.msra.mxu1 %v12330_v8  ;;  %v13542_v53 = vor.u32 %v16712_v47, %v13541_v6  ;;  %v12014_v26 = vor.u32 %v16329_v49, %v12013_v48  ;;  %v16664_v41 = vld [vmem:[#allocation12 + $0xce4] sm:$0xf0]  ;;  %v16409_v20 = vld [vmem:[#allocation12 + $0x4ec] sm:$0xf0] }
 0x2e0   :  { %v12773_v21 = vld [vmem:[#allocation12 + $0x828] sm:$0xf]  ;;  %v12334_v6 = vor.u32 %v16409_v20, %v12333_v44  ;;  %v11757_v49 = vld [vmem:[#allocation12 + $0x30] sm:$0xf]  ;;  %v13031_v44 = vld [vmem:[#allocation12 + $0xa68] sm:$0xf0] }
 0x2e1   :  { %v16265_v50 = vld [vmem:[#allocation12 + $0x6c] sm:$0xf0]  ;;  %v12774_v60 = vor.u32 %v16520_v23, %v12773_v21  ;;  %v16321_v23 = vld [vmem:[#allocation12 + $0x234] sm:$0xf] }
 0x2e2   :  { %4799 = vmatpush.bf16.msra.mxu2 %v12770_v4  ;;  %4812 = vmatpush.bf16.msra.mxu3 %v13282_v7  ;;  %v16441_v4 = vld [vmem:[#allocation12 + $0x5ec] sm:$0xf0]  ;;  %v4581_v7 = vadd.f32 %v18082_v3, %v18080_v2 }
 0x2e3   :  { %4877 = vmatpush.bf16.msra.mxu0 %v11754_v9  ;;  %4890 = vmatpush.bf16.msra.mxu1 %v12266_v17  ;;  %v16552_v9 = vld [vmem:[#allocation12 + $0x964] sm:$0xf0]  ;;  %v11950_v17 = vor.u32 %v16313_v1, %v11949_v0  ;;  %v12269_v33 = vld [vmem:[#allocation12 + $0x430] sm:$0xf]  ;;  %v12207_v0 = vld [vmem:[#allocation12 + $0x3f0] sm:$0xf0] }
 0x2e4   :  { %v12902_v36 = vor.u32 %v16552_v9, %v12901_v12  ;;  %v16497_v1 = vld [vmem:[#allocation12 + $0x7b4] sm:$0xf]  ;;  %v16608_v12 = vld [vmem:[#allocation12 + $0xb2c] sm:$0xf] }
 0x2e5   :  { %4800 = vmatmul.bf16.vlgmr.msra.gmra.mxu2 %v18018_v57  ;;  %4813 = vmatmul.bf16.vlgmr.msra.gmra.mxu3 %v18020_v51  ;;  %v18100_v27 = vpop.f32.mrf.mxu0  ;;  %v18102_v8 = vpop.f32.mrf.mxu1  ;;  %v13159_v9 = vld [vmem:[#allocation12 + $0xb68] sm:$0xf0] }
 0x2e6   :  { %4844 = vmatpush.bf16.msrb.mxu2 %v13222_v18  ;;  %4857 = vmatpush.bf16.msrb.mxu3 %v13734_v19  ;;  %v12462_v18 = vor.u32 %v16441_v4, %v12461_v62  ;;  %v12719_v62 = vld [vmem:[#allocation12 + $0x7f0] sm:$0xf0]  ;;  %v11758_v4 = vor.u32 %v16265_v50, %v11757_v49  ;;  %v16560_v50 = vld [vmem:[#allocation12 + $0x9ac] sm:$0xf] }
 0x2e7   :  { %4922 = vmatpush.bf16.msrb.mxu0 %v12206_v25  ;;  %4935 = vmatpush.bf16.msrb.mxu1 %v12718_v28  ;;  %v16680_v25 = vld [vmem:[#allocation12 + $0xd64] sm:$0xf0]  ;;  %v11885_v28 = vld [vmem:[#allocation12 + $0x130] sm:$0xf] }
 0x2e8   :  { %4878 = vmatmul.bf16.vlgmr.msra.gmra.mxu0 %v18008_v15  ;;  %4891 = vmatmul.bf16.vlgmr.msra.gmra.mxu1 %v18010_v16  ;;  %v4593_v19 = vpop.f32.mrf.mxu2  ;;  %v4606_v22 = vpop.f32.mrf.mxu3 }
 0x2e9   :  { %v4594_v29 = vadd.f32 %v4593_v19, %v4581_v7  ;;  %v16736_v19 = vld [vmem:[#allocation12 + $0xf2c] sm:$0xf] }
 0x2ea   :  { %4845 = vmatpush.bf16.msrb.mxu2 %v13158_v37  ;;  %4858 = vmatpush.bf16.msrb.mxu3 %v13670_v38  ;;  %v13414_v37 = vor.u32 %v16680_v25, %v13413_v24  ;;  %v12837_v38 = vld [vmem:[#allocation12 + $0x8a8] sm:$0xf]  ;;  %v16353_v24 = vld [vmem:[#allocation12 + $0x334] sm:$0xf] }
 0x2eb   :  { %4923 = vmatpush.bf16.msrb.mxu0 %v12142_v11  ;;  %4936 = vmatpush.bf16.msrb.mxu1 %v12654_v40  ;;  %v18106_v2 = vadd.f32 %v4606_v22, %v4594_v29  ;;  %v11886_v11 = vor.u32 %v16297_v32, %v11885_v28  ;;  %v12398_v40 = vor.u32 %v16425_v35, %v12397_v34  ;;  %v13671_v22 = vld [vmem:[#allocation12 + $0xf68] sm:$0xf0]  ;;  %v12143_v25 = vld [vmem:[#allocation12 + $0x370] sm:$0xf0] }
 0x2ec   :  { %v16481_v28 = vld [vmem:[#allocation12 + $0x734] sm:$0xf]  ;;  %v13162_v32 = vor.u32 %v16608_v12, %v13159_v9  ;;  %v13674_v34 = vor.u32 %v16736_v19, %v13671_v22  ;;  %v16592_v35 = vld [vmem:[#allocation12 + $0xaac] sm:$0xf] }
 0x2ed   :  { %v4673_v3 = vpop.f32.mrf.mxu0  ;;  %v4686_v14 = vpop.f32.mrf.mxu1  ;;  %5135 = vst [vmem:[#allocation4 + $0x68] sm:$0xff] %v18106_v2  ;;  %v12655_v29 = vld [vmem:[#allocation12 + $0x770] sm:$0xf0] }
 0x2ee   :  { %4846 = vmatpush.bf16.msrb.mxu2 %v13094_v13  ;;  %4859 = vmatpush.bf16.msrb.mxu3 %v13606_v30  ;;  %v12838_v13 = vor.u32 %v16536_v39, %v12837_v38  ;;  %v13350_v30 = vor.u32 %v16664_v41, %v13349_v10  ;;  %v13095_v3 = vld [vmem:[#allocation12 + $0xae8] sm:$0xf0]  ;;  %v12146_v14 = vor.u32 %v16353_v24, %v12143_v25  ;;  %v16337_v39 = vld [vmem:[#allocation12 + $0x2b4] sm:$0xf] }
 0x2ef   :  { %4924 = vmatpush.bf16.msrb.mxu0 %v12078_v46  ;;  %4937 = vmatpush.bf16.msrb.mxu1 %v12590_v5  ;;  %v16648_v46 = vld [vmem:[#allocation12 + $0xc64] sm:$0xf0]  ;;  %v11822_v5 = vor.u32 %v16281_v43, %v11821_v42  ;;  %v13607_v38 = vld [vmem:[#allocation12 + $0xee8] sm:$0xf0]  ;;  %v12079_v10 = vld [vmem:[#allocation12 + $0x2f0] sm:$0xf0]  ;;  %v13098_v41 = vor.u32 %v16592_v35, %v13095_v3 }
 0x2f0   :  { %v4595_v47 = vpop.f32.mrf.mxu2  ;;  %v4608_v48 = vpop.f32.mrf.mxu3  ;;  %v13286_v63 = vor.u32 %v16648_v46, %v13285_v31  ;;  %v16576_v43 = vld [vmem:[#allocation12 + $0xa2c] sm:$0xf]  ;;  %v12082_v20 = vor.u32 %v16337_v39, %v12079_v10  ;;  %v12015_v31 = vld [vmem:[#allocation12 + $0x270] sm:$0xf0] }
 0x2f1   :  { %v16449_v46 = vld [vmem:[#allocation12 + $0x634] sm:$0xf]  ;;  %v13034_v48 = vor.u32 %v16576_v43, %v13031_v44  ;;  %v16528_v35 = vld [vmem:[#allocation12 + $0x8ac] sm:$0xf] }
 0x2f2   :  { %4847 = vmatpush.bf16.msrb.mxu2 %v13030_v52  ;;  %4860 = vmatpush.bf16.msrb.mxu3 %v13542_v53  ;;  %v16393_v52 = vld [vmem:[#allocation12 + $0x46c] sm:$0xf0]  ;;  %v16624_v53 = vld [vmem:[#allocation12 + $0xbac] sm:$0xf]  ;;  %v16289_v19 = vld [vmem:[#allocation12 + $0x134] sm:$0xf] }
 0x2f3   :  { %4925 = vmatpush.bf16.msrb.mxu0 %v12014_v26  ;;  %4938 = vmatpush.bf16.msrb.mxu1 %v12526_v59  ;;  %v13735_v26 = vld [vmem:[#allocation12 + $0xfe8] sm:$0xf0]  ;;  %v16369_v59 = vld [vmem:[#allocation12 + $0x3b4] sm:$0xf]  ;;  %v12270_v7 = vor.u32 %v16393_v52, %v12269_v33  ;;  %v12018_v52 = vor.u32 %v16321_v23, %v12015_v31 }
 0x2f4   :  { %v12967_v33 = vld [vmem:[#allocation12 + $0x9e8] sm:$0xf0]  ;;  %v11887_v24 = vld [vmem:[#allocation12 + $0x170] sm:$0xf0] }
 0x2f5   :  { %v16417_v25 = vld [vmem:[#allocation12 + $0x534] sm:$0xf]  ;;  %v12839_v3 = vld [vmem:[#allocation12 + $0x8e8] sm:$0xf0] }
 0x2f6   :  { %4848 = vmatpush.bf16.msrb.mxu2 %v12966_v56  ;;  %4861 = vmatpush.bf16.msrb.mxu3 %v13478_v61  ;;  %v13226_v56 = vor.u32 %v16624_v53, %v13223_v54  ;;  %v13738_v61 = vor.u32 %v16752_v58, %v13735_v26  ;;  %v16688_v54 = vld [vmem:[#allocation12 + $0xdac] sm:$0xf]  ;;  %v16305_v26 = vld [vmem:[#allocation12 + $0x1b4] sm:$0xf] }
 0x2f7   :  { %4926 = vmatpush.bf16.msrb.mxu0 %v11950_v17  ;;  %4939 = vmatpush.bf16.msrb.mxu1 %v12462_v18  ;;  %v12210_v17 = vor.u32 %v16369_v59, %v12207_v0  ;;  %v12722_v18 = vor.u32 %v16497_v1, %v12719_v62  ;;  %v13479_v58 = vld [vmem:[#allocation12 + $0xde8] sm:$0xf0]  ;;  %v11951_v59 = vld [vmem:[#allocation12 + $0x1f0] sm:$0xf0]  ;;  %v4633_v0 = vadd.f32 %v18092_v55, %v18090_v45 }
 0x2f8   :  { %v12970_v1 = vor.u32 %v16560_v50, %v12967_v33  ;;  %v13482_v62 = vor.u32 %v16688_v54, %v13479_v58  ;;  %v16273_v39 = vld [vmem:[#allocation12 + $0xb4] sm:$0xf]  ;;  %v12775_v44 = vld [vmem:[#allocation12 + $0x868] sm:$0xf0]  ;;  %v13229_v50 = vld [vmem:[#allocation12 + $0xbb0] sm:$0xf] }
 0x2f9   :  { %v11823_v10 = vld [vmem:[#allocation12 + $0xf0] sm:$0xf0]  ;;  %v16633_v33 = vld [vmem:[#allocation12 + $0xbec] sm:$0xf0]  ;;  %v12213_v54 = vld [vmem:[#allocation12 + $0x3b8] sm:$0xf] }
 0x2fa   :  { %4849 = vmatpush.bf16.msrb.mxu2 %v12902_v36  ;;  %4862 = vmatpush.bf16.msrb.mxu3 %v13414_v37  ;;  %v12658_v36 = vor.u32 %v16481_v28, %v12655_v29  ;;  %v16720_v37 = vld [vmem:[#allocation12 + $0xeac] sm:$0xf]  ;;  %v12399_v28 = vld [vmem:[#allocation12 + $0x570] sm:$0xf0] }
 0x2fb   :  { %4927 = vmatpush.bf16.msrb.mxu0 %v11886_v11  ;;  %4940 = vmatpush.bf16.msrb.mxu1 %v12398_v40  ;;  %v16465_v11 = vld [vmem:[#allocation12 + $0x6b4] sm:$0xf]  ;;  %v13610_v42 = vor.u32 %v16720_v37, %v13607_v38  ;;  %v12402_v37 = vor.u32 %v16417_v25, %v12399_v28  ;;  %v13351_v38 = vld [vmem:[#allocation12 + $0xce8] sm:$0xf0] }
 0x2fc   :  { %v12591_v40 = vld [vmem:[#allocation12 + $0x6f0] sm:$0xf0] }
 0x2fd   :  { %v12594_v21 = vor.u32 %v16465_v11, %v12591_v40  ;;  %v16401_v11 = vld [vmem:[#allocation12 + $0x4b4] sm:$0xf] }
 0x2fe   :  { %4850 = vmatpush.bf16.msrb.mxu2 %v12838_v13  ;;  %4863 = vmatpush.bf16.msrb.mxu3 %v13350_v30  ;;  %v16704_v13 = vld [vmem:[#allocation12 + $0xe2c] sm:$0xf]  ;;  %v12335_v40 = vld [vmem:[#allocation12 + $0x4f0] sm:$0xf0] }
 0x2ff   :  { %4928 = vmatpush.bf16.msrb.mxu0 %v11822_v5  ;;  %4941 = vmatpush.bf16.msrb.mxu1 %v12334_v6  ;;  %v13543_v30 = vld [vmem:[#allocation12 + $0xe68] sm:$0xf0]  ;;  %v12527_v5 = vld [vmem:[#allocation12 + $0x670] sm:$0xf0] }
 0x300   :  { %v13546_v49 = vor.u32 %v16704_v13, %v13543_v30  ;;  %v12530_v53 = vor.u32 %v16449_v46, %v12527_v5  ;;  %v11826_v13 = vor.u32 %v16273_v39, %v11823_v10  ;;  %v12338_v30 = vor.u32 %v16401_v11, %v12335_v40  ;;  %v16257_v46 = vld [vmem:[#allocation12 + $0x34] sm:$0xf]  ;;  %v13037_v10 = vld [vmem:[#allocation12 + $0xa30] sm:$0xf] }
 0x301   :  { %v11759_v5 = vld [vmem:[#allocation12 + $0x70] sm:$0xf0]  ;;  %v16585_v11 = vld [vmem:[#allocation12 + $0xa6c] sm:$0xf0] }
 0x302   :  { %4851 = vmatpush.bf16.msrb.mxu2 %v12774_v60  ;;  %4864 = vmatpush.bf16.msrb.mxu3 %v13286_v63  ;;  %v16433_v60 = vld [vmem:[#allocation12 + $0x5b4] sm:$0xf] }
 0x303   :  { %4929 = vmatpush.bf16.msrb.mxu0 %v11758_v4  ;;  %4942 = vmatpush.bf16.msrb.mxu1 %v12270_v7  ;;  %v12463_v63 = vld [vmem:[#allocation12 + $0x5f0] sm:$0xf0]  ;;  %v16544_v4 = vld [vmem:[#allocation12 + $0x92c] sm:$0xf] }
 0x304   :  { %v12903_v7 = vld [vmem:[#allocation12 + $0x968] sm:$0xf0] }
 0x305   :  { %4852 = vmatmul.bf16.vlgmr.msrb.gmra.mxu2 %v18018_v57  ;;  %4865 = vmatmul.bf16.vlgmr.msrb.gmra.mxu3 %v18020_v51  ;;  %v18113_v6 = vpop.f32.mrf.mxu0  ;;  %v18115_v47 = vpop.f32.mrf.mxu1 }
 0x306   :  { %4896 = vmatpush.bf16.msra.mxu2 %v13226_v56  ;;  %4909 = vmatpush.bf16.msra.mxu3 %v13738_v61  ;;  %v11954_v56 = vor.u32 %v16305_v26, %v11951_v59  ;;  %v12466_v61 = vor.u32 %v16433_v60, %v12463_v63  ;;  %v16378_v59 = vld [vmem:[#allocation12 + $0x3f4] sm:$0xf0] }
 0x307   :  { %4974 = vmatpush.bf16.msra.mxu0 %v12210_v17  ;;  %4987 = vmatpush.bf16.msra.mxu1 %v12722_v18  ;;  %v16672_v17 = vld [vmem:[#allocation12 + $0xd2c] sm:$0xf]  ;;  %v12725_v60 = vld [vmem:[#allocation12 + $0x7b8] sm:$0xf] }
 0x308   :  { %4930 = vmatmul.bf16.vlgmr.msrb.gmra.mxu0 %v18008_v15  ;;  %4943 = vmatmul.bf16.vlgmr.msrb.gmra.mxu1 %v18010_v16  ;;  %v4645_v12 = vpop.f32.mrf.mxu2  ;;  %v4658_v9 = vpop.f32.mrf.mxu3  ;;  %v13415_v18 = vld [vmem:[#allocation12 + $0xd68] sm:$0xf0]  ;;  %v16506_v63 = vld [vmem:[#allocation12 + $0x7f4] sm:$0xf0] }
 0x309   :  { %v4646_v22 = vadd.f32 %v4645_v12, %v4633_v0  ;;  %v11762_v0 = vor.u32 %v16257_v46, %v11759_v5  ;;  %v12726_v12 = vor.u32 %v16506_v63, %v12725_v60  ;;  %v12973_v5 = vld [vmem:[#allocation12 + $0x9b0] sm:$0xf] }
 0x30a   :  { %4897 = vmatpush.bf16.msra.mxu2 %v13162_v32  ;;  %4910 = vmatpush.bf16.msra.mxu3 %v13674_v34  ;;  %v12906_v32 = vor.u32 %v16544_v4, %v12903_v7  ;;  %v13418_v34 = vor.u32 %v16672_v17, %v13415_v18  ;;  %v13165_v7 = vld [vmem:[#allocation12 + $0xb30] sm:$0xf]  ;;  %v12149_v18 = vld [vmem:[#allocation12 + $0x338] sm:$0xf] }
 0x30b   :  { %4975 = vmatpush.bf16.msra.mxu0 %v12146_v14  ;;  %4988 = vmatpush.bf16.msra.mxu1 %v12658_v36  ;;  %v4659_v45 = vadd.f32 %v4658_v9, %v4646_v22  ;;  %v16656_v14 = vld [vmem:[#allocation12 + $0xcac] sm:$0xf]  ;;  %v11890_v36 = vor.u32 %v16289_v19, %v11887_v24  ;;  %v13677_v9 = vld [vmem:[#allocation12 + $0xf30] sm:$0xf]  ;;  %v16362_v19 = vld [vmem:[#allocation12 + $0x374] sm:$0xf0] }
 0x30c   :  { %v13354_v43 = vor.u32 %v16656_v14, %v13351_v38  ;;  %v16745_v17 = vld [vmem:[#allocation12 + $0xf6c] sm:$0xf0]  ;;  %v12661_v22 = vld [vmem:[#allocation12 + $0x738] sm:$0xf] }
 0x30d   :  { %v4725_v55 = vpop.f32.mrf.mxu0  ;;  %v4738_v29 = vpop.f32.mrf.mxu1  ;;  %5136 = vst [vmem:[#allocation4 + $0x30] sm:$0xff] %v4659_v45  ;;  %v16490_v24 = vld [vmem:[#allocation12 + $0x774] sm:$0xf0]  ;;  %v13678_v28 = vor.u32 %v16745_v17, %v13677_v9  ;;  %v13101_v45 = vld [vmem:[#allocation12 + $0xab0] sm:$0xf] }
 0x30e   :  { %4898 = vmatpush.bf16.msra.mxu2 %v13098_v41  ;;  %4911 = vmatpush.bf16.msra.mxu3 %v13610_v42  ;;  %v16512_v41 = vld [vmem:[#allocation12 + $0x82c] sm:$0xf]  ;;  %v12842_v42 = vor.u32 %v16528_v35, %v12839_v3  ;;  %v16601_v55 = vld [vmem:[#allocation12 + $0xaec] sm:$0xf0]  ;;  %v12150_v29 = vor.u32 %v16362_v19, %v12149_v18  ;;  %v12085_v3 = vld [vmem:[#allocation12 + $0x2b8] sm:$0xf] }
 0x30f   :  { %4976 = vmatpush.bf16.msra.mxu0 %v12082_v20  ;;  %4989 = vmatpush.bf16.msra.mxu1 %v12594_v21  ;;  %v16640_v20 = vld [vmem:[#allocation12 + $0xc2c] sm:$0xf]  ;;  %v12778_v58 = vor.u32 %v16512_v41, %v12775_v44  ;;  %v16729_v35 = vld [vmem:[#allocation12 + $0xeec] sm:$0xf0]  ;;  %v16346_v14 = vld [vmem:[#allocation12 + $0x2f4] sm:$0xf0]  ;;  %v13102_v38 = vor.u32 %v16601_v55, %v13101_v45 }
 0x310   :  { %v13287_v21 = vld [vmem:[#allocation12 + $0xc68] sm:$0xf0]  ;;  %v4647_v23 = vpop.f32.mrf.mxu2  ;;  %v4660_v31 = vpop.f32.mrf.mxu3  ;;  %v12086_v40 = vor.u32 %v16346_v14, %v12085_v3  ;;  %v12021_v44 = vld [vmem:[#allocation12 + $0x238] sm:$0xf]  ;;  %v12845_v45 = vld [vmem:[#allocation12 + $0x8b0] sm:$0xf] }
 0x311   :  { %v13290_v26 = vor.u32 %v16640_v20, %v13287_v21  ;;  %v16330_v20 = vld [vmem:[#allocation12 + $0x274] sm:$0xf0]  ;;  %v13038_v31 = vor.u32 %v16585_v11, %v13037_v10  ;;  %v16537_v55 = vld [vmem:[#allocation12 + $0x8ec] sm:$0xf0] }
 0x312   :  { %4899 = vmatpush.bf16.msra.mxu2 %v13034_v48  ;;  %4912 = vmatpush.bf16.msra.mxu3 %v13546_v49  ;;  %v16385_v48 = vld [vmem:[#allocation12 + $0x434] sm:$0xf]  ;;  %v12533_v21 = vld [vmem:[#allocation12 + $0x638] sm:$0xf]  ;;  %v16521_v11 = vld [vmem:[#allocation12 + $0x86c] sm:$0xf0] }
 0x313   :  { %4977 = vmatpush.bf16.msra.mxu0 %v12018_v52  ;;  %4990 = vmatpush.bf16.msra.mxu1 %v12530_v53  ;;  %v12271_v49 = vld [vmem:[#allocation12 + $0x470] sm:$0xf0]  ;;  %v13741_v52 = vld [vmem:[#allocation12 + $0xfb0] sm:$0xf]  ;;  %v11893_v9 = vld [vmem:[#allocation12 + $0x138] sm:$0xf] }
 0x314   :  { %v16761_v53 = vld [vmem:[#allocation12 + $0xfec] sm:$0xf0]  ;;  %v16298_v18 = vld [vmem:[#allocation12 + $0x174] sm:$0xf0] }
 0x315   :  { %v13742_v4 = vor.u32 %v16761_v53, %v13741_v52  ;;  %v16697_v52 = vld [vmem:[#allocation12 + $0xdec] sm:$0xf0]  ;;  %v11957_v53 = vld [vmem:[#allocation12 + $0x1b8] sm:$0xf] }
 0x316   :  { %4900 = vmatpush.bf16.msra.mxu2 %v12970_v1  ;;  %4913 = vmatpush.bf16.msra.mxu3 %v13482_v62  ;;  %v12274_v1 = vor.u32 %v16385_v48, %v12271_v49  ;;  %v13230_v62 = vor.u32 %v16633_v33, %v13229_v50  ;;  %v16569_v48 = vld [vmem:[#allocation12 + $0x9ec] sm:$0xf0]  ;;  %v12022_v49 = vor.u32 %v16330_v20, %v12021_v44  ;;  %v12405_v19 = vld [vmem:[#allocation12 + $0x538] sm:$0xf] }
 0x317   :  { %4978 = vmatpush.bf16.msra.mxu0 %v11954_v56  ;;  %4991 = vmatpush.bf16.msra.mxu1 %v12466_v61  ;;  %v16617_v56 = vld [vmem:[#allocation12 + $0xb6c] sm:$0xf0]  ;;  %v12214_v61 = vor.u32 %v16378_v59, %v12213_v54  ;;  %v16314_v54 = vld [vmem:[#allocation12 + $0x1f4] sm:$0xf0]  ;;  %v4685_v59 = vadd.f32 %v18102_v8, %v18100_v27  ;;  %v12974_v60 = vor.u32 %v16569_v48, %v12973_v5  ;;  %v16625_v5 = vld [vmem:[#allocation12 + $0xbb4] sm:$0xf] }
 0x318   :  { %v13166_v25 = vor.u32 %v16617_v56, %v13165_v7  ;;  %v13485_v33 = vld [vmem:[#allocation12 + $0xdb0] sm:$0xf]  ;;  %v11829_v3 = vld [vmem:[#allocation12 + $0xb8] sm:$0xf]  ;;  %v13231_v48 = vld [vmem:[#allocation12 + $0xbf0] sm:$0xf0] }
 0x319   :  { %v13486_v63 = vor.u32 %v16697_v52, %v13485_v33  ;;  %v16282_v14 = vld [vmem:[#allocation12 + $0xf4] sm:$0xf0]  ;;  %v16370_v33 = vld [vmem:[#allocation12 + $0x3bc] sm:$0xf] }
 0x31a   :  { %4901 = vmatpush.bf16.msra.mxu2 %v12906_v32  ;;  %4914 = vmatpush.bf16.msra.mxu3 %v13418_v34  ;;  %v12662_v32 = vor.u32 %v16490_v24, %v12661_v22  ;;  %v13613_v34 = vld [vmem:[#allocation12 + $0xeb0] sm:$0xf]  ;;  %v16426_v22 = vld [vmem:[#allocation12 + $0x574] sm:$0xf0] }
 0x31b   :  { %4979 = vmatpush.bf16.msra.mxu0 %v11890_v36  ;;  %4992 = vmatpush.bf16.msra.mxu1 %v12402_v37  ;;  %v12597_v36 = vld [vmem:[#allocation12 + $0x6b8] sm:$0xf]  ;;  %v13614_v39 = vor.u32 %v16729_v35, %v13613_v34  ;;  %v12406_v34 = vor.u32 %v16426_v22, %v12405_v19  ;;  %v16665_v35 = vld [vmem:[#allocation12 + $0xcec] sm:$0xf0] }
 0x31c   :  { %v16474_v37 = vld [vmem:[#allocation12 + $0x6f4] sm:$0xf0] }
 0x31d   :  { %v12598_v41 = vor.u32 %v16474_v37, %v12597_v36  ;;  %v12341_v36 = vld [vmem:[#allocation12 + $0x4b8] sm:$0xf] }
 0x31e   :  { %4902 = vmatpush.bf16.msra.mxu2 %v12842_v42  ;;  %4915 = vmatpush.bf16.msra.mxu3 %v13354_v43  ;;  %v13549_v42 = vld [vmem:[#allocation12 + $0xe30] sm:$0xf]  ;;  %v16410_v37 = vld [vmem:[#allocation12 + $0x4f4] sm:$0xf0] }
 0x31f   :  { %4980 = vmatpush.bf16.msra.mxu0 %v11826_v13  ;;  %4993 = vmatpush.bf16.msra.mxu1 %v12338_v30  ;;  %v16713_v43 = vld [vmem:[#allocation12 + $0xe6c] sm:$0xf0]  ;;  %v16458_v13 = vld [vmem:[#allocation12 + $0x674] sm:$0xf0] }
 0x320   :  { %v13550_v46 = vor.u32 %v16713_v43, %v13549_v42  ;;  %v12534_v50 = vor.u32 %v16458_v13, %v12533_v21  ;;  %v11830_v42 = vor.u32 %v16282_v14, %v11829_v3  ;;  %v12342_v43 = vor.u32 %v16410_v37, %v12341_v36  ;;  %v11765_v21 = vld [vmem:[#allocation12 + $0x38] sm:$0xf]  ;;  %v16577_v36 = vld [vmem:[#allocation12 + $0xa34] sm:$0xf] }
 0x321   :  { %v16266_v13 = vld [vmem:[#allocation12 + $0x74] sm:$0xf0]  ;;  %v13039_v37 = vld [vmem:[#allocation12 + $0xa70] sm:$0xf0] }
 0x322   :  { %4903 = vmatpush.bf16.msra.mxu2 %v12778_v58  ;;  %4916 = vmatpush.bf16.msra.mxu3 %v13290_v26  ;;  %v12469_v58 = vld [vmem:[#allocation12 + $0x5b8] sm:$0xf] }
 0x323   :  { %4981 = vmatpush.bf16.msra.mxu0 %v11762_v0  ;;  %4994 = vmatpush.bf16.msra.mxu1 %v12274_v1  ;;  %v16442_v26 = vld [vmem:[#allocation12 + $0x5f4] sm:$0xf0]  ;;  %v12909_v0 = vld [vmem:[#allocation12 + $0x930] sm:$0xf] }
 0x324   :  { %v16553_v1 = vld [vmem:[#allocation12 + $0x96c] sm:$0xf0] }
 0x325   :  { %4904 = vmatmul.bf16.vlgmr.msra.gmra.mxu2 %v18018_v57  ;;  %4917 = vmatmul.bf16.vlgmr.msra.gmra.mxu3 %v18020_v51  ;;  %v18123_v30 = vpop.f32.mrf.mxu0  ;;  %v18125_v23 = vpop.f32.mrf.mxu1 }
 0x326   :  { %4948 = vmatpush.bf16.msrb.mxu2 %v13230_v62  ;;  %4961 = vmatpush.bf16.msrb.mxu3 %v13742_v4  ;;  %v11958_v62 = vor.u32 %v16314_v54, %v11957_v53  ;;  %v12470_v4 = vor.u32 %v16442_v26, %v12469_v58  ;;  %v12215_v54 = vld [vmem:[#allocation12 + $0x3f8] sm:$0xf0] }
 0x327   :  { %5026 = vmatpush.bf16.msrb.mxu0 %v12214_v61  ;;  %5039 = vmatpush.bf16.msrb.mxu1 %v12726_v12  ;;  %v13421_v61 = vld [vmem:[#allocation12 + $0xd30] sm:$0xf]  ;;  %v16498_v58 = vld [vmem:[#allocation12 + $0x7bc] sm:$0xf] }
 0x328   :  { %4982 = vmatmul.bf16.vlgmr.msra.gmra.mxu0 %v18008_v15  ;;  %4995 = vmatmul.bf16.vlgmr.msra.gmra.mxu1 %v18010_v16  ;;  %v4697_v7 = vpop.f32.mrf.mxu2  ;;  %v4710_v56 = vpop.f32.mrf.mxu3  ;;  %v16681_v12 = vld [vmem:[#allocation12 + $0xd6c] sm:$0xf0]  ;;  %v12727_v26 = vld [vmem:[#allocation12 + $0x7f8] sm:$0xf0] }
 0x329   :  { %v4698_v17 = vadd.f32 %v4697_v7, %v4685_v59  ;;  %v11766_v59 = vor.u32 %v16266_v13, %v11765_v21  ;;  %v12730_v7 = vor.u32 %v16498_v58, %v12727_v26  ;;  %v13042_v21 = vor.u32 %v16577_v36, %v13039_v37  ;;  %v16513_v37 = vld [vmem:[#allocation12 + $0x834] sm:$0xf] }
 0x32a   :  { %4949 = vmatpush.bf16.msrb.mxu2 %v13166_v25  ;;  %4962 = vmatpush.bf16.msrb.mxu3 %v13678_v28  ;;  %v12910_v25 = vor.u32 %v16553_v1, %v12909_v0  ;;  %v13422_v28 = vor.u32 %v16681_v12, %v13421_v61  ;;  %v16609_v1 = vld [vmem:[#allocation12 + $0xb34] sm:$0xf]  ;;  %v16354_v12 = vld [vmem:[#allocation12 + $0x33c] sm:$0xf]  ;;  %v4737_v58 = vadd.f32 %v18115_v47, %v18113_v6 }
 0x32b   :  { %5027 = vmatpush.bf16.msrb.mxu0 %v12150_v29  ;;  %5040 = vmatpush.bf16.msrb.mxu1 %v12662_v32  ;;  %v18129_v27 = vadd.f32 %v4710_v56, %v4698_v17  ;;  %v13357_v29 = vld [vmem:[#allocation12 + $0xcb0] sm:$0xf]  ;;  %v11894_v32 = vor.u32 %v16298_v18, %v11893_v9  ;;  %v16737_v56 = vld [vmem:[#allocation12 + $0xf34] sm:$0xf]  ;;  %v12151_v9 = vld [vmem:[#allocation12 + $0x378] sm:$0xf0] }
 0x32c   :  { %v13358_v10 = vor.u32 %v16665_v35, %v13357_v29  ;;  %v13679_v61 = vld [vmem:[#allocation12 + $0xf70] sm:$0xf0]  ;;  %v16482_v17 = vld [vmem:[#allocation12 + $0x73c] sm:$0xf] }
 0x32d   :  { %v4777_v8 = vpop.f32.mrf.mxu0  ;;  %v4790_v24 = vpop.f32.mrf.mxu1  ;;  %5137 = vst [vmem:[#allocation4 + $0x18] sm:$0xff] %v18129_v27  ;;  %v12663_v18 = vld [vmem:[#allocation12 + $0x778] sm:$0xf0]  ;;  %v13682_v22 = vor.u32 %v16737_v56, %v13679_v61  ;;  %v13423_v56 = vld [vmem:[#allocation12 + $0xd70] sm:$0xf0] }
 0x32e   :  { %4950 = vmatpush.bf16.msrb.mxu2 %v13102_v38  ;;  %4963 = vmatpush.bf16.msrb.mxu3 %v13614_v39  ;;  %v12781_v38 = vld [vmem:[#allocation12 + $0x830] sm:$0xf]  ;;  %v12846_v39 = vor.u32 %v16537_v55, %v12845_v45  ;;  %v16593_v8 = vld [vmem:[#allocation12 + $0xab4] sm:$0xf]  ;;  %v16338_v29 = vld [vmem:[#allocation12 + $0x2bc] sm:$0xf] }
 0x32f   :  { %5028 = vmatpush.bf16.msrb.mxu0 %v12086_v40  ;;  %5041 = vmatpush.bf16.msrb.mxu1 %v12598_v41  ;;  %v13293_v40 = vld [vmem:[#allocation12 + $0xc30] sm:$0xf]  ;;  %v12782_v52 = vor.u32 %v16521_v11, %v12781_v38  ;;  %v13103_v24 = vld [vmem:[#allocation12 + $0xaf0] sm:$0xf0]  ;;  %v12599_v35 = vld [vmem:[#allocation12 + $0x6f8] sm:$0xf0] }
 0x330   :  { %v16649_v41 = vld [vmem:[#allocation12 + $0xc6c] sm:$0xf0]  ;;  %v4699_v44 = vpop.f32.mrf.mxu2  ;;  %v4712_v20 = vpop.f32.mrf.mxu3  ;;  %v16721_v45 = vld [vmem:[#allocation12 + $0xeb4] sm:$0xf]  ;;  %v13106_v3 = vor.u32 %v16593_v8, %v13103_v24  ;;  %v16290_v61 = vld [vmem:[#allocation12 + $0x13c] sm:$0xf] }
 0x331   :  { %v13294_v53 = vor.u32 %v16649_v41, %v13293_v40  ;;  %v13615_v55 = vld [vmem:[#allocation12 + $0xef0] sm:$0xf0]  ;;  %v16322_v40 = vld [vmem:[#allocation12 + $0x23c] sm:$0xf] }
 0x332   :  { %4951 = vmatpush.bf16.msrb.mxu2 %v13038_v31  ;;  %4964 = vmatpush.bf16.msrb.mxu3 %v13550_v46  ;;  %v12277_v31 = vld [vmem:[#allocation12 + $0x438] sm:$0xf]  ;;  %v13618_v14 = vor.u32 %v16721_v45, %v13615_v55  ;;  %v13551_v11 = vld [vmem:[#allocation12 + $0xe70] sm:$0xf0]  ;;  %v12023_v41 = vld [vmem:[#allocation12 + $0x278] sm:$0xf0] }
 0x333   :  { %5029 = vmatpush.bf16.msrb.mxu0 %v12022_v49  ;;  %5042 = vmatpush.bf16.msrb.mxu1 %v12534_v50  ;;  %v16394_v46 = vld [vmem:[#allocation12 + $0x474] sm:$0xf0]  ;;  %v16753_v49 = vld [vmem:[#allocation12 + $0xfb4] sm:$0xf] }
 0x334   :  { %v13743_v50 = vld [vmem:[#allocation12 + $0xff0] sm:$0xf0] }
 0x335   :  { %v13746_v0 = vor.u32 %v16753_v49, %v13743_v50  ;;  %v16689_v49 = vld [vmem:[#allocation12 + $0xdb4] sm:$0xf] }
 0x336   :  { %4952 = vmatpush.bf16.msrb.mxu2 %v12974_v60  ;;  %4965 = vmatpush.bf16.msrb.mxu3 %v13486_v63  ;;  %v12278_v60 = vor.u32 %v16394_v46, %v12277_v31  ;;  %v13234_v63 = vor.u32 %v16625_v5, %v13231_v48  ;;  %v16561_v31 = vld [vmem:[#allocation12 + $0x9b4] sm:$0xf]  ;;  %v12026_v5 = vor.u32 %v16322_v40, %v12023_v41 }
 0x337   :  { %5030 = vmatpush.bf16.msrb.mxu0 %v11958_v62  ;;  %5043 = vmatpush.bf16.msrb.mxu1 %v12470_v4  ;;  %v13167_v62 = vld [vmem:[#allocation12 + $0xb70] sm:$0xf0]  ;;  %v12218_v4 = vor.u32 %v16370_v33, %v12215_v54  ;;  %v16306_v33 = vld [vmem:[#allocation12 + $0x1bc] sm:$0xf] }
 0x338   :  { %v13170_v19 = vor.u32 %v16609_v1, %v13167_v62  ;;  %v12975_v46 = vld [vmem:[#allocation12 + $0x9f0] sm:$0xf0]  ;;  %v12471_v54 = vld [vmem:[#allocation12 + $0x5f8] sm:$0xf0] }
 0x339   :  { %v13487_v50 = vld [vmem:[#allocation12 + $0xdf0] sm:$0xf0]  ;;  %v12978_v26 = vor.u32 %v16561_v31, %v12975_v46  ;;  %v12279_v31 = vld [vmem:[#allocation12 + $0x478] sm:$0xf0]  ;;  %v13237_v46 = vld [vmem:[#allocation12 + $0xbb8] sm:$0xf] }
 0x33a   :  { %4953 = vmatpush.bf16.msrb.mxu2 %v12910_v25  ;;  %4966 = vmatpush.bf16.msrb.mxu3 %v13422_v28  ;;  %v12154_v25 = vor.u32 %v16354_v12, %v12151_v9  ;;  %v12666_v28 = vor.u32 %v16482_v17, %v12663_v18  ;;  %v11895_v9 = vld [vmem:[#allocation12 + $0x178] sm:$0xf0]  ;;  %v16529_v24 = vld [vmem:[#allocation12 + $0x8b4] sm:$0xf] }
 0x33b   :  { %5031 = vmatpush.bf16.msrb.mxu0 %v11894_v32  ;;  %5044 = vmatpush.bf16.msrb.mxu1 %v12406_v34  ;;  %v12087_v32 = vld [vmem:[#allocation12 + $0x2f8] sm:$0xf0]  ;;  %v11898_v45 = vor.u32 %v16290_v61, %v11895_v9  ;;  %v16730_v61 = vld [vmem:[#allocation12 + $0xef4] sm:$0xf0]  ;;  %v5147_v9 = vld [vmem:[#allocation4 + $0xd0] sm:$0xff] }
 0x33c   :  { %v16466_v34 = vld [vmem:[#allocation12 + $0x6bc] sm:$0xf]  ;;  %v12090_v38 = vor.u32 %v16338_v29, %v12087_v32  ;;  %v13359_v29 = vld [vmem:[#allocation12 + $0xcf0] sm:$0xf0] }
 0x33d   :  { %v16418_v17 = vld [vmem:[#allocation12 + $0x53c] sm:$0xf] }
 0x33e   :  { %4954 = vmatpush.bf16.msrb.mxu2 %v12846_v39  ;;  %4967 = vmatpush.bf16.msrb.mxu3 %v13358_v10  ;;  %v12602_v39 = vor.u32 %v16466_v34, %v12599_v35  ;;  %v16705_v10 = vld [vmem:[#allocation12 + $0xe34] sm:$0xf]  ;;  %v12407_v18 = vld [vmem:[#allocation12 + $0x578] sm:$0xf0] }
 0x33f   :  { %5032 = vmatpush.bf16.msrb.mxu0 %v11830_v42  ;;  %5045 = vmatpush.bf16.msrb.mxu1 %v12342_v43  ;;  %v16450_v42 = vld [vmem:[#allocation12 + $0x63c] sm:$0xf]  ;;  %v13554_v13 = vor.u32 %v16705_v10, %v13551_v11  ;;  %v12410_v55 = vor.u32 %v16418_v17, %v12407_v18  ;;  %v13045_v18 = vld [vmem:[#allocation12 + $0xa38] sm:$0xf] }
 0x340   :  { %v12535_v43 = vld [vmem:[#allocation12 + $0x678] sm:$0xf0] }
 0x341   :  { %v12538_v48 = vor.u32 %v16450_v42, %v12535_v43  ;;  %v16274_v32 = vld [vmem:[#allocation12 + $0xbc] sm:$0xf]  ;;  %v13295_v42 = vld [vmem:[#allocation12 + $0xc70] sm:$0xf0] }
 0x342   :  { %4955 = vmatpush.bf16.msrb.mxu2 %v12782_v52  ;;  %4968 = vmatpush.bf16.msrb.mxu3 %v13294_v53  ;;  %v11959_v52 = vld [vmem:[#allocation12 + $0x1f8] sm:$0xf0] }
 0x343   :  { %5033 = vmatpush.bf16.msrb.mxu0 %v11766_v59  ;;  %5046 = vmatpush.bf16.msrb.mxu1 %v12278_v60  ;;  %v16434_v53 = vld [vmem:[#allocation12 + $0x5bc] sm:$0xf]  ;;  %v13490_v59 = vor.u32 %v16689_v49, %v13487_v50  ;;  %v16545_v60 = vld [vmem:[#allocation12 + $0x934] sm:$0xf]  ;;  %v16762_v49 = vld [vmem:[#allocation12 + $0xff4] sm:$0xf0] }
 0x344   :  { %v12474_v1 = vor.u32 %v16434_v53, %v12471_v54  ;;  %v11831_v34 = vld [vmem:[#allocation12 + $0xf8] sm:$0xf0] }
 0x345   :  { %4956 = vmatmul.bf16.vlgmr.msrb.gmra.mxu2 %v18018_v57  ;;  %4969 = vmatmul.bf16.vlgmr.msrb.gmra.mxu3 %v18020_v51  ;;  %v18136_v44 = vpop.f32.mrf.mxu0  ;;  %v18138_v20 = vpop.f32.mrf.mxu1  ;;  %v16402_v35 = vld [vmem:[#allocation12 + $0x4bc] sm:$0xf]  ;;  %v11834_v10 = vor.u32 %v16274_v32, %v11831_v34 }
 0x346   :  { %5000 = vmatpush.bf16.msra.mxu2 %v13234_v63  ;;  %5013 = vmatpush.bf16.msra.mxu3 %v13746_v0  ;;  %v12911_v63 = vld [vmem:[#allocation12 + $0x970] sm:$0xf0]  ;;  %v11962_v0 = vor.u32 %v16306_v33, %v11959_v52  ;;  %v16258_v43 = vld [vmem:[#allocation12 + $0x3c] sm:$0xf] }
 0x347   :  { %5078 = vmatpush.bf16.msra.mxu0 %v12218_v4  ;;  %5091 = vmatpush.bf16.msra.mxu1 %v12730_v7  ;;  %v16673_v7 = vld [vmem:[#allocation12 + $0xd34] sm:$0xf] }
 0x348   :  { %5034 = vmatmul.bf16.vlgmr.msrb.gmra.mxu0 %v18008_v15  ;;  %5047 = vmatmul.bf16.vlgmr.msrb.gmra.mxu1 %v18010_v16  ;;  %v4749_v62 = vpop.f32.mrf.mxu2  ;;  %v4762_v4 = vpop.f32.mrf.mxu3  ;;  %v13426_v8 = vor.u32 %v16673_v7, %v13423_v56  ;;  %v16602_v7 = vld [vmem:[#allocation12 + $0xaf4] sm:$0xf0] }
 0x349   :  { %v4750_v12 = vadd.f32 %v4749_v62, %v4737_v58  ;;  %v13621_v56 = vld [vmem:[#allocation12 + $0xeb8] sm:$0xf] }
 0x34a   :  { %5001 = vmatpush.bf16.msra.mxu2 %v13170_v19  ;;  %5014 = vmatpush.bf16.msra.mxu3 %v13682_v22  ;;  %v12914_v22 = vor.u32 %v16545_v60, %v12911_v63  ;;  %v13685_v60 = vld [vmem:[#allocation12 + $0xf38] sm:$0xf]  ;;  %v13622_v17 = vor.u32 %v16730_v61, %v13621_v56  ;;  %v16594_v61 = vld [vmem:[#allocation12 + $0xabc] sm:$0xf] }
 0x34b   :  { %5079 = vmatpush.bf16.msra.mxu0 %v12154_v25  ;;  %5092 = vmatpush.bf16.msra.mxu1 %v12666_v28  ;;  %v18142_v6 = vadd.f32 %v4762_v4, %v4750_v12  ;;  %v12847_v25 = vld [vmem:[#allocation12 + $0x8f0] sm:$0xf0]  ;;  %v16746_v63 = vld [vmem:[#allocation12 + $0xf74] sm:$0xf0] }
 0x34c   :  { %v16657_v28 = vld [vmem:[#allocation12 + $0xcb4] sm:$0xf]  ;;  %v13686_v62 = vor.u32 %v16746_v63, %v13685_v60  ;;  %v13109_v4 = vld [vmem:[#allocation12 + $0xab8] sm:$0xf] }
 0x34d   :  { %v4829_v47 = vpop.f32.mrf.mxu0  ;;  %v4842_v19 = vpop.f32.mrf.mxu1  ;;  %5138 = vst [vmem:[#allocation4 + $0x80] sm:$0xff] %v18142_v6  ;;  %v13362_v36 = vor.u32 %v16657_v28, %v13359_v29  ;;  %v5146_v12 = vld [vmem:[#allocation4 + $0xb0] sm:$0xff]  ;;  %v16570_v28 = vld [vmem:[#allocation12 + $0x9f4] sm:$0xf0]  ;;  %v4789_v29 = vadd.f32 %v18125_v23, %v18123_v30 }
 0x34e   :  { %5002 = vmatpush.bf16.msra.mxu2 %v13106_v3  ;;  %5015 = vmatpush.bf16.msra.mxu3 %v13618_v14  ;;  %v12343_v3 = vld [vmem:[#allocation12 + $0x4f8] sm:$0xf0]  ;;  %v12850_v14 = vor.u32 %v16529_v24, %v12847_v25  ;;  %v16586_v47 = vld [vmem:[#allocation12 + $0xa74] sm:$0xf0] }
 0x34f   :  { %5080 = vmatpush.bf16.msra.mxu0 %v12090_v38  ;;  %5093 = vmatpush.bf16.msra.mxu1 %v12602_v39  ;;  %v12783_v38 = vld [vmem:[#allocation12 + $0x870] sm:$0xf0]  ;;  %v12346_v11 = vor.u32 %v16402_v35, %v12343_v3  ;;  %v13557_v19 = vld [vmem:[#allocation12 + $0xe38] sm:$0xf] }
 0x350   :  { %v16641_v39 = vld [vmem:[#allocation12 + $0xc34] sm:$0xf]  ;;  %v4751_v40 = vpop.f32.mrf.mxu2  ;;  %v4764_v41 = vpop.f32.mrf.mxu3  ;;  %v12786_v50 = vor.u32 %v16513_v37, %v12783_v38  ;;  %v12981_v25 = vld [vmem:[#allocation12 + $0x9b8] sm:$0xf] }
 0x351   :  { %v13298_v33 = vor.u32 %v16641_v39, %v13295_v42  ;;  %v12982_v32 = vor.u32 %v16570_v28, %v12981_v25  ;;  %v16554_v37 = vld [vmem:[#allocation12 + $0x974] sm:$0xf0] }
 0x352   :  { %5003 = vmatpush.bf16.msra.mxu2 %v13042_v21  ;;  %5016 = vmatpush.bf16.msra.mxu3 %v13554_v13  ;;  %v11767_v21 = vld [vmem:[#allocation12 + $0x78] sm:$0xf0]  ;;  %v13429_v38 = vld [vmem:[#allocation12 + $0xd38] sm:$0xf] }
 0x353   :  { %5081 = vmatpush.bf16.msra.mxu0 %v12026_v5  ;;  %5094 = vmatpush.bf16.msra.mxu1 %v12538_v48  ;;  %v16386_v13 = vld [vmem:[#allocation12 + $0x43c] sm:$0xf]  ;;  %v16634_v5 = vld [vmem:[#allocation12 + $0xbf4] sm:$0xf0]  ;;  %v11770_v52 = vor.u32 %v16258_v43, %v11767_v21 }
 0x354   :  { %v13749_v48 = vld [vmem:[#allocation12 + $0xfb8] sm:$0xf]  ;;  %v12282_v53 = vor.u32 %v16386_v13, %v12279_v31  ;;  %v13238_v54 = vor.u32 %v16634_v5, %v13237_v46 }
 0x355   :  { %v13750_v58 = vor.u32 %v16762_v49, %v13749_v48  ;;  %v16682_v39 = vld [vmem:[#allocation12 + $0xd74] sm:$0xf0] }
 0x356   :  { %5004 = vmatpush.bf16.msra.mxu2 %v12978_v26  ;;  %5017 = vmatpush.bf16.msra.mxu3 %v13490_v59  ;;  %v13173_v26 = vld [vmem:[#allocation12 + $0xb38] sm:$0xf]  ;;  %v13430_v23 = vor.u32 %v16682_v39, %v13429_v38  ;;  %v12919_v39 = vld [vmem:[#allocation12 + $0x978] sm:$0xf0] }
 0x357   :  { %5082 = vmatpush.bf16.msra.mxu0 %v11962_v0  ;;  %5095 = vmatpush.bf16.msra.mxu1 %v12474_v1  ;;  %v16618_v59 = vld [vmem:[#allocation12 + $0xb74] sm:$0xf0]  ;;  %v5152_v0 = vld [vmem:[#allocation4 + $0x108] sm:$0xff] }
 0x358   :  { %v13174_v1 = vor.u32 %v16618_v59, %v13173_v26  ;;  %v12853_v42 = vld [vmem:[#allocation12 + $0x8b8] sm:$0xf]  ;;  %v13751_v26 = vld [vmem:[#allocation12 + $0xff8] sm:$0xf0] }
 0x359   :  { %v16538_v43 = vld [vmem:[#allocation12 + $0x8f4] sm:$0xf0] }
 0x35a   :  { %5005 = vmatpush.bf16.msra.mxu2 %v12914_v22  ;;  %5018 = vmatpush.bf16.msra.mxu3 %v13426_v8  ;;  %v16714_v22 = vld [vmem:[#allocation12 + $0xe74] sm:$0xf0]  ;;  %v12854_v31 = vor.u32 %v16538_v43, %v12853_v42 }
 0x35b   :  { %5083 = vmatpush.bf16.msra.mxu0 %v11898_v45  ;;  %5096 = vmatpush.bf16.msra.mxu1 %v12410_v55  ;;  %v13493_v45 = vld [vmem:[#allocation12 + $0xdb8] sm:$0xf] }
 0x35c   :  { %v16698_v55 = vld [vmem:[#allocation12 + $0xdf4] sm:$0xf0] }
 0x35d   :  { %v13494_v34 = vor.u32 %v16698_v55, %v13493_v45  ;;  %v13365_v21 = vld [vmem:[#allocation12 + $0xcb8] sm:$0xf]  ;;  %v16562_v55 = vld [vmem:[#allocation12 + $0x9bc] sm:$0xf] }
 0x35e   :  { %5006 = vmatpush.bf16.msra.mxu2 %v12850_v14  ;;  %5019 = vmatpush.bf16.msra.mxu3 %v13362_v36  ;;  %v12917_v14 = vld [vmem:[#allocation12 + $0x938] sm:$0xf] }
 0x35f   :  { %5084 = vmatpush.bf16.msra.mxu0 %v11834_v10  ;;  %5097 = vmatpush.bf16.msra.mxu1 %v12346_v11  ;;  %v18156_v11 = vld [vmem:[#allocation15 + $0x10] sm:$0xff]  ;;  %v12918_v30 = vor.u32 %v16554_v37, %v12917_v14  ;;  %v16666_v13 = vld [vmem:[#allocation12 + $0xcf4] sm:$0xf0] }
 0x360   :  { %v13366_v46 = vor.u32 %v16666_v13, %v13365_v21  ;;  %v12789_v49 = vld [vmem:[#allocation12 + $0x838] sm:$0xf]  ;;  %v16530_v13 = vld [vmem:[#allocation12 + $0x8bc] sm:$0xf] }
 0x362   :  { %5007 = vmatpush.bf16.msra.mxu2 %v12786_v50  ;;  %5020 = vmatpush.bf16.msra.mxu3 %v13298_v33  ;;  %v16522_v50 = vld [vmem:[#allocation12 + $0x874] sm:$0xf0] }
 0x363   :  { %5085 = vmatpush.bf16.msra.mxu0 %v11770_v52  ;;  %5098 = vmatpush.bf16.msra.mxu1 %v12282_v53  ;;  %v13301_v33 = vld [vmem:[#allocation12 + $0xc38] sm:$0xf]  ;;  %v16626_v53 = vld [vmem:[#allocation12 + $0xbbc] sm:$0xf]  ;;  %v12790_v59 = vor.u32 %v16522_v50, %v12789_v49 }
 0x364   :  { %v16650_v52 = vld [vmem:[#allocation12 + $0xc74] sm:$0xf0] }
 0x365   :  { %5008 = vmatmul.bf16.vlgmr.msra.gmra.mxu2 %v18018_v57  ;;  %5021 = vmatmul.bf16.vlgmr.msra.gmra.mxu3 %v18020_v51  ;;  %v18150_v8 = vpop.f32.mrf.mxu0  ;;  %v18152_v24 = vpop.f32.mrf.mxu1  ;;  %v13302_v60 = vor.u32 %v16650_v52, %v13301_v33  ;;  %v12791_v33 = vld [vmem:[#allocation12 + $0x878] sm:$0xf0] }
 0x366   :  { %5052 = vmatpush.bf16.msrb.mxu2 %v13238_v54  ;;  %5065 = vmatpush.bf16.msrb.mxu3 %v13750_v58  ;;  %v13239_v54 = vld [vmem:[#allocation12 + $0xbf8] sm:$0xf0] }
 0x367   :  { %5181 = vmatpush.msrb.mxu0 %v5152_v0  ;;  %5204 = vmatpush.msrb.mxu1 %v18106_v2  ;;  %v13110_v2 = vor.u32 %v16602_v7, %v13109_v4  ;;  %v16754_v58 = vld [vmem:[#allocation12 + $0xfbc] sm:$0xf] }
 0x368   :  { %5086 = vmatmul.bf16.vlgmr.msra.gmra.mxu0 %v18008_v15  ;;  %5099 = vmatmul.bf16.vlgmr.msra.gmra.mxu1 %v18010_v16  ;;  %v13046_v15 = vor.u32 %v16586_v47, %v13045_v18  ;;  %v13558_v16 = vor.u32 %v16714_v22, %v13557_v19  ;;  %v4801_v35 = vpop.f32.mrf.mxu2  ;;  %v4814_v3 = vpop.f32.mrf.mxu3  ;;  %v13754_v63 = vor.u32 %v16754_v58, %v13751_v26  ;;  %v16610_v0 = vld [vmem:[#allocation12 + $0xb3c] sm:$0xf]  ;;  %v5154_v26 = vld [vmem:[#allocation4 + $0x30] sm:$0xff] }
 0x369   :  { %5279 = vmatpush.msra.mxu0 %v5146_v12  ;;  %5302 = vmatpush.msra.mxu1 %v5147_v9  ;;  %v4802_v36 = vadd.f32 %v4801_v35, %v4789_v29  ;;  %v13687_v4 = vld [vmem:[#allocation12 + $0xf78] sm:$0xf0]  ;;  %v4841_v35 = vadd.f32 %v18138_v20, %v18136_v44 }
 0x36a   :  { %5053 = vmatpush.bf16.msrb.mxu2 %v13174_v1  ;;  %5066 = vmatpush.bf16.msrb.mxu3 %v13686_v62  ;;  %v13175_v1 = vld [vmem:[#allocation12 + $0xb78] sm:$0xf0] }
 0x36b   :  { %v4815_v10 = vadd.f32 %v4814_v3, %v4802_v36  ;;  %v16738_v62 = vld [vmem:[#allocation12 + $0xf3c] sm:$0xf]  ;;  %v13178_v7 = vor.u32 %v16610_v0, %v13175_v1  ;;  %v5150_v1 = vld [vmem:[#allocation15] sm:$0xff] }
 0x36c   :  { %v13690_v56 = vor.u32 %v16738_v62, %v13687_v4  ;;  %v13111_v12 = vld [vmem:[#allocation12 + $0xaf8] sm:$0xf0] }
 0x36d   :  { %v4881_v40 = vpop.f32.mrf.mxu0  ;;  %v4894_v41 = vpop.f32.mrf.mxu1  ;;  %5139 = vst [vmem:[#allocation4 + $0x180] sm:$0xff] %v4815_v10  ;;  %v16722_v9 = vld [vmem:[#allocation12 + $0xebc] sm:$0xf] }
 0x36e   :  { %5054 = vmatpush.bf16.msrb.mxu2 %v13110_v2  ;;  %5067 = vmatpush.bf16.msrb.mxu3 %v13622_v17  ;;  %v13623_v2 = vld [vmem:[#allocation12 + $0xef8] sm:$0xf0]  ;;  %v13114_v17 = vor.u32 %v16594_v61, %v13111_v12  ;;  %v5151_v61 = vld [vmem:[#allocation15 + $0x8] sm:$0xff]  ;;  %v5361_v12 = vld [vmem:[#allocation15 + $0x20] sm:$0xff] }
 0x36f   :  { %v13626_v18 = vor.u32 %v16722_v9, %v13623_v2  ;;  %v16578_v47 = vld [vmem:[#allocation12 + $0xa3c] sm:$0xf]  ;;  %v5362_v9 = vld [vmem:[#allocation15 + $0x28] sm:$0xff] }
 0x370   :  { %v4803_v5 = vpop.f32.mrf.mxu2  ;;  %v4816_v48 = vpop.f32.mrf.mxu3  ;;  %v13047_v19 = vld [vmem:[#allocation12 + $0xa78] sm:$0xf0] }
 0x371   :  { %v16706_v22 = vld [vmem:[#allocation12 + $0xe3c] sm:$0xf]  ;;  %v13050_v28 = vor.u32 %v16578_v47, %v13047_v19 }
 0x372   :  { %5055 = vmatpush.bf16.msrb.mxu2 %v13046_v15  ;;  %5068 = vmatpush.bf16.msrb.mxu3 %v13558_v16  ;;  %v13559_v15 = vld [vmem:[#allocation12 + $0xe78] sm:$0xf0] }
 0x373   :  { %v13562_v45 = vor.u32 %v16706_v22, %v13559_v15  ;;  %v12983_v29 = vld [vmem:[#allocation12 + $0x9f8] sm:$0xf0] }
 0x374   :  { %v12986_v3 = vor.u32 %v16562_v55, %v12983_v29  ;;  %v16546_v36 = vld [vmem:[#allocation12 + $0x93c] sm:$0xf] }
 0x375   :  { %v13431_v40 = vld [vmem:[#allocation12 + $0xd78] sm:$0xf0]  ;;  %v12922_v43 = vor.u32 %v16546_v36, %v12919_v39 }
 0x376   :  { %5056 = vmatpush.bf16.msrb.mxu2 %v12982_v32  ;;  %5069 = vmatpush.bf16.msrb.mxu3 %v13494_v34  ;;  %v16690_v32 = vld [vmem:[#allocation12 + $0xdbc] sm:$0xf] }
 0x377   :  { %v13495_v34 = vld [vmem:[#allocation12 + $0xdf8] sm:$0xf0] }
 0x378   :  { %13755 = vmatmul.msk.f32.vlgmr.msrb.gmra.mxu0 %vm5159_vm11, %v18156_v11  ;;  %13757 = vmatmul.msk.f32.vlgmr.msrb.gmra.mxu1 %vm5159_vm11, %v18156_v11  ;;  %v13498_v14 = vor.u32 %v16690_v32, %v13495_v34  ;;  %v12855_v44 = vld [vmem:[#allocation12 + $0x8f8] sm:$0xf0] }
 0x379   :  { %5384 = vmatpush.msrb.mxu0 %v18142_v6  ;;  %5407 = vmatpush.msrb.mxu1 %v4815_v10  ;;  %v13242_v6 = vor.u32 %v16626_v53, %v13239_v54  ;;  %v16674_v10 = vld [vmem:[#allocation12 + $0xd3c] sm:$0xf] }
 0x37a   :  { %5057 = vmatpush.bf16.msrb.mxu2 %v12918_v30  ;;  %5070 = vmatpush.bf16.msrb.mxu3 %v13430_v23  ;;  %v13434_v21 = vor.u32 %v16674_v10, %v13431_v40  ;;  %v16658_v20 = vld [vmem:[#allocation12 + $0xcbc] sm:$0xf] }
 0x37b   :  { %v16514_v48 = vld [vmem:[#allocation12 + $0x83c] sm:$0xf] }
 0x37c   :  { %v16642_v52 = vld [vmem:[#allocation12 + $0xc3c] sm:$0xf]  ;;  %v12794_v54 = vor.u32 %v16514_v48, %v12791_v33 }
 0x37d   :  { %v13303_v53 = vld [vmem:[#allocation12 + $0xc78] sm:$0xf0] }
 0x37e   :  { %5058 = vmatpush.bf16.msrb.mxu2 %v12854_v31  ;;  %5071 = vmatpush.bf16.msrb.mxu3 %v13366_v46  ;;  %v13367_v31 = vld [vmem:[#allocation12 + $0xcf8] sm:$0xf0]  ;;  %v12858_v46 = vor.u32 %v16530_v13, %v12855_v44  ;;  %v13306_v58 = vor.u32 %v16642_v52, %v13303_v53 }
 0x37f   :  { %v13370_v5 = vor.u32 %v16658_v20, %v13367_v31  ;;  %v5475_v32 = vld [vmem:[#allocation15 + $0x38] sm:$0xff] }
 0x382   :  { %5059 = vmatpush.bf16.msrb.mxu2 %v12790_v59  ;;  %5072 = vmatpush.bf16.msrb.mxu3 %v13302_v60  ;;  %v5158_v59 = vld [vmem:[#allocation15 + $0x18] sm:$0xff]  ;;  %v5148_v60 = vld [vmem:[#allocation4 + $0x10] sm:$0xff] }
 0x383   :  { %13756 = vmatmul.msk.f32.gmra.mxu0 %vm5159_vm11, %v5158_v59  ;;  %13758 = vmatmul.msk.f32.gmra.mxu1 %vm5159_vm11, %v5158_v59 }
 0x385   :  { %5060 = vmatmul.bf16.vlgmr.msrb.gmra.mxu2 %v18018_v57  ;;  %5073 = vmatmul.bf16.vlgmr.msrb.gmra.mxu3 %v18020_v51  ;;  %v18165_v16 = vpop.f32.mrf.mxu0  ;;  %v18167_v25 = vpop.f32.mrf.mxu1 }
 0x386   :  { %5104 = vmatpush.bf16.msra.mxu2 %v13242_v6  ;;  %5117 = vmatpush.bf16.msra.mxu3 %v13754_v63  ;;  %v5149_v6 = vld [vmem:[#allocation4 + $0x48] sm:$0xff] }
 0x388   :  { %v4853_v37 = vpop.f32.mrf.mxu2  ;;  %v4866_v38 = vpop.f32.mrf.mxu3 }
 0x389   :  { %v4854_v41 = vadd.f32 %v4853_v37, %v4841_v35 }
 0x38a   :  { %5105 = vmatpush.bf16.msra.mxu2 %v13178_v7  ;;  %5118 = vmatpush.bf16.msra.mxu3 %v13690_v56 }
 0x38b   :  { %v4867_v30 = vadd.f32 %v4866_v38, %v4854_v41  ;;  %13763 = vmatmul.msk.f32.vlgmr.msra.gmra.mxu0 %vm5159_vm11, %v5150_v1  ;;  %13765 = vmatmul.msk.f32.vlgmr.msra.gmra.mxu1 %vm5159_vm11, %v5150_v1 }
 0x38d   :  { %v4933_v23 = vpop.f32.mrf.mxu0  ;;  %v4946_v42 = vpop.f32.mrf.mxu1  ;;  %5140 = vst [vmem:[#allocation4 + $0x188] sm:$0xff] %v4867_v30 }
 0x38e   :  { %5106 = vmatpush.bf16.msra.mxu2 %v13114_v17  ;;  %5119 = vmatpush.bf16.msra.mxu3 %v13626_v18  ;;  %v4945_v17 = vadd.f32 %v18167_v25, %v18165_v16 }
 0x390   :  { %v4855_v49 = vpop.f32.mrf.mxu2  ;;  %v4868_v50 = vpop.f32.mrf.mxu3 }
 0x392   :  { %5107 = vmatpush.bf16.msra.mxu2 %v13050_v28  ;;  %5120 = vmatpush.bf16.msra.mxu3 %v13562_v45  ;;  %v5474_v45 = vld [vmem:[#allocation15 + $0x30] sm:$0xff] }
 0x393   :  { %13764 = vmatmul.msk.f32.gmra.mxu0 %vm5159_vm11, %v5151_v61  ;;  %13766 = vmatmul.msk.f32.gmra.mxu1 %vm5159_vm11, %v5151_v61 }
 0x396   :  { %5108 = vmatpush.bf16.msra.mxu2 %v12986_v3  ;;  %5121 = vmatpush.bf16.msra.mxu3 %v13498_v14 }
 0x39a   :  { %5109 = vmatpush.bf16.msra.mxu2 %v12922_v43  ;;  %5122 = vmatpush.bf16.msra.mxu3 %v13434_v21 }
 0x39b   :  { %13771 = vmatmul.msk.f32.vlgmr.msrb.gmra.mxu0 %vm5159_vm11, %v5361_v12  ;;  %13773 = vmatmul.msk.f32.vlgmr.msrb.gmra.mxu1 %vm5159_vm11, %v5361_v12 }
 0x39e   :  { %5110 = vmatpush.bf16.msra.mxu2 %v12858_v46  ;;  %5123 = vmatpush.bf16.msra.mxu3 %v13370_v5 }
 0x3a2   :  { %5111 = vmatpush.bf16.msra.mxu2 %v12794_v54  ;;  %5124 = vmatpush.bf16.msra.mxu3 %v13306_v58 }
 0x3a3   :  { %13772 = vmatmul.msk.f32.gmra.mxu0 %vm5159_vm11, %v5362_v9  ;;  %13774 = vmatmul.msk.f32.gmra.mxu1 %vm5159_vm11, %v5362_v9 }
 0x3a5   :  { %5112 = vmatmul.bf16.vlgmr.msra.gmra.mxu2 %v18018_v57  ;;  %5125 = vmatmul.bf16.vlgmr.msra.gmra.mxu3 %v18020_v51  ;;  %v4983_v63 = vpop.f32.mrf.mxu0  ;;  %v4996_v0 = vpop.f32.mrf.mxu1  ;;  %v4893_v57 = vadd.f32 %v18152_v24, %v18150_v8 }
 0x3a6   :  { %5227 = vmatpush.msrb.mxu2 %v5154_v26  ;;  %5250 = vmatpush.msrb.mxu3 %v18129_v27  ;;  %v4997_v34 = vadd.f32 %v4996_v0, %v4983_v63 }
 0x3a8   :  { %5325 = vmatpush.msra.mxu2 %v5148_v60  ;;  %5348 = vmatpush.msra.mxu3 %v5149_v6  ;;  %v4905_v27 = vpop.f32.mrf.mxu2  ;;  %v4918_v51 = vpop.f32.mrf.mxu3 }
 0x3a9   :  { %v4906_v62 = vadd.f32 %v4905_v27, %v4893_v57 }
 0x3ab   :  { %v4919_v4 = vadd.f32 %v4918_v51, %v4906_v62 }
 0x3ad   :  { %v4985_v7 = vpop.f32.mrf.mxu0  ;;  %v4998_v56 = vpop.f32.mrf.mxu1  ;;  %5141 = vst [vmem:[#allocation4 + $0x98] sm:$0xff] %v4919_v4 }
 0x3b0   :  { %v4907_v8 = vpop.f32.mrf.mxu2  ;;  %v4920_v24 = vpop.f32.mrf.mxu3 }
 0x3b5   :  { %13759 = vmatmul.msk.f32.vlgmr.msrb.gmra.mxu2 %vm5159_vm11, %v18156_v11  ;;  %13761 = vmatmul.msk.f32.vlgmr.msrb.gmra.mxu3 %vm5159_vm11, %v18156_v11 }
 0x3b6   :  { %5430 = vmatpush.msrb.mxu2 %v4867_v30  ;;  %5453 = vmatpush.msrb.mxu3 %v4919_v4 }
 0x3bd   :  { %13760 = vmatmul.msk.f32.gmra.mxu2 %vm5159_vm11, %v5158_v59  ;;  %13762 = vmatmul.msk.f32.gmra.mxu3 %vm5159_vm11, %v5158_v59 }
 0x3c5   :  { %13767 = vmatmul.msk.f32.vlgmr.msra.gmra.mxu2 %vm5159_vm11, %v5150_v1  ;;  %13769 = vmatmul.msk.f32.vlgmr.msra.gmra.mxu3 %vm5159_vm11, %v5150_v1  ;;  %v5035_v11 = vpop.f32.mrf.mxu0  ;;  %v5048_v2 = vpop.f32.mrf.mxu1 }
 0x3c6   :  { %v5049_v40 = vadd.f32 %v5048_v2, %v5035_v11 }
 0x3c8   :  { %v4957_v18 = vpop.f32.mrf.mxu2  ;;  %v4970_v47 = vpop.f32.mrf.mxu3 }
 0x3c9   :  { %v4958_v19 = vadd.f32 %v4957_v18, %v4945_v17 }
 0x3cb   :  { %v4971_v22 = vadd.f32 %v4970_v47, %v4958_v19 }
 0x3cd   :  { %13768 = vmatmul.msk.f32.gmra.mxu2 %vm5159_vm11, %v5151_v61  ;;  %13770 = vmatmul.msk.f32.gmra.mxu3 %vm5159_vm11, %v5151_v61  ;;  %v5037_v15 = vpop.f32.mrf.mxu0  ;;  %v5050_v28 = vpop.f32.mrf.mxu1  ;;  %5142 = vst [vmem:[#allocation4 + $0xf8] sm:$0xff] %v4971_v22 }
 0x3ce   :  { %5497 = vmatpush.msra.mxu0 %v4971_v22 }
 0x3cf   :  { %13779 = vmatmul.msk.f32.vlgmr.msra.gmra.mxu0 %vm5159_vm11, %v5474_v45 }
 0x3d0   :  { %v4959_v55 = vpop.f32.mrf.mxu2  ;;  %v4972_v29 = vpop.f32.mrf.mxu3 }
 0x3d5   :  { %13775 = vmatmul.msk.f32.vlgmr.msrb.gmra.mxu2 %vm5159_vm11, %v5361_v12  ;;  %13777 = vmatmul.msk.f32.vlgmr.msrb.gmra.mxu3 %vm5159_vm11, %v5361_v12 }
 0x3d7   :  { %13780 = vmatmul.msk.f32.gmra.mxu0 %vm5159_vm11, %v5475_v32 }
 0x3dd   :  { %13776 = vmatmul.msk.f32.gmra.mxu2 %vm5159_vm11, %v5362_v9  ;;  %13778 = vmatmul.msk.f32.gmra.mxu3 %vm5159_vm11, %v5362_v9 }
 0x3e5   :  { %v5087_v16 = vpop.f32.mrf.mxu0  ;;  %v5100_v25 = vpop.f32.mrf.mxu1 }
 0x3e6   :  { %v5101_v20 = vadd.f32 %v5100_v25, %v5087_v16 }
 0x3e8   :  { %v5009_v35 = vpop.f32.mrf.mxu2  ;;  %v5022_v3 = vpop.f32.mrf.mxu3 }
 0x3e9   :  { %v5010_v14 = vadd.f32 %v5009_v35, %v4997_v34 }
 0x3eb   :  { %v5023_v36 = vadd.f32 %v5022_v3, %v5010_v14 }
 0x3ed   :  { %v5089_v37 = vpop.f32.mrf.mxu0  ;;  %v5102_v38 = vpop.f32.mrf.mxu1  ;;  %5143 = vst [vmem:[#allocation4 + $0x38] sm:$0xff] %v5023_v36  ;;  %5520 = vmatpush.msra.mxu1 %v5023_v36 }
 0x3ee   :  { %13781 = vmatmul.msk.f32.vlgmr.msra.gmra.mxu1 %vm5159_vm11, %v5474_v45 }
 0x3f0   :  { %v5011_v39 = vpop.f32.mrf.mxu2  ;;  %v5024_v10 = vpop.f32.mrf.mxu3 }
 0x3f5   :  { %v5183_v13 = vpop.f32.mrf.mxu0  ;;  %v5206_v52 = vpop.f32.mrf.mxu1 }
 0x3f6   :  { %13782 = vmatmul.msk.f32.gmra.mxu1 %vm5159_vm11, %v5475_v32 }
 0x400   :  { %v5186_v44 = vpop.f32.mrf.mxu0  ;;  %v5209_v54 = vpop.f32.mrf.mxu1 }
 0x408   :  { %v5061_v41 = vpop.f32.mrf.mxu2  ;;  %v5074_v30 = vpop.f32.mrf.mxu3 }
 0x409   :  { %v5062_v23 = vadd.f32 %v5061_v41, %v5049_v40  ;;  %v5281_v49 = vpop.f32.mrf.mxu0  ;;  %v5304_v26 = vpop.f32.mrf.mxu1 }
 0x40a   :  { %v5282_v60 = vadd.f32 %v5281_v49, %v5183_v13 }
 0x40b   :  { %v5075_v42 = vadd.f32 %v5074_v30, %v5062_v23 }
 0x40d   :  { %5144 = vst [vmem:[#allocation4 + $0x8] sm:$0xff] %v5075_v42  ;;  %5543 = vmatpush.msra.mxu2 %v5075_v42 }
 0x40e   :  { %13783 = vmatmul.msk.f32.vlgmr.msra.gmra.mxu2 %vm5159_vm11, %v5474_v45 }
 0x410   :  { %v5063_v43 = vpop.f32.mrf.mxu2  ;;  %v5076_v21 = vpop.f32.mrf.mxu3 }
 0x411   :  { %v5284_v53 = vpop.f32.mrf.mxu0  ;;  %v5307_v6 = vpop.f32.mrf.mxu1 }
 0x412   :  { %v5285_v0 = vadd.f32 %v5284_v53, %v5186_v44  ;;  %v5308_v34 = vadd.f32 %v5307_v6, %v5209_v54 }
 0x416   :  { %13784 = vmatmul.msk.f32.gmra.mxu2 %vm5159_vm11, %v5475_v32 }
 0x419   :  { %v5386_v58 = vpop.f32.mrf.mxu0  ;;  %v5409_v56 = vpop.f32.mrf.mxu1 }
 0x41a   :  { %v5461_v1 = vadd.f32 %v5386_v58, %v5282_v60 }
 0x421   :  { %v5389_v59 = vpop.f32.mrf.mxu0  ;;  %v5412_v22 = vpop.f32.mrf.mxu1 }
 0x422   :  { %v5465_v57 = vadd.f32 %v5389_v59, %v5285_v0  ;;  %v5466_v3 = vadd.f32 %v5412_v22, %v5308_v34 }
 0x428   :  { %v5113_v31 = vpop.f32.mrf.mxu2  ;;  %v5126_v46 = vpop.f32.mrf.mxu3 }
 0x429   :  { %v5114_v5 = vadd.f32 %v5113_v31, %v5101_v20 }
 0x42b   :  { %v5127_v48 = vadd.f32 %v5126_v46, %v5114_v5 }
 0x42d   :  { %5145 = vst [vmem:[#allocation4 + $0x78] sm:$0xff] %v5127_v48  ;;  %5566 = vmatpush.msra.mxu3 %v5127_v48 }
 0x42e   :  { %13785 = vmatmul.msk.f32.vlgmr.msra.gmra.mxu3 %vm5159_vm11, %v5474_v45 }
 0x430   :  { %v5115_v50 = vpop.f32.mrf.mxu2  ;;  %v5128_v33 = vpop.f32.mrf.mxu3 }
 0x436   :  { %13786 = vmatmul.msk.f32.gmra.mxu3 %vm5159_vm11, %v5475_v32  ;;  %v5305_v32 = vadd.f32 %v5304_v26, %v5206_v52 }
 0x438   :  { %v5229_v51 = vpop.f32.mrf.mxu2  ;;  %v5462_v35 = vadd.f32 %v5409_v56, %v5305_v32  ;;  %v5252_v36 = vpop.f32.mrf.mxu3 }
 0x440   :  { %v5232_v18 = vpop.f32.mrf.mxu2  ;;  %v5255_v21 = vpop.f32.mrf.mxu3 }
 0x448   :  { %v5327_v16 = vpop.f32.mrf.mxu2  ;;  %v5350_v52 = vpop.f32.mrf.mxu3 }
 0x449   :  { %v5328_v58 = vadd.f32 %v5327_v16, %v5229_v51 }
 0x44c   :  { %v5499_v63 = vpop.f32.mrf.mxu0 }
 0x44d   :  { %v18210_v27 = vadd.f32 %v5499_v63, %v5461_v1 }
 0x44f   :  { %v5613_v4 = vmul.f32 %v18210_v27, %v18210_v27 }
 0x450   :  { %v5330_v38 = vpop.f32.mrf.mxu2  ;;  %v5353_v26 = vpop.f32.mrf.mxu3 }
 0x451   :  { %v5331_v59 = vadd.f32 %v5330_v38, %v5232_v18  ;;  %v5354_v32 = vadd.f32 %v5353_v26, %v5255_v21 }
 0x454   :  { %v5502_v62 = vpop.f32.mrf.mxu0 }
 0x455   :  { %v18214_v7 = vadd.f32 %v5502_v62, %v5465_v57 }
 0x457   :  { %v5585_v61 = vadd.f32 %v18214_v7, %v18210_v27  ;;  %v5617_v8 = vmul.f32 %v18214_v7, %v18214_v7 }
 0x458   :  { %v5432_v20 = vpop.f32.mrf.mxu2  ;;  %v5455_v57 = vpop.f32.mrf.mxu3 }
 0x459   :  { %v5586_v24 = vrot.slane %v5585_v61, 4  ;;  %v5621_v12 = vadd.f32 %v5617_v8, %v5613_v4  ;;  %v5463_v60 = vadd.f32 %v5432_v20, %v5328_v58 }
 0x45b   :  { %v5587_v9 = vadd.f32 %v5586_v24, %v5585_v61  ;;  %v5622_v11 = vrot.slane %v5621_v12, 4 }
 0x45d   :  { %v5588_v2 = vrot.slane %v5587_v9, 2  ;;  %v5623_v17 = vadd.f32 %v5622_v11, %v5621_v12 }
 0x45f   :  { %v5589_v47 = vadd.f32 %v5588_v2, %v5587_v9  ;;  %v5624_v19 = vrot.slane %v5623_v17, 2 }
 0x460   :  { %v5435_v53 = vpop.f32.mrf.mxu2 }
 0x461   :  { %v5590_v15 = vrot.slane %v5589_v47, 1  ;;  %v5625_v28 = vadd.f32 %v5624_v19, %v5623_v17  ;;  %v5467_v6 = vadd.f32 %v5435_v53, %v5331_v59  ;;  %v5458_v17 = vpop.f32.mrf.mxu3 }
 0x463   :  { %v18220_v45 = vadd.f32 %v5590_v15, %v5589_v47  ;;  %v5626_v55 = vrot.slane %v5625_v28, 1 }
 0x465   :  { %5649 = vrot.lane.b32.xlu0 %v18220_v45, %s17729_s14  ;;  %v18224_v29 = vadd.f32 %v5626_v55, %v5625_v28  ;;  %v5351_v55 = vadd.f32 %v5350_v52, %v5252_v36 }
 0x467   :  { %5668 = vrot.lane.b32.xlu2 %v18224_v29, %s17729_s14  ;;  %v5464_v16 = vadd.f32 %v5455_v57, %v5351_v55 }
 0x46b   :  { %v5522_v25 = vpop.f32.mrf.mxu1 }
 0x46c   :  { %v18228_v14 = vadd.f32 %v5522_v25, %v5462_v35  ;;  %v5468_v25 = vadd.f32 %v5458_v17, %v5354_v32 }
 0x46e   :  { %v5614_v39 = vmul.f32 %v18228_v14, %v18228_v14 }
 0x473   :  { %v5525_v37 = vpop.f32.mrf.mxu1 }
 0x474   :  { %v18232_v10 = vadd.f32 %v5525_v37, %v5466_v3 }
 0x476   :  { %v5592_v40 = vadd.f32 %v18232_v10, %v18228_v14  ;;  %v5618_v41 = vmul.f32 %v18232_v10, %v18232_v10 }
 0x478   :  { %v5593_v30 = vrot.slane %v5592_v40, 4  ;;  %v5628_v23 = vadd.f32 %v5618_v41, %v5614_v39 }
 0x47a   :  { %v5594_v42 = vadd.f32 %v5593_v30, %v5592_v40  ;;  %v5629_v43 = vrot.slane %v5628_v23, 4 }
 0x47c   :  { %v5595_v13 = vrot.slane %v5594_v42, 2  ;;  %v5630_v44 = vadd.f32 %v5629_v43, %v5628_v23 }
 0x47e   :  { %v5596_v31 = vadd.f32 %v5595_v13, %v5594_v42  ;;  %v5631_v46 = vrot.slane %v5630_v44, 2 }
 0x480   :  { %v5597_v5 = vrot.slane %v5596_v31, 1  ;;  %v5632_v48 = vadd.f32 %v5631_v46, %v5630_v44 }
 0x482   :  { %v18238_v49 = vadd.f32 %v5597_v5, %v5596_v31  ;;  %v5633_v50 = vrot.slane %v5632_v48, 1 }
 0x484   :  { %5651 = vrot.lane.b32.xlu0 %v18238_v49, %s17729_s14  ;;  %v18242_v33 = vadd.f32 %v5633_v50, %v5632_v48  ;;  %v5657_v48 = vlaneseq }
 0x486   :  { %5670 = vrot.lane.b32.xlu2 %v18242_v33, %s17729_s14  ;;  %v18279_v53 = vand.u32 127, %v5657_v48 }
 0x488   :  { %vm5659_vm12 = vcmp.lt.s32.totalorder %v18279_v53, 64 }
 0x491   :  { %v5545_v54 = vpop.f32.mrf.mxu2 }
 0x492   :  { %v18246_v63 = vadd.f32 %v5545_v54, %v5463_v60 }
 0x494   :  { %v5615_v62 = vmul.f32 %v18246_v63, %v18246_v63 }
 0x499   :  { %v5548_v0 = vpop.f32.mrf.mxu2 }
 0x49a   :  { %v18248_v1 = vadd.f32 %v5548_v0, %v5467_v6 }
 0x49c   :  { %v5599_v4 = vadd.f32 %v18248_v1, %v18246_v63  ;;  %v5619_v56 = vmul.f32 %v18248_v1, %v18248_v1 }
 0x49e   :  { %v5600_v51 = vrot.slane %v5599_v4, 4  ;;  %v5635_v61 = vadd.f32 %v5619_v56, %v5615_v62 }
 0x4a0   :  { %v5601_v8 = vadd.f32 %v5600_v51, %v5599_v4  ;;  %v5636_v24 = vrot.slane %v5635_v61, 4 }
 0x4a2   :  { %v5602_v12 = vrot.slane %v5601_v8, 2  ;;  %v5637_v9 = vadd.f32 %v5636_v24, %v5635_v61 }
 0x4a4   :  { %v5603_v11 = vadd.f32 %v5602_v12, %v5601_v8  ;;  %v5638_v2 = vrot.slane %v5637_v9, 2 }
 0x4a6   :  { %v5604_v18 = vrot.slane %v5603_v11, 1  ;;  %v5639_v47 = vadd.f32 %v5638_v2, %v5637_v9 }
 0x4a8   :  { %v5605_v19 = vadd.f32 %v5604_v18, %v5603_v11  ;;  %v5640_v22 = vrot.slane %v5639_v47, 1 }
 0x4aa   :  { %5653 = vrot.lane.b32.xlu1 %v5605_v19, %s17729_s14  ;;  %v18257_v15 = vadd.f32 %v5640_v22, %v5639_v47 }
 0x4ac   :  { %5672 = vrot.lane.b32.xlu0 %v18257_v15, %s17729_s14 }
 0x4b1   :  { %v5568_v28 = vpop.f32.mrf.mxu3 }
 0x4b2   :  { %v18261_v34 = vadd.f32 %v5568_v28, %v5464_v16 }
 0x4b4   :  { %v5616_v37 = vmul.f32 %v18261_v34, %v18261_v34 }
 0x4b9   :  { %v5571_v35 = vpop.f32.mrf.mxu3 }
 0x4ba   :  { %v18263_v3 = vadd.f32 %v5571_v35, %v5468_v25 }
 0x4bc   :  { %v5606_v38 = vadd.f32 %v18263_v3, %v18261_v34  ;;  %v5620_v39 = vmul.f32 %v18263_v3, %v18263_v3 }
 0x4be   :  { %v5607_v40 = vrot.slane %v5606_v38, 4  ;;  %v5642_v41 = vadd.f32 %v5620_v39, %v5616_v37 }
 0x4c0   :  { %v5608_v36 = vadd.f32 %v5607_v40, %v5606_v38  ;;  %v5643_v30 = vrot.slane %v5642_v41, 4 }
 0x4c1   :  { %v5669_v52 = vpop.permute.xlu2 %5668 }
 0x4c2   :  { %v5609_v23 = vrot.slane %v5608_v36, 2  ;;  %v5644_v42 = vadd.f32 %v5643_v30, %v5642_v41 }
 0x4c4   :  { %v5610_v43 = vadd.f32 %v5609_v23, %v5608_v36  ;;  %v5645_v21 = vrot.slane %v5644_v42, 2 }
 0x4c6   :  { %v5611_v13 = vrot.slane %v5610_v43, 1  ;;  %v5646_v20 = vadd.f32 %v5645_v21, %v5644_v42 }
 0x4c8   :  { %v5612_v44 = vadd.f32 %v5611_v13, %v5610_v43  ;;  %v5647_v31 = vrot.slane %v5646_v20, 1 }
 0x4ca   :  { %5655 = vrot.lane.b32.xlu1 %v5612_v44, %s17729_s14  ;;  %v5648_v46 = vadd.f32 %v5647_v31, %v5646_v20 }
 0x4d2   :  { %5674 = vrot.lane.b32.xlu1 %v5648_v46, %s17729_s14 }
 0x4d7   :  { %v5650_v5 = vpop.permute.xlu0 %5649 }
 0x4e0   :  { %v5671_v51 = vpop.permute.xlu2 %5670 }
 0x4e1   :  { %v5678_v11 = vsel %vm5659_vm12, %v5669_v52, %v5671_v51 }
 0x4f6   :  { %v5652_v54 = vpop.permute.xlu0 %5651 }
 0x4f7   :  { %v5662_v26 = vsel %vm5659_vm12, %v5650_v5, %v5652_v54 }
 0x4f8   :  { %v5665_v62 = vadd.f32 %v5662_v26, %v18238_v49  ;;  %v5681_v49 = vadd.f32 %v5678_v11, %v18242_v33 }
 0x51c   :  { %v5654_v50 = vpop.permute.xlu1 %5653 }
 0x51d   :  { %v5661_v58 = vsel %vm5659_vm12, %v5652_v54, %v5654_v50 }
 0x51e   :  { %v5666_v60 = vadd.f32 %v5661_v58, %v5605_v19  ;;  %v5673_v6 = vpop.permute.xlu0 %5672 }
 0x51f   :  { %v5677_v61 = vsel %vm5659_vm12, %v5671_v51, %v5673_v6 }
 0x520   :  { %v5686_v9 = vadd.f32 %v5666_v60, %v5665_v62  ;;  %v5682_v2 = vadd.f32 %v5677_v61, %v18257_v15 }
 0x522   :  { %v5690_v55 = vadd.f32 %v5682_v2, %v5681_v49 }
 0x53c   :  { %v5656_v59 = vpop.permute.xlu1 %5655 }
 0x53d   :  { %v5660_v0 = vsel %vm5659_vm12, %v5654_v50, %v5656_v59  ;;  %v5663_v57 = vsel %vm5659_vm12, %v5656_v59, %v5650_v5 }
 0x53e   :  { %v5664_v4 = vadd.f32 %v5663_v57, %v18220_v45  ;;  %v5667_v56 = vadd.f32 %v5660_v0, %v5612_v44 }
 0x540   :  { %v5684_v8 = vadd.f32 %v5667_v56, %v5664_v4  ;;  %v5685_v24 = vadd.f32 %v5665_v62, %v5664_v4  ;;  %v5687_v12 = vadd.f32 %v5667_v56, %v5666_v60 }
 0x542   :  { %v5692_v17 = vadd.f32 %v5686_v9, %v5684_v8  ;;  %v5693_v18 = vadd.f32 %v5687_v12, %v5685_v24 }
 0x544   :  { %v5675_v47 = vpop.permute.xlu1 %5674  ;;  %v5696_v32 = vmul.f32 0.0078125, %v5692_v17  ;;  %v5697_v16 = vmul.f32 0.0078125, %v5693_v18 }
 0x545   :  { %v5676_v45 = vsel %vm5659_vm12, %v5673_v6, %v5675_v47  ;;  %v5679_v19 = vsel %vm5659_vm12, %v5675_v47, %v5669_v52  ;;  %v5582_v6 = vld [vmem:[#allocation21] ss:$2 sm:$0xf]  ;;  %v5584_v47 = vld [vmem:[#allocation21 + $0x1] ss:$2 sm:$0xf] }
 0x546   :  { %v5680_v22 = vadd.f32 %v5679_v19, %v18224_v29  ;;  %v5683_v28 = vadd.f32 %v5676_v45, %v5648_v46  ;;  %v5700_v33 = vmul.f32 %v5696_v32, %v5696_v32  ;;  %v5701_v41 = vmul.f32 %v5697_v16, %v5697_v16 }
 0x548   :  { %v5688_v25 = vadd.f32 %v5683_v28, %v5680_v22  ;;  %v5689_v35 = vadd.f32 %v5681_v49, %v5680_v22  ;;  %v5691_v15 = vadd.f32 %v5683_v28, %v5682_v2 }
 0x54a   :  { %v5694_v37 = vadd.f32 %v5690_v55, %v5688_v25  ;;  %v5695_v38 = vadd.f32 %v5691_v15, %v5689_v35 }
 0x54c   :  { %v5698_v39 = vmul.f32 0.0078125, %v5694_v37  ;;  %v5699_v40 = vmul.f32 0.0078125, %v5695_v38 }
 0x54e   :  { %v5702_v36 = vsub.f32 %v5698_v39, %v5700_v33  ;;  %v5703_v30 = vsub.f32 %v5699_v40, %v5701_v41 }
 0x550   :  { %v5704_v23 = vadd.f32 1e-05, %v5702_v36  ;;  %v5705_v42 = vadd.f32 1e-05, %v5703_v30 }
 0x552   :  { %17373 = vrsqrt.f32 %v5704_v23  ;;  %vm5712_vm15 = vweird.f32 %v5704_v23  ;;  %vm5722_vm3 = vweird.f32 %v5705_v42 }
 0x553   :  { %17375 = vrsqrt.f32 %v5705_v42 }
 0x558   :  { %v17374_v29 = vpop.eup %17373 }
 0x559   :  { %v17376_v43 = vpop.eup %17375  ;;  %v5707_v21 = vmul.f32 %v17374_v29, %v5704_v23  ;;  %vm5713_vm13 = vweird.f32 %v17374_v29 }
 0x55a   :  { %v5717_v13 = vmul.f32 %v17376_v43, %v5705_v42  ;;  %vm5723_vm14 = vweird.f32 %v17376_v43  ;;  %vm5714_vm2 = vmor %vm5712_vm15, %vm5713_vm13 }
 0x55b   :  { %v5708_v44 = vmul.f32 %v17374_v29, %v5707_v21  ;;  %vm5724_vm4 = vmor %vm5722_vm3, %vm5723_vm14 }
 0x55c   :  { %v5718_v20 = vmul.f32 %v17376_v43, %v5717_v13 }
 0x55d   :  { %v5709_v31 = vmul.f32 0.5, %v5708_v44 }
 0x55e   :  { %v5719_v46 = vmul.f32 0.5, %v5718_v20 }
 0x55f   :  { %v5710_v5 = vsub.f32 1.5, %v5709_v31 }
 0x560   :  { %v5720_v48 = vsub.f32 1.5, %v5719_v46 }
 0x561   :  { %v5711_v50 = vmul.f32 %v17374_v29, %v5710_v5 }
 0x562   :  { %v5721_v52 = vmul.f32 %v17376_v43, %v5720_v48 }
 0x563   :  { %v5715_v54 = vsel %vm5714_vm2, %v17374_v29, %v5711_v50 }
 0x564   :  { %v5725_v58 = vsel %vm5724_vm4, %v17376_v43, %v5721_v52  ;;  %v5729_v26 = vrot.slane %v5715_v54, 6 }
 0x565   :  { %v5728_v59 = vrot.slane %v5725_v58, 7  ;;  %v5730_v60 = vrot.slane %v5725_v58, 5 }
 0x567   :  { %v5731_v0 = vsel %vm1153_vm9, %v5715_v54, %v5728_v59  ;;  %v5732_v57 = vsel %vm1155_vm10, %v5729_v26, %v5730_v60 }
 0x568   :  { %v5733_v62 = vsel %vm653_vm1, %v5731_v0, %v5732_v57 }
 0x569   :  { %v5735_v4 = vmul.f32 %v5733_v62, %v5582_v6 }
 0x56b   :  { %v5737_v56 = vperm.slane %v5735_v4, 0  ;;  %v5738_v51 = vperm.slane %v5735_v4, 1  ;;  %v5739_v61 = vperm.slane %v5735_v4, 2  ;;  %v5740_v8 = vperm.slane %v5735_v4, 3 }
 0x56d   :  { %v5746_v24 = vmul.f32 %v5738_v51, %v5697_v16  ;;  %v5747_v12 = vmul.f32 %v5739_v61, %v5696_v32  ;;  %v5748_v9 = vmul.f32 %v5740_v8, %v5697_v16  ;;  %v5745_v11 = vmul.f32 %v5737_v56, %v5696_v32 }
 0x56e   :  { %v5761_v28 = vmul.f32 %v5737_v56, %v18210_v27  ;;  %v5762_v55 = vmul.f32 %v5738_v51, %v18228_v14  ;;  %v5763_v25 = vmul.f32 %v5739_v61, %v18246_v63  ;;  %v5764_v16 = vmul.f32 %v5740_v8, %v18261_v34 }
 0x56f   :  { %v5753_v2 = vrot.slane %v5746_v24, 7  ;;  %v5754_v17 = vrot.slane %v5747_v12, 6  ;;  %v5755_v18 = vrot.slane %v5748_v9, 5  ;;  %v5765_v38 = vmul.f32 %v5737_v56, %v18214_v7 }
 0x570   :  { %v5766_v39 = vmul.f32 %v5738_v51, %v18232_v10  ;;  %v5767_v40 = vmul.f32 %v5739_v61, %v18248_v1  ;;  %v5768_v33 = vmul.f32 %v5740_v8, %v18263_v3 }
 0x571   :  { %v5756_v49 = vsel %vm1153_vm9, %v5745_v11, %v5753_v2  ;;  %v5757_v45 = vsel %vm1155_vm10, %v5754_v17, %v5755_v18 }
 0x572   :  { %v5758_v19 = vsel %vm653_vm1, %v5756_v49, %v5757_v45 }
 0x573   :  { %v5760_v22 = vsub.f32 %v5584_v47, %v5758_v19 }
 0x575   :  { %v5770_v32 = vperm.slane %v5760_v22, 0  ;;  %v5771_v35 = vperm.slane %v5760_v22, 1  ;;  %v5772_v15 = vperm.slane %v5760_v22, 2  ;;  %v5773_v37 = vperm.slane %v5760_v22, 3 }
 0x577   :  { %v5778_v41 = vadd.f32 %v5770_v32, %v5761_v28  ;;  %v5779_v27 = vadd.f32 %v5771_v35, %v5762_v55  ;;  %v5780_v36 = vadd.f32 %v5772_v15, %v5763_v25  ;;  %v5781_v14 = vadd.f32 %v5773_v37, %v5764_v16 }
 0x578   :  { %v5782_v30 = vadd.f32 %v5770_v32, %v5765_v38  ;;  %v5783_v63 = vadd.f32 %v5771_v35, %v5766_v39  ;;  %v5784_v23 = vadd.f32 %v5772_v15, %v5767_v40  ;;  %v5785_v34 = vadd.f32 %v5773_v37, %v5768_v33 }
 0x579   :  { %v5786_v42 = vmax.f32 %v5778_v41, 0.0  ;;  %v5787_v29 = vmax.f32 %v5779_v27, 0.0  ;;  %v5788_v43 = vmax.f32 %v5780_v36, 0.0  ;;  %v5789_v21 = vmax.f32 %v5781_v14, 0.0 }
 0x57a   :  { %v5790_v13 = vmax.f32 %v5782_v30, 0.0  ;;  %v5791_v7 = vmax.f32 %v5783_v63, 0.0  ;;  %v5792_v44 = vmax.f32 %v5784_v23, 0.0  ;;  %v5793_v10 = vmax.f32 %v5785_v34, 0.0 }
 0x57b   :  { %v5794_v20 = vpack.c.bf16 %v5787_v29, %v5786_v42  ;;  %v5795_v1 = vpack.c.bf16 %v5789_v21, %v5788_v43 }
 0x57c   :  { %v5796_v31 = vpack.c.bf16 %v5791_v7, %v5790_v13  ;;  %v5797_v3 = vpack.c.bf16 %v5793_v10, %v5792_v44 }
 0x57d   :  { %5798 = vst [vmem:[#allocation6] sm:$0xff] %v5794_v20 }
 0x57e   :  { %5799 = vst [vmem:[#allocation6 + $0x8] sm:$0xff] %v5795_v1 }
 0x57f   :  { %5800 = vst [vmem:[#allocation6 + $0x10] sm:$0xff] %v5796_v31 }
 0x580   :  { %5801 = vst [vmem:[#allocation6 + $0x18] sm:$0xff] %v5797_v3 }
 0x581   :  { %17721 = dma.done.wait [#allocation8], 65536 }
 0x582   :  { %17722 = vsyncadd [#allocation8], 4294901760  ;;  %v14253_v46 = vld [vmem:[#allocation2 + $0x380] sm:$0xf]  ;;  %vm9855_vm5 = vcmask 130048   ;;  %s17743_s3 = smov 32  }
 0x583   :  { %v16887_v5 = vld [vmem:[#allocation2 + $0x3bc] sm:$0xf0]  ;;  %vm10525_vm6 = vcmp.lt.s32.totalorder %v18279_v53, 32 }
 0x584   :  { %v14765_v48 = vld [vmem:[#allocation2 + $0x780] sm:$0xf]  ;;  %v14254_v50 = vor.u32 %v16887_v5, %v14253_v46 }
 0x585   :  { %v17015_v52 = vld [vmem:[#allocation2 + $0x7bc] sm:$0xf0] }
 0x586   :  { %v15277_v54 = vld [vmem:[#allocation2 + $0xb80] sm:$0xf]  ;;  %v14766_v26 = vor.u32 %v17015_v52, %v14765_v48  ;;  %8902 = vmatpush.bf16.msrb.mxu0 %v14254_v50 }
 0x587   :  { %v17143_v58 = vld [vmem:[#allocation2 + $0xbbc] sm:$0xf0] }
 0x588   :  { %v15278_v59 = vor.u32 %v17143_v58, %v15277_v54  ;;  %v15789_v60 = vld [vmem:[#allocation2 + $0xf80] sm:$0xf]  ;;  %8916 = vmatpush.bf16.msrb.mxu1 %v14766_v26 }
 0x589   :  { %v17271_v6 = vld [vmem:[#allocation2 + $0xfbc] sm:$0xf0] }
 0x58a   :  { %v14189_v0 = vld [vmem:[#allocation2 + $0x300] sm:$0xf]  ;;  %v15790_v57 = vor.u32 %v17271_v6, %v15789_v60  ;;  %8930 = vmatpush.bf16.msrb.mxu2 %v15278_v59 }
 0x58b   :  { %v16871_v62 = vld [vmem:[#allocation2 + $0x33c] sm:$0xf0] }
 0x58c   :  { %v14701_v4 = vld [vmem:[#allocation2 + $0x700] sm:$0xf]  ;;  %v14190_v51 = vor.u32 %v16871_v62, %v14189_v0  ;;  %8944 = vmatpush.bf16.msrb.mxu3 %v15790_v57 }
 0x58d   :  { %v16999_v56 = vld [vmem:[#allocation2 + $0x73c] sm:$0xf0] }
 0x58e   :  { %v14702_v61 = vor.u32 %v16999_v56, %v14701_v4  ;;  %v15213_v8 = vld [vmem:[#allocation2 + $0xb00] sm:$0xf]  ;;  %8903 = vmatpush.bf16.msrb.mxu0 %v14190_v51 }
 0x58f   :  { %v17127_v24 = vld [vmem:[#allocation2 + $0xb3c] sm:$0xf0] }
 0x590   :  { %v15725_v12 = vld [vmem:[#allocation2 + $0xf00] sm:$0xf]  ;;  %v15214_v9 = vor.u32 %v17127_v24, %v15213_v8  ;;  %8917 = vmatpush.bf16.msrb.mxu1 %v14702_v61 }
 0x591   :  { %v17255_v11 = vld [vmem:[#allocation2 + $0xf3c] sm:$0xf0] }
 0x592   :  { %v14125_v2 = vld [vmem:[#allocation2 + $0x280] sm:$0xf]  ;;  %v15726_v18 = vor.u32 %v17255_v11, %v15725_v12  ;;  %8931 = vmatpush.bf16.msrb.mxu2 %v15214_v9 }
 0x593   :  { %v16855_v17 = vld [vmem:[#allocation2 + $0x2bc] sm:$0xf0] }
 0x594   :  { %v14637_v47 = vld [vmem:[#allocation2 + $0x680] sm:$0xf]  ;;  %v14126_v19 = vor.u32 %v16855_v17, %v14125_v2  ;;  %8945 = vmatpush.bf16.msrb.mxu3 %v15726_v18 }
 0x595   :  { %v16983_v49 = vld [vmem:[#allocation2 + $0x6bc] sm:$0xf0] }
 0x596   :  { %v15149_v45 = vld [vmem:[#allocation2 + $0xa80] sm:$0xf]  ;;  %v14638_v25 = vor.u32 %v16983_v49, %v14637_v47  ;;  %8904 = vmatpush.bf16.msrb.mxu0 %v14126_v19  ;;  %v16879_v19 = vld [vmem:[#allocation2 + $0x384] sm:$0xf] }
 0x597   :  { %v17111_v22 = vld [vmem:[#allocation2 + $0xabc] sm:$0xf0] }
 0x598   :  { %v15661_v28 = vld [vmem:[#allocation2 + $0xe80] sm:$0xf]  ;;  %v15150_v16 = vor.u32 %v17111_v22, %v15149_v45  ;;  %8918 = vmatpush.bf16.msrb.mxu1 %v14638_v25  ;;  %v14255_v22 = vld [vmem:[#allocation2 + $0x3c0] sm:$0xf0] }
 0x599   :  { %v17239_v55 = vld [vmem:[#allocation2 + $0xebc] sm:$0xf0]  ;;  %v14767_v25 = vld [vmem:[#allocation2 + $0x7c0] sm:$0xf0] }
 0x59a   :  { %v14061_v32 = vld [vmem:[#allocation2 + $0x200] sm:$0xf]  ;;  %v15662_v37 = vor.u32 %v17239_v55, %v15661_v28  ;;  %8932 = vmatpush.bf16.msrb.mxu2 %v15150_v16  ;;  %v17007_v28 = vld [vmem:[#allocation2 + $0x784] sm:$0xf] }
 0x59b   :  { %v16839_v35 = vld [vmem:[#allocation2 + $0x23c] sm:$0xf0]  ;;  %v17135_v16 = vld [vmem:[#allocation2 + $0xb84] sm:$0xf] }
 0x59c   :  { %v14573_v15 = vld [vmem:[#allocation2 + $0x600] sm:$0xf]  ;;  %v14062_v27 = vor.u32 %v16839_v35, %v14061_v32  ;;  %8946 = vmatpush.bf16.msrb.mxu3 %v15662_v37  ;;  %v15279_v32 = vld [vmem:[#allocation2 + $0xbc0] sm:$0xf0] }
 0x59d   :  { %v16967_v38 = vld [vmem:[#allocation2 + $0x63c] sm:$0xf0]  ;;  %v17263_v37 = vld [vmem:[#allocation2 + $0xf84] sm:$0xf] }
 0x59e   :  { %v15085_v39 = vld [vmem:[#allocation2 + $0xa00] sm:$0xf]  ;;  %v14574_v36 = vor.u32 %v16967_v38, %v14573_v15  ;;  %8905 = vmatpush.bf16.msrb.mxu0 %v14062_v27  ;;  %v15791_v38 = vld [vmem:[#allocation2 + $0xfc0] sm:$0xf0] }
 0x59f   :  { %v17095_v40 = vld [vmem:[#allocation2 + $0xa3c] sm:$0xf0]  ;;  %v16863_v27 = vld [vmem:[#allocation2 + $0x304] sm:$0xf] }
 0x5a0   :  { %v15597_v33 = vld [vmem:[#allocation2 + $0xe00] sm:$0xf]  ;;  %v15086_v14 = vor.u32 %v17095_v40, %v15085_v39  ;;  %8919 = vmatpush.bf16.msrb.mxu1 %v14574_v36  ;;  %v14258_v40 = vor.u32 %v16879_v19, %v14255_v22  ;;  %v14191_v36 = vld [vmem:[#allocation2 + $0x340] sm:$0xf0]  ;;  %v13791_v22 = vld [vmem:[#allocation6 + $0x10] sm:$0xf0] }
 0x5a1   :  { %v17223_v41 = vld [vmem:[#allocation2 + $0xe3c] sm:$0xf0]  ;;  %v16763_v19 = vld [vmem:[#allocation6 + $0x4] sm:$0xf] }
 0x5a2   :  { %v13997_v30 = vld [vmem:[#allocation2 + $0x180] sm:$0xf]  ;;  %v15598_v34 = vor.u32 %v17223_v41, %v15597_v33  ;;  %8933 = vmatpush.bf16.msrb.mxu2 %v15086_v14  ;;  %v14770_v33 = vor.u32 %v17007_v28, %v14767_v25  ;;  %v15282_v41 = vor.u32 %v17135_v16, %v15279_v32  ;;  %v16991_v14 = vld [vmem:[#allocation2 + $0x704] sm:$0xf]  ;;  %v18325_v32 = vor.u32 %v16763_v19, %v13791_v22  ;;  %v14197_v19 = vld [vmem:[#allocation2 + $0x308] sm:$0xf] }
 0x5a3   :  { %v16823_v63 = vld [vmem:[#allocation2 + $0x1bc] sm:$0xf0]  ;;  %v17071_v25 = vld [vmem:[#allocation2 + $0x984] sm:$0xf]  ;;  %v16872_v22 = vld [vmem:[#allocation2 + $0x344] sm:$0xf0] }
 0x5a4   :  { %v14509_v23 = vld [vmem:[#allocation2 + $0x580] sm:$0xf]  ;;  %v13998_v7 = vor.u32 %v16823_v63, %v13997_v30  ;;  %8947 = vmatpush.bf16.msrb.mxu3 %v15598_v34  ;;  %v15794_v30 = vor.u32 %v17263_v37, %v15791_v38  ;;  %v14703_v63 = vld [vmem:[#allocation2 + $0x740] sm:$0xf0] }
 0x5a5   :  { %v16951_v42 = vld [vmem:[#allocation2 + $0x5bc] sm:$0xf0]  ;;  %v15215_v34 = vld [vmem:[#allocation2 + $0xb40] sm:$0xf0] }
 0x5a6   :  { %v15021_v29 = vld [vmem:[#allocation2 + $0x980] sm:$0xf]  ;;  %v14510_v44 = vor.u32 %v16951_v42, %v14509_v23  ;;  %8906 = vmatpush.bf16.msrb.mxu0 %v13998_v7  ;;  %v17119_v23 = vld [vmem:[#allocation2 + $0xb04] sm:$0xf] }
 0x5a7   :  { %v17079_v43 = vld [vmem:[#allocation2 + $0x9bc] sm:$0xf0]  ;;  %v17247_v42 = vld [vmem:[#allocation2 + $0xf04] sm:$0xf] }
 0x5a8   :  { %v15533_v21 = vld [vmem:[#allocation2 + $0xd80] sm:$0xf]  ;;  %v15022_v10 = vor.u32 %v17079_v43, %v15021_v29  ;;  %8920 = vmatpush.bf16.msrb.mxu1 %v14510_v44  ;;  %v15727_v29 = vld [vmem:[#allocation2 + $0xf40] sm:$0xf0]  ;;  %v14194_v43 = vor.u32 %v16863_v27, %v14191_v36 }
 0x5a9   :  { %v17207_v13 = vld [vmem:[#allocation2 + $0xdbc] sm:$0xf0]  ;;  %v16847_v7 = vld [vmem:[#allocation2 + $0x284] sm:$0xf] }
 0x5aa   :  { %v13933_v20 = vld [vmem:[#allocation2 + $0x100] sm:$0xf]  ;;  %v15534_v3 = vor.u32 %v17207_v13, %v15533_v21  ;;  %8934 = vmatpush.bf16.msrb.mxu2 %v15022_v10  ;;  %v14706_v21 = vor.u32 %v16991_v14, %v14703_v63  ;;  %v15218_v13 = vor.u32 %v17119_v23, %v15215_v34  ;;  %v14127_v44 = vld [vmem:[#allocation2 + $0x2c0] sm:$0xf0] }
 0x5ab   :  { %v16807_v1 = vld [vmem:[#allocation2 + $0x13c] sm:$0xf0]  ;;  %v16975_v10 = vld [vmem:[#allocation2 + $0x684] sm:$0xf] }
 0x5ac   :  { %v14445_v31 = vld [vmem:[#allocation2 + $0x500] sm:$0xf]  ;;  %v13934_v54 = vor.u32 %v16807_v1, %v13933_v20  ;;  %8948 = vmatpush.bf16.msrb.mxu3 %v15534_v3  ;;  %v15730_v20 = vor.u32 %v17247_v42, %v15727_v29  ;;  %v14639_v1 = vld [vmem:[#allocation2 + $0x6c0] sm:$0xf0] }
 0x5ad   :  { %v16935_v46 = vld [vmem:[#allocation2 + $0x53c] sm:$0xf0]  ;;  %v15151_v3 = vld [vmem:[#allocation2 + $0xac0] sm:$0xf0] }
 0x5ae   :  { %v14957_v5 = vld [vmem:[#allocation2 + $0x900] sm:$0xf]  ;;  %v14446_v58 = vor.u32 %v16935_v46, %v14445_v31  ;;  %8907 = vmatpush.bf16.msrb.mxu0 %v13934_v54  ;;  %v17103_v31 = vld [vmem:[#allocation2 + $0xa84] sm:$0xf]  ;;  %v13797_v54 = vld [vmem:[#allocation6 + $0x8] sm:$0xf] }
 0x5af   :  { %v17063_v48 = vld [vmem:[#allocation2 + $0x93c] sm:$0xf0]  ;;  %v17231_v46 = vld [vmem:[#allocation2 + $0xe84] sm:$0xf] }
 0x5b0   :  { %v15469_v50 = vld [vmem:[#allocation2 + $0xd00] sm:$0xf]  ;;  %v14958_v26 = vor.u32 %v17063_v48, %v14957_v5  ;;  %8921 = vmatpush.bf16.msrb.mxu1 %v14446_v58  ;;  %v15663_v5 = vld [vmem:[#allocation2 + $0xec0] sm:$0xf0]  ;;  %v16766_v58 = vld [vmem:[#allocation6 + $0x14] sm:$0xf0] }
 0x5b1   :  { %v17191_v52 = vld [vmem:[#allocation2 + $0xd3c] sm:$0xf0]  ;;  %v16831_v48 = vld [vmem:[#allocation2 + $0x204] sm:$0xf] }
 0x5b2   :  { %v13869_v59 = vld [vmem:[#allocation2 + $0x80] sm:$0xf]  ;;  %v15470_v0 = vor.u32 %v17191_v52, %v15469_v50  ;;  %8935 = vmatpush.bf16.msrb.mxu2 %v14958_v26  ;;  %v14130_v50 = vor.u32 %v16847_v7, %v14127_v44  ;;  %v14063_v52 = vld [vmem:[#allocation2 + $0x240] sm:$0xf0]  ;;  %v14642_v26 = vor.u32 %v16975_v10, %v14639_v1 }
 0x5b3   :  { %v16791_v60 = vld [vmem:[#allocation2 + $0xbc] sm:$0xf0]  ;;  %v15023_v16 = vld [vmem:[#allocation2 + $0x9c0] sm:$0xf0] }
 0x5b4   :  { %v14381_v6 = vld [vmem:[#allocation2 + $0x480] sm:$0xf]  ;;  %v13870_v61 = vor.u32 %v16791_v60, %v13869_v59  ;;  %8949 = vmatpush.bf16.msrb.mxu3 %v15470_v0  ;;  %v15154_v59 = vor.u32 %v17103_v31, %v15151_v3  ;;  %v16959_v60 = vld [vmem:[#allocation2 + $0x604] sm:$0xf]  ;;  %v16764_v0 = vld [vmem:[#allocation6 + $0xc] sm:$0xf] }
 0x5b5   :  { %v16919_v57 = vld [vmem:[#allocation2 + $0x4bc] sm:$0xf0]  ;;  %v14447_v36 = vld [vmem:[#allocation2 + $0x540] sm:$0xf0] }
 0x5b6   :  { %v14893_v62 = vld [vmem:[#allocation2 + $0x880] sm:$0xf]  ;;  %v14382_v12 = vor.u32 %v16919_v57, %v14381_v6  ;;  %8908 = vmatpush.bf16.msrb.mxu0 %v13870_v61  ;;  %v18317_v6 = vor.u32 %v16766_v58, %v13797_v54  ;;  %v13799_v57 = vld [vmem:[#allocation6 + $0x18] sm:$0xf0]  ;;  %v17055_v14 = vld [vmem:[#allocation2 + $0x904] sm:$0xf] }
 0x5b7   :  { %v17047_v4 = vld [vmem:[#allocation2 + $0x8bc] sm:$0xf0]  ;;  %v18319_v61 = vor.u32 %v16764_v0, %v13799_v57  ;;  %v17183_v63 = vld [vmem:[#allocation2 + $0xd04] sm:$0xf]  ;;  %v14261_v57 = vld [vmem:[#allocation2 + $0x388] sm:$0xf] }
 0x5b8   :  { %v15405_v56 = vld [vmem:[#allocation2 + $0xc80] sm:$0xf]  ;;  %v14894_v9 = vor.u32 %v17047_v4, %v14893_v62  ;;  %8922 = vmatpush.bf16.msrb.mxu1 %v14382_v12  ;;  %v15666_v62 = vor.u32 %v17231_v46, %v15663_v5  ;;  %v14575_v4 = vld [vmem:[#allocation2 + $0x640] sm:$0xf0] }
 0x5b9   :  { %v17175_v51 = vld [vmem:[#allocation2 + $0xcbc] sm:$0xf0]  ;;  %v16815_v12 = vld [vmem:[#allocation2 + $0x184] sm:$0xf] }
 0x5ba   :  { %v13805_v8 = vld [vmem:[#allocation2] sm:$0xf]  ;;  %v15406_v18 = vor.u32 %v17175_v51, %v15405_v56  ;;  %8936 = vmatpush.bf16.msrb.mxu2 %v14894_v9  ;;  %v17087_v56 = vld [vmem:[#allocation2 + $0xa04] sm:$0xf]  ;;  %v14066_v9 = vor.u32 %v16831_v48, %v14063_v52 }
 0x5bb   :  { %v16775_v24 = vld [vmem:[#allocation2 + $0x3c] sm:$0xf0]  ;;  %v15087_v51 = vld [vmem:[#allocation2 + $0xa40] sm:$0xf0] }
 0x5bc   :  { %v14317_v11 = vld [vmem:[#allocation2 + $0x400] sm:$0xf]  ;;  %v13806_v55 = vor.u32 %v16775_v24, %v13805_v8  ;;  %8950 = vmatpush.bf16.msrb.mxu3 %v15406_v18  ;;  %v17215_v8 = vld [vmem:[#allocation2 + $0xe04] sm:$0xf]  ;;  %v14578_v18 = vor.u32 %v16959_v60, %v14575_v4  ;;  %v14773_v4 = vld [vmem:[#allocation2 + $0x788] sm:$0xf] }
 0x5bd   :  { %v16903_v2 = vld [vmem:[#allocation2 + $0x43c] sm:$0xf0]  ;;  %v15599_v24 = vld [vmem:[#allocation2 + $0xe40] sm:$0xf0] }
 0x5be   :  { %v14829_v17 = vld [vmem:[#allocation2 + $0x800] sm:$0xf]  ;;  %v14318_v35 = vor.u32 %v16903_v2, %v14317_v11  ;;  %8909 = vmatpush.bf16.msrb.mxu0 %v13806_v55  ;;  %v13999_v11 = vld [vmem:[#allocation2 + $0x1c0] sm:$0xf0]  ;;  %v15602_v28 = vor.u32 %v17215_v8, %v15599_v24  ;;  %v15285_v8 = vld [vmem:[#allocation2 + $0xb88] sm:$0xf] }
 0x5bf   :  { %v17031_v47 = vld [vmem:[#allocation2 + $0x83c] sm:$0xf0]  ;;  %v14511_v55 = vld [vmem:[#allocation2 + $0x5c0] sm:$0xf0]  ;;  %v14002_v37 = vor.u32 %v16815_v12, %v13999_v11  ;;  %v17144_v24 = vld [vmem:[#allocation2 + $0xbc4] sm:$0xf0] }
 0x5c0   :  { %v15341_v49 = vld [vmem:[#allocation2 + $0xc00] sm:$0xf]  ;;  %v14830_v15 = vor.u32 %v17031_v47, %v14829_v17  ;;  %8923 = vmatpush.bf16.msrb.mxu1 %v14318_v35  ;;  %v16765_v17 = vld [vmem:[#allocation6 + $0xc] sm:$0xf0]  ;;  %v15090_v47 = vor.u32 %v17087_v56, %v15087_v51  ;;  %v17199_v35 = vld [vmem:[#allocation2 + $0xd84] sm:$0xf] }
 0x5c1   :  { %v17159_v45 = vld [vmem:[#allocation2 + $0xc3c] sm:$0xf0]  ;;  %v15471_v23 = vld [vmem:[#allocation2 + $0xd40] sm:$0xf0]  ;;  %v17016_v51 = vld [vmem:[#allocation2 + $0x7c4] sm:$0xf0] }
 0x5c2   :  { %v15342_v39 = vor.u32 %v17159_v45, %v15341_v49  ;;  %8937 = vmatpush.bf16.msrb.mxu2 %v14830_v15  ;;  %8958 = vmatpush.bf16.msra.mxu0 %v14258_v40  ;;  %v13789_v2 = vld [vmem:[#allocation6] sm:$0xf]  ;;  %v16943_v49 = vld [vmem:[#allocation2 + $0x584] sm:$0xf]  ;;  %v15474_v7 = vor.u32 %v17183_v63, %v15471_v23  ;;  %v15797_v11 = vld [vmem:[#allocation2 + $0xf88] sm:$0xf] }
 0x5c3   :  { %v18323_v45 = vor.u32 %v16765_v17, %v13789_v2  ;;  %v15535_v15 = vld [vmem:[#allocation2 + $0xdc0] sm:$0xf0]  ;;  %8924 = vmatmul.bf16.vlgmr.msrb.gmra.mxu1 %v18325_v32  ;;  %v14514_v38 = vor.u32 %v16943_v49, %v14511_v55  ;;  %v17272_v2 = vld [vmem:[#allocation2 + $0xfc4] sm:$0xf0]  ;;  %v15286_v49 = vor.u32 %v17144_v24, %v15285_v8 }
 0x5c4   :  { %8951 = vmatpush.bf16.msrb.mxu3 %v15342_v39  ;;  %8972 = vmatpush.bf16.msra.mxu1 %v14770_v33  ;;  %v15026_v39 = vor.u32 %v17071_v25, %v15023_v16  ;;  %v16799_v40 = vld [vmem:[#allocation2 + $0x104] sm:$0xf]  ;;  %v15538_v27 = vor.u32 %v17199_v35, %v15535_v15  ;;  %v15798_v55 = vor.u32 %v17272_v2, %v15797_v11  ;;  %v17000_v25 = vld [vmem:[#allocation2 + $0x744] sm:$0xf0] }
 0x5c5   :  { %8938 = vmatmul.bf16.vlgmr.msrb.gmra.mxu2 %v18317_v6  ;;  %8910 = vmatmul.bf16.vlgmr.msrb.gmra.mxu0 %v18323_v45  ;;  %v13935_v33 = vld [vmem:[#allocation2 + $0x140] sm:$0xf0]  ;;  %v15221_v16 = vld [vmem:[#allocation2 + $0xb08] sm:$0xf] }
 0x5c6   :  { %8986 = vmatpush.bf16.msra.mxu2 %v15282_v41  ;;  %8959 = vmatpush.bf16.msra.mxu0 %v14194_v43  ;;  %v16927_v41 = vld [vmem:[#allocation2 + $0x504] sm:$0xf]  ;;  %v13938_v34 = vor.u32 %v16799_v40, %v13935_v33  ;;  %v17128_v35 = vld [vmem:[#allocation2 + $0xb44] sm:$0xf0] }
 0x5c7   :  { %8952 = vmatmul.bf16.vlgmr.msrb.gmra.mxu3 %v18319_v61  ;;  %v14450_v42 = vor.u32 %v16927_v41, %v14447_v36  ;;  %v16783_v43 = vld [vmem:[#allocation2 + $0x84] sm:$0xf]  ;;  %v15733_v15 = vld [vmem:[#allocation2 + $0xf08] sm:$0xf]  ;;  %v15222_v40 = vor.u32 %v17128_v35, %v15221_v16 }
 0x5c8   :  { %9000 = vmatpush.bf16.msra.mxu3 %v15794_v30  ;;  %8973 = vmatpush.bf16.msra.mxu1 %v14706_v21  ;;  %v14959_v30 = vld [vmem:[#allocation2 + $0x940] sm:$0xf0]  ;;  %v14133_v33 = vld [vmem:[#allocation2 + $0x288] sm:$0xf] }
 0x5c9   :  { %v14962_v29 = vor.u32 %v17055_v14, %v14959_v30  ;;  %v13871_v21 = vld [vmem:[#allocation2 + $0xc0] sm:$0xf0]  ;;  %v16856_v41 = vld [vmem:[#allocation2 + $0x2c4] sm:$0xf0] }
 0x5ca   :  { %8987 = vmatpush.bf16.msra.mxu2 %v15218_v13  ;;  %8960 = vmatpush.bf16.msra.mxu0 %v14130_v50  ;;  %v16911_v13 = vld [vmem:[#allocation2 + $0x484] sm:$0xf]  ;;  %v13874_v3 = vor.u32 %v16783_v43, %v13871_v21  ;;  %v16984_v14 = vld [vmem:[#allocation2 + $0x6c4] sm:$0xf0] }
 0x5cb   :  { %v14383_v44 = vld [vmem:[#allocation2 + $0x4c0] sm:$0xf0]  ;;  %v15157_v30 = vld [vmem:[#allocation2 + $0xa88] sm:$0xf] }
 0x5cc   :  { %9001 = vmatpush.bf16.msra.mxu3 %v15730_v20  ;;  %8974 = vmatpush.bf16.msra.mxu1 %v14642_v26  ;;  %v17039_v10 = vld [vmem:[#allocation2 + $0x884] sm:$0xf]  ;;  %v14386_v48 = vor.u32 %v16911_v13, %v14383_v44  ;;  %v17112_v63 = vld [vmem:[#allocation2 + $0xac4] sm:$0xf0] }
 0x5cd   :  { %v14895_v20 = vld [vmem:[#allocation2 + $0x8c0] sm:$0xf0]  ;;  %v15669_v23 = vld [vmem:[#allocation2 + $0xe88] sm:$0xf]  ;;  %v15158_v43 = vor.u32 %v17112_v63, %v15157_v30 }
 0x5ce   :  { %8988 = vmatpush.bf16.msra.mxu2 %v15154_v59  ;;  %8961 = vmatpush.bf16.msra.mxu0 %v14066_v9  ;;  %v17167_v1 = vld [vmem:[#allocation2 + $0xc84] sm:$0xf]  ;;  %v14898_v50 = vor.u32 %v17039_v10, %v14895_v20  ;;  %v14069_v21 = vld [vmem:[#allocation2 + $0x208] sm:$0xf] }
 0x5cf   :  { %v15407_v31 = vld [vmem:[#allocation2 + $0xcc0] sm:$0xf0]  ;;  %v16840_v13 = vld [vmem:[#allocation2 + $0x244] sm:$0xf0] }
 0x5d0   :  { %9002 = vmatpush.bf16.msra.mxu3 %v15666_v62  ;;  %8975 = vmatpush.bf16.msra.mxu1 %v14578_v18  ;;  %v16767_v46 = vld [vmem:[#allocation2 + $0x4] sm:$0xf]  ;;  %v15410_v26 = vor.u32 %v17167_v1, %v15407_v31  ;;  %v16888_v62 = vld [vmem:[#allocation2 + $0x3c4] sm:$0xf0] }
 0x5d1   :  { %v13807_v5 = vld [vmem:[#allocation2 + $0x40] sm:$0xf0]  ;;  %v14262_v18 = vor.u32 %v16888_v62, %v14261_v57  ;;  %v16968_v10 = vld [vmem:[#allocation2 + $0x644] sm:$0xf0] }
 0x5d2   :  { %8989 = vmatpush.bf16.msra.mxu2 %v15090_v47  ;;  %8962 = vmatpush.bf16.msra.mxu0 %v14002_v37  ;;  %v16895_v52 = vld [vmem:[#allocation2 + $0x404] sm:$0xf]  ;;  %v13810_v56 = vor.u32 %v16767_v46, %v13807_v5  ;;  %v14774_v47 = vor.u32 %v17016_v51, %v14773_v4  ;;  %v17256_v37 = vld [vmem:[#allocation2 + $0xf44] sm:$0xf0]  ;;  %v14070_v46 = vor.u32 %v16840_v13, %v14069_v21  ;;  %v17008_v21 = vld [vmem:[#allocation2 + $0x78c] sm:$0xf] }
 0x5d3   :  { %v14319_v54 = vld [vmem:[#allocation2 + $0x440] sm:$0xf0]  ;;  %v15734_v36 = vor.u32 %v17256_v37, %v15733_v15  ;;  %v15093_v20 = vld [vmem:[#allocation2 + $0xa08] sm:$0xf] }
 0x5d4   :  { %9003 = vmatpush.bf16.msra.mxu3 %v15602_v28  ;;  %8976 = vmatpush.bf16.msra.mxu1 %v14514_v38  ;;  %v17023_v58 = vld [vmem:[#allocation2 + $0x804] sm:$0xf]  ;;  %v14322_v12 = vor.u32 %v16895_v52, %v14319_v54  ;;  %v14709_v28 = vld [vmem:[#allocation2 + $0x708] sm:$0xf]  ;;  %v14198_v38 = vor.u32 %v16872_v22, %v14197_v19 }
 0x5d5   :  { %v14831_v59 = vld [vmem:[#allocation2 + $0x840] sm:$0xf0]  ;;  %v17096_v1 = vld [vmem:[#allocation2 + $0xa44] sm:$0xf0] }
 0x5d6   :  { %8990 = vmatpush.bf16.msra.mxu2 %v15026_v39  ;;  %8963 = vmatpush.bf16.msra.mxu0 %v13938_v34  ;;  %v17151_v60 = vld [vmem:[#allocation2 + $0xc04] sm:$0xf]  ;;  %v14834_v9 = vor.u32 %v17023_v58, %v14831_v59  ;;  %v14710_v39 = vor.u32 %v17000_v25, %v14709_v28  ;;  %v17240_v34 = vld [vmem:[#allocation2 + $0xec4] sm:$0xf0] }
 0x5d7   :  { %v15343_v0 = vld [vmem:[#allocation2 + $0xc40] sm:$0xf0]  ;;  %v15670_v44 = vor.u32 %v17240_v34, %v15669_v23  ;;  %v15605_v31 = vld [vmem:[#allocation2 + $0xe08] sm:$0xf] }
 0x5d8   :  { %9004 = vmatpush.bf16.msra.mxu3 %v15538_v27  ;;  %8977 = vmatpush.bf16.msra.mxu1 %v14450_v42  ;;  %v15346_v17 = vor.u32 %v17151_v60, %v15343_v0  ;;  %v14645_v27 = vld [vmem:[#allocation2 + $0x688] sm:$0xf]  ;;  %v14134_v42 = vor.u32 %v16856_v41, %v14133_v33 }
 0x5d9   :  { %v16824_v52 = vld [vmem:[#allocation2 + $0x1c4] sm:$0xf0] }
 0x5da   :  { %8991 = vmatpush.bf16.msra.mxu2 %v14962_v29  ;;  %8964 = vmatpush.bf16.msra.mxu0 %v13874_v3  ;;  %v14646_v29 = vor.u32 %v16984_v14, %v14645_v27  ;;  %v17224_v3 = vld [vmem:[#allocation2 + $0xe44] sm:$0xf0] }
 0x5db   :  { %v14517_v54 = vld [vmem:[#allocation2 + $0x588] sm:$0xf]  ;;  %v15606_v58 = vor.u32 %v17224_v3, %v15605_v31  ;;  %v17264_v31 = vld [vmem:[#allocation2 + $0xf8c] sm:$0xf] }
 0x5dc   :  { %9005 = vmatpush.bf16.msra.mxu3 %v15474_v7  ;;  %8978 = vmatpush.bf16.msra.mxu1 %v14386_v48  ;;  %v14581_v7 = vld [vmem:[#allocation2 + $0x608] sm:$0xf]  ;;  %v15094_v48 = vor.u32 %v17096_v1, %v15093_v20  ;;  %v15799_v3 = vld [vmem:[#allocation2 + $0xfc8] sm:$0xf0] }
 0x5dd   :  { %v14582_v5 = vor.u32 %v16968_v10, %v14581_v7  ;;  %v15029_v59 = vld [vmem:[#allocation2 + $0x988] sm:$0xf]  ;;  %v14775_v7 = vld [vmem:[#allocation2 + $0x7c8] sm:$0xf0] }
 0x5de   :  { %8992 = vmatpush.bf16.msra.mxu2 %v14898_v50  ;;  %8965 = vmatpush.bf16.msra.mxu0 %v13810_v56  ;;  %v14005_v50 = vld [vmem:[#allocation2 + $0x188] sm:$0xf]  ;;  %v15287_v10 = vld [vmem:[#allocation2 + $0xbc8] sm:$0xf0] }
 0x5df   :  { %v17080_v60 = vld [vmem:[#allocation2 + $0x9c4] sm:$0xf0]  ;;  %v14006_v62 = vor.u32 %v16824_v52, %v14005_v50  ;;  %v16864_v52 = vld [vmem:[#allocation2 + $0x30c] sm:$0xf] }
 0x5e0   :  { %9006 = vmatpush.bf16.msra.mxu3 %v15410_v26  ;;  %8979 = vmatpush.bf16.msra.mxu1 %v14322_v12  ;;  %v16952_v26 = vld [vmem:[#allocation2 + $0x5c4] sm:$0xf0]  ;;  %v15030_v56 = vor.u32 %v17080_v60, %v15029_v59  ;;  %v14711_v59 = vld [vmem:[#allocation2 + $0x748] sm:$0xf0] }
 0x5e1   :  { %8966 = vmatmul.bf16.vlgmr.msra.gmra.mxu0 %v18323_v45  ;;  %v15541_v0 = vld [vmem:[#allocation2 + $0xd88] sm:$0xf]  ;;  %v14518_v4 = vor.u32 %v16952_v26, %v14517_v54  ;;  %v14199_v54 = vld [vmem:[#allocation2 + $0x348] sm:$0xf0]  ;;  %v15802_v26 = vor.u32 %v17264_v31, %v15799_v3 }
 0x5e2   :  { %8993 = vmatpush.bf16.msra.mxu2 %v14834_v9  ;;  %9014 = vmatpush.bf16.msrb.mxu0 %v14262_v18  ;;  %v17208_v57 = vld [vmem:[#allocation2 + $0xdc4] sm:$0xf0]  ;;  %v17120_v60 = vld [vmem:[#allocation2 + $0xb0c] sm:$0xf] }
 0x5e3   :  { %8980 = vmatmul.bf16.vlgmr.msra.gmra.mxu1 %v18325_v32  ;;  %v13941_v51 = vld [vmem:[#allocation2 + $0x108] sm:$0xf]  ;;  %v15542_v12 = vor.u32 %v17208_v57, %v15541_v0  ;;  %v15223_v0 = vld [vmem:[#allocation2 + $0xb48] sm:$0xf0] }
 0x5e4   :  { %9007 = vmatpush.bf16.msra.mxu3 %v15346_v17  ;;  %9028 = vmatpush.bf16.msrb.mxu1 %v14774_v47  ;;  %v16808_v8 = vld [vmem:[#allocation2 + $0x144] sm:$0xf0]  ;;  %v17248_v57 = vld [vmem:[#allocation2 + $0xf0c] sm:$0xf] }
 0x5e5   :  { %8994 = vmatmul.bf16.vlgmr.msra.gmra.mxu2 %v18317_v6  ;;  %v14453_v24 = vld [vmem:[#allocation2 + $0x508] sm:$0xf]  ;;  %v13942_v47 = vor.u32 %v16808_v8, %v13941_v51  ;;  %v15226_v51 = vor.u32 %v17120_v60, %v15223_v0  ;;  %v16848_v8 = vld [vmem:[#allocation2 + $0x28c] sm:$0xf] }
 0x5e6   :  { %9042 = vmatpush.bf16.msrb.mxu2 %v15286_v49  ;;  %9015 = vmatpush.bf16.msrb.mxu0 %v14198_v38  ;;  %v16936_v9 = vld [vmem:[#allocation2 + $0x544] sm:$0xf0]  ;;  %v17056_v31 = vld [vmem:[#allocation2 + $0x90c] sm:$0xf] }
 0x5e7   :  { %9008 = vmatmul.bf16.vlgmr.msra.gmra.mxu3 %v18319_v61  ;;  %v14965_v11 = vld [vmem:[#allocation2 + $0x908] sm:$0xf]  ;;  %v14454_v49 = vor.u32 %v16936_v9, %v14453_v24  ;;  %v14135_v24 = vld [vmem:[#allocation2 + $0x2c8] sm:$0xf0] }
 0x5e8   :  { %9056 = vmatpush.bf16.msrb.mxu3 %v15798_v55  ;;  %9029 = vmatpush.bf16.msrb.mxu1 %v14710_v39  ;;  %v17064_v2 = vld [vmem:[#allocation2 + $0x944] sm:$0xf0]  ;;  %v14967_v3 = vld [vmem:[#allocation2 + $0x948] sm:$0xf0] }
 0x5e9   :  { %v15477_v17 = vld [vmem:[#allocation2 + $0xd08] sm:$0xf]  ;;  %v14966_v19 = vor.u32 %v17064_v2, %v14965_v11  ;;  %v14647_v11 = vld [vmem:[#allocation2 + $0x6c8] sm:$0xf0] }
 0x5ea   :  { %9043 = vmatpush.bf16.msrb.mxu2 %v15222_v40  ;;  %9016 = vmatpush.bf16.msrb.mxu0 %v14134_v42  ;;  %v17192_v18 = vld [vmem:[#allocation2 + $0xd44] sm:$0xf0]  ;;  %v17104_v2 = vld [vmem:[#allocation2 + $0xa8c] sm:$0xf] }
 0x5eb   :  { %v13877_v22 = vld [vmem:[#allocation2 + $0x88] sm:$0xf]  ;;  %v15478_v25 = vor.u32 %v17192_v18, %v15477_v17  ;;  %v15159_v17 = vld [vmem:[#allocation2 + $0xac8] sm:$0xf0] }
 0x5ec   :  { %9057 = vmatpush.bf16.msrb.mxu3 %v15734_v36  ;;  %9030 = vmatpush.bf16.msrb.mxu1 %v14646_v29  ;;  %v16792_v28 = vld [vmem:[#allocation2 + $0xc4] sm:$0xf0]  ;;  %v16880_v29 = vld [vmem:[#allocation2 + $0x38c] sm:$0xf] }
 0x5ed   :  { %v14389_v55 = vld [vmem:[#allocation2 + $0x488] sm:$0xf]  ;;  %v13878_v39 = vor.u32 %v16792_v28, %v13877_v22  ;;  %v17232_v18 = vld [vmem:[#allocation2 + $0xe8c] sm:$0xf]  ;;  %v15162_v22 = vor.u32 %v17104_v2, %v15159_v17 }
 0x5ee   :  { %9044 = vmatpush.bf16.msrb.mxu2 %v15158_v43  ;;  %9017 = vmatpush.bf16.msrb.mxu0 %v14070_v46  ;;  %v16920_v16 = vld [vmem:[#allocation2 + $0x4c4] sm:$0xf0]  ;;  %v14263_v43 = vld [vmem:[#allocation2 + $0x3c8] sm:$0xf0] }
 0x5ef   :  { %v14901_v35 = vld [vmem:[#allocation2 + $0x888] sm:$0xf]  ;;  %v14390_v41 = vor.u32 %v16920_v16, %v14389_v55  ;;  %v16832_v28 = vld [vmem:[#allocation2 + $0x20c] sm:$0xf] }
 0x5f0   :  { %9058 = vmatpush.bf16.msrb.mxu3 %v15670_v44  ;;  %9031 = vmatpush.bf16.msrb.mxu1 %v14582_v5  ;;  %v17048_v15 = vld [vmem:[#allocation2 + $0x8c4] sm:$0xf0]  ;;  %v17136_v44 = vld [vmem:[#allocation2 + $0xb8c] sm:$0xf]  ;;  %v14266_v5 = vor.u32 %v16880_v29, %v14263_v43 }
 0x5f1   :  { %v15413_v37 = vld [vmem:[#allocation2 + $0xc88] sm:$0xf]  ;;  %v14902_v27 = vor.u32 %v17048_v15, %v14901_v35  ;;  %v15290_v50 = vor.u32 %v17136_v44, %v15287_v10  ;;  %v14071_v55 = vld [vmem:[#allocation2 + $0x248] sm:$0xf0] }
 0x5f2   :  { %9045 = vmatpush.bf16.msrb.mxu2 %v15094_v48  ;;  %9018 = vmatpush.bf16.msrb.mxu0 %v14006_v62  ;;  %v17176_v38 = vld [vmem:[#allocation2 + $0xcc4] sm:$0xf0]  ;;  %v14778_v48 = vor.u32 %v17008_v21, %v14775_v7  ;;  %v15735_v62 = vld [vmem:[#allocation2 + $0xf48] sm:$0xf0] }
 0x5f3   :  { %v13813_v40 = vld [vmem:[#allocation2 + $0x8] sm:$0xf]  ;;  %v15414_v63 = vor.u32 %v17176_v38, %v15413_v37  ;;  %v15738_v9 = vor.u32 %v17248_v57, %v15735_v62  ;;  %v14583_v35 = vld [vmem:[#allocation2 + $0x648] sm:$0xf0] }
 0x5f4   :  { %9059 = vmatpush.bf16.msrb.mxu3 %v15606_v58  ;;  %9032 = vmatpush.bf16.msrb.mxu1 %v14518_v4  ;;  %v16776_v33 = vld [vmem:[#allocation2 + $0x44] sm:$0xf0]  ;;  %v16992_v58 = vld [vmem:[#allocation2 + $0x70c] sm:$0xf]  ;;  %v14202_v4 = vor.u32 %v16864_v52, %v14199_v54  ;;  %v14970_v52 = vor.u32 %v17056_v31, %v14967_v3  ;;  %v16985_v31 = vld [vmem:[#allocation2 + $0x6cc] sm:$0xf0] }
 0x5f5   :  { %v14325_v36 = vld [vmem:[#allocation2 + $0x408] sm:$0xf]  ;;  %v13814_v13 = vor.u32 %v16776_v33, %v13813_v40  ;;  %v17088_v15 = vld [vmem:[#allocation2 + $0xa0c] sm:$0xf]  ;;  %v14074_v40 = vor.u32 %v16832_v28, %v14071_v55  ;;  %v14781_v28 = vld [vmem:[#allocation2 + $0x790] sm:$0xf] }
 0x5f6   :  { %9046 = vmatpush.bf16.msrb.mxu2 %v15030_v56  ;;  %9019 = vmatpush.bf16.msrb.mxu0 %v13942_v47  ;;  %v16904_v14 = vld [vmem:[#allocation2 + $0x444] sm:$0xf0]  ;;  %v14714_v56 = vor.u32 %v16992_v58, %v14711_v59  ;;  %v15671_v47 = vld [vmem:[#allocation2 + $0xec8] sm:$0xf0]  ;;  %v15165_v3 = vld [vmem:[#allocation2 + $0xa90] sm:$0xf] }
 0x5f7   :  { %v14837_v30 = vld [vmem:[#allocation2 + $0x808] sm:$0xf]  ;;  %v14326_v20 = vor.u32 %v16904_v14, %v14325_v36  ;;  %v15674_v16 = vor.u32 %v17232_v18, %v15671_v47  ;;  %v15095_v37 = vld [vmem:[#allocation2 + $0xa48] sm:$0xf0] }
 0x5f8   :  { %9060 = vmatpush.bf16.msrb.mxu3 %v15542_v12  ;;  %9033 = vmatpush.bf16.msrb.mxu1 %v14454_v49  ;;  %v17032_v23 = vld [vmem:[#allocation2 + $0x844] sm:$0xf0]  ;;  %v16976_v12 = vld [vmem:[#allocation2 + $0x68c] sm:$0xf]  ;;  %v14138_v49 = vor.u32 %v16848_v8, %v14135_v24 }
 0x5f9   :  { %v15349_v34 = vld [vmem:[#allocation2 + $0xc08] sm:$0xf]  ;;  %v14838_v1 = vor.u32 %v17032_v23, %v14837_v30  ;;  %v17216_v38 = vld [vmem:[#allocation2 + $0xe0c] sm:$0xf] }
 0x5fa   :  { %9047 = vmatpush.bf16.msrb.mxu2 %v14966_v19  ;;  %v17160_v42 = vld [vmem:[#allocation2 + $0xc44] sm:$0xf0]  ;;  %9020 = vmatpush.bf16.msrb.mxu0 %v13878_v39  ;;  %v14650_v19 = vor.u32 %v16976_v12, %v14647_v11  ;;  %v15607_v39 = vld [vmem:[#allocation2 + $0xe48] sm:$0xf0] }
 0x5fb   :  { %v15350_v46 = vor.u32 %v17160_v42, %v15349_v34  ;;  %v14007_v36 = vld [vmem:[#allocation2 + $0x1c8] sm:$0xf0]  ;;  %v15610_v30 = vor.u32 %v17216_v38, %v15607_v39  ;;  %v15805_v38 = vld [vmem:[#allocation2 + $0xf90] sm:$0xf] }
 0x5fc   :  { %9061 = vmatpush.bf16.msrb.mxu3 %v15478_v25  ;;  %9034 = vmatpush.bf16.msrb.mxu1 %v14390_v41  ;;  %v16960_v25 = vld [vmem:[#allocation2 + $0x60c] sm:$0xf]  ;;  %v15098_v41 = vor.u32 %v17088_v15, %v15095_v37  ;;  %v17273_v39 = vld [vmem:[#allocation2 + $0xfcc] sm:$0xf0] }
 0x5fd   :  { %v14586_v33 = vor.u32 %v16960_v25, %v14583_v35  ;;  %v16944_v14 = vld [vmem:[#allocation2 + $0x58c] sm:$0xf]  ;;  %v17017_v25 = vld [vmem:[#allocation2 + $0x7cc] sm:$0xf0] }
 0x5fe   :  { %9048 = vmatpush.bf16.msrb.mxu2 %v14902_v27  ;;  %9021 = vmatpush.bf16.msrb.mxu0 %v13814_v13  ;;  %v16816_v27 = vld [vmem:[#allocation2 + $0x18c] sm:$0xf]  ;;  %v17145_v35 = vld [vmem:[#allocation2 + $0xbcc] sm:$0xf0] }
 0x5ff   :  { %v17072_v23 = vld [vmem:[#allocation2 + $0x98c] sm:$0xf]  ;;  %v14010_v43 = vor.u32 %v16816_v27, %v14007_v36  ;;  %v14205_v36 = vld [vmem:[#allocation2 + $0x310] sm:$0xf] }
 0x600   :  { %9062 = vmatpush.bf16.msrb.mxu3 %v15414_v63  ;;  %9035 = vmatpush.bf16.msrb.mxu1 %v14326_v20  ;;  %v14519_v63 = vld [vmem:[#allocation2 + $0x5c8] sm:$0xf0] }
 0x601   :  { %9022 = vmatmul.bf16.vlgmr.msrb.gmra.mxu0 %v18323_v45  ;;  %v15031_v34 = vld [vmem:[#allocation2 + $0x9c8] sm:$0xf0]  ;;  %v14522_v21 = vor.u32 %v16944_v14, %v14519_v63  ;;  %v16873_v14 = vld [vmem:[#allocation2 + $0x34c] sm:$0xf0]  ;;  %v15806_v63 = vor.u32 %v17273_v39, %v15805_v38 }
 0x602   :  { %9049 = vmatpush.bf16.msrb.mxu2 %v14838_v1  ;;  %9070 = vmatpush.bf16.msra.mxu0 %v14266_v5  ;;  %v17200_v42 = vld [vmem:[#allocation2 + $0xd8c] sm:$0xf]  ;;  %v15034_v13 = vor.u32 %v17072_v23, %v15031_v34  ;;  %v17001_v23 = vld [vmem:[#allocation2 + $0x74c] sm:$0xf0] }
 0x603   :  { %9036 = vmatmul.bf16.vlgmr.msrb.gmra.mxu1 %v18325_v32  ;;  %v15543_v29 = vld [vmem:[#allocation2 + $0xdc8] sm:$0xf0]  ;;  %v15229_v34 = vld [vmem:[#allocation2 + $0xb10] sm:$0xf] }
 0x604   :  { %9063 = vmatpush.bf16.msrb.mxu3 %v15350_v46  ;;  %9084 = vmatpush.bf16.msra.mxu1 %v14778_v48  ;;  %v16800_v7 = vld [vmem:[#allocation2 + $0x10c] sm:$0xf]  ;;  %v15546_v20 = vor.u32 %v17200_v42, %v15543_v29  ;;  %v17129_v42 = vld [vmem:[#allocation2 + $0xb4c] sm:$0xf0] }
 0x605   :  { %9050 = vmatmul.bf16.vlgmr.msrb.gmra.mxu2 %v18317_v6  ;;  %v13943_v44 = vld [vmem:[#allocation2 + $0x148] sm:$0xf0]  ;;  %v15741_v29 = vld [vmem:[#allocation2 + $0xf10] sm:$0xf] }
 0x606   :  { %9098 = vmatpush.bf16.msra.mxu2 %v15290_v50  ;;  %9071 = vmatpush.bf16.msra.mxu0 %v14202_v4  ;;  %v16928_v10 = vld [vmem:[#allocation2 + $0x50c] sm:$0xf]  ;;  %v13946_v48 = vor.u32 %v16800_v7, %v13943_v44  ;;  %v15230_v7 = vor.u32 %v17129_v42, %v15229_v34  ;;  %v14141_v44 = vld [vmem:[#allocation2 + $0x290] sm:$0xf] }
 0x607   :  { %9064 = vmatmul.bf16.vlgmr.msrb.gmra.mxu3 %v18319_v61  ;;  %v14455_v1 = vld [vmem:[#allocation2 + $0x548] sm:$0xf0]  ;;  %v14973_v38 = vld [vmem:[#allocation2 + $0x910] sm:$0xf] }
 0x608   :  { %9112 = vmatpush.bf16.msra.mxu3 %v15802_v26  ;;  %9085 = vmatpush.bf16.msra.mxu1 %v14714_v56  ;;  %v17184_v46 = vld [vmem:[#allocation2 + $0xd0c] sm:$0xf]  ;;  %v14458_v50 = vor.u32 %v16928_v10, %v14455_v1  ;;  %v16857_v10 = vld [vmem:[#allocation2 + $0x2cc] sm:$0xf0] }
 0x609   :  { %v15479_v5 = vld [vmem:[#allocation2 + $0xd48] sm:$0xf0]  ;;  %v17065_v39 = vld [vmem:[#allocation2 + $0x94c] sm:$0xf0] }
 0x60a   :  { %9099 = vmatpush.bf16.msra.mxu2 %v15226_v51  ;;  %9072 = vmatpush.bf16.msra.mxu0 %v14138_v49  ;;  %v16784_v54 = vld [vmem:[#allocation2 + $0x8c] sm:$0xf]  ;;  %v15482_v59 = vor.u32 %v17184_v46, %v15479_v5  ;;  %v17113_v46 = vld [vmem:[#allocation2 + $0xacc] sm:$0xf0] }
 0x60b   :  { %v13879_v58 = vld [vmem:[#allocation2 + $0xc8] sm:$0xf0]  ;;  %v15677_v5 = vld [vmem:[#allocation2 + $0xe90] sm:$0xf] }
 0x60c   :  { %9113 = vmatpush.bf16.msra.mxu3 %v15738_v9  ;;  %9086 = vmatpush.bf16.msra.mxu1 %v14650_v19  ;;  %v16912_v26 = vld [vmem:[#allocation2 + $0x48c] sm:$0xf]  ;;  %v13882_v56 = vor.u32 %v16784_v54, %v13879_v58  ;;  %v14269_v19 = vld [vmem:[#allocation2 + $0x390] sm:$0xf]  ;;  %v15166_v54 = vor.u32 %v17113_v46, %v15165_v3 }
 0x60d   :  { %v14391_v60 = vld [vmem:[#allocation2 + $0x4c8] sm:$0xf0]  ;;  %v14077_v58 = vld [vmem:[#allocation2 + $0x210] sm:$0xf] }
 0x60e   :  { %9100 = vmatpush.bf16.msra.mxu2 %v15162_v22  ;;  %9073 = vmatpush.bf16.msra.mxu0 %v14074_v40  ;;  %v17040_v0 = vld [vmem:[#allocation2 + $0x88c] sm:$0xf]  ;;  %v14394_v24 = vor.u32 %v16912_v26, %v14391_v60  ;;  %v16889_v22 = vld [vmem:[#allocation2 + $0x3cc] sm:$0xf0] }
 0x60f   :  { %v14903_v57 = vld [vmem:[#allocation2 + $0x8c8] sm:$0xf0]  ;;  %v16841_v26 = vld [vmem:[#allocation2 + $0x24c] sm:$0xf0] }
 0x610   :  { %9114 = vmatpush.bf16.msra.mxu3 %v15674_v16  ;;  %9087 = vmatpush.bf16.msra.mxu1 %v14586_v33  ;;  %v17168_v62 = vld [vmem:[#allocation2 + $0xc8c] sm:$0xf]  ;;  %v14906_v12 = vor.u32 %v17040_v0, %v14903_v57  ;;  %v15293_v16 = vld [vmem:[#allocation2 + $0xb90] sm:$0xf]  ;;  %v14270_v33 = vor.u32 %v16889_v22, %v14269_v19 }
 0x611   :  { %v15415_v4 = vld [vmem:[#allocation2 + $0xcc8] sm:$0xf0]  ;;  %v15294_v27 = vor.u32 %v17145_v35, %v15293_v16  ;;  %v16969_v0 = vld [vmem:[#allocation2 + $0x64c] sm:$0xf0] }
 0x612   :  { %9101 = vmatpush.bf16.msra.mxu2 %v15098_v41  ;;  %9074 = vmatpush.bf16.msra.mxu0 %v14010_v43  ;;  %v16768_v51 = vld [vmem:[#allocation2 + $0xc] sm:$0xf]  ;;  %v15418_v17 = vor.u32 %v17168_v62, %v15415_v4  ;;  %v14782_v41 = vor.u32 %v17017_v25, %v14781_v28  ;;  %v17257_v43 = vld [vmem:[#allocation2 + $0xf4c] sm:$0xf0] }
 0x613   :  { %v13815_v8 = vld [vmem:[#allocation2 + $0x48] sm:$0xf0]  ;;  %v15742_v1 = vor.u32 %v17257_v43, %v15741_v29  ;;  %v15101_v57 = vld [vmem:[#allocation2 + $0xa10] sm:$0xf] }
 0x614   :  { %9115 = vmatpush.bf16.msra.mxu3 %v15610_v30  ;;  %9088 = vmatpush.bf16.msra.mxu1 %v14522_v21  ;;  %v16896_v9 = vld [vmem:[#allocation2 + $0x40c] sm:$0xf]  ;;  %v13818_v55 = vor.u32 %v16768_v51, %v13815_v8  ;;  %v14717_v30 = vld [vmem:[#allocation2 + $0x710] sm:$0xf]  ;;  %v14206_v21 = vor.u32 %v16873_v14, %v14205_v36  ;;  %v14078_v51 = vor.u32 %v16841_v26, %v14077_v58  ;;  %v17009_v58 = vld [vmem:[#allocation2 + $0x794] sm:$0xf] }
 0x615   :  { %v14327_v11 = vld [vmem:[#allocation2 + $0x448] sm:$0xf0]  ;;  %v17097_v62 = vld [vmem:[#allocation2 + $0xa4c] sm:$0xf0]  ;;  %v14974_v36 = vor.u32 %v17065_v39, %v14973_v38  ;;  %v14655_v38 = vld [vmem:[#allocation2 + $0x6d0] sm:$0xf0] }
 0x616   :  { %9102 = vmatpush.bf16.msra.mxu2 %v15034_v13  ;;  %9075 = vmatpush.bf16.msra.mxu0 %v13946_v48  ;;  %v17024_v2 = vld [vmem:[#allocation2 + $0x80c] sm:$0xf]  ;;  %v14330_v15 = vor.u32 %v16896_v9, %v14327_v11  ;;  %v14718_v13 = vor.u32 %v17001_v23, %v14717_v30  ;;  %v17241_v48 = vld [vmem:[#allocation2 + $0xecc] sm:$0xf0]  ;;  %v17105_v39 = vld [vmem:[#allocation2 + $0xa94] sm:$0xf] }
 0x617   :  { %v14839_v18 = vld [vmem:[#allocation2 + $0x848] sm:$0xf0]  ;;  %v15678_v60 = vor.u32 %v17241_v48, %v15677_v5  ;;  %v15613_v4 = vld [vmem:[#allocation2 + $0xe10] sm:$0xf] }
 0x618   :  { %9116 = vmatpush.bf16.msra.mxu3 %v15546_v20  ;;  %9089 = vmatpush.bf16.msra.mxu1 %v14458_v50  ;;  %v17152_v47 = vld [vmem:[#allocation2 + $0xc0c] sm:$0xf]  ;;  %v14842_v37 = vor.u32 %v17024_v2, %v14839_v18  ;;  %v14653_v20 = vld [vmem:[#allocation2 + $0x690] sm:$0xf]  ;;  %v14142_v50 = vor.u32 %v16857_v10, %v14141_v44 }
 0x619   :  { %v15351_v49 = vld [vmem:[#allocation2 + $0xc48] sm:$0xf0]  ;;  %v16825_v9 = vld [vmem:[#allocation2 + $0x1cc] sm:$0xf0] }
 0x61a   :  { %9103 = vmatpush.bf16.msra.mxu2 %v14970_v52  ;;  %9076 = vmatpush.bf16.msra.mxu0 %v13882_v56  ;;  %v15354_v40 = vor.u32 %v17152_v47, %v15351_v49  ;;  %v14654_v52 = vor.u32 %v16985_v31, %v14653_v20  ;;  %v17225_v56 = vld [vmem:[#allocation2 + $0xe4c] sm:$0xf0] }
 0x61b   :  { %v14525_v11 = vld [vmem:[#allocation2 + $0x590] sm:$0xf]  ;;  %v15614_v2 = vor.u32 %v17225_v56, %v15613_v4  ;;  %v17265_v4 = vld [vmem:[#allocation2 + $0xf94] sm:$0xf] }
 0x61c   :  { %9117 = vmatpush.bf16.msra.mxu3 %v15482_v59  ;;  %9090 = vmatpush.bf16.msra.mxu1 %v14394_v24  ;;  %v14589_v59 = vld [vmem:[#allocation2 + $0x610] sm:$0xf]  ;;  %v15102_v24 = vor.u32 %v17097_v62, %v15101_v57  ;;  %v15807_v56 = vld [vmem:[#allocation2 + $0xfd0] sm:$0xf0] }
 0x61d   :  { %v14590_v8 = vor.u32 %v16969_v0, %v14589_v59  ;;  %v15037_v18 = vld [vmem:[#allocation2 + $0x990] sm:$0xf]  ;;  %v14783_v59 = vld [vmem:[#allocation2 + $0x7d0] sm:$0xf0] }
 0x61e   :  { %9104 = vmatpush.bf16.msra.mxu2 %v14906_v12  ;;  %9077 = vmatpush.bf16.msra.mxu0 %v13818_v55  ;;  %v14013_v12 = vld [vmem:[#allocation2 + $0x190] sm:$0xf]  ;;  %v15295_v0 = vld [vmem:[#allocation2 + $0xbd0] sm:$0xf0] }
 0x61f   :  { %v17081_v47 = vld [vmem:[#allocation2 + $0x9cc] sm:$0xf0]  ;;  %v14014_v22 = vor.u32 %v16825_v9, %v14013_v12  ;;  %v16865_v9 = vld [vmem:[#allocation2 + $0x314] sm:$0xf] }
 0x620   :  { %9118 = vmatpush.bf16.msra.mxu3 %v15418_v17  ;;  %9091 = vmatpush.bf16.msra.mxu1 %v14330_v15  ;;  %v16953_v17 = vld [vmem:[#allocation2 + $0x5cc] sm:$0xf0]  ;;  %v15038_v55 = vor.u32 %v17081_v47, %v15037_v18  ;;  %v14719_v18 = vld [vmem:[#allocation2 + $0x750] sm:$0xf0] }
 0x621   :  { %9078 = vmatmul.bf16.vlgmr.msra.gmra.mxu0 %v18323_v45  ;;  %v15549_v49 = vld [vmem:[#allocation2 + $0xd90] sm:$0xf]  ;;  %v14526_v28 = vor.u32 %v16953_v17, %v14525_v11  ;;  %v14207_v11 = vld [vmem:[#allocation2 + $0x350] sm:$0xf0]  ;;  %v15810_v17 = vor.u32 %v17265_v4, %v15807_v56 }
 0x622   :  { %9105 = vmatpush.bf16.msra.mxu2 %v14842_v37  ;;  %9126 = vmatpush.bf16.msrb.mxu0 %v14270_v33  ;;  %v17209_v19 = vld [vmem:[#allocation2 + $0xdcc] sm:$0xf0]  ;;  %v17121_v47 = vld [vmem:[#allocation2 + $0xb14] sm:$0xf] }
 0x623   :  { %9092 = vmatmul.bf16.vlgmr.msra.gmra.mxu1 %v18325_v32  ;;  %v13949_v25 = vld [vmem:[#allocation2 + $0x110] sm:$0xf]  ;;  %v15550_v15 = vor.u32 %v17209_v19, %v15549_v49  ;;  %v15231_v49 = vld [vmem:[#allocation2 + $0xb50] sm:$0xf0] }
 0x624   :  { %9119 = vmatpush.bf16.msra.mxu3 %v15354_v40  ;;  %9140 = vmatpush.bf16.msrb.mxu1 %v14782_v41  ;;  %v16809_v16 = vld [vmem:[#allocation2 + $0x14c] sm:$0xf0]  ;;  %v17249_v19 = vld [vmem:[#allocation2 + $0xf14] sm:$0xf] }
 0x625   :  { %9106 = vmatmul.bf16.vlgmr.msra.gmra.mxu2 %v18317_v6  ;;  %v14461_v35 = vld [vmem:[#allocation2 + $0x510] sm:$0xf]  ;;  %v13950_v41 = vor.u32 %v16809_v16, %v13949_v25  ;;  %v15234_v25 = vor.u32 %v17121_v47, %v15231_v49  ;;  %v16849_v16 = vld [vmem:[#allocation2 + $0x294] sm:$0xf] }
 0x626   :  { %9154 = vmatpush.bf16.msrb.mxu2 %v15294_v27  ;;  %9127 = vmatpush.bf16.msrb.mxu0 %v14206_v21  ;;  %v16937_v37 = vld [vmem:[#allocation2 + $0x54c] sm:$0xf0]  ;;  %v17057_v4 = vld [vmem:[#allocation2 + $0x914] sm:$0xf] }
 0x627   :  { %9120 = vmatmul.bf16.vlgmr.msra.gmra.mxu3 %v18319_v61  ;;  %v15485_v40 = vld [vmem:[#allocation2 + $0xd10] sm:$0xf]  ;;  %v14462_v27 = vor.u32 %v16937_v37, %v14461_v35  ;;  %v14143_v35 = vld [vmem:[#allocation2 + $0x2d0] sm:$0xf0] }
 0x628   :  { %9168 = vmatpush.bf16.msrb.mxu3 %v15806_v63  ;;  %9141 = vmatpush.bf16.msrb.mxu1 %v14718_v13  ;;  %v17193_v33 = vld [vmem:[#allocation2 + $0xd4c] sm:$0xf0]  ;;  %v14975_v56 = vld [vmem:[#allocation2 + $0x950] sm:$0xf0] }
 0x629   :  { %v13885_v14 = vld [vmem:[#allocation2 + $0x90] sm:$0xf]  ;;  %v15486_v23 = vor.u32 %v17193_v33, %v15485_v40  ;;  %v15167_v40 = vld [vmem:[#allocation2 + $0xad0] sm:$0xf0] }
 0x62a   :  { %9155 = vmatpush.bf16.msrb.mxu2 %v15230_v7  ;;  %9128 = vmatpush.bf16.msrb.mxu0 %v14142_v50  ;;  %v16793_v30 = vld [vmem:[#allocation2 + $0xcc] sm:$0xf0]  ;;  %v17233_v33 = vld [vmem:[#allocation2 + $0xe94] sm:$0xf] }
 0x62b   :  { %v14397_v63 = vld [vmem:[#allocation2 + $0x490] sm:$0xf]  ;;  %v13886_v13 = vor.u32 %v16793_v30, %v13885_v14  ;;  %v15170_v14 = vor.u32 %v17105_v39, %v15167_v40  ;;  %v16833_v30 = vld [vmem:[#allocation2 + $0x214] sm:$0xf] }
 0x62c   :  { %9169 = vmatpush.bf16.msrb.mxu3 %v15742_v1  ;;  %9142 = vmatpush.bf16.msrb.mxu1 %v14654_v52  ;;  %v16921_v34 = vld [vmem:[#allocation2 + $0x4cc] sm:$0xf0]  ;;  %v16881_v52 = vld [vmem:[#allocation2 + $0x394] sm:$0xf] }
 0x62d   :  { %v14909_v42 = vld [vmem:[#allocation2 + $0x890] sm:$0xf]  ;;  %v14398_v10 = vor.u32 %v16921_v34, %v14397_v63  ;;  %v14079_v63 = vld [vmem:[#allocation2 + $0x250] sm:$0xf0] }
 0x62e   :  { %9156 = vmatpush.bf16.msrb.mxu2 %v15166_v54  ;;  %9129 = vmatpush.bf16.msrb.mxu0 %v14078_v51  ;;  %v17049_v29 = vld [vmem:[#allocation2 + $0x8cc] sm:$0xf0]  ;;  %v14271_v54 = vld [vmem:[#allocation2 + $0x3d0] sm:$0xf0] }
 0x62f   :  { %v15421_v43 = vld [vmem:[#allocation2 + $0xc90] sm:$0xf]  ;;  %v14910_v20 = vor.u32 %v17049_v29, %v14909_v42  ;;  %v14591_v42 = vld [vmem:[#allocation2 + $0x650] sm:$0xf0] }
 0x630   :  { %9170 = vmatpush.bf16.msrb.mxu3 %v15678_v60  ;;  %9143 = vmatpush.bf16.msrb.mxu1 %v14590_v8  ;;  %v17177_v21 = vld [vmem:[#allocation2 + $0xccc] sm:$0xf0]  ;;  %v17137_v60 = vld [vmem:[#allocation2 + $0xb94] sm:$0xf]  ;;  %v14274_v8 = vor.u32 %v16881_v52, %v14271_v54 }
 0x631   :  { %v13821_v7 = vld [vmem:[#allocation2 + $0x10] sm:$0xf]  ;;  %v15422_v46 = vor.u32 %v17177_v21, %v15421_v43  ;;  %v15298_v12 = vor.u32 %v17137_v60, %v15295_v0  ;;  %v17089_v29 = vld [vmem:[#allocation2 + $0xa14] sm:$0xf] }
 0x632   :  { %9157 = vmatpush.bf16.msrb.mxu2 %v15102_v24  ;;  %9130 = vmatpush.bf16.msrb.mxu0 %v14014_v22  ;;  %v16777_v44 = vld [vmem:[#allocation2 + $0x4c] sm:$0xf0]  ;;  %v14786_v24 = vor.u32 %v17009_v58, %v14783_v59  ;;  %v15743_v22 = vld [vmem:[#allocation2 + $0xf50] sm:$0xf0] }
 0x633   :  { %v14333_v1 = vld [vmem:[#allocation2 + $0x410] sm:$0xf]  ;;  %v13822_v26 = vor.u32 %v16777_v44, %v13821_v7  ;;  %v15746_v37 = vor.u32 %v17249_v19, %v15743_v22  ;;  %v15103_v43 = vld [vmem:[#allocation2 + $0xa50] sm:$0xf0]  ;;  %v14082_v7 = vor.u32 %v16833_v30, %v14079_v63 }
 0x634   :  { %9171 = vmatpush.bf16.msrb.mxu3 %v15614_v2  ;;  %9144 = vmatpush.bf16.msrb.mxu1 %v14526_v28  ;;  %v16905_v31 = vld [vmem:[#allocation2 + $0x44c] sm:$0xf0]  ;;  %v16993_v2 = vld [vmem:[#allocation2 + $0x714] sm:$0xf]  ;;  %v14210_v28 = vor.u32 %v16865_v9, %v14207_v11  ;;  %v14978_v11 = vor.u32 %v17057_v4, %v14975_v56  ;;  %v17002_v4 = vld [vmem:[#allocation2 + $0x754] sm:$0xf0] }
 0x635   :  { %v14845_v3 = vld [vmem:[#allocation2 + $0x810] sm:$0xf]  ;;  %v14334_v57 = vor.u32 %v16905_v31, %v14333_v1  ;;  %v17217_v21 = vld [vmem:[#allocation2 + $0xe14] sm:$0xf]  ;;  %v15237_v56 = vld [vmem:[#allocation2 + $0xb18] sm:$0xf] }
 0x636   :  { %9158 = vmatpush.bf16.msrb.mxu2 %v15038_v55  ;;  %9131 = vmatpush.bf16.msrb.mxu0 %v13950_v41  ;;  %v17033_v5 = vld [vmem:[#allocation2 + $0x84c] sm:$0xf0]  ;;  %v14722_v55 = vor.u32 %v16993_v2, %v14719_v18  ;;  %v15679_v41 = vld [vmem:[#allocation2 + $0xed0] sm:$0xf0] }
 0x637   :  { %v15357_v48 = vld [vmem:[#allocation2 + $0xc10] sm:$0xf]  ;;  %v14846_v62 = vor.u32 %v17033_v5, %v14845_v3  ;;  %v15682_v34 = vor.u32 %v17233_v33, %v15679_v41  ;;  %v14015_v1 = vld [vmem:[#allocation2 + $0x1d0] sm:$0xf0] }
 0x638   :  { %9172 = vmatpush.bf16.msrb.mxu3 %v15550_v15  ;;  %9145 = vmatpush.bf16.msrb.mxu1 %v14462_v27  ;;  %v17161_v50 = vld [vmem:[#allocation2 + $0xc4c] sm:$0xf0]  ;;  %v16977_v15 = vld [vmem:[#allocation2 + $0x694] sm:$0xf]  ;;  %v14146_v27 = vor.u32 %v16849_v16, %v14143_v35 }
 0x639   :  { %v15358_v51 = vor.u32 %v17161_v50, %v15357_v48  ;;  %v16945_v31 = vld [vmem:[#allocation2 + $0x594] sm:$0xf] }
 0x63a   :  { %9159 = vmatpush.bf16.msrb.mxu2 %v14974_v36  ;;  %9132 = vmatpush.bf16.msrb.mxu0 %v13886_v13  ;;  %v14658_v36 = vor.u32 %v16977_v15, %v14655_v38  ;;  %v15615_v13 = vld [vmem:[#allocation2 + $0xe50] sm:$0xf0] }
 0x63b   :  { %v15618_v3 = vor.u32 %v17217_v21, %v15615_v13  ;;  %v17073_v5 = vld [vmem:[#allocation2 + $0x994] sm:$0xf]  ;;  %v14789_v21 = vld [vmem:[#allocation2 + $0x798] sm:$0xf] }
 0x63c   :  { %9173 = vmatpush.bf16.msrb.mxu3 %v15486_v23  ;;  %9146 = vmatpush.bf16.msrb.mxu1 %v14398_v10  ;;  %v16961_v23 = vld [vmem:[#allocation2 + $0x614] sm:$0xf]  ;;  %v15106_v10 = vor.u32 %v17089_v29, %v15103_v43  ;;  %v16890_v43 = vld [vmem:[#allocation2 + $0x3d4] sm:$0xf0] }
 0x63d   :  { %v14594_v44 = vor.u32 %v16961_v23, %v14591_v42  ;;  %v15039_v48 = vld [vmem:[#allocation2 + $0x9d0] sm:$0xf0]  ;;  %v14277_v42 = vld [vmem:[#allocation2 + $0x398] sm:$0xf] }
 0x63e   :  { %9160 = vmatpush.bf16.msrb.mxu2 %v14910_v20  ;;  %9133 = vmatpush.bf16.msrb.mxu0 %v13822_v26  ;;  %v16817_v20 = vld [vmem:[#allocation2 + $0x194] sm:$0xf]  ;;  %v15042_v26 = vor.u32 %v17073_v5, %v15039_v48  ;;  %v17018_v13 = vld [vmem:[#allocation2 + $0x7d4] sm:$0xf0] }
 0x63f   :  { %v17201_v50 = vld [vmem:[#allocation2 + $0xd94] sm:$0xf]  ;;  %v14018_v54 = vor.u32 %v16817_v20, %v14015_v1 }
 0x640   :  { %9174 = vmatpush.bf16.msrb.mxu3 %v15422_v46  ;;  %9147 = vmatpush.bf16.msrb.mxu1 %v14334_v57  ;;  %v14527_v46 = vld [vmem:[#allocation2 + $0x5d0] sm:$0xf0]  ;;  %v8925_v47 = vpop.f32.mrf.mxu1 }
 0x641   :  { %9134 = vmatmul.bf16.vlgmr.msrb.gmra.mxu0 %v18323_v45  ;;  %v15551_v52 = vld [vmem:[#allocation2 + $0xdd0] sm:$0xf0]  ;;  %v14530_v58 = vor.u32 %v16945_v31, %v14527_v46  ;;  %v17274_v46 = vld [vmem:[#allocation2 + $0xfd4] sm:$0xf0] }
 0x642   :  { %9161 = vmatpush.bf16.msrb.mxu2 %v14846_v62  ;;  %9182 = vmatpush.bf16.msra.mxu0 %v14274_v8  ;;  %v16801_v59 = vld [vmem:[#allocation2 + $0x114] sm:$0xf]  ;;  %v15554_v57 = vor.u32 %v17201_v50, %v15551_v52  ;;  %v14278_v50 = vor.u32 %v16890_v43, %v14277_v42  ;;  %v16826_v43 = vld [vmem:[#allocation2 + $0x1d4] sm:$0xf0] }
 0x643   :  { %9148 = vmatmul.bf16.vlgmr.msrb.gmra.mxu1 %v18325_v32  ;;  %v13951_v60 = vld [vmem:[#allocation2 + $0x150] sm:$0xf0] }
 0x644   :  { %9175 = vmatpush.bf16.msrb.mxu3 %v15358_v51  ;;  %9196 = vmatpush.bf16.msra.mxu1 %v14786_v24  ;;  %v16929_v0 = vld [vmem:[#allocation2 + $0x514] sm:$0xf]  ;;  %v13954_v24 = vor.u32 %v16801_v59, %v13951_v60  ;;  %v14213_v59 = vld [vmem:[#allocation2 + $0x318] sm:$0xf] }
 0x645   :  { %9162 = vmatmul.bf16.vlgmr.msrb.gmra.mxu2 %v18317_v6  ;;  %v14463_v62 = vld [vmem:[#allocation2 + $0x550] sm:$0xf0]  ;;  %v16874_v60 = vld [vmem:[#allocation2 + $0x354] sm:$0xf0] }
 0x646   :  { %9210 = vmatpush.bf16.msra.mxu2 %v15298_v12  ;;  %9183 = vmatpush.bf16.msra.mxu0 %v14210_v28  ;;  %v17185_v51 = vld [vmem:[#allocation2 + $0xd14] sm:$0xf]  ;;  %v8911_v12 = vpop.f32.mrf.mxu0  ;;  %v14466_v9 = vor.u32 %v16929_v0, %v14463_v62  ;;  %v14725_v0 = vld [vmem:[#allocation2 + $0x718] sm:$0xf] }
 0x647   :  { %9176 = vmatmul.bf16.vlgmr.msrb.gmra.mxu3 %v18319_v61  ;;  %v15487_v8 = vld [vmem:[#allocation2 + $0xd50] sm:$0xf0] }
 0x648   :  { %9224 = vmatpush.bf16.msra.mxu3 %v15810_v17  ;;  %9197 = vmatpush.bf16.msra.mxu1 %v14722_v55  ;;  %v16785_v2 = vld [vmem:[#allocation2 + $0x94] sm:$0xf]  ;;  %v15490_v49 = vor.u32 %v17185_v51, %v15487_v8  ;;  %v8926_v55 = vadd.f32 %v8925_v47, %v8911_v12  ;;  %v8927_v5 = vpop.f32.mrf.mxu1  ;;  %v17130_v51 = vld [vmem:[#allocation2 + $0xb54] sm:$0xf0] }
 0x649   :  { %v13887_v17 = vld [vmem:[#allocation2 + $0xd0] sm:$0xf0]  ;;  %v17258_v12 = vld [vmem:[#allocation2 + $0xf54] sm:$0xf0] }
 0x64a   :  { %9211 = vmatpush.bf16.msra.mxu2 %v15234_v25  ;;  %9184 = vmatpush.bf16.msra.mxu0 %v14146_v27  ;;  %v16913_v18 = vld [vmem:[#allocation2 + $0x494] sm:$0xf]  ;;  %v8939_v25 = vpop.f32.mrf.mxu2  ;;  %v8953_v15 = vpop.f32.mrf.mxu3  ;;  %v16858_v47 = vld [vmem:[#allocation2 + $0x2d4] sm:$0xf0] }
 0x64b   :  { %v14399_v19 = vld [vmem:[#allocation2 + $0x4d0] sm:$0xf0]  ;;  %v8940_v33 = vadd.f32 %v8939_v25, %v8926_v55  ;;  %v17114_v55 = vld [vmem:[#allocation2 + $0xad4] sm:$0xf0] }
 0x64c   :  { %9225 = vmatpush.bf16.msra.mxu3 %v15746_v37  ;;  %9198 = vmatpush.bf16.msra.mxu1 %v14658_v36  ;;  %v17041_v22 = vld [vmem:[#allocation2 + $0x894] sm:$0xf]  ;;  %v13890_v37 = vor.u32 %v16785_v2, %v13887_v17  ;;  %v14402_v41 = vor.u32 %v16913_v18, %v14399_v19  ;;  %v14726_v17 = vor.u32 %v17002_v4, %v14725_v0  ;;  %v16986_v19 = vld [vmem:[#allocation2 + $0x6d4] sm:$0xf0] }
 0x64d   :  { %v14911_v28 = vld [vmem:[#allocation2 + $0x8d0] sm:$0xf0]  ;;  %v8954_v29 = vadd.f32 %v8953_v15, %v8940_v33  ;;  %v15238_v18 = vor.u32 %v17130_v51, %v15237_v56  ;;  %v15685_v25 = vld [vmem:[#allocation2 + $0xe98] sm:$0xf] }
 0x64e   :  { %9212 = vmatpush.bf16.msra.mxu2 %v15170_v14  ;;  %9185 = vmatpush.bf16.msra.mxu0 %v14082_v7  ;;  %v17169_v16 = vld [vmem:[#allocation2 + $0xc94] sm:$0xf]  ;;  %v14914_v27 = vor.u32 %v17041_v22, %v14911_v28  ;;  %v8913_v20 = vpop.f32.mrf.mxu0  ;;  %v15173_v28 = vld [vmem:[#allocation2 + $0xa98] sm:$0xf] }
 0x64f   :  { %v15423_v35 = vld [vmem:[#allocation2 + $0xcd0] sm:$0xf0]  ;;  %9798 = vst [vmem:[#allocation4 + $0xb0] sm:$0xff] %v8954_v29  ;;  %v8928_v52 = vadd.f32 %v8927_v5, %v8913_v20  ;;  %v14021_v29 = vld [vmem:[#allocation2 + $0x198] sm:$0xf] }
 0x650   :  { %9226 = vmatpush.bf16.msra.mxu3 %v15682_v34  ;;  %9199 = vmatpush.bf16.msra.mxu1 %v14594_v44  ;;  %v16769_v38 = vld [vmem:[#allocation2 + $0x14] sm:$0xf]  ;;  %v15426_v63 = vor.u32 %v17169_v16, %v15423_v35  ;;  %v15301_v44 = vld [vmem:[#allocation2 + $0xb98] sm:$0xf] }
 0x651   :  { %v13823_v39 = vld [vmem:[#allocation2 + $0x50] sm:$0xf0]  ;;  %v17242_v16 = vld [vmem:[#allocation2 + $0xed4] sm:$0xf0] }
 0x652   :  { %9213 = vmatpush.bf16.msra.mxu2 %v15106_v10  ;;  %9186 = vmatpush.bf16.msra.mxu0 %v14018_v54  ;;  %v16897_v40 = vld [vmem:[#allocation2 + $0x414] sm:$0xf]  ;;  %v13826_v7 = vor.u32 %v16769_v38, %v13823_v39  ;;  %v17146_v10 = vld [vmem:[#allocation2 + $0xbd4] sm:$0xf0]  ;;  %v8941_v54 = vpop.f32.mrf.mxu2  ;;  %v15686_v33 = vor.u32 %v17242_v16, %v15685_v25 }
 0x653   :  { %v14335_v36 = vld [vmem:[#allocation2 + $0x450] sm:$0xf0]  ;;  %v8942_v8 = vadd.f32 %v8941_v54, %v8928_v52  ;;  %v14085_v38 = vld [vmem:[#allocation2 + $0x218] sm:$0xf] }
 0x654   :  { %9227 = vmatpush.bf16.msra.mxu3 %v15618_v3  ;;  %9200 = vmatpush.bf16.msra.mxu1 %v14530_v58  ;;  %v17025_v14 = vld [vmem:[#allocation2 + $0x814] sm:$0xf]  ;;  %v14338_v1 = vor.u32 %v16897_v40, %v14335_v36  ;;  %v15813_v3 = vld [vmem:[#allocation2 + $0xf98] sm:$0xf]  ;;  %v14790_v58 = vor.u32 %v17018_v13, %v14789_v21 }
 0x655   :  { %v14847_v30 = vld [vmem:[#allocation2 + $0x850] sm:$0xf0]  ;;  %v15814_v62 = vor.u32 %v17274_v46, %v15813_v3  ;;  %v16842_v39 = vld [vmem:[#allocation2 + $0x254] sm:$0xf0]  ;;  %v14022_v46 = vor.u32 %v16826_v43, %v14021_v29  ;;  %v17010_v29 = vld [vmem:[#allocation2 + $0x79c] sm:$0xf] }
 0x656   :  { %9214 = vmatpush.bf16.msra.mxu2 %v15042_v26  ;;  %9187 = vmatpush.bf16.msra.mxu0 %v13954_v24  ;;  %v17153_v23 = vld [vmem:[#allocation2 + $0xc14] sm:$0xf]  ;;  %v14850_v31 = vor.u32 %v17025_v14, %v14847_v30  ;;  %v15302_v26 = vor.u32 %v17146_v10, %v15301_v44  ;;  %v15749_v24 = vld [vmem:[#allocation2 + $0xf18] sm:$0xf] }
 0x657   :  { %v15359_v34 = vld [vmem:[#allocation2 + $0xc50] sm:$0xf0]  ;;  %v15750_v22 = vor.u32 %v17258_v12, %v15749_v24  ;;  %v14597_v40 = vld [vmem:[#allocation2 + $0x618] sm:$0xf] }
 0x658   :  { %9228 = vmatpush.bf16.msra.mxu3 %v15554_v57  ;;  %9201 = vmatpush.bf16.msra.mxu1 %v14466_v9  ;;  %v15362_v48 = vor.u32 %v17153_v23, %v15359_v34  ;;  %v8955_v57 = vpop.f32.mrf.mxu3  ;;  %v14214_v9 = vor.u32 %v16874_v60, %v14213_v59  ;;  %v17098_v36 = vld [vmem:[#allocation2 + $0xa54] sm:$0xf0] }
 0x659   :  { %v8956_v2 = vadd.f32 %v8955_v57, %v8942_v8  ;;  %v15621_v14 = vld [vmem:[#allocation2 + $0xe18] sm:$0xf] }
 0x65a   :  { %9215 = vmatpush.bf16.msra.mxu2 %v14978_v11  ;;  %9188 = vmatpush.bf16.msra.mxu0 %v13890_v37  ;;  %v14149_v11 = vld [vmem:[#allocation2 + $0x298] sm:$0xf]  ;;  %v15174_v37 = vor.u32 %v17114_v55, %v15173_v28 }
 0x65b   :  { %9814 = vst [vmem:[#allocation4 + $0x20] sm:$0xff] %v8956_v2  ;;  %v14150_v35 = vor.u32 %v16858_v47, %v14149_v11  ;;  %v17226_v30 = vld [vmem:[#allocation2 + $0xe54] sm:$0xf0] }
 0x65c   :  { %9229 = vmatpush.bf16.msra.mxu3 %v15490_v49  ;;  %9202 = vmatpush.bf16.msra.mxu1 %v14402_v41  ;;  %v14661_v49 = vld [vmem:[#allocation2 + $0x698] sm:$0xf] }
 0x65d   :  { %v14662_v15 = vor.u32 %v16986_v19, %v14661_v49  ;;  %v16970_v41 = vld [vmem:[#allocation2 + $0x654] sm:$0xf0] }
 0x65e   :  { %9216 = vmatpush.bf16.msra.mxu2 %v14914_v27  ;;  %9189 = vmatpush.bf16.msra.mxu0 %v13826_v7  ;;  %v15109_v27 = vld [vmem:[#allocation2 + $0xa18] sm:$0xf]  ;;  %v8967_v23 = vpop.f32.mrf.mxu0  ;;  %v14598_v34 = vor.u32 %v16970_v41, %v14597_v40  ;;  %v15622_v7 = vor.u32 %v17226_v30, %v15621_v14 }
 0x65f   :  { %v15110_v42 = vor.u32 %v17098_v36, %v15109_v27  ;;  %v14533_v21 = vld [vmem:[#allocation2 + $0x598] sm:$0xf] }
 0x660   :  { %9230 = vmatpush.bf16.msra.mxu3 %v15426_v63  ;;  %9203 = vmatpush.bf16.msra.mxu1 %v14338_v1  ;;  %v14086_v63 = vor.u32 %v16842_v39, %v14085_v38  ;;  %v8981_v13 = vpop.f32.mrf.mxu1  ;;  %v16954_v44 = vld [vmem:[#allocation2 + $0x5d4] sm:$0xf0] }
 0x661   :  { %9190 = vmatmul.bf16.vlgmr.msra.gmra.mxu0 %v18323_v45  ;;  %v15045_v10 = vld [vmem:[#allocation2 + $0x998] sm:$0xf]  ;;  %v8982_v1 = vadd.f32 %v8981_v13, %v8967_v23  ;;  %v14534_v5 = vor.u32 %v16954_v44, %v14533_v21  ;;  %v14791_v21 = vld [vmem:[#allocation2 + $0x7d8] sm:$0xf0] }
 0x662   :  { %9217 = vmatpush.bf16.msra.mxu2 %v14850_v31  ;;  %9238 = vmatpush.bf16.msrb.mxu0 %v14278_v50  ;;  %v17082_v20 = vld [vmem:[#allocation2 + $0x9d4] sm:$0xf0]  ;;  %v17138_v13 = vld [vmem:[#allocation2 + $0xb9c] sm:$0xf] }
 0x663   :  { %9204 = vmatmul.bf16.vlgmr.msra.gmra.mxu1 %v18325_v32  ;;  %v15557_v31 = vld [vmem:[#allocation2 + $0xd98] sm:$0xf] }
 0x664   :  { %9231 = vmatpush.bf16.msra.mxu3 %v15362_v48  ;;  %9252 = vmatpush.bf16.msrb.mxu1 %v14790_v58  ;;  %v17210_v3 = vld [vmem:[#allocation2 + $0xdd4] sm:$0xf0]  ;;  %v15046_v48 = vor.u32 %v17082_v20, %v15045_v10 }
 0x665   :  { %9218 = vmatmul.bf16.vlgmr.msra.gmra.mxu2 %v18317_v6  ;;  %v13957_v50 = vld [vmem:[#allocation2 + $0x118] sm:$0xf] }
 0x666   :  { %9266 = vmatpush.bf16.msrb.mxu2 %v15302_v26  ;;  %9239 = vmatpush.bf16.msrb.mxu0 %v14214_v9  ;;  %v16810_v52 = vld [vmem:[#allocation2 + $0x154] sm:$0xf0]  ;;  %v15558_v26 = vor.u32 %v17210_v3, %v15557_v31  ;;  %v8969_v12 = vpop.f32.mrf.mxu0  ;;  %v15815_v31 = vld [vmem:[#allocation2 + $0xfd8] sm:$0xf0] }
 0x667   :  { %9232 = vmatmul.bf16.vlgmr.msra.gmra.mxu3 %v18319_v61  ;;  %v14469_v54 = vld [vmem:[#allocation2 + $0x518] sm:$0xf]  ;;  %v13958_v51 = vor.u32 %v16810_v52, %v13957_v50  ;;  %v16866_v50 = vld [vmem:[#allocation2 + $0x31c] sm:$0xf] }
 0x668   :  { %9280 = vmatpush.bf16.msrb.mxu3 %v15814_v62  ;;  %9253 = vmatpush.bf16.msrb.mxu1 %v14726_v17  ;;  %v8995_v58 = vpop.f32.mrf.mxu2  ;;  %v16938_v59 = vld [vmem:[#allocation2 + $0x554] sm:$0xf0]  ;;  %v8983_v47 = vpop.f32.mrf.mxu1  ;;  %v14215_v52 = vld [vmem:[#allocation2 + $0x358] sm:$0xf0] }
 0x669   :  { %v14981_v60 = vld [vmem:[#allocation2 + $0x918] sm:$0xf]  ;;  %v8996_v57 = vadd.f32 %v8995_v58, %v8982_v1  ;;  %v14470_v9 = vor.u32 %v16938_v59, %v14469_v54  ;;  %v8984_v28 = vadd.f32 %v8983_v47, %v8969_v12  ;;  %v17266_v1 = vld [vmem:[#allocation2 + $0xf9c] sm:$0xf] }
 0x66a   :  { %9267 = vmatpush.bf16.msrb.mxu2 %v15238_v18  ;;  %9240 = vmatpush.bf16.msrb.mxu0 %v14150_v35  ;;  %v17066_v0 = vld [vmem:[#allocation2 + $0x954] sm:$0xf0]  ;;  %v9009_v62 = vpop.f32.mrf.mxu3  ;;  %v16994_v54 = vld [vmem:[#allocation2 + $0x71c] sm:$0xf]  ;;  %v15818_v58 = vor.u32 %v17266_v1, %v15815_v31 }
 0x66b   :  { %v15493_v4 = vld [vmem:[#allocation2 + $0xd18] sm:$0xf]  ;;  %v9010_v24 = vadd.f32 %v9009_v62, %v8996_v57  ;;  %v14982_v11 = vor.u32 %v17066_v0, %v14981_v60  ;;  %v17122_v59 = vld [vmem:[#allocation2 + $0xb1c] sm:$0xf]  ;;  %v14218_v62 = vor.u32 %v16866_v50, %v14215_v52 }
 0x66c   :  { %9281 = vmatpush.bf16.msrb.mxu3 %v15750_v22  ;;  %9254 = vmatpush.bf16.msrb.mxu1 %v14662_v15  ;;  %v17194_v56 = vld [vmem:[#allocation2 + $0xd54] sm:$0xf0]  ;;  %v15239_v60 = vld [vmem:[#allocation2 + $0xb58] sm:$0xf0] }
 0x66d   :  { %v13893_v8 = vld [vmem:[#allocation2 + $0x98] sm:$0xf]  ;;  %v15494_v49 = vor.u32 %v17194_v56, %v15493_v4  ;;  %9799 = vst [vmem:[#allocation4 + $0xd0] sm:$0xff] %v9010_v24  ;;  %v17250_v0 = vld [vmem:[#allocation2 + $0xf1c] sm:$0xf]  ;;  %v15242_v56 = vor.u32 %v17122_v59, %v15239_v60 }
 0x66e   :  { %9268 = vmatpush.bf16.msrb.mxu2 %v15174_v37  ;;  %9241 = vmatpush.bf16.msrb.mxu0 %v14086_v63  ;;  %v16794_v2 = vld [vmem:[#allocation2 + $0xd4] sm:$0xf0]  ;;  %v15751_v57 = vld [vmem:[#allocation2 + $0xf58] sm:$0xf0] }
 0x66f   :  { %v14405_v17 = vld [vmem:[#allocation2 + $0x498] sm:$0xf]  ;;  %v13894_v16 = vor.u32 %v16794_v2, %v13893_v8  ;;  %v14151_v8 = vld [vmem:[#allocation2 + $0x2d8] sm:$0xf0]  ;;  %v15754_v12 = vor.u32 %v17250_v0, %v15751_v57 }
 0x670   :  { %9282 = vmatpush.bf16.msrb.mxu3 %v15686_v33  ;;  %9255 = vmatpush.bf16.msrb.mxu1 %v14598_v34  ;;  %v16922_v18 = vld [vmem:[#allocation2 + $0x4d4] sm:$0xf0]  ;;  %v8997_v41 = vpop.f32.mrf.mxu2  ;;  %v16882_v34 = vld [vmem:[#allocation2 + $0x39c] sm:$0xf] }
 0x671   :  { %v14917_v19 = vld [vmem:[#allocation2 + $0x898] sm:$0xf]  ;;  %v14406_v37 = vor.u32 %v16922_v18, %v14405_v17  ;;  %v8998_v63 = vadd.f32 %v8997_v41, %v8984_v28  ;;  %v16978_v24 = vld [vmem:[#allocation2 + $0x69c] sm:$0xf] }
 0x672   :  { %9269 = vmatpush.bf16.msrb.mxu2 %v15110_v42  ;;  %9242 = vmatpush.bf16.msrb.mxu0 %v14022_v46  ;;  %v17050_v22 = vld [vmem:[#allocation2 + $0x8d4] sm:$0xf0]  ;;  %v9011_v23 = vpop.f32.mrf.mxu3  ;;  %v14279_v42 = vld [vmem:[#allocation2 + $0x3d8] sm:$0xf0] }
 0x673   :  { %v15429_v55 = vld [vmem:[#allocation2 + $0xc98] sm:$0xf]  ;;  %v14918_v38 = vor.u32 %v17050_v22, %v14917_v19  ;;  %v9012_v44 = vadd.f32 %v9011_v23, %v8998_v63  ;;  %v14282_v46 = vor.u32 %v16882_v34, %v14279_v42  ;;  %v15175_v2 = vld [vmem:[#allocation2 + $0xad8] sm:$0xf0] }
 0x674   :  { %9283 = vmatpush.bf16.msrb.mxu3 %v15622_v7  ;;  %9256 = vmatpush.bf16.msrb.mxu1 %v14534_v5  ;;  %v17178_v25 = vld [vmem:[#allocation2 + $0xcd4] sm:$0xf0]  ;;  %v15303_v7 = vld [vmem:[#allocation2 + $0xbd8] sm:$0xf0]  ;;  %v14794_v5 = vor.u32 %v17010_v29, %v14791_v21 }
 0x675   :  { %v13829_v35 = vld [vmem:[#allocation2 + $0x18] sm:$0xf]  ;;  %v15430_v27 = vor.u32 %v17178_v25, %v15429_v55  ;;  %9815 = vst [vmem:[#allocation4 + $0xc8] sm:$0xff] %v9012_v44  ;;  %v17234_v17 = vld [vmem:[#allocation2 + $0xe9c] sm:$0xf] }
 0x676   :  { %9270 = vmatpush.bf16.msrb.mxu2 %v15046_v48  ;;  %9243 = vmatpush.bf16.msrb.mxu0 %v13958_v51  ;;  %v16778_v15 = vld [vmem:[#allocation2 + $0x54] sm:$0xf0]  ;;  %v15306_v48 = vor.u32 %v17138_v13, %v15303_v7  ;;  %v16850_v51 = vld [vmem:[#allocation2 + $0x29c] sm:$0xf] }
 0x677   :  { %v14341_v39 = vld [vmem:[#allocation2 + $0x418] sm:$0xf]  ;;  %v13830_v43 = vor.u32 %v16778_v15, %v13829_v35  ;;  %v15687_v18 = vld [vmem:[#allocation2 + $0xed8] sm:$0xf0]  ;;  %v14154_v47 = vor.u32 %v16850_v51, %v14151_v8 }
 0x678   :  { %9284 = vmatpush.bf16.msrb.mxu3 %v15558_v26  ;;  %9257 = vmatpush.bf16.msrb.mxu1 %v14470_v9  ;;  %v16906_v40 = vld [vmem:[#allocation2 + $0x454] sm:$0xf0]  ;;  %v14727_v26 = vld [vmem:[#allocation2 + $0x758] sm:$0xf0]  ;;  %v15690_v25 = vor.u32 %v17234_v17, %v15687_v18 }
 0x679   :  { %v14853_v33 = vld [vmem:[#allocation2 + $0x818] sm:$0xf]  ;;  %v14342_v10 = vor.u32 %v16906_v40, %v14341_v39  ;;  %v14730_v4 = vor.u32 %v16994_v54, %v14727_v26  ;;  %v14663_v9 = vld [vmem:[#allocation2 + $0x6d8] sm:$0xf0] }
 0x67a   :  { %9271 = vmatpush.bf16.msrb.mxu2 %v14982_v11  ;;  %v17034_v36 = vld [vmem:[#allocation2 + $0x854] sm:$0xf0]  ;;  %9244 = vmatpush.bf16.msrb.mxu0 %v13894_v16  ;;  %v17106_v11 = vld [vmem:[#allocation2 + $0xa9c] sm:$0xf] }
 0x67b   :  { %v15365_v14 = vld [vmem:[#allocation2 + $0xc18] sm:$0xf]  ;;  %v14854_v20 = vor.u32 %v17034_v36, %v14853_v33  ;;  %v15178_v19 = vor.u32 %v17106_v11, %v15175_v2  ;;  %v16834_v22 = vld [vmem:[#allocation2 + $0x21c] sm:$0xf] }
 0x67c   :  { %9285 = vmatpush.bf16.msrb.mxu3 %v15494_v49  ;;  %v17162_v30 = vld [vmem:[#allocation2 + $0xc54] sm:$0xf0]  ;;  %9258 = vmatpush.bf16.msrb.mxu1 %v14406_v37  ;;  %v14666_v49 = vor.u32 %v16978_v24, %v14663_v9  ;;  %v14087_v28 = vld [vmem:[#allocation2 + $0x258] sm:$0xf0] }
 0x67d   :  { %v15366_v3 = vor.u32 %v17162_v30, %v15365_v14  ;;  %v16962_v55 = vld [vmem:[#allocation2 + $0x61c] sm:$0xf]  ;;  %v14090_v39 = vor.u32 %v16834_v22, %v14087_v28 }
 0x67e   :  { %9272 = vmatpush.bf16.msrb.mxu2 %v14918_v38  ;;  %9245 = vmatpush.bf16.msrb.mxu0 %v13830_v43  ;;  %v14599_v16 = vld [vmem:[#allocation2 + $0x658] sm:$0xf0]  ;;  %v9023_v40 = vpop.f32.mrf.mxu0 }
 0x67f   :  { %v17090_v35 = vld [vmem:[#allocation2 + $0xa1c] sm:$0xf]  ;;  %v14602_v33 = vor.u32 %v16962_v55, %v14599_v16 }
 0x680   :  { %9286 = vmatpush.bf16.msrb.mxu3 %v15430_v27  ;;  %9259 = vmatpush.bf16.msrb.mxu1 %v14342_v10  ;;  %v15111_v15 = vld [vmem:[#allocation2 + $0xa58] sm:$0xf0]  ;;  %v9037_v30 = vpop.f32.mrf.mxu1 }
 0x681   :  { %9246 = vmatmul.bf16.vlgmr.msrb.gmra.mxu0 %v18323_v45  ;;  %v17218_v37 = vld [vmem:[#allocation2 + $0xe1c] sm:$0xf]  ;;  %v15114_v41 = vor.u32 %v17090_v35, %v15111_v15  ;;  %v9038_v29 = vadd.f32 %v9037_v30, %v9023_v40  ;;  %v15309_v30 = vld [vmem:[#allocation2 + $0xba0] sm:$0xf] }
 0x682   :  { %9273 = vmatpush.bf16.msrb.mxu2 %v14854_v20  ;;  %9294 = vmatpush.bf16.msra.mxu0 %v14282_v46  ;;  %v15623_v38 = vld [vmem:[#allocation2 + $0xe58] sm:$0xf0] }
 0x683   :  { %9260 = vmatmul.bf16.vlgmr.msrb.gmra.mxu1 %v18325_v32  ;;  %v16818_v27 = vld [vmem:[#allocation2 + $0x19c] sm:$0xf]  ;;  %v15626_v63 = vor.u32 %v17218_v37, %v15623_v38 }
 0x684   :  { %9287 = vmatpush.bf16.msrb.mxu3 %v15366_v3  ;;  %9308 = vmatpush.bf16.msra.mxu1 %v14794_v5  ;;  %v14023_v36 = vld [vmem:[#allocation2 + $0x1d8] sm:$0xf0] }
 0x685   :  { %9274 = vmatmul.bf16.vlgmr.msrb.gmra.mxu2 %v18317_v6  ;;  %v16946_v14 = vld [vmem:[#allocation2 + $0x59c] sm:$0xf]  ;;  %v14026_v13 = vor.u32 %v16818_v27, %v14023_v36  ;;  %v14797_v27 = vld [vmem:[#allocation2 + $0x7a0] sm:$0xf] }
 0x686   :  { %9322 = vmatpush.bf16.msra.mxu2 %v15306_v48  ;;  %9295 = vmatpush.bf16.msra.mxu0 %v14218_v62  ;;  %v14535_v23 = vld [vmem:[#allocation2 + $0x5d8] sm:$0xf0]  ;;  %v9025_v0 = vpop.f32.mrf.mxu0 }
 0x687   :  { %9288 = vmatmul.bf16.vlgmr.msrb.gmra.mxu3 %v18319_v61  ;;  %v17074_v34 = vld [vmem:[#allocation2 + $0x99c] sm:$0xf]  ;;  %v14538_v7 = vor.u32 %v16946_v14, %v14535_v23  ;;  %v17019_v14 = vld [vmem:[#allocation2 + $0x7dc] sm:$0xf0] }
 0x688   :  { %9336 = vmatpush.bf16.msra.mxu3 %v15818_v58  ;;  %9309 = vmatpush.bf16.msra.mxu1 %v14730_v4  ;;  %v15047_v42 = vld [vmem:[#allocation2 + $0x9d8] sm:$0xf0]  ;;  %v9051_v31 = vpop.f32.mrf.mxu2  ;;  %v9039_v8 = vpop.f32.mrf.mxu1 }
 0x689   :  { %v17202_v43 = vld [vmem:[#allocation2 + $0xd9c] sm:$0xf]  ;;  %v15050_v44 = vor.u32 %v17074_v34, %v15047_v42  ;;  %v9052_v50 = vadd.f32 %v9051_v31, %v9038_v29  ;;  %v9040_v11 = vadd.f32 %v9039_v8, %v9025_v0  ;;  %v15821_v29 = vld [vmem:[#allocation2 + $0xfa0] sm:$0xf] }
 0x68a   :  { %9323 = vmatpush.bf16.msra.mxu2 %v15242_v56  ;;  %9296 = vmatpush.bf16.msra.mxu0 %v14154_v47  ;;  %v15559_v21 = vld [vmem:[#allocation2 + $0xdd8] sm:$0xf0]  ;;  %v9065_v52 = vpop.f32.mrf.mxu3 }
 0x68b   :  { %v16802_v10 = vld [vmem:[#allocation2 + $0x11c] sm:$0xf]  ;;  %v15562_v3 = vor.u32 %v17202_v43, %v15559_v21  ;;  %v9066_v60 = vadd.f32 %v9065_v52, %v9052_v50  ;;  %v17275_v43 = vld [vmem:[#allocation2 + $0xfdc] sm:$0xf0] }
 0x68c   :  { %9337 = vmatpush.bf16.msra.mxu3 %v15754_v12  ;;  %9310 = vmatpush.bf16.msra.mxu1 %v14666_v49  ;;  %v13959_v20 = vld [vmem:[#allocation2 + $0x158] sm:$0xf0]  ;;  %v15822_v31 = vor.u32 %v17275_v43, %v15821_v29  ;;  %v17259_v50 = vld [vmem:[#allocation2 + $0xf5c] sm:$0xf0] }
 0x68d   :  { %v16930_v1 = vld [vmem:[#allocation2 + $0x51c] sm:$0xf]  ;;  %v13962_v26 = vor.u32 %v16802_v10, %v13959_v20  ;;  %9800 = vst [vmem:[#allocation4 + $0x10] sm:$0xff] %v9066_v60  ;;  %v14221_v10 = vld [vmem:[#allocation2 + $0x320] sm:$0xf] }
 0x68e   :  { %9324 = vmatpush.bf16.msra.mxu2 %v15178_v19  ;;  %9297 = vmatpush.bf16.msra.mxu0 %v14090_v39  ;;  %v14471_v46 = vld [vmem:[#allocation2 + $0x558] sm:$0xf0]  ;;  %v16875_v20 = vld [vmem:[#allocation2 + $0x35c] sm:$0xf0] }
 0x68f   :  { %v17058_v5 = vld [vmem:[#allocation2 + $0x91c] sm:$0xf]  ;;  %v14474_v57 = vor.u32 %v16930_v1, %v14471_v46  ;;  %v14733_v1 = vld [vmem:[#allocation2 + $0x720] sm:$0xf]  ;;  %v14222_v52 = vor.u32 %v16875_v20, %v14221_v10 }
 0x690   :  { %9338 = vmatpush.bf16.msra.mxu3 %v15690_v25  ;;  %9311 = vmatpush.bf16.msra.mxu1 %v14602_v33  ;;  %v14983_v48 = vld [vmem:[#allocation2 + $0x958] sm:$0xf0]  ;;  %v9053_v16 = vpop.f32.mrf.mxu2  ;;  %v14285_v33 = vld [vmem:[#allocation2 + $0x3a0] sm:$0xf] }
 0x691   :  { %v17186_v54 = vld [vmem:[#allocation2 + $0xd1c] sm:$0xf]  ;;  %v14986_v62 = vor.u32 %v17058_v5, %v14983_v48  ;;  %v9054_v39 = vadd.f32 %v9053_v16, %v9040_v11  ;;  %v15245_v46 = vld [vmem:[#allocation2 + $0xb20] sm:$0xf] }
 0x692   :  { %9325 = vmatpush.bf16.msra.mxu2 %v15114_v41  ;;  %v15495_v58 = vld [vmem:[#allocation2 + $0xd58] sm:$0xf0]  ;;  %9298 = vmatpush.bf16.msra.mxu0 %v14026_v13  ;;  %v9067_v40 = vpop.f32.mrf.mxu3  ;;  %v16891_v41 = vld [vmem:[#allocation2 + $0x3dc] sm:$0xf0] }
 0x693   :  { %v16786_v59 = vld [vmem:[#allocation2 + $0x9c] sm:$0xf]  ;;  %v15498_v24 = vor.u32 %v17186_v54, %v15495_v58  ;;  %v9068_v23 = vadd.f32 %v9067_v40, %v9054_v39  ;;  %v14286_v13 = vor.u32 %v16891_v41, %v14285_v33  ;;  %v17131_v5 = vld [vmem:[#allocation2 + $0xb5c] sm:$0xf0] }
 0x694   :  { %9339 = vmatpush.bf16.msra.mxu3 %v15626_v63  ;;  %9312 = vmatpush.bf16.msra.mxu1 %v14538_v7  ;;  %v13895_v4 = vld [vmem:[#allocation2 + $0xd8] sm:$0xf0]  ;;  %v17147_v63 = vld [vmem:[#allocation2 + $0xbdc] sm:$0xf0]  ;;  %v14798_v7 = vor.u32 %v17019_v14, %v14797_v27  ;;  %v15246_v58 = vor.u32 %v17131_v5, %v15245_v46 }
 0x695   :  { %v16914_v56 = vld [vmem:[#allocation2 + $0x49c] sm:$0xf]  ;;  %v13898_v18 = vor.u32 %v16786_v59, %v13895_v4  ;;  %9816 = vst [vmem:[#allocation4 + $0x90] sm:$0xff] %v9068_v23  ;;  %v15757_v48 = vld [vmem:[#allocation2 + $0xf20] sm:$0xf] }
 0x696   :  { %9326 = vmatpush.bf16.msra.mxu2 %v15050_v44  ;;  %v14407_v51 = vld [vmem:[#allocation2 + $0x4d8] sm:$0xf0]  ;;  %9299 = vmatpush.bf16.msra.mxu0 %v13962_v26  ;;  %v15310_v44 = vor.u32 %v17147_v63, %v15309_v30  ;;  %v14157_v26 = vld [vmem:[#allocation2 + $0x2a0] sm:$0xf]  ;;  %v15758_v0 = vor.u32 %v17259_v50, %v15757_v48 }
 0x697   :  { %v17042_v12 = vld [vmem:[#allocation2 + $0x89c] sm:$0xf]  ;;  %v14410_v19 = vor.u32 %v16914_v56, %v14407_v51  ;;  %v16859_v59 = vld [vmem:[#allocation2 + $0x2dc] sm:$0xf0] }
 0x698   :  { %9340 = vmatpush.bf16.msra.mxu3 %v15562_v3  ;;  %v14919_v9 = vld [vmem:[#allocation2 + $0x8d8] sm:$0xf0]  ;;  %9313 = vmatpush.bf16.msra.mxu1 %v14474_v57  ;;  %v17003_v3 = vld [vmem:[#allocation2 + $0x75c] sm:$0xf0]  ;;  %v14158_v8 = vor.u32 %v16859_v59, %v14157_v26 }
 0x699   :  { %v17170_v2 = vld [vmem:[#allocation2 + $0xc9c] sm:$0xf]  ;;  %v14922_v22 = vor.u32 %v17042_v12, %v14919_v9  ;;  %v14734_v54 = vor.u32 %v17003_v3, %v14733_v1  ;;  %v14669_v60 = vld [vmem:[#allocation2 + $0x6a0] sm:$0xf] }
 0x69a   :  { %v15431_v17 = vld [vmem:[#allocation2 + $0xcd8] sm:$0xf0]  ;;  %9327 = vmatpush.bf16.msra.mxu2 %v14986_v62  ;;  %9300 = vmatpush.bf16.msra.mxu0 %v13898_v18  ;;  %v16987_v57 = vld [vmem:[#allocation2 + $0x6dc] sm:$0xf0] }
 0x69b   :  { %v16770_v47 = vld [vmem:[#allocation2 + $0x1c] sm:$0xf]  ;;  %v15434_v35 = vor.u32 %v17170_v2, %v15431_v17  ;;  %v15181_v62 = vld [vmem:[#allocation2 + $0xaa0] sm:$0xf] }
 0x69c   :  { %v13831_v49 = vld [vmem:[#allocation2 + $0x58] sm:$0xf0]  ;;  %9341 = vmatpush.bf16.msra.mxu3 %v15498_v24  ;;  %9314 = vmatpush.bf16.msra.mxu1 %v14410_v19  ;;  %v17115_v4 = vld [vmem:[#allocation2 + $0xadc] sm:$0xf0]  ;;  %v14670_v24 = vor.u32 %v16987_v57, %v14669_v60 }
 0x69d   :  { %v16898_v28 = vld [vmem:[#allocation2 + $0x41c] sm:$0xf]  ;;  %v13834_v36 = vor.u32 %v16770_v47, %v13831_v49  ;;  %v15693_v56 = vld [vmem:[#allocation2 + $0xea0] sm:$0xf]  ;;  %v15182_v12 = vor.u32 %v17115_v4, %v15181_v62 }
 0x69e   :  { %v14343_v55 = vld [vmem:[#allocation2 + $0x458] sm:$0xf0]  ;;  %9328 = vmatpush.bf16.msra.mxu2 %v14922_v22  ;;  %v17243_v51 = vld [vmem:[#allocation2 + $0xedc] sm:$0xf0] }
 0x69f   :  { %v17026_v25 = vld [vmem:[#allocation2 + $0x81c] sm:$0xf]  ;;  %v14346_v34 = vor.u32 %v16898_v28, %v14343_v55  ;;  %9301 = vmatpush.bf16.msra.mxu0 %v13834_v36  ;;  %v14093_v9 = vld [vmem:[#allocation2 + $0x220] sm:$0xf]  ;;  %v15694_v17 = vor.u32 %v17243_v51, %v15693_v56  ;;  %v9079_v55 = vpop.f32.mrf.mxu0 }
 0x6a0   :  { %v14855_v15 = vld [vmem:[#allocation2 + $0x858] sm:$0xf0]  ;;  %9342 = vmatpush.bf16.msra.mxu3 %v15434_v35  ;;  %v16843_v11 = vld [vmem:[#allocation2 + $0x25c] sm:$0xf0] }
 0x6a1   :  { %v17154_v37 = vld [vmem:[#allocation2 + $0xc1c] sm:$0xf]  ;;  %v14858_v42 = vor.u32 %v17026_v25, %v14855_v15  ;;  %9315 = vmatpush.bf16.msra.mxu1 %v14346_v34  ;;  %v14605_v2 = vld [vmem:[#allocation2 + $0x620] sm:$0xf]  ;;  %v14094_v28 = vor.u32 %v16843_v11, %v14093_v9 }
 0x6a2   :  { %v15367_v38 = vld [vmem:[#allocation2 + $0xc58] sm:$0xf0]  ;;  %9302 = vmatmul.bf16.vlgmr.msra.gmra.mxu0 %v18323_v45  ;;  %v16971_v18 = vld [vmem:[#allocation2 + $0x65c] sm:$0xf0] }
 0x6a3   :  { %v15370_v21 = vor.u32 %v17154_v37, %v15367_v38  ;;  %9329 = vmatpush.bf16.msra.mxu2 %v14858_v42  ;;  %9350 = vmatpush.bf16.msrb.mxu0 %v14286_v13  ;;  %v15117_v47 = vld [vmem:[#allocation2 + $0xa20] sm:$0xf]  ;;  %v14606_v25 = vor.u32 %v16971_v18, %v14605_v2  ;;  %v9093_v38 = vpop.f32.mrf.mxu1 }
 0x6a4   :  { %9316 = vmatmul.bf16.vlgmr.msra.gmra.mxu1 %v18325_v32  ;;  %v17099_v49 = vld [vmem:[#allocation2 + $0xa5c] sm:$0xf0]  ;;  %v9094_v27 = vadd.f32 %v9093_v38, %v9079_v55  ;;  %v17139_v38 = vld [vmem:[#allocation2 + $0xba4] sm:$0xf] }
 0x6a5   :  { %9343 = vmatpush.bf16.msra.mxu3 %v15370_v21  ;;  %9364 = vmatpush.bf16.msrb.mxu1 %v14798_v7  ;;  %v15629_v19 = vld [vmem:[#allocation2 + $0xe20] sm:$0xf]  ;;  %v15118_v16 = vor.u32 %v17099_v49, %v15117_v47 }
 0x6a6   :  { %9330 = vmatmul.bf16.vlgmr.msra.gmra.mxu2 %v18317_v6  ;;  %v17227_v22 = vld [vmem:[#allocation2 + $0xe5c] sm:$0xf0] }
 0x6a7   :  { %9378 = vmatpush.bf16.msrb.mxu2 %v15310_v44  ;;  %9351 = vmatpush.bf16.msrb.mxu0 %v14222_v52  ;;  %v14029_v35 = vld [vmem:[#allocation2 + $0x1a0] sm:$0xf]  ;;  %v15630_v39 = vor.u32 %v17227_v22, %v15629_v19  ;;  %v9081_v48 = vpop.f32.mrf.mxu0 }
 0x6a8   :  { %9344 = vmatmul.bf16.vlgmr.msra.gmra.mxu3 %v18319_v61  ;;  %v16827_v15 = vld [vmem:[#allocation2 + $0x1dc] sm:$0xf0]  ;;  %v9107_v43 = vpop.f32.mrf.mxu2 }
 0x6a9   :  { %9392 = vmatpush.bf16.msrb.mxu3 %v15822_v31  ;;  %9365 = vmatpush.bf16.msrb.mxu1 %v14734_v54  ;;  %v14541_v37 = vld [vmem:[#allocation2 + $0x5a0] sm:$0xf]  ;;  %v14030_v30 = vor.u32 %v16827_v15, %v14029_v35  ;;  %v9108_v10 = vadd.f32 %v9107_v43, %v9094_v27  ;;  %v17011_v35 = vld [vmem:[#allocation2 + $0x7a4] sm:$0xf] }
 0x6aa   :  { %v16955_v40 = vld [vmem:[#allocation2 + $0x5dc] sm:$0xf0]  ;;  %v9121_v20 = vpop.f32.mrf.mxu3  ;;  %v17267_v27 = vld [vmem:[#allocation2 + $0xfa4] sm:$0xf] }
 0x6ab   :  { %9379 = vmatpush.bf16.msrb.mxu2 %v15246_v58  ;;  %9352 = vmatpush.bf16.msrb.mxu0 %v14158_v8  ;;  %v15053_v33 = vld [vmem:[#allocation2 + $0x9a0] sm:$0xf]  ;;  %v14542_v63 = vor.u32 %v16955_v40, %v14541_v37  ;;  %v9122_v5 = vadd.f32 %v9121_v20, %v9108_v10  ;;  %v9095_v59 = vpop.f32.mrf.mxu1  ;;  %v14799_v37 = vld [vmem:[#allocation2 + $0x7e0] sm:$0xf0] }
 0x6ac   :  { %v17083_v41 = vld [vmem:[#allocation2 + $0x9dc] sm:$0xf0]  ;;  %v9096_v62 = vadd.f32 %v9095_v59, %v9081_v48  ;;  %v15759_v10 = vld [vmem:[#allocation2 + $0xf60] sm:$0xf0] }
 0x6ad   :  { %9393 = vmatpush.bf16.msrb.mxu3 %v15758_v0  ;;  %9366 = vmatpush.bf16.msrb.mxu1 %v14670_v24  ;;  %v15565_v36 = vld [vmem:[#allocation2 + $0xda0] sm:$0xf]  ;;  %v15054_v23 = vor.u32 %v17083_v41, %v15053_v33  ;;  %9801 = vst [vmem:[#allocation4 + $0x48] sm:$0xff] %v9122_v5  ;;  %v16979_v5 = vld [vmem:[#allocation2 + $0x6a4] sm:$0xf] }
 0x6ae   :  { %v17211_v14 = vld [vmem:[#allocation2 + $0xddc] sm:$0xf0] }
 0x6af   :  { %9380 = vmatpush.bf16.msrb.mxu2 %v15182_v12  ;;  %9353 = vmatpush.bf16.msrb.mxu0 %v14094_v28  ;;  %v13965_v34 = vld [vmem:[#allocation2 + $0x120] sm:$0xf]  ;;  %v15566_v21 = vor.u32 %v17211_v14, %v15565_v36  ;;  %v15823_v36 = vld [vmem:[#allocation2 + $0xfe0] sm:$0xf0] }
 0x6b0   :  { %v16811_v42 = vld [vmem:[#allocation2 + $0x15c] sm:$0xf0]  ;;  %v9109_v18 = vpop.f32.mrf.mxu2  ;;  %v15826_v43 = vor.u32 %v17267_v27, %v15823_v36  ;;  %v16931_v27 = vld [vmem:[#allocation2 + $0x524] sm:$0xf] }
 0x6b1   :  { %9394 = vmatpush.bf16.msrb.mxu3 %v15694_v17  ;;  %9367 = vmatpush.bf16.msrb.mxu1 %v14606_v25  ;;  %v14477_v29 = vld [vmem:[#allocation2 + $0x520] sm:$0xf]  ;;  %v13966_v3 = vor.u32 %v16811_v42, %v13965_v34  ;;  %v9110_v28 = vadd.f32 %v9109_v18, %v9096_v62  ;;  %v16883_v25 = vld [vmem:[#allocation2 + $0x3a4] sm:$0xf] }
 0x6b2   :  { %v16939_v13 = vld [vmem:[#allocation2 + $0x55c] sm:$0xf0]  ;;  %v9123_v55 = vpop.f32.mrf.mxu3  ;;  %v16867_v34 = vld [vmem:[#allocation2 + $0x324] sm:$0xf] }
 0x6b3   :  { %9381 = vmatpush.bf16.msrb.mxu2 %v15118_v16  ;;  %v14989_v7 = vld [vmem:[#allocation2 + $0x920] sm:$0xf]  ;;  %9354 = vmatpush.bf16.msrb.mxu0 %v14030_v30  ;;  %v14478_v50 = vor.u32 %v16939_v13, %v14477_v29  ;;  %v14287_v16 = vld [vmem:[#allocation2 + $0x3e0] sm:$0xf0]  ;;  %v9124_v40 = vadd.f32 %v9123_v55, %v9110_v28 }
 0x6b4   :  { %v17067_v44 = vld [vmem:[#allocation2 + $0x95c] sm:$0xf0]  ;;  %v14290_v30 = vor.u32 %v16883_v25, %v14287_v16  ;;  %v14223_v42 = vld [vmem:[#allocation2 + $0x360] sm:$0xf0] }
 0x6b5   :  { %9395 = vmatpush.bf16.msrb.mxu3 %v15630_v39  ;;  %v15501_v1 = vld [vmem:[#allocation2 + $0xd20] sm:$0xf]  ;;  %9368 = vmatpush.bf16.msrb.mxu1 %v14542_v63  ;;  %v14990_v52 = vor.u32 %v17067_v44, %v14989_v7  ;;  %v15311_v39 = vld [vmem:[#allocation2 + $0xbe0] sm:$0xf0]  ;;  %9817 = vst [vmem:[#allocation4 + $0xa0] sm:$0xff] %v9124_v40  ;;  %v14802_v63 = vor.u32 %v17011_v35, %v14799_v37 }
 0x6b6   :  { %v17195_v31 = vld [vmem:[#allocation2 + $0xd5c] sm:$0xf0]  ;;  %v16995_v29 = vld [vmem:[#allocation2 + $0x724] sm:$0xf]  ;;  %v14226_v20 = vor.u32 %v16867_v34, %v14223_v42 }
 0x6b7   :  { %v13901_v46 = vld [vmem:[#allocation2 + $0xa0] sm:$0xf]  ;;  %9382 = vmatpush.bf16.msrb.mxu2 %v15054_v23  ;;  %v15502_v60 = vor.u32 %v17195_v31, %v15501_v1  ;;  %9355 = vmatpush.bf16.msrb.mxu0 %v13966_v3  ;;  %v15314_v23 = vor.u32 %v17139_v38, %v15311_v39  ;;  %v17123_v13 = vld [vmem:[#allocation2 + $0xb24] sm:$0xf] }
 0x6b8   :  { %v16795_v54 = vld [vmem:[#allocation2 + $0xdc] sm:$0xf0]  ;;  %v15247_v7 = vld [vmem:[#allocation2 + $0xb60] sm:$0xf0] }
 0x6b9   :  { %v14413_v58 = vld [vmem:[#allocation2 + $0x4a0] sm:$0xf]  ;;  %9396 = vmatpush.bf16.msrb.mxu3 %v15566_v21  ;;  %v13902_v51 = vor.u32 %v16795_v54, %v13901_v46  ;;  %9369 = vmatpush.bf16.msrb.mxu1 %v14478_v50  ;;  %v14735_v21 = vld [vmem:[#allocation2 + $0x760] sm:$0xf0]  ;;  %v15250_v31 = vor.u32 %v17123_v13, %v15247_v7 }
 0x6ba   :  { %v16923_v26 = vld [vmem:[#allocation2 + $0x4dc] sm:$0xf0]  ;;  %v17251_v44 = vld [vmem:[#allocation2 + $0xf24] sm:$0xf]  ;;  %v14738_v1 = vor.u32 %v16995_v29, %v14735_v21 }
 0x6bb   :  { %v14925_v0 = vld [vmem:[#allocation2 + $0x8a0] sm:$0xf]  ;;  %9383 = vmatpush.bf16.msrb.mxu2 %v14990_v52  ;;  %v14414_v12 = vor.u32 %v16923_v26, %v14413_v58  ;;  %9356 = vmatpush.bf16.msrb.mxu0 %v13902_v51  ;;  %v16851_v3 = vld [vmem:[#allocation2 + $0x2a4] sm:$0xf]  ;;  %v15762_v48 = vor.u32 %v17251_v44, %v15759_v10 }
 0x6bc   :  { %v17051_v57 = vld [vmem:[#allocation2 + $0x8dc] sm:$0xf0]  ;;  %v14159_v46 = vld [vmem:[#allocation2 + $0x2e0] sm:$0xf0] }
 0x6bd   :  { %v15437_v4 = vld [vmem:[#allocation2 + $0xca0] sm:$0xf]  ;;  %v14926_v9 = vor.u32 %v17051_v57, %v14925_v0  ;;  %9397 = vmatpush.bf16.msrb.mxu3 %v15502_v60  ;;  %9370 = vmatpush.bf16.msrb.mxu1 %v14414_v12  ;;  %v14671_v50 = vld [vmem:[#allocation2 + $0x6e0] sm:$0xf0]  ;;  %v14162_v59 = vor.u32 %v16851_v3, %v14159_v46 }
 0x6be   :  { %v17179_v56 = vld [vmem:[#allocation2 + $0xcdc] sm:$0xf0]  ;;  %v17107_v52 = vld [vmem:[#allocation2 + $0xaa4] sm:$0xf]  ;;  %v14674_v60 = vor.u32 %v16979_v5, %v14671_v50 }
 0x6bf   :  { %v13837_v8 = vld [vmem:[#allocation2 + $0x20] sm:$0xf]  ;;  %v15438_v47 = vor.u32 %v17179_v56, %v15437_v4  ;;  %9384 = vmatpush.bf16.msrb.mxu2 %v14926_v9  ;;  %v15183_v54 = vld [vmem:[#allocation2 + $0xae0] sm:$0xf0] }
 0x6c0   :  { %v16779_v24 = vld [vmem:[#allocation2 + $0x5c] sm:$0xf0]  ;;  %v17235_v58 = vld [vmem:[#allocation2 + $0xea4] sm:$0xf]  ;;  %v15186_v0 = vor.u32 %v17107_v52, %v15183_v54 }
 0x6c1   :  { %v14349_v11 = vld [vmem:[#allocation2 + $0x420] sm:$0xf]  ;;  %v13838_v15 = vor.u32 %v16779_v24, %v13837_v8  ;;  %9398 = vmatpush.bf16.msrb.mxu3 %v15438_v47  ;;  %v15695_v26 = vld [vmem:[#allocation2 + $0xee0] sm:$0xf0] }
 0x6c2   :  { %v16907_v2 = vld [vmem:[#allocation2 + $0x45c] sm:$0xf0]  ;;  %v16835_v57 = vld [vmem:[#allocation2 + $0x224] sm:$0xf]  ;;  %v15698_v56 = vor.u32 %v17235_v58, %v15695_v26 }
 0x6c3   :  { %v14861_v17 = vld [vmem:[#allocation2 + $0x820] sm:$0xf]  ;;  %v14350_v33 = vor.u32 %v16907_v2, %v14349_v11  ;;  %9357 = vmatpush.bf16.msrb.mxu0 %v13838_v15  ;;  %v14095_v62 = vld [vmem:[#allocation2 + $0x260] sm:$0xf0]  ;;  %v9135_v2 = vpop.f32.mrf.mxu0 }
 0x6c4   :  { %v17035_v49 = vld [vmem:[#allocation2 + $0x85c] sm:$0xf0]  ;;  %v16963_v4 = vld [vmem:[#allocation2 + $0x624] sm:$0xf]  ;;  %v14098_v11 = vor.u32 %v16835_v57, %v14095_v62 }
 0x6c5   :  { %v15373_v19 = vld [vmem:[#allocation2 + $0xc20] sm:$0xf]  ;;  %v14862_v41 = vor.u32 %v17035_v49, %v14861_v17  ;;  %9371 = vmatpush.bf16.msrb.mxu1 %v14350_v33  ;;  %v14607_v51 = vld [vmem:[#allocation2 + $0x660] sm:$0xf0] }
 0x6c6   :  { %v17163_v22 = vld [vmem:[#allocation2 + $0xc5c] sm:$0xf0]  ;;  %9358 = vmatmul.bf16.vlgmr.msrb.gmra.mxu0 %v18323_v45  ;;  %v17091_v8 = vld [vmem:[#allocation2 + $0xa24] sm:$0xf]  ;;  %v14610_v17 = vor.u32 %v16963_v4, %v14607_v51 }
 0x6c7   :  { %v15374_v14 = vor.u32 %v17163_v22, %v15373_v19  ;;  %9385 = vmatpush.bf16.msrb.mxu2 %v14862_v41  ;;  %9406 = vmatpush.bf16.msra.mxu0 %v14290_v30  ;;  %v15119_v24 = vld [vmem:[#allocation2 + $0xa60] sm:$0xf0]  ;;  %v9149_v22 = vpop.f32.mrf.mxu1 }
 0x6c8   :  { %9372 = vmatmul.bf16.vlgmr.msrb.gmra.mxu1 %v18325_v32  ;;  %v17219_v12 = vld [vmem:[#allocation2 + $0xe24] sm:$0xf]  ;;  %v15122_v18 = vor.u32 %v17091_v8, %v15119_v24  ;;  %v9150_v35 = vadd.f32 %v9149_v22, %v9135_v2  ;;  %v9163_v36 = vpop.f32.mrf.mxu2  ;;  %v15317_v22 = vld [vmem:[#allocation2 + $0xba8] sm:$0xf] }
 0x6c9   :  { %9399 = vmatpush.bf16.msrb.mxu3 %v15374_v14  ;;  %9420 = vmatpush.bf16.msra.mxu1 %v14802_v63  ;;  %v15631_v9 = vld [vmem:[#allocation2 + $0xe60] sm:$0xf0] }
 0x6ca   :  { %9386 = vmatmul.bf16.vlgmr.msrb.gmra.mxu2 %v18317_v6  ;;  %v16819_v47 = vld [vmem:[#allocation2 + $0x1a4] sm:$0xf]  ;;  %v15634_v28 = vor.u32 %v17219_v12, %v15631_v9  ;;  %v9164_v34 = vadd.f32 %v9163_v36, %v9150_v35  ;;  %v9177_v42 = vpop.f32.mrf.mxu3  ;;  %v15829_v35 = vld [vmem:[#allocation2 + $0xfa8] sm:$0xf] }
 0x6cb   :  { %9434 = vmatpush.bf16.msra.mxu2 %v15314_v23  ;;  %9407 = vmatpush.bf16.msra.mxu0 %v14226_v20  ;;  %v14031_v49 = vld [vmem:[#allocation2 + $0x1e0] sm:$0xf0]  ;;  %v9137_v44 = vpop.f32.mrf.mxu0 }
 0x6cc   :  { %9400 = vmatmul.bf16.vlgmr.msrb.gmra.mxu3 %v18319_v61  ;;  %v16947_v19 = vld [vmem:[#allocation2 + $0x5a4] sm:$0xf]  ;;  %v14034_v38 = vor.u32 %v16819_v47, %v14031_v49  ;;  %v9178_v7 = vadd.f32 %v9177_v42, %v9164_v34  ;;  %v14805_v47 = vld [vmem:[#allocation2 + $0x7a8] sm:$0xf] }
 0x6cd   :  { %9448 = vmatpush.bf16.msra.mxu3 %v15826_v43  ;;  %9421 = vmatpush.bf16.msra.mxu1 %v14738_v1  ;;  %v14543_v55 = vld [vmem:[#allocation2 + $0x5e0] sm:$0xf0]  ;;  %v17260_v34 = vld [vmem:[#allocation2 + $0xf64] sm:$0xf0] }
 0x6ce   :  { %v17075_v25 = vld [vmem:[#allocation2 + $0x9a4] sm:$0xf]  ;;  %v14546_v39 = vor.u32 %v16947_v19, %v14543_v55  ;;  %9802 = vst [vmem:[#allocation4 + $0x108] sm:$0xff] %v9178_v7  ;;  %v17020_v19 = vld [vmem:[#allocation2 + $0x7e4] sm:$0xf0] }
 0x6cf   :  { %9435 = vmatpush.bf16.msra.mxu2 %v15250_v31  ;;  %9408 = vmatpush.bf16.msra.mxu0 %v14162_v59  ;;  %v15055_v16 = vld [vmem:[#allocation2 + $0x9e0] sm:$0xf0]  ;;  %v9151_v46 = vpop.f32.mrf.mxu1  ;;  %v14677_v7 = vld [vmem:[#allocation2 + $0x6a8] sm:$0xf] }
 0x6d0   :  { %v17203_v15 = vld [vmem:[#allocation2 + $0xda4] sm:$0xf]  ;;  %v15058_v40 = vor.u32 %v17075_v25, %v15055_v16  ;;  %v9152_v52 = vadd.f32 %v9151_v46, %v9137_v44  ;;  %v9165_v51 = vpop.f32.mrf.mxu2 }
 0x6d1   :  { %9449 = vmatpush.bf16.msra.mxu3 %v15762_v48  ;;  %9422 = vmatpush.bf16.msra.mxu1 %v14674_v60  ;;  %v15567_v37 = vld [vmem:[#allocation2 + $0xde0] sm:$0xf0] }
 0x6d2   :  { %v16803_v33 = vld [vmem:[#allocation2 + $0x124] sm:$0xf]  ;;  %v15570_v14 = vor.u32 %v17203_v15, %v15567_v37  ;;  %v9179_v2 = vpop.f32.mrf.mxu3  ;;  %v17276_v15 = vld [vmem:[#allocation2 + $0xfe4] sm:$0xf0] }
 0x6d3   :  { %9436 = vmatpush.bf16.msra.mxu2 %v15186_v0  ;;  %9409 = vmatpush.bf16.msra.mxu0 %v14098_v11  ;;  %v13967_v41 = vld [vmem:[#allocation2 + $0x160] sm:$0xf0]  ;;  %v9166_v11 = vadd.f32 %v9165_v51, %v9152_v52  ;;  %v15830_v36 = vor.u32 %v17276_v15, %v15829_v35  ;;  %v16844_v52 = vld [vmem:[#allocation2 + $0x264] sm:$0xf0] }
 0x6d4   :  { %v14479_v30 = vld [vmem:[#allocation2 + $0x560] sm:$0xf0]  ;;  %v13970_v21 = vor.u32 %v16803_v33, %v13967_v41  ;;  %v14229_v33 = vld [vmem:[#allocation2 + $0x328] sm:$0xf] }
 0x6d5   :  { %9450 = vmatpush.bf16.msra.mxu3 %v15698_v56  ;;  %9423 = vmatpush.bf16.msra.mxu1 %v14610_v17  ;;  %v17059_v63 = vld [vmem:[#allocation2 + $0x924] sm:$0xf]  ;;  %v14482_v10 = vor.u32 %v16931_v27, %v14479_v30  ;;  %v14293_v17 = vld [vmem:[#allocation2 + $0x3a8] sm:$0xf]  ;;  %v9180_v55 = vadd.f32 %v9179_v2, %v9166_v11 }
 0x6d6   :  { %v14991_v23 = vld [vmem:[#allocation2 + $0x960] sm:$0xf0]  ;;  %v16876_v41 = vld [vmem:[#allocation2 + $0x364] sm:$0xf0] }
 0x6d7   :  { %9437 = vmatpush.bf16.msra.mxu2 %v15122_v18  ;;  %v17187_v29 = vld [vmem:[#allocation2 + $0xd24] sm:$0xf]  ;;  %9410 = vmatpush.bf16.msra.mxu0 %v14034_v38  ;;  %v14994_v20 = vor.u32 %v17059_v63, %v14991_v23  ;;  %v16892_v18 = vld [vmem:[#allocation2 + $0x3e4] sm:$0xf0]  ;;  %9818 = vst [vmem:[#allocation4 + $0x70] sm:$0xff] %v9180_v55  ;;  %v14230_v42 = vor.u32 %v16876_v41, %v14229_v33 }
 0x6d8   :  { %v15503_v43 = vld [vmem:[#allocation2 + $0xd60] sm:$0xf0]  ;;  %v14294_v38 = vor.u32 %v16892_v18, %v14293_v17  ;;  %v14741_v27 = vld [vmem:[#allocation2 + $0x728] sm:$0xf] }
 0x6d9   :  { %9451 = vmatpush.bf16.msra.mxu3 %v15634_v28  ;;  %v16787_v13 = vld [vmem:[#allocation2 + $0xa4] sm:$0xf]  ;;  %9424 = vmatpush.bf16.msra.mxu1 %v14546_v39  ;;  %v15506_v5 = vor.u32 %v17187_v29, %v15503_v43  ;;  %v17148_v28 = vld [vmem:[#allocation2 + $0xbe4] sm:$0xf0]  ;;  %v14806_v39 = vor.u32 %v17020_v19, %v14805_v47 }
 0x6da   :  { %v13903_v1 = vld [vmem:[#allocation2 + $0xe0] sm:$0xf0]  ;;  %v15253_v30 = vld [vmem:[#allocation2 + $0xb28] sm:$0xf] }
 0x6db   :  { %9438 = vmatpush.bf16.msra.mxu2 %v15058_v40  ;;  %v16915_v31 = vld [vmem:[#allocation2 + $0x4a4] sm:$0xf]  ;;  %9411 = vmatpush.bf16.msra.mxu0 %v13970_v21  ;;  %v13906_v26 = vor.u32 %v16787_v13, %v13903_v1  ;;  %v15318_v40 = vor.u32 %v17148_v28, %v15317_v22  ;;  %v17132_v63 = vld [vmem:[#allocation2 + $0xb64] sm:$0xf0] }
 0x6dc   :  { %v14415_v3 = vld [vmem:[#allocation2 + $0x4e0] sm:$0xf0]  ;;  %v15765_v23 = vld [vmem:[#allocation2 + $0xf28] sm:$0xf]  ;;  %v15254_v43 = vor.u32 %v17132_v63, %v15253_v30 }
 0x6dd   :  { %9452 = vmatpush.bf16.msra.mxu3 %v15570_v14  ;;  %v17043_v48 = vld [vmem:[#allocation2 + $0x8a4] sm:$0xf]  ;;  %9425 = vmatpush.bf16.msra.mxu1 %v14482_v10  ;;  %v14418_v0 = vor.u32 %v16915_v31, %v14415_v3  ;;  %v17004_v14 = vld [vmem:[#allocation2 + $0x764] sm:$0xf0]  ;;  %v15766_v44 = vor.u32 %v17260_v34, %v15765_v23 }
 0x6de   :  { %v14927_v50 = vld [vmem:[#allocation2 + $0x8e0] sm:$0xf0]  ;;  %v14742_v29 = vor.u32 %v17004_v14, %v14741_v27  ;;  %v14165_v21 = vld [vmem:[#allocation2 + $0x2a8] sm:$0xf] }
 0x6df   :  { %v17171_v54 = vld [vmem:[#allocation2 + $0xca4] sm:$0xf]  ;;  %9439 = vmatpush.bf16.msra.mxu2 %v14994_v20  ;;  %v14930_v57 = vor.u32 %v17043_v48, %v14927_v50  ;;  %9412 = vmatpush.bf16.msra.mxu0 %v13906_v26  ;;  %v16860_v13 = vld [vmem:[#allocation2 + $0x2e4] sm:$0xf0] }
 0x6e0   :  { %v15439_v58 = vld [vmem:[#allocation2 + $0xce0] sm:$0xf0]  ;;  %v16988_v10 = vld [vmem:[#allocation2 + $0x6e4] sm:$0xf0]  ;;  %v14166_v46 = vor.u32 %v16860_v13, %v14165_v21 }
 0x6e1   :  { %v16771_v59 = vld [vmem:[#allocation2 + $0x24] sm:$0xf]  ;;  %9453 = vmatpush.bf16.msra.mxu3 %v15506_v5  ;;  %v15442_v8 = vor.u32 %v17171_v54, %v15439_v58  ;;  %9426 = vmatpush.bf16.msra.mxu1 %v14418_v0  ;;  %v15189_v20 = vld [vmem:[#allocation2 + $0xaa8] sm:$0xf]  ;;  %v14678_v5 = vor.u32 %v16988_v10, %v14677_v7 }
 0x6e2   :  { %v13839_v60 = vld [vmem:[#allocation2 + $0x60] sm:$0xf0]  ;;  %v17116_v1 = vld [vmem:[#allocation2 + $0xae4] sm:$0xf0] }
 0x6e3   :  { %v16899_v62 = vld [vmem:[#allocation2 + $0x424] sm:$0xf]  ;;  %v13842_v49 = vor.u32 %v16771_v59, %v13839_v60  ;;  %9440 = vmatpush.bf16.msra.mxu2 %v14930_v57  ;;  %v15701_v31 = vld [vmem:[#allocation2 + $0xea8] sm:$0xf]  ;;  %v15190_v48 = vor.u32 %v17116_v1, %v15189_v20 }
 0x6e4   :  { %v14351_v4 = vld [vmem:[#allocation2 + $0x460] sm:$0xf0]  ;;  %v17244_v3 = vld [vmem:[#allocation2 + $0xee4] sm:$0xf0] }
 0x6e5   :  { %v17027_v56 = vld [vmem:[#allocation2 + $0x824] sm:$0xf]  ;;  %v14354_v25 = vor.u32 %v16899_v62, %v14351_v4  ;;  %9454 = vmatpush.bf16.msra.mxu3 %v15442_v8  ;;  %9413 = vmatpush.bf16.msra.mxu0 %v13842_v49  ;;  %v14101_v50 = vld [vmem:[#allocation2 + $0x228] sm:$0xf]  ;;  %v15702_v58 = vor.u32 %v17244_v3, %v15701_v31  ;;  %v9191_v4 = vpop.f32.mrf.mxu0 }
 0x6e6   :  { %v14863_v24 = vld [vmem:[#allocation2 + $0x860] sm:$0xf0]  ;;  %v14613_v54 = vld [vmem:[#allocation2 + $0x628] sm:$0xf]  ;;  %v14102_v62 = vor.u32 %v16844_v52, %v14101_v50 }
 0x6e7   :  { %v17155_v12 = vld [vmem:[#allocation2 + $0xc24] sm:$0xf]  ;;  %v14866_v16 = vor.u32 %v17027_v56, %v14863_v24  ;;  %9427 = vmatpush.bf16.msra.mxu1 %v14354_v25  ;;  %v16972_v26 = vld [vmem:[#allocation2 + $0x664] sm:$0xf0] }
 0x6e8   :  { %v15375_v9 = vld [vmem:[#allocation2 + $0xc60] sm:$0xf0]  ;;  %9414 = vmatmul.bf16.vlgmr.msra.gmra.mxu0 %v18323_v45  ;;  %v15125_v59 = vld [vmem:[#allocation2 + $0xa28] sm:$0xf]  ;;  %v14614_v56 = vor.u32 %v16972_v26, %v14613_v54  ;;  %v9219_v15 = vpop.f32.mrf.mxu2 }
 0x6e9   :  { %v15378_v37 = vor.u32 %v17155_v12, %v15375_v9  ;;  %9441 = vmatpush.bf16.msra.mxu2 %v14866_v16  ;;  %9462 = vmatpush.bf16.msrb.mxu0 %v14294_v38  ;;  %v17100_v60 = vld [vmem:[#allocation2 + $0xa64] sm:$0xf0]  ;;  %v9205_v9 = vpop.f32.mrf.mxu1 }
 0x6ea   :  { %9428 = vmatmul.bf16.vlgmr.msra.gmra.mxu1 %v18325_v32  ;;  %v15637_v0 = vld [vmem:[#allocation2 + $0xe28] sm:$0xf]  ;;  %v15126_v51 = vor.u32 %v17100_v60, %v15125_v59  ;;  %v9206_v47 = vadd.f32 %v9205_v9, %v9191_v4  ;;  %v9233_v41 = vpop.f32.mrf.mxu3  ;;  %v17140_v9 = vld [vmem:[#allocation2 + $0xbac] sm:$0xf] }
 0x6eb   :  { %9455 = vmatpush.bf16.msra.mxu3 %v15378_v37  ;;  %9476 = vmatpush.bf16.msrb.mxu1 %v14806_v39  ;;  %v17228_v57 = vld [vmem:[#allocation2 + $0xe64] sm:$0xf0] }
 0x6ec   :  { %9442 = vmatmul.bf16.vlgmr.msra.gmra.mxu2 %v18317_v6  ;;  %v14037_v8 = vld [vmem:[#allocation2 + $0x1a8] sm:$0xf]  ;;  %v15638_v11 = vor.u32 %v17228_v57, %v15637_v0  ;;  %v9220_v33 = vadd.f32 %v9219_v15, %v9206_v47  ;;  %v17268_v47 = vld [vmem:[#allocation2 + $0xfac] sm:$0xf] }
 0x6ed   :  { %9490 = vmatpush.bf16.msrb.mxu2 %v15318_v40  ;;  %9463 = vmatpush.bf16.msrb.mxu0 %v14230_v42  ;;  %v16828_v24 = vld [vmem:[#allocation2 + $0x1e4] sm:$0xf0]  ;;  %v9193_v23 = vpop.f32.mrf.mxu0 }
 0x6ee   :  { %9456 = vmatmul.bf16.vlgmr.msra.gmra.mxu3 %v18319_v61  ;;  %v14549_v12 = vld [vmem:[#allocation2 + $0x5a8] sm:$0xf]  ;;  %v14038_v22 = vor.u32 %v16828_v24, %v14037_v8  ;;  %v9234_v63 = vadd.f32 %v9233_v41, %v9220_v33  ;;  %v17012_v8 = vld [vmem:[#allocation2 + $0x7ac] sm:$0xf] }
 0x6ef   :  { %9504 = vmatpush.bf16.msrb.mxu3 %v15830_v36  ;;  %9477 = vmatpush.bf16.msrb.mxu1 %v14742_v29  ;;  %v16956_v2 = vld [vmem:[#allocation2 + $0x5e4] sm:$0xf0]  ;;  %v15767_v33 = vld [vmem:[#allocation2 + $0xf68] sm:$0xf0] }
 0x6f0   :  { %v15061_v17 = vld [vmem:[#allocation2 + $0x9a8] sm:$0xf]  ;;  %v14550_v28 = vor.u32 %v16956_v2, %v14549_v12  ;;  %9803 = vst [vmem:[#allocation4 + $0x68] sm:$0xff] %v9234_v63  ;;  %v9221_v26 = vpop.f32.mrf.mxu2  ;;  %v14807_v12 = vld [vmem:[#allocation2 + $0x7e8] sm:$0xf0] }
 0x6f1   :  { %9491 = vmatpush.bf16.msrb.mxu2 %v15254_v43  ;;  %9464 = vmatpush.bf16.msrb.mxu0 %v14166_v46  ;;  %v17084_v18 = vld [vmem:[#allocation2 + $0x9e4] sm:$0xf0]  ;;  %v9207_v13 = vpop.f32.mrf.mxu1  ;;  %v16980_v63 = vld [vmem:[#allocation2 + $0x6ac] sm:$0xf] }
 0x6f2   :  { %v15573_v49 = vld [vmem:[#allocation2 + $0xda8] sm:$0xf]  ;;  %v15062_v55 = vor.u32 %v17084_v18, %v15061_v17  ;;  %v9208_v20 = vadd.f32 %v9207_v13, %v9193_v23  ;;  %v9235_v4 = vpop.f32.mrf.mxu3 }
 0x6f3   :  { %9505 = vmatpush.bf16.msrb.mxu3 %v15766_v44  ;;  %9478 = vmatpush.bf16.msrb.mxu1 %v14678_v5  ;;  %v17212_v19 = vld [vmem:[#allocation2 + $0xde4] sm:$0xf0] }
 0x6f4   :  { %v13973_v25 = vld [vmem:[#allocation2 + $0x128] sm:$0xf]  ;;  %v15574_v37 = vor.u32 %v17212_v19, %v15573_v49  ;;  %v15831_v49 = vld [vmem:[#allocation2 + $0xfe8] sm:$0xf0] }
 0x6f5   :  { %9492 = vmatpush.bf16.msrb.mxu2 %v15190_v48  ;;  %9465 = vmatpush.bf16.msrb.mxu0 %v14102_v62  ;;  %v16812_v16 = vld [vmem:[#allocation2 + $0x164] sm:$0xf0]  ;;  %v9222_v62 = vadd.f32 %v9221_v26, %v9208_v20  ;;  %v15834_v15 = vor.u32 %v17268_v47, %v15831_v49  ;;  %v14103_v20 = vld [vmem:[#allocation2 + $0x268] sm:$0xf0] }
 0x6f6   :  { %v14485_v35 = vld [vmem:[#allocation2 + $0x528] sm:$0xf]  ;;  %v13974_v14 = vor.u32 %v16812_v16, %v13973_v25  ;;  %v16868_v25 = vld [vmem:[#allocation2 + $0x32c] sm:$0xf] }
 0x6f7   :  { %9506 = vmatpush.bf16.msrb.mxu3 %v15702_v58  ;;  %9479 = vmatpush.bf16.msrb.mxu1 %v14614_v56  ;;  %v16940_v38 = vld [vmem:[#allocation2 + $0x564] sm:$0xf0]  ;;  %v16884_v56 = vld [vmem:[#allocation2 + $0x3ac] sm:$0xf]  ;;  %v9236_v2 = vadd.f32 %v9235_v4, %v9222_v62 }
 0x6f8   :  { %v14997_v39 = vld [vmem:[#allocation2 + $0x928] sm:$0xf]  ;;  %v14486_v34 = vor.u32 %v16940_v38, %v14485_v35  ;;  %v14231_v16 = vld [vmem:[#allocation2 + $0x368] sm:$0xf0] }
 0x6f9   :  { %9493 = vmatpush.bf16.msrb.mxu2 %v15126_v51  ;;  %v17068_v40 = vld [vmem:[#allocation2 + $0x964] sm:$0xf0]  ;;  %9466 = vmatpush.bf16.msrb.mxu0 %v14038_v22  ;;  %v14295_v51 = vld [vmem:[#allocation2 + $0x3e8] sm:$0xf0]  ;;  %9819 = vst [vmem:[#allocation4 + $0x58] sm:$0xff] %v9236_v2  ;;  %v14234_v41 = vor.u32 %v16868_v25, %v14231_v16 }
 0x6fa   :  { %v15509_v27 = vld [vmem:[#allocation2 + $0xd28] sm:$0xf]  ;;  %v14998_v42 = vor.u32 %v17068_v40, %v14997_v39  ;;  %v14298_v22 = vor.u32 %v16884_v56, %v14295_v51  ;;  %v16996_v35 = vld [vmem:[#allocation2 + $0x72c] sm:$0xf] }
 0x6fb   :  { %9507 = vmatpush.bf16.msrb.mxu3 %v15638_v11  ;;  %v17196_v36 = vld [vmem:[#allocation2 + $0xd64] sm:$0xf0]  ;;  %9480 = vmatpush.bf16.msrb.mxu1 %v14550_v28  ;;  %v15319_v11 = vld [vmem:[#allocation2 + $0xbe8] sm:$0xf0]  ;;  %v14810_v28 = vor.u32 %v17012_v8, %v14807_v12 }
 0x6fc   :  { %v13909_v30 = vld [vmem:[#allocation2 + $0xa8] sm:$0xf]  ;;  %v15510_v7 = vor.u32 %v17196_v36, %v15509_v27  ;;  %v17124_v38 = vld [vmem:[#allocation2 + $0xb2c] sm:$0xf] }
 0x6fd   :  { %9494 = vmatpush.bf16.msrb.mxu2 %v15062_v55  ;;  %v16796_v29 = vld [vmem:[#allocation2 + $0xe4] sm:$0xf0]  ;;  %9467 = vmatpush.bf16.msrb.mxu0 %v13974_v14  ;;  %v15322_v55 = vor.u32 %v17140_v9, %v15319_v11  ;;  %v15255_v39 = vld [vmem:[#allocation2 + $0xb68] sm:$0xf0] }
 0x6fe   :  { %v14421_v43 = vld [vmem:[#allocation2 + $0x4a8] sm:$0xf]  ;;  %v13910_v3 = vor.u32 %v16796_v29, %v13909_v30  ;;  %v17252_v40 = vld [vmem:[#allocation2 + $0xf2c] sm:$0xf]  ;;  %v15258_v36 = vor.u32 %v17124_v38, %v15255_v39 }
 0x6ff   :  { %v16924_v21 = vld [vmem:[#allocation2 + $0x4e4] sm:$0xf0]  ;;  %9508 = vmatpush.bf16.msrb.mxu3 %v15574_v37  ;;  %9481 = vmatpush.bf16.msrb.mxu1 %v14486_v34  ;;  %v14743_v37 = vld [vmem:[#allocation2 + $0x768] sm:$0xf0]  ;;  %v15770_v23 = vor.u32 %v17252_v40, %v15767_v33 }
 0x700   :  { %v14933_v44 = vld [vmem:[#allocation2 + $0x8a8] sm:$0xf]  ;;  %v14422_v48 = vor.u32 %v16924_v21, %v14421_v43  ;;  %v14746_v27 = vor.u32 %v16996_v35, %v14743_v37  ;;  %v16852_v14 = vld [vmem:[#allocation2 + $0x2ac] sm:$0xf] }
 0x701   :  { %v17052_v10 = vld [vmem:[#allocation2 + $0x8e4] sm:$0xf0]  ;;  %9495 = vmatpush.bf16.msrb.mxu2 %v14998_v42  ;;  %9468 = vmatpush.bf16.msrb.mxu0 %v13910_v3  ;;  %v14167_v30 = vld [vmem:[#allocation2 + $0x2e8] sm:$0xf0] }
 0x702   :  { %v15445_v1 = vld [vmem:[#allocation2 + $0xca8] sm:$0xf]  ;;  %v14934_v50 = vor.u32 %v17052_v10, %v14933_v44  ;;  %v14679_v34 = vld [vmem:[#allocation2 + $0x6e8] sm:$0xf0]  ;;  %v14170_v13 = vor.u32 %v16852_v14, %v14167_v30 }
 0x703   :  { %v17180_v31 = vld [vmem:[#allocation2 + $0xce4] sm:$0xf0]  ;;  %9509 = vmatpush.bf16.msrb.mxu3 %v15510_v7  ;;  %9482 = vmatpush.bf16.msrb.mxu1 %v14422_v48  ;;  %v17108_v42 = vld [vmem:[#allocation2 + $0xaac] sm:$0xf]  ;;  %v14682_v7 = vor.u32 %v16980_v63, %v14679_v34 }
 0x704   :  { %v13845_v46 = vld [vmem:[#allocation2 + $0x28] sm:$0xf]  ;;  %v15446_v59 = vor.u32 %v17180_v31, %v15445_v1  ;;  %v15191_v29 = vld [vmem:[#allocation2 + $0xae8] sm:$0xf0] }
 0x705   :  { %v16780_v5 = vld [vmem:[#allocation2 + $0x64] sm:$0xf0]  ;;  %9496 = vmatpush.bf16.msrb.mxu2 %v14934_v50  ;;  %v17236_v43 = vld [vmem:[#allocation2 + $0xeac] sm:$0xf]  ;;  %v15194_v44 = vor.u32 %v17108_v42, %v15191_v29 }
 0x706   :  { %v14357_v52 = vld [vmem:[#allocation2 + $0x428] sm:$0xf]  ;;  %v13846_v24 = vor.u32 %v16780_v5, %v13845_v46  ;;  %v15703_v21 = vld [vmem:[#allocation2 + $0xee8] sm:$0xf0] }
 0x707   :  { %v16908_v54 = vld [vmem:[#allocation2 + $0x464] sm:$0xf0]  ;;  %9510 = vmatpush.bf16.msrb.mxu3 %v15446_v59  ;;  %v16836_v10 = vld [vmem:[#allocation2 + $0x22c] sm:$0xf]  ;;  %v15706_v31 = vor.u32 %v17236_v43, %v15703_v21 }
 0x708   :  { %v14869_v58 = vld [vmem:[#allocation2 + $0x828] sm:$0xf]  ;;  %v14358_v17 = vor.u32 %v16908_v54, %v14357_v52  ;;  %9469 = vmatpush.bf16.msrb.mxu0 %v13846_v24  ;;  %v16964_v1 = vld [vmem:[#allocation2 + $0x62c] sm:$0xf]  ;;  %v14106_v52 = vor.u32 %v16836_v10, %v14103_v20  ;;  %v9247_v54 = vpop.f32.mrf.mxu0  ;;  %v9275_v49 = vpop.f32.mrf.mxu2 }
 0x709   :  { %v17036_v60 = vld [vmem:[#allocation2 + $0x864] sm:$0xf0]  ;;  %v14615_v3 = vld [vmem:[#allocation2 + $0x668] sm:$0xf0] }
 0x70a   :  { %v15381_v0 = vld [vmem:[#allocation2 + $0xc28] sm:$0xf]  ;;  %v14870_v18 = vor.u32 %v17036_v60, %v14869_v58  ;;  %9483 = vmatpush.bf16.msrb.mxu1 %v14358_v17  ;;  %v17092_v46 = vld [vmem:[#allocation2 + $0xa2c] sm:$0xf]  ;;  %v14618_v58 = vor.u32 %v16964_v1, %v14615_v3  ;;  %v9289_v16 = vpop.f32.mrf.mxu3 }
 0x70b   :  { %v17164_v57 = vld [vmem:[#allocation2 + $0xc64] sm:$0xf0]  ;;  %9470 = vmatmul.bf16.vlgmr.msrb.gmra.mxu0 %v18323_v45  ;;  %v15127_v5 = vld [vmem:[#allocation2 + $0xa68] sm:$0xf0] }
 0x70c   :  { %v15382_v19 = vor.u32 %v17164_v57, %v15381_v0  ;;  %9497 = vmatpush.bf16.msrb.mxu2 %v14870_v18  ;;  %9518 = vmatpush.bf16.msra.mxu0 %v14298_v22  ;;  %v17220_v48 = vld [vmem:[#allocation2 + $0xe2c] sm:$0xf]  ;;  %v15130_v26 = vor.u32 %v17092_v46, %v15127_v5  ;;  %v9261_v57 = vpop.f32.mrf.mxu1 }
 0x70d   :  { %9484 = vmatmul.bf16.vlgmr.msrb.gmra.mxu1 %v18325_v32  ;;  %v15639_v50 = vld [vmem:[#allocation2 + $0xe68] sm:$0xf0]  ;;  %v9262_v8 = vadd.f32 %v9261_v57, %v9247_v54  ;;  %v15325_v57 = vld [vmem:[#allocation2 + $0xbb0] sm:$0xf] }
 0x70e   :  { %9511 = vmatpush.bf16.msrb.mxu3 %v15382_v19  ;;  %9532 = vmatpush.bf16.msra.mxu1 %v14810_v28  ;;  %v16820_v59 = vld [vmem:[#allocation2 + $0x1ac] sm:$0xf]  ;;  %v15642_v62 = vor.u32 %v17220_v48, %v15639_v50 }
 0x70f   :  { %9498 = vmatmul.bf16.vlgmr.msrb.gmra.mxu2 %v18317_v6  ;;  %v14039_v60 = vld [vmem:[#allocation2 + $0x1e8] sm:$0xf0]  ;;  %v9276_v25 = vadd.f32 %v9275_v49, %v9262_v8  ;;  %v15837_v8 = vld [vmem:[#allocation2 + $0xfb0] sm:$0xf] }
 0x710   :  { %9546 = vmatpush.bf16.msra.mxu2 %v15322_v55  ;;  %9519 = vmatpush.bf16.msra.mxu0 %v14234_v41  ;;  %v16948_v0 = vld [vmem:[#allocation2 + $0x5ac] sm:$0xf]  ;;  %v14042_v9 = vor.u32 %v16820_v59, %v14039_v60  ;;  %v9249_v40 = vpop.f32.mrf.mxu0  ;;  %v9277_v3 = vpop.f32.mrf.mxu2  ;;  %v14813_v59 = vld [vmem:[#allocation2 + $0x7b0] sm:$0xf] }
 0x711   :  { %9512 = vmatmul.bf16.vlgmr.msrb.gmra.mxu3 %v18319_v61  ;;  %v14551_v4 = vld [vmem:[#allocation2 + $0x5e8] sm:$0xf0]  ;;  %v9290_v39 = vadd.f32 %v9289_v16, %v9276_v25  ;;  %v17261_v25 = vld [vmem:[#allocation2 + $0xf6c] sm:$0xf0] }
 0x712   :  { %9560 = vmatpush.bf16.msra.mxu3 %v15834_v15  ;;  %9533 = vmatpush.bf16.msra.mxu1 %v14746_v27  ;;  %v17076_v56 = vld [vmem:[#allocation2 + $0x9ac] sm:$0xf]  ;;  %v14554_v11 = vor.u32 %v16948_v0, %v14551_v4  ;;  %v9291_v54 = vpop.f32.mrf.mxu3  ;;  %v17021_v0 = vld [vmem:[#allocation2 + $0x7ec] sm:$0xf0] }
 0x713   :  { %v15063_v51 = vld [vmem:[#allocation2 + $0x9e8] sm:$0xf0]  ;;  %9804 = vst [vmem:[#allocation4 + $0x30] sm:$0xff] %v9290_v39  ;;  %v14685_v39 = vld [vmem:[#allocation2 + $0x6b0] sm:$0xf] }
 0x714   :  { %9547 = vmatpush.bf16.msra.mxu2 %v15258_v36  ;;  %9520 = vmatpush.bf16.msra.mxu0 %v14170_v13  ;;  %v17204_v24 = vld [vmem:[#allocation2 + $0xdac] sm:$0xf]  ;;  %v15066_v2 = vor.u32 %v17076_v56, %v15063_v51  ;;  %v9263_v30 = vpop.f32.mrf.mxu1 }
 0x715   :  { %v15575_v12 = vld [vmem:[#allocation2 + $0xde8] sm:$0xf0]  ;;  %v9264_v42 = vadd.f32 %v9263_v30, %v9249_v40 }
 0x716   :  { %9561 = vmatpush.bf16.msra.mxu3 %v15770_v23  ;;  %9534 = vmatpush.bf16.msra.mxu1 %v14682_v7  ;;  %v16804_v17 = vld [vmem:[#allocation2 + $0x12c] sm:$0xf]  ;;  %v15578_v19 = vor.u32 %v17204_v24, %v15575_v12  ;;  %v17277_v24 = vld [vmem:[#allocation2 + $0xfec] sm:$0xf0] }
 0x717   :  { %v13975_v18 = vld [vmem:[#allocation2 + $0x168] sm:$0xf0]  ;;  %v15838_v49 = vor.u32 %v17277_v24, %v15837_v8  ;;  %v14493_v8 = vld [vmem:[#allocation2 + $0x530] sm:$0xf] }
 0x718   :  { %9548 = vmatpush.bf16.msra.mxu2 %v15194_v44  ;;  %9521 = vmatpush.bf16.msra.mxu0 %v14106_v52  ;;  %v16932_v47 = vld [vmem:[#allocation2 + $0x52c] sm:$0xf]  ;;  %v13978_v37 = vor.u32 %v16804_v17, %v13975_v18  ;;  %v9278_v52 = vadd.f32 %v9277_v3, %v9264_v42  ;;  %v14237_v17 = vld [vmem:[#allocation2 + $0x330] sm:$0xf] }
 0x719   :  { %v14487_v22 = vld [vmem:[#allocation2 + $0x568] sm:$0xf0]  ;;  %v16877_v18 = vld [vmem:[#allocation2 + $0x36c] sm:$0xf0] }
 0x71a   :  { %9562 = vmatpush.bf16.msra.mxu3 %v15706_v31  ;;  %9535 = vmatpush.bf16.msra.mxu1 %v14618_v58  ;;  %v17060_v28 = vld [vmem:[#allocation2 + $0x92c] sm:$0xf]  ;;  %v14490_v33 = vor.u32 %v16932_v47, %v14487_v22  ;;  %v14301_v58 = vld [vmem:[#allocation2 + $0x3b0] sm:$0xf]  ;;  %v9292_v4 = vadd.f32 %v9291_v54, %v9278_v52  ;;  %v14238_v16 = vor.u32 %v16877_v18, %v14237_v17 }
 0x71b   :  { %v14999_v55 = vld [vmem:[#allocation2 + $0x968] sm:$0xf0]  ;;  %v14749_v47 = vld [vmem:[#allocation2 + $0x730] sm:$0xf] }
 0x71c   :  { %9549 = vmatpush.bf16.msra.mxu2 %v15130_v26  ;;  %v17188_v35 = vld [vmem:[#allocation2 + $0xd2c] sm:$0xf]  ;;  %9522 = vmatpush.bf16.msra.mxu0 %v14042_v9  ;;  %v15002_v41 = vor.u32 %v17060_v28, %v14999_v55  ;;  %v16893_v26 = vld [vmem:[#allocation2 + $0x3ec] sm:$0xf0]  ;;  %9820 = vst [vmem:[#allocation4 + $0xe0] sm:$0xff] %v9292_v4 }
 0x71d   :  { %v15511_v15 = vld [vmem:[#allocation2 + $0xd68] sm:$0xf0]  ;;  %v14302_v9 = vor.u32 %v16893_v26, %v14301_v58  ;;  %v15261_v22 = vld [vmem:[#allocation2 + $0xb30] sm:$0xf] }
 0x71e   :  { %9563 = vmatpush.bf16.msra.mxu3 %v15642_v62  ;;  %v16788_v38 = vld [vmem:[#allocation2 + $0xac] sm:$0xf]  ;;  %9536 = vmatpush.bf16.msra.mxu1 %v14554_v11  ;;  %v15514_v63 = vor.u32 %v17188_v35, %v15511_v15  ;;  %v17149_v62 = vld [vmem:[#allocation2 + $0xbec] sm:$0xf0]  ;;  %v14814_v11 = vor.u32 %v17021_v0, %v14813_v59 }
 0x71f   :  { %v13911_v27 = vld [vmem:[#allocation2 + $0xe8] sm:$0xf0]  ;;  %v17133_v28 = vld [vmem:[#allocation2 + $0xb6c] sm:$0xf0] }
 0x720   :  { %9550 = vmatpush.bf16.msra.mxu2 %v15066_v2  ;;  %v16916_v36 = vld [vmem:[#allocation2 + $0x4ac] sm:$0xf]  ;;  %9523 = vmatpush.bf16.msra.mxu0 %v13978_v37  ;;  %v13914_v21 = vor.u32 %v16788_v38, %v13911_v27  ;;  %v15326_v2 = vor.u32 %v17149_v62, %v15325_v57  ;;  %v15773_v55 = vld [vmem:[#allocation2 + $0xf30] sm:$0xf]  ;;  %v15262_v15 = vor.u32 %v17133_v28, %v15261_v22 }
 0x721   :  { %v14423_v14 = vld [vmem:[#allocation2 + $0x4e8] sm:$0xf0]  ;;  %v14173_v37 = vld [vmem:[#allocation2 + $0x2b0] sm:$0xf]  ;;  %v15774_v40 = vor.u32 %v17261_v25, %v15773_v55 }
 0x722   :  { %9564 = vmatpush.bf16.msra.mxu3 %v15578_v19  ;;  %v17044_v23 = vld [vmem:[#allocation2 + $0x8ac] sm:$0xf]  ;;  %9537 = vmatpush.bf16.msra.mxu1 %v14490_v33  ;;  %v14426_v44 = vor.u32 %v16916_v36, %v14423_v14  ;;  %v17005_v19 = vld [vmem:[#allocation2 + $0x76c] sm:$0xf0] }
 0x723   :  { %v14935_v34 = vld [vmem:[#allocation2 + $0x8e8] sm:$0xf0]  ;;  %v14750_v35 = vor.u32 %v17005_v19, %v14749_v47  ;;  %v16861_v38 = vld [vmem:[#allocation2 + $0x2ec] sm:$0xf0] }
 0x724   :  { %v17172_v29 = vld [vmem:[#allocation2 + $0xcac] sm:$0xf]  ;;  %9551 = vmatpush.bf16.msra.mxu2 %v15002_v41  ;;  %v14938_v10 = vor.u32 %v17044_v23, %v14935_v34  ;;  %9524 = vmatpush.bf16.msra.mxu0 %v13914_v21  ;;  %v16989_v33 = vld [vmem:[#allocation2 + $0x6ec] sm:$0xf0]  ;;  %v14174_v30 = vor.u32 %v16861_v38, %v14173_v37 }
 0x725   :  { %v15447_v43 = vld [vmem:[#allocation2 + $0xce8] sm:$0xf0]  ;;  %v15197_v41 = vld [vmem:[#allocation2 + $0xab0] sm:$0xf] }
 0x726   :  { %v16772_v13 = vld [vmem:[#allocation2 + $0x2c] sm:$0xf]  ;;  %9565 = vmatpush.bf16.msra.mxu3 %v15514_v63  ;;  %v15450_v46 = vor.u32 %v17172_v29, %v15447_v43  ;;  %9538 = vmatpush.bf16.msra.mxu1 %v14426_v44  ;;  %v17117_v27 = vld [vmem:[#allocation2 + $0xaec] sm:$0xf0]  ;;  %v14686_v63 = vor.u32 %v16989_v33, %v14685_v39 }
 0x727   :  { %v13847_v7 = vld [vmem:[#allocation2 + $0x68] sm:$0xf0]  ;;  %v15709_v36 = vld [vmem:[#allocation2 + $0xeb0] sm:$0xf]  ;;  %v15198_v23 = vor.u32 %v17117_v27, %v15197_v41 }
 0x728   :  { %v16900_v20 = vld [vmem:[#allocation2 + $0x42c] sm:$0xf]  ;;  %v13850_v60 = vor.u32 %v16772_v13, %v13847_v7  ;;  %9552 = vmatpush.bf16.msra.mxu2 %v14938_v10  ;;  %v17245_v14 = vld [vmem:[#allocation2 + $0xeec] sm:$0xf0] }
 0x729   :  { %v14359_v1 = vld [vmem:[#allocation2 + $0x468] sm:$0xf0]  ;;  %v14109_v34 = vld [vmem:[#allocation2 + $0x230] sm:$0xf]  ;;  %v15710_v43 = vor.u32 %v17245_v14, %v15709_v36  ;;  %v9331_v24 = vpop.f32.mrf.mxu2 }
 0x72a   :  { %v17028_v31 = vld [vmem:[#allocation2 + $0x82c] sm:$0xf]  ;;  %v14362_v56 = vor.u32 %v16900_v20, %v14359_v1  ;;  %9566 = vmatpush.bf16.msra.mxu3 %v15450_v46  ;;  %9525 = vmatpush.bf16.msra.mxu0 %v13850_v60  ;;  %v16845_v42 = vld [vmem:[#allocation2 + $0x26c] sm:$0xf0]  ;;  %v9303_v1 = vpop.f32.mrf.mxu0 }
 0x72b   :  { %v14871_v5 = vld [vmem:[#allocation2 + $0x868] sm:$0xf0]  ;;  %v14621_v29 = vld [vmem:[#allocation2 + $0x630] sm:$0xf]  ;;  %v14110_v20 = vor.u32 %v16845_v42, %v14109_v34  ;;  %v9345_v18 = vpop.f32.mrf.mxu3 }
 0x72c   :  { %v17156_v48 = vld [vmem:[#allocation2 + $0xc2c] sm:$0xf]  ;;  %v14874_v51 = vor.u32 %v17028_v31, %v14871_v5  ;;  %9539 = vmatpush.bf16.msra.mxu1 %v14362_v56  ;;  %v16973_v21 = vld [vmem:[#allocation2 + $0x66c] sm:$0xf0] }
 0x72d   :  { %v15383_v50 = vld [vmem:[#allocation2 + $0xc68] sm:$0xf0]  ;;  %9526 = vmatmul.bf16.vlgmr.msra.gmra.mxu0 %v18323_v45  ;;  %v15133_v13 = vld [vmem:[#allocation2 + $0xa30] sm:$0xf]  ;;  %v14622_v31 = vor.u32 %v16973_v21, %v14621_v29 }
 0x72e   :  { %v15386_v12 = vor.u32 %v17156_v48, %v15383_v50  ;;  %9553 = vmatpush.bf16.msra.mxu2 %v14874_v51  ;;  %9574 = vmatpush.bf16.msrb.mxu0 %v14302_v9  ;;  %v17101_v7 = vld [vmem:[#allocation2 + $0xa6c] sm:$0xf0]  ;;  %v9317_v50 = vpop.f32.mrf.mxu1 }
 0x72f   :  { %9540 = vmatmul.bf16.vlgmr.msra.gmra.mxu1 %v18325_v32  ;;  %v15645_v44 = vld [vmem:[#allocation2 + $0xe30] sm:$0xf]  ;;  %v15134_v3 = vor.u32 %v17101_v7, %v15133_v13  ;;  %v9318_v59 = vadd.f32 %v9317_v50, %v9303_v1  ;;  %v17141_v50 = vld [vmem:[#allocation2 + $0xbb4] sm:$0xf] }
 0x730   :  { %9567 = vmatpush.bf16.msra.mxu3 %v15386_v12  ;;  %9588 = vmatpush.bf16.msrb.mxu1 %v14814_v11  ;;  %v17229_v10 = vld [vmem:[#allocation2 + $0xe6c] sm:$0xf0] }
 0x731   :  { %9554 = vmatmul.bf16.vlgmr.msra.gmra.mxu2 %v18317_v6  ;;  %v14045_v46 = vld [vmem:[#allocation2 + $0x1b0] sm:$0xf]  ;;  %v15646_v52 = vor.u32 %v17229_v10, %v15645_v44  ;;  %v9332_v17 = vadd.f32 %v9331_v24, %v9318_v59  ;;  %v9333_v21 = vpop.f32.mrf.mxu2  ;;  %v17269_v59 = vld [vmem:[#allocation2 + $0xfb4] sm:$0xf] }
 0x732   :  { %9602 = vmatpush.bf16.msrb.mxu2 %v15326_v2  ;;  %9575 = vmatpush.bf16.msrb.mxu0 %v14238_v16  ;;  %v16829_v5 = vld [vmem:[#allocation2 + $0x1ec] sm:$0xf0]  ;;  %v9305_v55 = vpop.f32.mrf.mxu0 }
 0x733   :  { %9568 = vmatmul.bf16.vlgmr.msra.gmra.mxu3 %v18319_v61  ;;  %v14557_v48 = vld [vmem:[#allocation2 + $0x5b0] sm:$0xf]  ;;  %v14046_v57 = vor.u32 %v16829_v5, %v14045_v46  ;;  %v18373_v28 = vadd.f32 %v9345_v18, %v9332_v17  ;;  %v9347_v1 = vpop.f32.mrf.mxu3  ;;  %v17013_v46 = vld [vmem:[#allocation2 + $0x7b4] sm:$0xf] }
 0x734   :  { %9616 = vmatpush.bf16.msrb.mxu3 %v15838_v49  ;;  %9589 = vmatpush.bf16.msrb.mxu1 %v14750_v35  ;;  %v16957_v54 = vld [vmem:[#allocation2 + $0x5ec] sm:$0xf0]  ;;  %v15775_v17 = vld [vmem:[#allocation2 + $0xf70] sm:$0xf0] }
 0x735   :  { %v15069_v58 = vld [vmem:[#allocation2 + $0x9b0] sm:$0xf]  ;;  %v14558_v62 = vor.u32 %v16957_v54, %v14557_v48  ;;  %9805 = vst [vmem:[#allocation4 + $0x18] sm:$0xff] %v18373_v28  ;;  %v14815_v48 = vld [vmem:[#allocation2 + $0x7f0] sm:$0xf0] }
 0x736   :  { %9603 = vmatpush.bf16.msrb.mxu2 %v15262_v15  ;;  %9576 = vmatpush.bf16.msrb.mxu0 %v14174_v30  ;;  %v17085_v26 = vld [vmem:[#allocation2 + $0x9ec] sm:$0xf0]  ;;  %v9319_v38 = vpop.f32.mrf.mxu1 }
 0x737   :  { %v15581_v60 = vld [vmem:[#allocation2 + $0xdb0] sm:$0xf]  ;;  %v15070_v4 = vor.u32 %v17085_v26, %v15069_v58  ;;  %v9320_v41 = vadd.f32 %v9319_v38, %v9305_v55  ;;  %v16981_v55 = vld [vmem:[#allocation2 + $0x6b4] sm:$0xf] }
 0x738   :  { %9617 = vmatpush.bf16.msrb.mxu3 %v15774_v40  ;;  %9590 = vmatpush.bf16.msrb.mxu1 %v14686_v63  ;;  %v17213_v0 = vld [vmem:[#allocation2 + $0xdec] sm:$0xf0]  ;;  %v15711_v38 = vld [vmem:[#allocation2 + $0xef0] sm:$0xf0] }
 0x739   :  { %v13981_v56 = vld [vmem:[#allocation2 + $0x130] sm:$0xf]  ;;  %v15582_v12 = vor.u32 %v17213_v0, %v15581_v60  ;;  %v15839_v60 = vld [vmem:[#allocation2 + $0xff0] sm:$0xf0] }
 0x73a   :  { %9604 = vmatpush.bf16.msrb.mxu2 %v15198_v23  ;;  %9577 = vmatpush.bf16.msrb.mxu0 %v14110_v20  ;;  %v16813_v51 = vld [vmem:[#allocation2 + $0x16c] sm:$0xf0]  ;;  %v9334_v20 = vadd.f32 %v9333_v21, %v9320_v41  ;;  %v15842_v24 = vor.u32 %v17269_v59, %v15839_v60  ;;  %v16837_v41 = vld [vmem:[#allocation2 + $0x234] sm:$0xf] }
 0x73b   :  { %v16941_v9 = vld [vmem:[#allocation2 + $0x56c] sm:$0xf0]  ;;  %v13982_v19 = vor.u32 %v16813_v51, %v13981_v56  ;;  %v16869_v56 = vld [vmem:[#allocation2 + $0x334] sm:$0xf] }
 0x73c   :  { %9618 = vmatpush.bf16.msrb.mxu3 %v15710_v43  ;;  %9591 = vmatpush.bf16.msrb.mxu1 %v14622_v31  ;;  %v15005_v11 = vld [vmem:[#allocation2 + $0x930] sm:$0xf]  ;;  %v14494_v25 = vor.u32 %v16941_v9, %v14493_v8  ;;  %v16885_v31 = vld [vmem:[#allocation2 + $0x3b4] sm:$0xf]  ;;  %v18376_v54 = vadd.f32 %v9347_v1, %v9334_v20 }
 0x73d   :  { %v17069_v2 = vld [vmem:[#allocation2 + $0x96c] sm:$0xf0]  ;;  %v14239_v51 = vld [vmem:[#allocation2 + $0x370] sm:$0xf0] }
 0x73e   :  { %9605 = vmatpush.bf16.msrb.mxu2 %v15134_v3  ;;  %v15517_v47 = vld [vmem:[#allocation2 + $0xd30] sm:$0xf]  ;;  %9578 = vmatpush.bf16.msrb.mxu0 %v14046_v57  ;;  %v15006_v16 = vor.u32 %v17069_v2, %v15005_v11  ;;  %v14303_v3 = vld [vmem:[#allocation2 + $0x3f0] sm:$0xf0]  ;;  %v14242_v18 = vor.u32 %v16869_v56, %v14239_v51 }
 0x73f   :  { %v17197_v49 = vld [vmem:[#allocation2 + $0xd6c] sm:$0xf0]  ;;  %v14306_v57 = vor.u32 %v16885_v31, %v14303_v3  ;;  %v16997_v8 = vld [vmem:[#allocation2 + $0x734] sm:$0xf] }
 0x740   :  { %9619 = vmatpush.bf16.msrb.mxu3 %v15646_v52  ;;  %v13917_v22 = vld [vmem:[#allocation2 + $0xb0] sm:$0xf]  ;;  %9592 = vmatpush.bf16.msrb.mxu1 %v14558_v62  ;;  %v15518_v39 = vor.u32 %v17197_v49, %v15517_v47  ;;  %v15327_v52 = vld [vmem:[#allocation2 + $0xbf0] sm:$0xf0]  ;;  %v14818_v62 = vor.u32 %v17013_v46, %v14815_v48 }
 0x741   :  { %v16797_v35 = vld [vmem:[#allocation2 + $0xec] sm:$0xf0]  ;;  %v17125_v9 = vld [vmem:[#allocation2 + $0xb34] sm:$0xf] }
 0x742   :  { %9606 = vmatpush.bf16.msrb.mxu2 %v15070_v4  ;;  %v14429_v15 = vld [vmem:[#allocation2 + $0x4b0] sm:$0xf]  ;;  %9579 = vmatpush.bf16.msrb.mxu0 %v13982_v19  ;;  %v13918_v14 = vor.u32 %v16797_v35, %v13917_v22  ;;  %v15330_v4 = vor.u32 %v17141_v50, %v15327_v52  ;;  %v15263_v11 = vld [vmem:[#allocation2 + $0xb70] sm:$0xf0] }
 0x743   :  { %v16925_v37 = vld [vmem:[#allocation2 + $0x4ec] sm:$0xf0]  ;;  %v17253_v2 = vld [vmem:[#allocation2 + $0xf34] sm:$0xf]  ;;  %v15266_v49 = vor.u32 %v17125_v9, %v15263_v11 }
 0x744   :  { %9620 = vmatpush.bf16.msrb.mxu3 %v15582_v12  ;;  %v14941_v40 = vld [vmem:[#allocation2 + $0x8b0] sm:$0xf]  ;;  %9593 = vmatpush.bf16.msrb.mxu1 %v14494_v25  ;;  %v14430_v23 = vor.u32 %v16925_v37, %v14429_v15  ;;  %v14751_v12 = vld [vmem:[#allocation2 + $0x770] sm:$0xf0]  ;;  %v15778_v25 = vor.u32 %v17253_v2, %v15775_v17 }
 0x745   :  { %v17053_v33 = vld [vmem:[#allocation2 + $0x8ec] sm:$0xf0]  ;;  %v14754_v47 = vor.u32 %v16997_v8, %v14751_v12  ;;  %v16853_v19 = vld [vmem:[#allocation2 + $0x2b4] sm:$0xf]  ;;  %v9373_v20 = vpop.f32.mrf.mxu1 }
 0x746   :  { %v15453_v27 = vld [vmem:[#allocation2 + $0xcb0] sm:$0xf]  ;;  %9607 = vmatpush.bf16.msrb.mxu2 %v15006_v16  ;;  %v14942_v34 = vor.u32 %v17053_v33, %v14941_v40  ;;  %9580 = vmatpush.bf16.msrb.mxu0 %v13918_v14  ;;  %v14175_v22 = vld [vmem:[#allocation2 + $0x2f0] sm:$0xf0] }
 0x747   :  { %v17181_v36 = vld [vmem:[#allocation2 + $0xcec] sm:$0xf0]  ;;  %v14687_v16 = vld [vmem:[#allocation2 + $0x6f0] sm:$0xf0] }
 0x748   :  { %v13853_v30 = vld [vmem:[#allocation2 + $0x30] sm:$0xf]  ;;  %9621 = vmatpush.bf16.msrb.mxu3 %v15518_v39  ;;  %v15454_v13 = vor.u32 %v17181_v36, %v15453_v27  ;;  %9594 = vmatpush.bf16.msrb.mxu1 %v14430_v23  ;;  %v17109_v35 = vld [vmem:[#allocation2 + $0xab4] sm:$0xf]  ;;  %v14178_v39 = vor.u32 %v16853_v19, %v14175_v22  ;;  %v14690_v40 = vor.u32 %v16981_v55, %v14687_v16 }
 0x749   :  { %v16781_v63 = vld [vmem:[#allocation2 + $0x6c] sm:$0xf0]  ;;  %v15199_v15 = vld [vmem:[#allocation2 + $0xaf0] sm:$0xf0] }
 0x74a   :  { %v14365_v42 = vld [vmem:[#allocation2 + $0x430] sm:$0xf]  ;;  %v13854_v5 = vor.u32 %v16781_v63, %v13853_v30  ;;  %9608 = vmatpush.bf16.msrb.mxu2 %v14942_v34  ;;  %v17237_v37 = vld [vmem:[#allocation2 + $0xeb4] sm:$0xf]  ;;  %v15202_v33 = vor.u32 %v17109_v35, %v15199_v15 }
 0x74b   :  { %v16909_v29 = vld [vmem:[#allocation2 + $0x46c] sm:$0xf0]  ;;  %v14111_v27 = vld [vmem:[#allocation2 + $0x270] sm:$0xf0]  ;;  %v15714_v14 = vor.u32 %v17237_v37, %v15711_v38 }
 0x74c   :  { %v14877_v43 = vld [vmem:[#allocation2 + $0x830] sm:$0xf]  ;;  %v14366_v58 = vor.u32 %v16909_v29, %v14365_v42  ;;  %9622 = vmatpush.bf16.msrb.mxu3 %v15454_v13  ;;  %9581 = vmatpush.bf16.msrb.mxu0 %v13854_v5  ;;  %v16965_v36 = vld [vmem:[#allocation2 + $0x634] sm:$0xf]  ;;  %v14114_v29 = vor.u32 %v16837_v41, %v14111_v27 }
 0x74d   :  { %v17037_v7 = vld [vmem:[#allocation2 + $0x86c] sm:$0xf0]  ;;  %v14623_v30 = vld [vmem:[#allocation2 + $0x670] sm:$0xf0] }
 0x74e   :  { %v15389_v44 = vld [vmem:[#allocation2 + $0xc30] sm:$0xf]  ;;  %v14878_v26 = vor.u32 %v17037_v7, %v14877_v43  ;;  %9595 = vmatpush.bf16.msrb.mxu1 %v14366_v58  ;;  %v17093_v63 = vld [vmem:[#allocation2 + $0xa34] sm:$0xf]  ;;  %v9359_v43 = vpop.f32.mrf.mxu0  ;;  %v14626_v21 = vor.u32 %v16965_v36, %v14623_v30 }
 0x74f   :  { %v17165_v10 = vld [vmem:[#allocation2 + $0xc6c] sm:$0xf0]  ;;  %9582 = vmatmul.bf16.vlgmr.msrb.gmra.mxu0 %v18323_v45  ;;  %v15135_v23 = vld [vmem:[#allocation2 + $0xa70] sm:$0xf0]  ;;  %v9374_v5 = vadd.f32 %v9373_v20, %v9359_v43 }
 0x750   :  { %v15390_v0 = vor.u32 %v17165_v10, %v15389_v44  ;;  %9609 = vmatpush.bf16.msrb.mxu2 %v14878_v26  ;;  %9630 = vmatpush.bf16.msra.mxu0 %v14306_v57  ;;  %v17221_v34 = vld [vmem:[#allocation2 + $0xe34] sm:$0xf]  ;;  %v15138_v13 = vor.u32 %v17093_v63, %v15135_v23  ;;  %v9387_v57 = vpop.f32.mrf.mxu2 }
 0x751   :  { %9596 = vmatmul.bf16.vlgmr.msrb.gmra.mxu1 %v18325_v32  ;;  %v15647_v42 = vld [vmem:[#allocation2 + $0xe70] sm:$0xf0]  ;;  %v9388_v8 = vadd.f32 %v9387_v57, %v9374_v5  ;;  %v16878_v57 = vld [vmem:[#allocation2 + $0x374] sm:$0xf0] }
 0x752   :  { %9623 = vmatpush.bf16.msrb.mxu3 %v15390_v0  ;;  %9644 = vmatpush.bf16.msra.mxu1 %v14818_v62  ;;  %v16821_v7 = vld [vmem:[#allocation2 + $0x1b4] sm:$0xf]  ;;  %v15650_v1 = vor.u32 %v17221_v34, %v15647_v42 }
 0x753   :  { %9610 = vmatmul.bf16.vlgmr.msrb.gmra.mxu2 %v18317_v6  ;;  %v14047_v44 = vld [vmem:[#allocation2 + $0x1f0] sm:$0xf0] }
 0x754   :  { %9658 = vmatpush.bf16.msra.mxu2 %v15330_v4  ;;  %9631 = vmatpush.bf16.msra.mxu0 %v14242_v18  ;;  %v16949_v10 = vld [vmem:[#allocation2 + $0x5b4] sm:$0xf]  ;;  %v14050_v52 = vor.u32 %v16821_v7, %v14047_v44  ;;  %v14309_v7 = vld [vmem:[#allocation2 + $0x3b8] sm:$0xf] }
 0x755   :  { %9624 = vmatmul.bf16.vlgmr.msrb.gmra.mxu3 %v18319_v61  ;;  %v14559_v31 = vld [vmem:[#allocation2 + $0x5f0] sm:$0xf0]  ;;  %v16894_v44 = vld [vmem:[#allocation2 + $0x3f4] sm:$0xf0] }
 0x756   :  { %9672 = vmatpush.bf16.msra.mxu3 %v15842_v24  ;;  %9645 = vmatpush.bf16.msra.mxu1 %v14754_v47  ;;  %v17077_v3 = vld [vmem:[#allocation2 + $0x9b4] sm:$0xf]  ;;  %v14562_v58 = vor.u32 %v16949_v10, %v14559_v31  ;;  %v9401_v24 = vpop.f32.mrf.mxu3  ;;  %v9361_v18 = vpop.f32.mrf.mxu0  ;;  %v14821_v10 = vld [vmem:[#allocation2 + $0x7b8] sm:$0xf] }
 0x757   :  { %v15071_v46 = vld [vmem:[#allocation2 + $0x9f0] sm:$0xf0]  ;;  %v18382_v17 = vadd.f32 %v9401_v24, %v9388_v8  ;;  %v15333_v31 = vld [vmem:[#allocation2 + $0xbb8] sm:$0xf] }
 0x758   :  { %9659 = vmatpush.bf16.msra.mxu2 %v15266_v49  ;;  %9632 = vmatpush.bf16.msra.mxu0 %v14178_v39  ;;  %v17205_v48 = vld [vmem:[#allocation2 + $0xdb4] sm:$0xf]  ;;  %v15074_v26 = vor.u32 %v17077_v3, %v15071_v46  ;;  %v9389_v23 = vpop.f32.mrf.mxu2  ;;  %v17150_v3 = vld [vmem:[#allocation2 + $0xbf4] sm:$0xf0] }
 0x759   :  { %v15583_v50 = vld [vmem:[#allocation2 + $0xdf0] sm:$0xf0]  ;;  %9806 = vst [vmem:[#allocation4 + $0x80] sm:$0xff] %v18382_v17  ;;  %v17134_v8 = vld [vmem:[#allocation2 + $0xb74] sm:$0xf0] }
 0x75a   :  { %9673 = vmatpush.bf16.msra.mxu3 %v15778_v25  ;;  %9646 = vmatpush.bf16.msra.mxu1 %v14690_v40  ;;  %v16805_v59 = vld [vmem:[#allocation2 + $0x134] sm:$0xf]  ;;  %v15586_v62 = vor.u32 %v17205_v48, %v15583_v50  ;;  %v9375_v25 = vpop.f32.mrf.mxu1  ;;  %v15845_v50 = vld [vmem:[#allocation2 + $0xfb8] sm:$0xf] }
 0x75b   :  { %v13983_v60 = vld [vmem:[#allocation2 + $0x170] sm:$0xf0]  ;;  %v9376_v37 = vadd.f32 %v9375_v25, %v9361_v18  ;;  %v15781_v24 = vld [vmem:[#allocation2 + $0xf38] sm:$0xf] }
 0x75c   :  { %9660 = vmatpush.bf16.msra.mxu2 %v15202_v33  ;;  %9633 = vmatpush.bf16.msra.mxu0 %v14114_v29  ;;  %v16933_v0 = vld [vmem:[#allocation2 + $0x534] sm:$0xf]  ;;  %v13986_v11 = vor.u32 %v16805_v59, %v13983_v60  ;;  %v15334_v60 = vor.u32 %v17150_v3, %v15333_v31  ;;  %v14181_v18 = vld [vmem:[#allocation2 + $0x2b8] sm:$0xf] }
 0x75d   :  { %v14495_v4 = vld [vmem:[#allocation2 + $0x570] sm:$0xf0]  ;;  %v17118_v25 = vld [vmem:[#allocation2 + $0xaf4] sm:$0xf0] }
 0x75e   :  { %9674 = vmatpush.bf16.msra.mxu3 %v15714_v14  ;;  %9647 = vmatpush.bf16.msra.mxu1 %v14626_v21  ;;  %v17061_v56 = vld [vmem:[#allocation2 + $0x934] sm:$0xf]  ;;  %v14498_v47 = vor.u32 %v16933_v0, %v14495_v4  ;;  %v9390_v21 = vadd.f32 %v9389_v23, %v9376_v37  ;;  %v14245_v0 = vld [vmem:[#allocation2 + $0x338] sm:$0xf] }
 0x75f   :  { %v15007_v51 = vld [vmem:[#allocation2 + $0x970] sm:$0xf0]  ;;  %v15589_v3 = vld [vmem:[#allocation2 + $0xdb8] sm:$0xf] }
 0x760   :  { %9661 = vmatpush.bf16.msra.mxu2 %v15138_v13  ;;  %v17189_v12 = vld [vmem:[#allocation2 + $0xd34] sm:$0xf]  ;;  %9634 = vmatpush.bf16.msra.mxu0 %v14050_v52  ;;  %v15010_v49 = vor.u32 %v17061_v56, %v15007_v51  ;;  %v9403_v13 = vpop.f32.mrf.mxu3  ;;  %v17278_v52 = vld [vmem:[#allocation2 + $0xff4] sm:$0xf0] }
 0x761   :  { %v15519_v9 = vld [vmem:[#allocation2 + $0xd70] sm:$0xf0]  ;;  %v18385_v46 = vadd.f32 %v9403_v13, %v9390_v21  ;;  %v15846_v4 = vor.u32 %v17278_v52, %v15845_v50  ;;  %v17006_v56 = vld [vmem:[#allocation2 + $0x774] sm:$0xf0] }
 0x762   :  { %9675 = vmatpush.bf16.msra.mxu3 %v15650_v1  ;;  %v16789_v2 = vld [vmem:[#allocation2 + $0xb4] sm:$0xf]  ;;  %9648 = vmatpush.bf16.msra.mxu1 %v14562_v58  ;;  %v15522_v16 = vor.u32 %v17189_v12, %v15519_v9  ;;  %v17022_v1 = vld [vmem:[#allocation2 + $0x7f4] sm:$0xf0]  ;;  %v14246_v9 = vor.u32 %v16878_v57, %v14245_v0 }
 0x763   :  { %v13919_v19 = vld [vmem:[#allocation2 + $0xf0] sm:$0xf0]  ;;  %v14822_v59 = vor.u32 %v17022_v1, %v14821_v10  ;;  %v15269_v51 = vld [vmem:[#allocation2 + $0xb38] sm:$0xf] }
 0x764   :  { %9662 = vmatpush.bf16.msra.mxu2 %v15074_v26  ;;  %v16917_v22 = vld [vmem:[#allocation2 + $0x4b4] sm:$0xf]  ;;  %9635 = vmatpush.bf16.msra.mxu0 %v13986_v11  ;;  %v13922_v40 = vor.u32 %v16789_v2, %v13919_v19  ;;  %v14310_v26 = vor.u32 %v16894_v44, %v14309_v7  ;;  %v17262_v12 = vld [vmem:[#allocation2 + $0xf74] sm:$0xf0]  ;;  %v15270_v2 = vor.u32 %v17134_v8, %v15269_v51 }
 0x765   :  { %v14431_v55 = vld [vmem:[#allocation2 + $0x4f0] sm:$0xf0]  ;;  %v15782_v19 = vor.u32 %v17262_v12, %v15781_v24  ;;  %v16830_v21 = vld [vmem:[#allocation2 + $0x1f4] sm:$0xf0] }
 0x766   :  { %9676 = vmatpush.bf16.msra.mxu3 %v15586_v62  ;;  %v17045_v35 = vld [vmem:[#allocation2 + $0x8b4] sm:$0xf]  ;;  %9649 = vmatpush.bf16.msra.mxu1 %v14498_v47  ;;  %v14434_v27 = vor.u32 %v16917_v22, %v14431_v55  ;;  %v14757_v62 = vld [vmem:[#allocation2 + $0x738] sm:$0xf] }
 0x767   :  { %v14943_v15 = vld [vmem:[#allocation2 + $0x8f0] sm:$0xf0]  ;;  %v14758_v11 = vor.u32 %v17006_v56, %v14757_v62  ;;  %v16862_v47 = vld [vmem:[#allocation2 + $0x2f4] sm:$0xf0]  ;;  %v9429_v7 = vpop.f32.mrf.mxu1 }
 0x768   :  { %v17173_v38 = vld [vmem:[#allocation2 + $0xcb4] sm:$0xf]  ;;  %9663 = vmatpush.bf16.msra.mxu2 %v15010_v49  ;;  %v14946_v36 = vor.u32 %v17045_v35, %v14943_v15  ;;  %9636 = vmatpush.bf16.msra.mxu0 %v13922_v40  ;;  %v14693_v49 = vld [vmem:[#allocation2 + $0x6b8] sm:$0xf]  ;;  %v14182_v15 = vor.u32 %v16862_v47, %v14181_v18 }
 0x769   :  { %v15455_v39 = vld [vmem:[#allocation2 + $0xcf0] sm:$0xf0]  ;;  %v16990_v22 = vld [vmem:[#allocation2 + $0x6f4] sm:$0xf0] }
 0x76a   :  { %v16773_v33 = vld [vmem:[#allocation2 + $0x34] sm:$0xf]  ;;  %9677 = vmatpush.bf16.msra.mxu3 %v15522_v16  ;;  %v15458_v34 = vor.u32 %v17173_v38, %v15455_v39  ;;  %9650 = vmatpush.bf16.msra.mxu1 %v14434_v27  ;;  %v15205_v55 = vld [vmem:[#allocation2 + $0xab8] sm:$0xf]  ;;  %v14694_v37 = vor.u32 %v16990_v22, %v14693_v49 }
 0x76b   :  { %v13855_v41 = vld [vmem:[#allocation2 + $0x70] sm:$0xf0]  ;;  %v15717_v16 = vld [vmem:[#allocation2 + $0xeb8] sm:$0xf]  ;;  %v15206_v38 = vor.u32 %v17118_v25, %v15205_v55 }
 0x76c   :  { %v16901_v14 = vld [vmem:[#allocation2 + $0x434] sm:$0xf]  ;;  %v13858_v20 = vor.u32 %v16773_v33, %v13855_v41  ;;  %9664 = vmatpush.bf16.msra.mxu2 %v14946_v36  ;;  %v17246_v35 = vld [vmem:[#allocation2 + $0xef4] sm:$0xf0] }
 0x76d   :  { %v14367_v30 = vld [vmem:[#allocation2 + $0x470] sm:$0xf0]  ;;  %v14117_v39 = vld [vmem:[#allocation2 + $0x238] sm:$0xf]  ;;  %v15718_v41 = vor.u32 %v17246_v35, %v15717_v16 }
 0x76e   :  { %v17029_v63 = vld [vmem:[#allocation2 + $0x834] sm:$0xf]  ;;  %v14370_v5 = vor.u32 %v16901_v14, %v14367_v30  ;;  %9678 = vmatpush.bf16.msra.mxu3 %v15458_v34  ;;  %9637 = vmatpush.bf16.msra.mxu0 %v13858_v20  ;;  %v16846_v40 = vld [vmem:[#allocation2 + $0x274] sm:$0xf0]  ;;  %v9415_v34 = vpop.f32.mrf.mxu0 }
 0x76f   :  { %v14879_v42 = vld [vmem:[#allocation2 + $0x870] sm:$0xf0]  ;;  %v14629_v33 = vld [vmem:[#allocation2 + $0x638] sm:$0xf]  ;;  %v14118_v23 = vor.u32 %v16846_v40, %v14117_v39  ;;  %v9430_v31 = vadd.f32 %v9429_v7, %v9415_v34  ;;  %v9431_v55 = vpop.f32.mrf.mxu1  ;;  %v14311_v7 = vld [vmem:[#allocation2 + $0x3f8] sm:$0xf0] }
 0x770   :  { %v17157_v29 = vld [vmem:[#allocation2 + $0xc34] sm:$0xf]  ;;  %v14882_v48 = vor.u32 %v17029_v63, %v14879_v42  ;;  %9651 = vmatpush.bf16.msra.mxu1 %v14370_v5  ;;  %v16974_v27 = vld [vmem:[#allocation2 + $0x674] sm:$0xf0] }
 0x771   :  { %v15391_v43 = vld [vmem:[#allocation2 + $0xc70] sm:$0xf0]  ;;  %9638 = vmatmul.bf16.vlgmr.msra.gmra.mxu0 %v18323_v45  ;;  %v15141_v36 = vld [vmem:[#allocation2 + $0xa38] sm:$0xf]  ;;  %v14630_v42 = vor.u32 %v16974_v27, %v14629_v33  ;;  %v9457_v51 = vpop.f32.mrf.mxu3 }
 0x772   :  { %v15394_v58 = vor.u32 %v17157_v29, %v15391_v43  ;;  %9665 = vmatpush.bf16.msra.mxu2 %v14882_v48  ;;  %9686 = vmatpush.bf16.msrb.mxu0 %v14310_v26  ;;  %v17102_v14 = vld [vmem:[#allocation2 + $0xa74] sm:$0xf0] }
 0x773   :  { %9652 = vmatmul.bf16.vlgmr.msra.gmra.mxu1 %v18325_v32  ;;  %v15653_v30 = vld [vmem:[#allocation2 + $0xe38] sm:$0xf]  ;;  %v15142_v29 = vor.u32 %v17102_v14, %v15141_v36 }
 0x774   :  { %9679 = vmatpush.bf16.msra.mxu3 %v15394_v58  ;;  %9700 = vmatpush.bf16.msrb.mxu1 %v14822_v59  ;;  %v17230_v63 = vld [vmem:[#allocation2 + $0xe74] sm:$0xf0] }
 0x775   :  { %9666 = vmatmul.bf16.vlgmr.msra.gmra.mxu2 %v18317_v6  ;;  %v14053_v43 = vld [vmem:[#allocation2 + $0x1b8] sm:$0xf]  ;;  %v15654_v44 = vor.u32 %v17230_v63, %v15653_v30 }
 0x776   :  { %9714 = vmatpush.bf16.msrb.mxu2 %v15334_v60  ;;  %9687 = vmatpush.bf16.msrb.mxu0 %v14246_v9  ;;  %v14565_v13 = vld [vmem:[#allocation2 + $0x5b8] sm:$0xf]  ;;  %v14054_v48 = vor.u32 %v16830_v21, %v14053_v43  ;;  %v9443_v60 = vpop.f32.mrf.mxu2 }
 0x777   :  { %9680 = vmatmul.bf16.vlgmr.msra.gmra.mxu3 %v18319_v61  ;;  %v16958_v10 = vld [vmem:[#allocation2 + $0x5f4] sm:$0xf0]  ;;  %v9444_v56 = vadd.f32 %v9443_v60, %v9430_v31  ;;  %v15335_v31 = vld [vmem:[#allocation2 + $0xbf8] sm:$0xf0] }
 0x778   :  { %9728 = vmatpush.bf16.msrb.mxu3 %v15846_v4  ;;  %9701 = vmatpush.bf16.msrb.mxu1 %v14758_v11  ;;  %v15077_v20 = vld [vmem:[#allocation2 + $0x9b8] sm:$0xf]  ;;  %v14566_v50 = vor.u32 %v16958_v10, %v14565_v13  ;;  %v16886_v13 = vld [vmem:[#allocation2 + $0x3bc] sm:$0xf] }
 0x779   :  { %v17086_v1 = vld [vmem:[#allocation2 + $0x9f4] sm:$0xf0]  ;;  %v18391_v11 = vadd.f32 %v9457_v51, %v9444_v56  ;;  %v9459_v21 = vpop.f32.mrf.mxu3  ;;  %v14759_v56 = vld [vmem:[#allocation2 + $0x778] sm:$0xf0] }
 0x77a   :  { %9715 = vmatpush.bf16.msrb.mxu2 %v15270_v2  ;;  %9688 = vmatpush.bf16.msrb.mxu0 %v14182_v15  ;;  %v17214_v5 = vld [vmem:[#allocation2 + $0xdf4] sm:$0xf0]  ;;  %v15078_v52 = vor.u32 %v17086_v1, %v15077_v20  ;;  %v9417_v2 = vpop.f32.mrf.mxu0  ;;  %v14823_v20 = vld [vmem:[#allocation2 + $0x7f8] sm:$0xf0] }
 0x77b   :  { %v13989_v58 = vld [vmem:[#allocation2 + $0x138] sm:$0xf]  ;;  %v15590_v0 = vor.u32 %v17214_v5, %v15589_v3  ;;  %9807 = vst [vmem:[#allocation4 + $0x180] sm:$0xff] %v18391_v11  ;;  %v9432_v15 = vadd.f32 %v9431_v55, %v9417_v2  ;;  %v17142_v1 = vld [vmem:[#allocation2 + $0xbbc] sm:$0xf] }
 0x77c   :  { %9729 = vmatpush.bf16.msrb.mxu3 %v15782_v19  ;;  %9702 = vmatpush.bf16.msrb.mxu1 %v14694_v37  ;;  %v16814_v26 = vld [vmem:[#allocation2 + $0x174] sm:$0xf0]  ;;  %v15338_v60 = vor.u32 %v17142_v1, %v15335_v31  ;;  %v17126_v51 = vld [vmem:[#allocation2 + $0xb3c] sm:$0xf] }
 0x77d   :  { %v14501_v59 = vld [vmem:[#allocation2 + $0x538] sm:$0xf]  ;;  %v13990_v12 = vor.u32 %v16814_v26, %v13989_v58  ;;  %v14314_v26 = vor.u32 %v16886_v13, %v14311_v7  ;;  %v14695_v55 = vld [vmem:[#allocation2 + $0x6f8] sm:$0xf0] }
 0x77e   :  { %9716 = vmatpush.bf16.msrb.mxu2 %v15206_v38  ;;  %9689 = vmatpush.bf16.msrb.mxu0 %v14118_v23  ;;  %v16942_v57 = vld [vmem:[#allocation2 + $0x574] sm:$0xf0]  ;;  %v9445_v63 = vpop.f32.mrf.mxu2  ;;  %v14055_v13 = vld [vmem:[#allocation2 + $0x1f8] sm:$0xf0] }
 0x77f   :  { %v15013_v62 = vld [vmem:[#allocation2 + $0x938] sm:$0xf]  ;;  %v14502_v18 = vor.u32 %v16942_v57, %v14501_v59  ;;  %v9446_v43 = vadd.f32 %v9445_v63, %v9432_v15  ;;  %v14247_v57 = vld [vmem:[#allocation2 + $0x378] sm:$0xf0] }
 0x780   :  { %9730 = vmatpush.bf16.msrb.mxu3 %v15718_v41  ;;  %9703 = vmatpush.bf16.msrb.mxu1 %v14630_v42  ;;  %v17070_v4 = vld [vmem:[#allocation2 + $0x974] sm:$0xf0]  ;;  %v15719_v15 = vld [vmem:[#allocation2 + $0xef8] sm:$0xf0] }
 0x781   :  { %v15525_v8 = vld [vmem:[#allocation2 + $0xd38] sm:$0xf]  ;;  %v15014_v47 = vor.u32 %v17070_v4, %v15013_v62  ;;  %v18394_v3 = vadd.f32 %v9459_v21, %v9446_v43  ;;  %v16998_v62 = vld [vmem:[#allocation2 + $0x73c] sm:$0xf] }
 0x782   :  { %9717 = vmatpush.bf16.msrb.mxu2 %v15142_v29  ;;  %v17198_v24 = vld [vmem:[#allocation2 + $0xd74] sm:$0xf0]  ;;  %9690 = vmatpush.bf16.msrb.mxu0 %v14054_v48  ;;  %v14762_v2 = vor.u32 %v16998_v62, %v14759_v56  ;;  %v17222_v63 = vld [vmem:[#allocation2 + $0xe3c] sm:$0xf] }
 0x783   :  { %v13925_v9 = vld [vmem:[#allocation2 + $0xb8] sm:$0xf]  ;;  %v15526_v25 = vor.u32 %v17198_v24, %v15525_v8  ;;  %v15271_v8 = vld [vmem:[#allocation2 + $0xb78] sm:$0xf0] }
 0x784   :  { %9731 = vmatpush.bf16.msrb.mxu3 %v15654_v44  ;;  %9704 = vmatpush.bf16.msrb.mxu1 %v14566_v50  ;;  %v16798_v49 = vld [vmem:[#allocation2 + $0xf4] sm:$0xf0]  ;;  %v17014_v44 = vld [vmem:[#allocation2 + $0x7bc] sm:$0xf] }
 0x785   :  { %v14437_v19 = vld [vmem:[#allocation2 + $0x4b8] sm:$0xf]  ;;  %v13926_v39 = vor.u32 %v16798_v49, %v13925_v9  ;;  %v17270_v50 = vld [vmem:[#allocation2 + $0xfbc] sm:$0xf]  ;;  %v14826_v59 = vor.u32 %v17014_v44, %v14823_v20 }
 0x786   :  { %9718 = vmatpush.bf16.msrb.mxu2 %v15078_v52  ;;  %v16926_v22 = vld [vmem:[#allocation2 + $0x4f4] sm:$0xf0]  ;;  %9691 = vmatpush.bf16.msrb.mxu0 %v13990_v12  ;;  %v15847_v52 = vld [vmem:[#allocation2 + $0xff8] sm:$0xf0] }
 0x787   :  { %v14949_v16 = vld [vmem:[#allocation2 + $0x8b8] sm:$0xf]  ;;  %v14438_v41 = vor.u32 %v16926_v22, %v14437_v19  ;;  %v15850_v4 = vor.u32 %v17270_v50, %v15847_v52  ;;  %v17254_v24 = vld [vmem:[#allocation2 + $0xf3c] sm:$0xf] }
 0x788   :  { %9732 = vmatpush.bf16.msrb.mxu3 %v15590_v0  ;;  %v17054_v35 = vld [vmem:[#allocation2 + $0x8f4] sm:$0xf0]  ;;  %9705 = vmatpush.bf16.msrb.mxu1 %v14502_v18  ;;  %v16870_v0 = vld [vmem:[#allocation2 + $0x33c] sm:$0xf]  ;;  %v15274_v18 = vor.u32 %v17126_v51, %v15271_v8 }
 0x789   :  { %v15461_v37 = vld [vmem:[#allocation2 + $0xcb8] sm:$0xf]  ;;  %v14950_v27 = vor.u32 %v17054_v35, %v14949_v16  ;;  %v15783_v12 = vld [vmem:[#allocation2 + $0xf78] sm:$0xf0]  ;;  %v14250_v9 = vor.u32 %v16870_v0, %v14247_v57 }
 0x78a   :  { %v17182_v38 = vld [vmem:[#allocation2 + $0xcf4] sm:$0xf0]  ;;  %9719 = vmatpush.bf16.msrb.mxu2 %v15014_v47  ;;  %9692 = vmatpush.bf16.msrb.mxu0 %v13926_v39  ;;  %v16854_v47 = vld [vmem:[#allocation2 + $0x2bc] sm:$0xf]  ;;  %v15786_v22 = vor.u32 %v17254_v24, %v15783_v12  ;;  %v9485_v44 = vpop.f32.mrf.mxu1 }
 0x78b   :  { %v13861_v40 = vld [vmem:[#allocation2 + $0x38] sm:$0xf]  ;;  %v15462_v23 = vor.u32 %v17182_v38, %v15461_v37  ;;  %v14183_v49 = vld [vmem:[#allocation2 + $0x2f8] sm:$0xf0] }
 0x78c   :  { %v16782_v33 = vld [vmem:[#allocation2 + $0x74] sm:$0xf0]  ;;  %9733 = vmatpush.bf16.msrb.mxu3 %v15526_v25  ;;  %9706 = vmatpush.bf16.msrb.mxu1 %v14438_v41  ;;  %v16982_v19 = vld [vmem:[#allocation2 + $0x6bc] sm:$0xf]  ;;  %v14186_v37 = vor.u32 %v16854_v47, %v14183_v49 }
 0x78d   :  { %v14373_v36 = vld [vmem:[#allocation2 + $0x438] sm:$0xf]  ;;  %v13862_v10 = vor.u32 %v16782_v33, %v13861_v40  ;;  %v17110_v25 = vld [vmem:[#allocation2 + $0xabc] sm:$0xf]  ;;  %v14698_v38 = vor.u32 %v16982_v19, %v14695_v55 }
 0x78e   :  { %v16910_v14 = vld [vmem:[#allocation2 + $0x474] sm:$0xf0]  ;;  %9720 = vmatpush.bf16.msrb.mxu2 %v14950_v27  ;;  %v15207_v16 = vld [vmem:[#allocation2 + $0xaf8] sm:$0xf0] }
 0x78f   :  { %v14885_v30 = vld [vmem:[#allocation2 + $0x838] sm:$0xf]  ;;  %v14374_v5 = vor.u32 %v16910_v14, %v14373_v36  ;;  %9693 = vmatpush.bf16.msrb.mxu0 %v13862_v10  ;;  %v17238_v35 = vld [vmem:[#allocation2 + $0xebc] sm:$0xf]  ;;  %v15210_v39 = vor.u32 %v17110_v25, %v15207_v16 }
 0x790   :  { %v17038_v34 = vld [vmem:[#allocation2 + $0x874] sm:$0xf0]  ;;  %9734 = vmatpush.bf16.msrb.mxu3 %v15462_v23  ;;  %v16838_v40 = vld [vmem:[#allocation2 + $0x23c] sm:$0xf]  ;;  %v15722_v27 = vor.u32 %v17238_v35, %v15719_v15 }
 0x791   :  { %v15397_v42 = vld [vmem:[#allocation2 + $0xc38] sm:$0xf]  ;;  %v14886_v48 = vor.u32 %v17038_v34, %v14885_v30  ;;  %9707 = vmatpush.bf16.msrb.mxu1 %v14374_v5  ;;  %v14119_v33 = vld [vmem:[#allocation2 + $0x278] sm:$0xf0] }
 0x792   :  { %v17166_v29 = vld [vmem:[#allocation2 + $0xc74] sm:$0xf0]  ;;  %9694 = vmatmul.bf16.vlgmr.msrb.gmra.mxu0 %v18323_v45  ;;  %v16966_v41 = vld [vmem:[#allocation2 + $0x63c] sm:$0xf]  ;;  %v14122_v34 = vor.u32 %v16838_v40, %v14119_v33  ;;  %v9499_v57 = vpop.f32.mrf.mxu2  ;;  %v9487_v35 = vpop.f32.mrf.mxu1 }
 0x793   :  { %v15398_v58 = vor.u32 %v17166_v29, %v15397_v42  ;;  %9721 = vmatpush.bf16.msrb.mxu2 %v14886_v48  ;;  %9742 = vmatpush.bf16.msra.mxu0 %v14314_v26  ;;  %v14631_v36 = vld [vmem:[#allocation2 + $0x678] sm:$0xf0]  ;;  %v9471_v42 = vpop.f32.mrf.mxu0 }
 0x794   :  { %9708 = vmatmul.bf16.vlgmr.msrb.gmra.mxu1 %v18325_v32  ;;  %v17094_v14 = vld [vmem:[#allocation2 + $0xa3c] sm:$0xf]  ;;  %v14634_v29 = vor.u32 %v16966_v41, %v14631_v36  ;;  %v9486_v5 = vadd.f32 %v9485_v44, %v9471_v42  ;;  %v9513_v24 = vpop.f32.mrf.mxu3 }
 0x795   :  { %9735 = vmatpush.bf16.msrb.mxu3 %v15398_v58  ;;  %9756 = vmatpush.bf16.msra.mxu1 %v14826_v59  ;;  %v15143_v30 = vld [vmem:[#allocation2 + $0xa78] sm:$0xf0] }
 0x796   :  { %9722 = vmatmul.bf16.vlgmr.msrb.gmra.mxu2 %v18317_v6  ;;  %v15655_v23 = vld [vmem:[#allocation2 + $0xe78] sm:$0xf0]  ;;  %v15146_v43 = vor.u32 %v17094_v14, %v15143_v30  ;;  %v9500_v8 = vadd.f32 %v9499_v57, %v9486_v5  ;;  %v9832_v57 = vld [vmem:[#allocation4 + $0x10] sm:$0xff] }
 0x797   :  { %9770 = vmatpush.bf16.msra.mxu2 %v15338_v60  ;;  %9743 = vmatpush.bf16.msra.mxu0 %v14250_v9  ;;  %v16822_v21 = vld [vmem:[#allocation2 + $0x1bc] sm:$0xf]  ;;  %v15658_v10 = vor.u32 %v17222_v63, %v15655_v23 }
 0x798   :  { %9736 = vmatmul.bf16.vlgmr.msrb.gmra.mxu3 %v18319_v61  ;;  %v16950_v7 = vld [vmem:[#allocation2 + $0x5bc] sm:$0xf]  ;;  %v14058_v52 = vor.u32 %v16822_v21, %v14055_v13  ;;  %v18400_v47 = vadd.f32 %v9513_v24, %v9500_v8  ;;  %v9851_v24 = vld [vmem:[#allocation17 + $0x20] sm:$0xff] }
 0x799   :  { %9784 = vmatpush.bf16.msra.mxu3 %v15850_v4  ;;  %9757 = vmatpush.bf16.msra.mxu1 %v14762_v2  ;;  %v14567_v20 = vld [vmem:[#allocation2 + $0x5f8] sm:$0xf0] }
 0x79a   :  { %v17078_v1 = vld [vmem:[#allocation2 + $0x9bc] sm:$0xf]  ;;  %v14570_v58 = vor.u32 %v16950_v7, %v14567_v20  ;;  %9808 = vst [vmem:[#allocation4 + $0x188] sm:$0xff] %v18400_v47  ;;  %v9501_v23 = vpop.f32.mrf.mxu2 }
 0x79b   :  { %9771 = vmatpush.bf16.msra.mxu2 %v15274_v18  ;;  %9744 = vmatpush.bf16.msra.mxu0 %v14186_v37  ;;  %v15079_v31 = vld [vmem:[#allocation2 + $0x9f8] sm:$0xf0]  ;;  %v9473_v49 = vpop.f32.mrf.mxu0 }
 0x79c   :  { %v17206_v48 = vld [vmem:[#allocation2 + $0xdbc] sm:$0xf]  ;;  %v15082_v26 = vor.u32 %v17078_v1, %v15079_v31  ;;  %v9515_v13 = vpop.f32.mrf.mxu3 }
 0x79d   :  { %9785 = vmatpush.bf16.msra.mxu3 %v15786_v22  ;;  %9758 = vmatpush.bf16.msra.mxu1 %v14698_v38  ;;  %v15591_v50 = vld [vmem:[#allocation2 + $0xdf8] sm:$0xf0] }
 0x79e   :  { %v16806_v59 = vld [vmem:[#allocation2 + $0x13c] sm:$0xf]  ;;  %v15594_v62 = vor.u32 %v17206_v48, %v15591_v50  ;;  %v9846_v48 = vld [vmem:[#allocation4 + $0x70] sm:$0xff] }
 0x79f   :  { %9772 = vmatpush.bf16.msra.mxu2 %v15210_v39  ;;  %9745 = vmatpush.bf16.msra.mxu0 %v14122_v34  ;;  %v13991_v60 = vld [vmem:[#allocation2 + $0x178] sm:$0xf0]  ;;  %v9488_v39 = vadd.f32 %v9487_v35, %v9473_v49 }
 0x7a0   :  { %v16934_v0 = vld [vmem:[#allocation2 + $0x53c] sm:$0xf]  ;;  %v13994_v2 = vor.u32 %v16806_v59, %v13991_v60  ;;  %v9844_v59 = vld [vmem:[#allocation4 + $0x30] sm:$0xff]  ;;  %v9834_v60 = vld [vmem:[#allocation4 + $0x20] sm:$0xff] }
 0x7a1   :  { %9786 = vmatpush.bf16.msra.mxu3 %v15722_v27  ;;  %9759 = vmatpush.bf16.msra.mxu1 %v14634_v29  ;;  %v14503_v4 = vld [vmem:[#allocation2 + $0x578] sm:$0xf0]  ;;  %v9502_v21 = vadd.f32 %v9501_v23, %v9488_v39  ;;  %v9838_v39 = vld [vmem:[#allocation17] sm:$0xff] }
 0x7a2   :  { %v17062_v56 = vld [vmem:[#allocation2 + $0x93c] sm:$0xf]  ;;  %v14506_v19 = vor.u32 %v16934_v0, %v14503_v4  ;;  %v9835_v0 = vld [vmem:[#allocation4 + $0xc8] sm:$0xff] }
 0x7a3   :  { %9773 = vmatpush.bf16.msra.mxu2 %v15146_v43  ;;  %v15015_v51 = vld [vmem:[#allocation2 + $0x978] sm:$0xf0]  ;;  %9746 = vmatpush.bf16.msra.mxu0 %v14058_v52  ;;  %v18403_v20 = vadd.f32 %v9515_v13, %v9502_v21  ;;  %v17381_v52 = vld [vmem:[#allocation4 + $0xe0] sm:$0xff] }
 0x7a4   :  { %v17190_v12 = vld [vmem:[#allocation2 + $0xd3c] sm:$0xf]  ;;  %v15018_v22 = vor.u32 %v17062_v56, %v15015_v51 }
 0x7a5   :  { %9787 = vmatpush.bf16.msra.mxu3 %v15658_v10  ;;  %v15527_v9 = vld [vmem:[#allocation2 + $0xd78] sm:$0xf0]  ;;  %9760 = vmatpush.bf16.msra.mxu1 %v14570_v58  ;;  %v9842_v58 = vld [vmem:[#allocation4 + $0x108] sm:$0xff] }
 0x7a6   :  { %v16790_v18 = vld [vmem:[#allocation2 + $0xbc] sm:$0xf]  ;;  %v15530_v15 = vor.u32 %v17190_v12, %v15527_v9 }
 0x7a7   :  { %9774 = vmatpush.bf16.msra.mxu2 %v15082_v26  ;;  %v13927_v55 = vld [vmem:[#allocation2 + $0xf8] sm:$0xf0]  ;;  %9747 = vmatpush.bf16.msra.mxu0 %v13994_v2  ;;  %v9843_v26 = vld [vmem:[#allocation4 + $0x68] sm:$0xff] }
 0x7a8   :  { %v16918_v25 = vld [vmem:[#allocation2 + $0x4bc] sm:$0xf]  ;;  %v13930_v41 = vor.u32 %v16790_v18, %v13927_v55  ;;  %v9852_v55 = vld [vmem:[#allocation17 + $0x28] sm:$0xff] }
 0x7a9   :  { %v14439_v16 = vld [vmem:[#allocation2 + $0x4f8] sm:$0xf0]  ;;  %9788 = vmatpush.bf16.msra.mxu3 %v15594_v62  ;;  %9761 = vmatpush.bf16.msra.mxu1 %v14506_v19  ;;  %v9833_v62 = vld [vmem:[#allocation4 + $0x48] sm:$0xff] }
 0x7aa   :  { %v17046_v37 = vld [vmem:[#allocation2 + $0x8bc] sm:$0xf]  ;;  %v14442_v27 = vor.u32 %v16918_v25, %v14439_v16 }
 0x7ab   :  { %v14951_v38 = vld [vmem:[#allocation2 + $0x8f8] sm:$0xf0]  ;;  %9775 = vmatpush.bf16.msra.mxu2 %v15018_v22  ;;  %9748 = vmatpush.bf16.msra.mxu0 %v13930_v41 }
 0x7ac   :  { %v17174_v40 = vld [vmem:[#allocation2 + $0xcbc] sm:$0xf]  ;;  %v14954_v36 = vor.u32 %v17046_v37, %v14951_v38  ;;  %v9541_v4 = vpop.f32.mrf.mxu1 }
 0x7ad   :  { %v15463_v33 = vld [vmem:[#allocation2 + $0xcf8] sm:$0xf0]  ;;  %9789 = vmatpush.bf16.msra.mxu3 %v15530_v15  ;;  %9762 = vmatpush.bf16.msra.mxu1 %v14442_v27 }
 0x7ae   :  { %v16774_v14 = vld [vmem:[#allocation2 + $0x3c] sm:$0xf]  ;;  %v15466_v34 = vor.u32 %v17174_v40, %v15463_v33 }
 0x7af   :  { %v13863_v30 = vld [vmem:[#allocation2 + $0x78] sm:$0xf0]  ;;  %9776 = vmatpush.bf16.msra.mxu2 %v14954_v36 }
 0x7b0   :  { %v16902_v63 = vld [vmem:[#allocation2 + $0x43c] sm:$0xf]  ;;  %v13866_v10 = vor.u32 %v16774_v14, %v13863_v30  ;;  %v9839_v30 = vld [vmem:[#allocation17 + $0x8] sm:$0xff] }
 0x7b1   :  { %v14375_v42 = vld [vmem:[#allocation2 + $0x478] sm:$0xf0]  ;;  %9790 = vmatpush.bf16.msra.mxu3 %v15466_v34 }
 0x7b2   :  { %v17030_v29 = vld [vmem:[#allocation2 + $0x83c] sm:$0xf]  ;;  %v14378_v1 = vor.u32 %v16902_v63, %v14375_v42  ;;  %9749 = vmatpush.bf16.msra.mxu0 %v13866_v10  ;;  %v9840_v63 = vld [vmem:[#allocation17 + $0x10] sm:$0xff] }
 0x7b3   :  { %v14887_v43 = vld [vmem:[#allocation2 + $0x878] sm:$0xf0] }
 0x7b4   :  { %v17158_v7 = vld [vmem:[#allocation2 + $0xc3c] sm:$0xf]  ;;  %v14890_v31 = vor.u32 %v17030_v29, %v14887_v43  ;;  %9763 = vmatpush.bf16.msra.mxu1 %v14378_v1  ;;  %v9555_v51 = vpop.f32.mrf.mxu2  ;;  %v9543_v2 = vpop.f32.mrf.mxu1  ;;  %v10121_v1 = vld [vmem:[#allocation17 + $0x40] sm:$0xff] }
 0x7b5   :  { %v15399_v44 = vld [vmem:[#allocation2 + $0xc78] sm:$0xf0]  ;;  %9750 = vmatmul.bf16.vlgmr.msra.gmra.mxu0 %v18323_v45  ;;  %v9837_v45 = vld [vmem:[#allocation4 + $0xa0] sm:$0xff] }
 0x7b6   :  { %v15402_v5 = vor.u32 %v17158_v7, %v15399_v44  ;;  %9777 = vmatpush.bf16.msra.mxu2 %v14890_v31  ;;  %9882 = vmatpush.msrb.mxu0 %v9846_v48  ;;  %v9847_v50 = vld [vmem:[#allocation4 + $0x58] sm:$0xff]  ;;  %v9569_v8 = vpop.f32.mrf.mxu3 }
 0x7b7   :  { %9764 = vmatmul.bf16.vlgmr.msra.gmra.mxu1 %v18325_v32  ;;  %v9830_v32 = vld [vmem:[#allocation4 + $0xb0] sm:$0xff]  ;;  %v9841_v29 = vld [vmem:[#allocation17 + $0x18] sm:$0xff] }
 0x7b8   :  { %9791 = vmatpush.bf16.msra.mxu3 %v15402_v5  ;;  %9911 = vmatpush.msrb.mxu1 %v9847_v50 }
 0x7b9   :  { %9778 = vmatmul.bf16.vlgmr.msra.gmra.mxu2 %v18317_v6  ;;  %9883 = vmatpush.msrb.mxu0 %v9842_v58  ;;  %v9831_v6 = vld [vmem:[#allocation4 + $0xd0] sm:$0xff] }
 0x7ba   :  { %9940 = vmatpush.msrb.mxu2 %v17381_v52  ;;  %9912 = vmatpush.msrb.mxu1 %v9843_v26  ;;  %v10122_v52 = vld [vmem:[#allocation17 + $0x48] sm:$0xff]  ;;  %v10123_v58 = vld [vmem:[#allocation17 + $0x50] sm:$0xff] }
 0x7bb   :  { %9792 = vmatmul.bf16.vlgmr.msra.gmra.mxu3 %v18319_v61  ;;  %10010 = vmatpush.msra.mxu0 %v9834_v60  ;;  %v9527_v61 = vpop.f32.mrf.mxu0 }
 0x7bc   :  { %9969 = vmatpush.msrb.mxu3 %v18376_v54  ;;  %9941 = vmatpush.msrb.mxu2 %v9844_v59  ;;  %v9836_v54 = vld [vmem:[#allocation4 + $0x90] sm:$0xff]  ;;  %v9542_v56 = vadd.f32 %v9541_v4, %v9527_v61  ;;  %v9557_v49 = vpop.f32.mrf.mxu2 }
 0x7bd   :  { %10039 = vmatpush.msra.mxu1 %v9835_v0  ;;  %10011 = vmatpush.msra.mxu0 %v9830_v32 }
 0x7be   :  { %9970 = vmatpush.msrb.mxu3 %v18373_v28  ;;  %10068 = vmatpush.msra.mxu2 %v9836_v54  ;;  %v9556_v28 = vadd.f32 %v9555_v51, %v9542_v56  ;;  %v9571_v22 = vpop.f32.mrf.mxu3  ;;  %v10124_v54 = vld [vmem:[#allocation17 + $0x58] sm:$0xff]  ;;  %v10278_v56 = vld [vmem:[#allocation17 + $0x60] sm:$0xff] }
 0x7bf   :  { %10040 = vmatpush.msra.mxu1 %v9831_v6 }
 0x7c0   :  { %10097 = vmatpush.msra.mxu3 %v9837_v45  ;;  %10069 = vmatpush.msra.mxu2 %v9832_v57  ;;  %v9570_v12 = vadd.f32 %v9569_v8, %v9556_v28 }
 0x7c2   :  { %10098 = vmatpush.msra.mxu3 %v9833_v62  ;;  %9809 = vst [vmem:[#allocation4 + $0x98] sm:$0xff] %v9570_v12 }
 0x7c3   :  { %v9529_v9 = vpop.f32.mrf.mxu0 }
 0x7c4   :  { %v9544_v18 = vadd.f32 %v9543_v2, %v9529_v9  ;;  %v10280_v9 = vld [vmem:[#allocation17 + $0x70] sm:$0xff] }
 0x7c5   :  { %15851 = vmatmul.msk.f32.vlgmr.msrb.gmra.mxu0 %vm9855_vm5, %v9851_v24 }
 0x7c6   :  { %10151 = vmatpush.msrb.mxu0 %v18385_v46  ;;  %v9558_v19 = vadd.f32 %v9557_v49, %v9544_v18 }
 0x7c7   :  { %15855 = vmatmul.msk.f32.vlgmr.msrb.gmra.mxu1 %vm9855_vm5, %v9851_v24 }
 0x7c8   :  { %10180 = vmatpush.msrb.mxu1 %v18394_v3  ;;  %10152 = vmatpush.msrb.mxu0 %v18382_v17  ;;  %v9572_v25 = vadd.f32 %v9571_v22, %v9558_v19  ;;  %v9853_v17 = vld [vmem:[#allocation17 + $0x30] sm:$0xff] }
 0x7c9   :  { %15859 = vmatmul.msk.f32.vlgmr.msrb.gmra.mxu2 %vm9855_vm5, %v9851_v24 }
 0x7ca   :  { %10209 = vmatpush.msrb.mxu2 %v18403_v20  ;;  %10181 = vmatpush.msrb.mxu1 %v18391_v11  ;;  %v9854_v11 = vld [vmem:[#allocation17 + $0x38] sm:$0xff] }
 0x7cb   :  { %15863 = vmatmul.msk.f32.vlgmr.msrb.gmra.mxu3 %vm9855_vm5, %v9851_v24  ;;  %v10279_v24 = vld [vmem:[#allocation17 + $0x68] sm:$0xff] }
 0x7cc   :  { %10210 = vmatpush.msrb.mxu2 %v18400_v47  ;;  %10238 = vmatpush.msrb.mxu3 %v9572_v25  ;;  %v9583_v46 = vpop.f32.mrf.mxu0  ;;  %v10281_v25 = vld [vmem:[#allocation17 + $0x78] sm:$0xff] }
 0x7cd   :  { %15852 = vmatmul.msk.f32.gmra.mxu0 %vm9855_vm5, %v9852_v55 }
 0x7ce   :  { %10239 = vmatpush.msrb.mxu3 %v9570_v12  ;;  %v9597_v3 = vpop.f32.mrf.mxu1 }
 0x7cf   :  { %15856 = vmatmul.msk.f32.gmra.mxu1 %vm9855_vm5, %v9852_v55  ;;  %v9598_v47 = vadd.f32 %v9597_v3, %v9583_v46 }
 0x7d1   :  { %15860 = vmatmul.msk.f32.gmra.mxu2 %vm9855_vm5, %v9852_v55 }
 0x7d3   :  { %15864 = vmatmul.msk.f32.gmra.mxu3 %vm9855_vm5, %v9852_v55 }
 0x7d4   :  { %v9585_v38 = vpop.f32.mrf.mxu0 }
 0x7d5   :  { %15853 = vmatmul.msk.f32.gmra.mxu0 %vm9855_vm5, %v9853_v17 }
 0x7d6   :  { %v9611_v16 = vpop.f32.mrf.mxu2  ;;  %v9599_v40 = vpop.f32.mrf.mxu1 }
 0x7d7   :  { %15857 = vmatmul.msk.f32.gmra.mxu1 %vm9855_vm5, %v9853_v17  ;;  %v9612_v35 = vadd.f32 %v9611_v16, %v9598_v47  ;;  %v9600_v33 = vadd.f32 %v9599_v40, %v9585_v38 }
 0x7d8   :  { %v9625_v15 = vpop.f32.mrf.mxu3 }
 0x7d9   :  { %15861 = vmatmul.msk.f32.gmra.mxu2 %vm9855_vm5, %v9853_v17  ;;  %v9626_v37 = vadd.f32 %v9625_v15, %v9612_v35 }
 0x7db   :  { %15865 = vmatmul.msk.f32.gmra.mxu3 %vm9855_vm5, %v9853_v17  ;;  %9810 = vst [vmem:[#allocation4 + $0xf8] sm:$0xff] %v9626_v37 }
 0x7dd   :  { %15854 = vmatmul.msk.f32.gmra.mxu0 %vm9855_vm5, %v9854_v11 }
 0x7de   :  { %v9613_v41 = vpop.f32.mrf.mxu2 }
 0x7df   :  { %15858 = vmatmul.msk.f32.gmra.mxu1 %vm9855_vm5, %v9854_v11  ;;  %v9614_v27 = vadd.f32 %v9613_v41, %v9600_v33 }
 0x7e0   :  { %v9627_v36 = vpop.f32.mrf.mxu3 }
 0x7e1   :  { %15862 = vmatmul.msk.f32.gmra.mxu2 %vm9855_vm5, %v9854_v11  ;;  %v9628_v14 = vadd.f32 %v9627_v36, %v9614_v27 }
 0x7e3   :  { %15866 = vmatmul.msk.f32.gmra.mxu3 %vm9855_vm5, %v9854_v11 }
 0x7e5   :  { %15867 = vmatmul.msk.f32.vlgmr.msra.gmra.mxu0 %vm9855_vm5, %v9838_v39 }
 0x7e6   :  { %10308 = vmatpush.msra.mxu0 %v9628_v14 }
 0x7e7   :  { %15871 = vmatmul.msk.f32.vlgmr.msra.gmra.mxu1 %vm9855_vm5, %v9838_v39 }
 0x7e8   :  { %10309 = vmatpush.msra.mxu0 %v9626_v37 }
 0x7e9   :  { %15875 = vmatmul.msk.f32.vlgmr.msra.gmra.mxu2 %vm9855_vm5, %v9838_v39 }
 0x7eb   :  { %15879 = vmatmul.msk.f32.vlgmr.msra.gmra.mxu3 %vm9855_vm5, %v9838_v39 }
 0x7ed   :  { %15868 = vmatmul.msk.f32.gmra.mxu0 %vm9855_vm5, %v9839_v30 }
 0x7ee   :  { %v9639_v23 = vpop.f32.mrf.mxu0 }
 0x7ef   :  { %15872 = vmatmul.msk.f32.gmra.mxu1 %vm9855_vm5, %v9839_v30 }
 0x7f0   :  { %v9653_v34 = vpop.f32.mrf.mxu1 }
 0x7f1   :  { %15876 = vmatmul.msk.f32.gmra.mxu2 %vm9855_vm5, %v9839_v30  ;;  %v9654_v42 = vadd.f32 %v9653_v34, %v9639_v23 }
 0x7f3   :  { %15880 = vmatmul.msk.f32.gmra.mxu3 %vm9855_vm5, %v9839_v30 }
 0x7f5   :  { %15869 = vmatmul.msk.f32.gmra.mxu0 %vm9855_vm5, %v9840_v63 }
 0x7f6   :  { %v9641_v44 = vpop.f32.mrf.mxu0 }
 0x7f7   :  { %15873 = vmatmul.msk.f32.gmra.mxu1 %vm9855_vm5, %v9840_v63 }
 0x7f8   :  { %v9667_v43 = vpop.f32.mrf.mxu2  ;;  %v9655_v10 = vpop.f32.mrf.mxu1 }
 0x7f9   :  { %15877 = vmatmul.msk.f32.gmra.mxu2 %vm9855_vm5, %v9840_v63  ;;  %v9668_v21 = vadd.f32 %v9667_v43, %v9654_v42  ;;  %v9656_v20 = vadd.f32 %v9655_v10, %v9641_v44 }
 0x7fa   :  { %v9681_v13 = vpop.f32.mrf.mxu3 }
 0x7fb   :  { %15881 = vmatmul.msk.f32.gmra.mxu3 %vm9855_vm5, %v9840_v63  ;;  %v9682_v7 = vadd.f32 %v9681_v13, %v9668_v21 }
 0x7fd   :  { %15870 = vmatmul.msk.f32.gmra.mxu0 %vm9855_vm5, %v9841_v29  ;;  %9811 = vst [vmem:[#allocation4 + $0x38] sm:$0xff] %v9682_v7 }
 0x7ff   :  { %15874 = vmatmul.msk.f32.gmra.mxu1 %vm9855_vm5, %v9841_v29 }
 0x800   :  { %v9669_v31 = vpop.f32.mrf.mxu2 }
 0x801   :  { %15878 = vmatmul.msk.f32.gmra.mxu2 %vm9855_vm5, %v9841_v29  ;;  %v9670_v5 = vadd.f32 %v9669_v31, %v9656_v20 }
 0x802   :  { %v9683_v48 = vpop.f32.mrf.mxu3 }
 0x803   :  { %15882 = vmatmul.msk.f32.gmra.mxu3 %vm9855_vm5, %v9841_v29  ;;  %v9684_v50 = vadd.f32 %v9683_v48, %v9670_v5 }
 0x805   :  { %15883 = vmatmul.msk.f32.vlgmr.msrb.gmra.mxu0 %vm9855_vm5, %v10121_v1  ;;  %10337 = vmatpush.msra.mxu1 %v9684_v50 }
 0x807   :  { %15887 = vmatmul.msk.f32.vlgmr.msrb.gmra.mxu1 %vm9855_vm5, %v10121_v1 }
 0x808   :  { %10338 = vmatpush.msra.mxu1 %v9682_v7 }
 0x809   :  { %15891 = vmatmul.msk.f32.vlgmr.msrb.gmra.mxu2 %vm9855_vm5, %v10121_v1 }
 0x80b   :  { %15895 = vmatmul.msk.f32.vlgmr.msrb.gmra.mxu3 %vm9855_vm5, %v10121_v1 }
 0x80d   :  { %15884 = vmatmul.msk.f32.gmra.mxu0 %vm9855_vm5, %v10122_v52 }
 0x80f   :  { %15888 = vmatmul.msk.f32.gmra.mxu1 %vm9855_vm5, %v10122_v52  ;;  %v9695_v26 = vpop.f32.mrf.mxu0 }
 0x811   :  { %15892 = vmatmul.msk.f32.gmra.mxu2 %vm9855_vm5, %v10122_v52  ;;  %v9709_v59 = vpop.f32.mrf.mxu1 }
 0x812   :  { %v9710_v60 = vadd.f32 %v9709_v59, %v9695_v26 }
 0x813   :  { %15896 = vmatmul.msk.f32.gmra.mxu3 %vm9855_vm5, %v10122_v52 }
 0x815   :  { %15885 = vmatmul.msk.f32.gmra.mxu0 %vm9855_vm5, %v10123_v58 }
 0x817   :  { %15889 = vmatmul.msk.f32.gmra.mxu1 %vm9855_vm5, %v10123_v58  ;;  %v9697_v57 = vpop.f32.mrf.mxu0 }
 0x819   :  { %15893 = vmatmul.msk.f32.gmra.mxu2 %vm9855_vm5, %v10123_v58  ;;  %v9723_v0 = vpop.f32.mrf.mxu2  ;;  %v9711_v61 = vpop.f32.mrf.mxu1 }
 0x81a   :  { %v9724_v45 = vadd.f32 %v9723_v0, %v9710_v60  ;;  %v9712_v62 = vadd.f32 %v9711_v61, %v9697_v57 }
 0x81b   :  { %15897 = vmatmul.msk.f32.gmra.mxu3 %vm9855_vm5, %v10123_v58  ;;  %v9737_v32 = vpop.f32.mrf.mxu3 }
 0x81c   :  { %v9738_v6 = vadd.f32 %v9737_v32, %v9724_v45 }
 0x81d   :  { %15886 = vmatmul.msk.f32.gmra.mxu0 %vm9855_vm5, %v10124_v54 }
 0x81e   :  { %9812 = vst [vmem:[#allocation4 + $0x8] sm:$0xff] %v9738_v6 }
 0x81f   :  { %15890 = vmatmul.msk.f32.gmra.mxu1 %vm9855_vm5, %v10124_v54 }
 0x821   :  { %15894 = vmatmul.msk.f32.gmra.mxu2 %vm9855_vm5, %v10124_v54  ;;  %v9725_v4 = vpop.f32.mrf.mxu2 }
 0x822   :  { %v9726_v51 = vadd.f32 %v9725_v4, %v9712_v62 }
 0x823   :  { %15898 = vmatmul.msk.f32.gmra.mxu3 %vm9855_vm5, %v10124_v54  ;;  %v9739_v28 = vpop.f32.mrf.mxu3 }
 0x824   :  { %v9740_v8 = vadd.f32 %v9739_v28, %v9726_v51 }
 0x825   :  { %15899 = vmatmul.msk.f32.vlgmr.msra.gmra.mxu0 %vm9855_vm5, %v10278_v56 }
 0x826   :  { %10366 = vmatpush.msra.mxu2 %v9740_v8 }
 0x827   :  { %15903 = vmatmul.msk.f32.vlgmr.msra.gmra.mxu1 %vm9855_vm5, %v10278_v56 }
 0x828   :  { %10367 = vmatpush.msra.mxu2 %v9738_v6 }
 0x829   :  { %15907 = vmatmul.msk.f32.vlgmr.msra.gmra.mxu2 %vm9855_vm5, %v10278_v56 }
 0x82d   :  { %15900 = vmatmul.msk.f32.gmra.mxu0 %vm9855_vm5, %v10279_v24 }
 0x82f   :  { %15904 = vmatmul.msk.f32.gmra.mxu1 %vm9855_vm5, %v10279_v24 }
 0x831   :  { %15908 = vmatmul.msk.f32.gmra.mxu2 %vm9855_vm5, %v10279_v24 }
 0x832   :  { %v9751_v12 = vpop.f32.mrf.mxu0 }
 0x834   :  { %v9765_v2 = vpop.f32.mrf.mxu1 }
 0x835   :  { %15901 = vmatmul.msk.f32.gmra.mxu0 %vm9855_vm5, %v10280_v9  ;;  %v9766_v18 = vadd.f32 %v9765_v2, %v9751_v12 }
 0x837   :  { %15905 = vmatmul.msk.f32.gmra.mxu1 %vm9855_vm5, %v10280_v9 }
 0x839   :  { %15909 = vmatmul.msk.f32.gmra.mxu2 %vm9855_vm5, %v10280_v9 }
 0x83a   :  { %v9753_v55 = vpop.f32.mrf.mxu0 }
 0x83c   :  { %v9779_v49 = vpop.f32.mrf.mxu2  ;;  %v9767_v17 = vpop.f32.mrf.mxu1 }
 0x83d   :  { %v9780_v19 = vadd.f32 %v9779_v49, %v9766_v18  ;;  %15902 = vmatmul.msk.f32.gmra.mxu0 %vm9855_vm5, %v10281_v25  ;;  %v9768_v11 = vadd.f32 %v9767_v17, %v9753_v55 }
 0x83e   :  { %v9793_v22 = vpop.f32.mrf.mxu3 }
 0x83f   :  { %v9794_v46 = vadd.f32 %v9793_v22, %v9780_v19  ;;  %15906 = vmatmul.msk.f32.gmra.mxu1 %vm9855_vm5, %v10281_v25 }
 0x841   :  { %9813 = vst [vmem:[#allocation4 + $0x78] sm:$0xff] %v9794_v46  ;;  %15910 = vmatmul.msk.f32.gmra.mxu2 %vm9855_vm5, %v10281_v25 }
 0x842   :  { %v9885_v35 = vpop.f32.mrf.mxu0 }
 0x844   :  { %v9781_v3 = vpop.f32.mrf.mxu2  ;;  %v9914_v15 = vpop.f32.mrf.mxu1 }
 0x845   :  { %v9782_v47 = vadd.f32 %v9781_v3, %v9768_v11 }
 0x846   :  { %v9795_v16 = vpop.f32.mrf.mxu3 }
 0x847   :  { %v9796_v37 = vadd.f32 %v9795_v16, %v9782_v47 }
 0x849   :  { %10395 = vmatpush.msra.mxu3 %v9796_v37 }
 0x84a   :  { %v9888_v38 = vpop.f32.mrf.mxu0 }
 0x84b   :  { %10396 = vmatpush.msra.mxu3 %v9794_v46 }
 0x84c   :  { %15911 = vmatmul.msk.f32.vlgmr.msra.gmra.mxu3 %vm9855_vm5, %v10278_v56  ;;  %v9943_v39 = vpop.f32.mrf.mxu2  ;;  %v9917_v40 = vpop.f32.mrf.mxu1 }
 0x84e   :  { %v9972_v33 = vpop.f32.mrf.mxu3 }
 0x852   :  { %v9891_v41 = vpop.f32.mrf.mxu0 }
 0x854   :  { %15912 = vmatmul.msk.f32.gmra.mxu3 %vm9855_vm5, %v10279_v24  ;;  %v9946_v27 = vpop.f32.mrf.mxu2  ;;  %v9920_v36 = vpop.f32.mrf.mxu1 }
 0x856   :  { %v9975_v14 = vpop.f32.mrf.mxu3 }
 0x85a   :  { %v18480_v30 = vpop.f32.mrf.mxu0 }
 0x85c   :  { %15913 = vmatmul.msk.f32.gmra.mxu3 %vm9855_vm5, %v10280_v9  ;;  %v9949_v63 = vpop.f32.mrf.mxu2  ;;  %v18482_v23 = vpop.f32.mrf.mxu1 }
 0x85e   :  { %v9978_v34 = vpop.f32.mrf.mxu3 }
 0x862   :  { %v10013_v29 = vpop.f32.mrf.mxu0 }
 0x863   :  { %v10014_v43 = vadd.f32 %v10013_v29, %v9885_v35 }
 0x864   :  { %15914 = vmatmul.msk.f32.gmra.mxu3 %vm9855_vm5, %v10281_v25  ;;  %v18485_v42 = vpop.f32.mrf.mxu2  ;;  %v10042_v21 = vpop.f32.mrf.mxu1 }
 0x865   :  { %v10043_v13 = vadd.f32 %v10042_v21, %v9914_v15 }
 0x866   :  { %v18487_v7 = vpop.f32.mrf.mxu3 }
 0x86a   :  { %v10016_v44 = vpop.f32.mrf.mxu0 }
 0x86b   :  { %v10017_v20 = vadd.f32 %v10016_v44, %v9888_v38 }
 0x86c   :  { %v10071_v10 = vpop.f32.mrf.mxu2  ;;  %v10045_v1 = vpop.f32.mrf.mxu1 }
 0x86d   :  { %v18489_v31 = vadd.f32 %v10071_v10, %v9943_v39  ;;  %v10046_v5 = vadd.f32 %v10045_v1, %v9917_v40 }
 0x86e   :  { %v10100_v48 = vpop.f32.mrf.mxu3 }
 0x86f   :  { %v18491_v50 = vadd.f32 %v10100_v48, %v9972_v33 }
 0x872   :  { %v10019_v52 = vpop.f32.mrf.mxu0 }
 0x873   :  { %v10020_v26 = vadd.f32 %v10019_v52, %v9891_v41 }
 0x874   :  { %v10074_v58 = vpop.f32.mrf.mxu2  ;;  %v10048_v59 = vpop.f32.mrf.mxu1 }
 0x875   :  { %v18493_v60 = vadd.f32 %v10074_v58, %v9946_v27  ;;  %v10049_v0 = vadd.f32 %v10048_v59, %v9920_v36 }
 0x876   :  { %v10103_v54 = vpop.f32.mrf.mxu3 }
 0x877   :  { %v18495_v45 = vadd.f32 %v10103_v54, %v9975_v14 }
 0x87a   :  { %v10022_v32 = vpop.f32.mrf.mxu0 }
 0x87b   :  { %v10023_v10 = vadd.f32 %v10022_v32, %v18480_v30 }
 0x87c   :  { %v10077_v6 = vpop.f32.mrf.mxu2  ;;  %v10051_v57 = vpop.f32.mrf.mxu1 }
 0x87d   :  { %v10078_v61 = vadd.f32 %v10077_v6, %v9949_v63 }
 0x87e   :  { %v10106_v62 = vpop.f32.mrf.mxu3 }
 0x87f   :  { %v18497_v4 = vadd.f32 %v10106_v62, %v9978_v34 }
 0x882   :  { %v10154_v51 = vpop.f32.mrf.mxu0 }
 0x883   :  { %v10253_v39 = vadd.f32 %v10154_v51, %v10014_v43 }
 0x884   :  { %v18499_v56 = vpop.f32.mrf.mxu2  ;;  %v10183_v28 = vpop.f32.mrf.mxu1 }
 0x885   :  { %v10254_v27 = vadd.f32 %v10183_v28, %v10043_v13 }
 0x886   :  { %v18501_v55 = vpop.f32.mrf.mxu3 }
 0x88a   :  { %v10157_v8 = vpop.f32.mrf.mxu0 }
 0x88b   :  { %v10257_v15 = vadd.f32 %v10157_v8, %v10017_v20  ;;  %v10052_v20 = vadd.f32 %v10051_v57, %v18482_v23 }
 0x88c   :  { %v10212_v24 = vpop.f32.mrf.mxu2  ;;  %v10186_v12 = vpop.f32.mrf.mxu1 }
 0x88d   :  { %v10258_v37 = vadd.f32 %v10186_v12, %v10046_v5  ;;  %v10255_v54 = vadd.f32 %v10212_v24, %v18489_v31 }
 0x88e   :  { %v18505_v11 = vpop.f32.mrf.mxu3 }
 0x892   :  { %v10160_v9 = vpop.f32.mrf.mxu0 }
 0x893   :  { %v10261_v40 = vadd.f32 %v10160_v9, %v10020_v26 }
 0x894   :  { %v10215_v2 = vpop.f32.mrf.mxu2  ;;  %v10189_v18 = vpop.f32.mrf.mxu1 }
 0x895   :  { %v10262_v36 = vadd.f32 %v10189_v18, %v10049_v0  ;;  %v10259_v51 = vadd.f32 %v10215_v2, %v18493_v60 }
 0x896   :  { %v18507_v35 = vpop.f32.mrf.mxu3 }
 0x89a   :  { %v10163_v49 = vpop.f32.mrf.mxu0 }
 0x89b   :  { %v10265_v1 = vadd.f32 %v10163_v49, %v10023_v10 }
 0x89c   :  { %v10192_v19 = vpop.f32.mrf.mxu1  ;;  %v10218_v22 = vpop.f32.mrf.mxu2 }
 0x89d   :  { %v10266_v58 = vadd.f32 %v10192_v19, %v10052_v20  ;;  %v10263_v9 = vadd.f32 %v10218_v22, %v10078_v61 }
 0x89e   :  { %v18533_v30 = vpop.f32.mrf.mxu3 }
 0x8a2   :  { %v10311_v25 = vpop.f32.mrf.mxu0 }
 0x8a3   :  { %v18513_v63 = vadd.f32 %v10311_v25, %v10253_v39 }
 0x8a4   :  { %v10340_v17 = vpop.f32.mrf.mxu1  ;;  %v18503_v46 = vpop.f32.mrf.mxu2 }
 0x8a5   :  { %v18517_v21 = vadd.f32 %v10340_v17, %v10254_v27  ;;  %v10465_v5 = vmul.f32 %v18513_v63, %v18513_v63 }
 0x8a7   :  { %v10466_v26 = vmul.f32 %v18517_v21, %v18517_v21 }
 0x8aa   :  { %v10314_v3 = vpop.f32.mrf.mxu0 }
 0x8ab   :  { %v18509_v33 = vadd.f32 %v10314_v3, %v10257_v15 }
 0x8ac   :  { %v10343_v47 = vpop.f32.mrf.mxu1  ;;  %v10369_v16 = vpop.f32.mrf.mxu2 }
 0x8ad   :  { %v18511_v14 = vadd.f32 %v10343_v47, %v10258_v37  ;;  %v10469_v43 = vmul.f32 %v18509_v33, %v18509_v33  ;;  %v10429_v48 = vadd.f32 %v18509_v33, %v18513_v63  ;;  %v18557_v47 = vadd.f32 %v10369_v16, %v10255_v54  ;;  %v10250_v16 = vpop.f32.mrf.mxu3 }
 0x8ae   :  { %v10081_v37 = vadd.f32 %v18499_v56, %v18485_v42 }
 0x8af   :  { %v10470_v13 = vmul.f32 %v18511_v14, %v18511_v14  ;;  %v10438_v23 = vadd.f32 %v18511_v14, %v18517_v21  ;;  %v10481_v32 = vadd.f32 %v10469_v43, %v10465_v5  ;;  %v10467_v43 = vmul.f32 %v18557_v47, %v18557_v47 }
 0x8b1   :  { %v10490_v28 = vadd.f32 %v10470_v13, %v10466_v26 }
 0x8b2   :  { %v10317_v38 = vpop.f32.mrf.mxu0 }
 0x8b3   :  { %v18515_v34 = vadd.f32 %v10317_v38, %v10261_v40 }
 0x8b4   :  { %v10346_v41 = vpop.f32.mrf.mxu1  ;;  %v10372_v29 = vpop.f32.mrf.mxu2 }
 0x8b5   :  { %v18519_v44 = vadd.f32 %v10346_v41, %v10262_v36  ;;  %v10473_v52 = vmul.f32 %v18515_v34, %v18515_v34  ;;  %v10430_v6 = vadd.f32 %v10429_v48, %v18515_v34  ;;  %v18555_v60 = vadd.f32 %v10372_v29, %v10259_v51 }
 0x8b6   :  { %v10267_v36 = vadd.f32 %v18503_v46, %v10081_v37 }
 0x8b7   :  { %v10474_v59 = vmul.f32 %v18519_v44, %v18519_v44  ;;  %v10439_v8 = vadd.f32 %v10438_v23, %v18519_v44  ;;  %v10482_v18 = vadd.f32 %v10481_v32, %v10473_v52  ;;  %v10471_v27 = vmul.f32 %v18555_v60, %v18555_v60 }
 0x8b8   :  { %v10447_v20 = vadd.f32 %v18555_v60, %v18557_v47 }
 0x8b9   :  { %v10491_v19 = vadd.f32 %v10490_v28, %v10474_v59  ;;  %v10499_v52 = vadd.f32 %v10471_v27, %v10467_v43  ;;  %v10256_v43 = vadd.f32 %v18505_v11, %v18491_v50 }
 0x8ba   :  { %v10320_v0 = vpop.f32.mrf.mxu0 }
 0x8bb   :  { %v18543_v57 = vadd.f32 %v10320_v0, %v10265_v1 }
 0x8bc   :  { %v10349_v62 = vpop.f32.mrf.mxu1  ;;  %v10375_v24 = vpop.f32.mrf.mxu2 }
 0x8bd   :  { %v18547_v12 = vadd.f32 %v10349_v62, %v10266_v58  ;;  %v10431_v49 = vadd.f32 %v10430_v6, %v18543_v57  ;;  %v10477_v31 = vmul.f32 %v18543_v57, %v18543_v57  ;;  %v18559_v15 = vadd.f32 %v10375_v24, %v10263_v9 }
 0x8bf   :  { %v10440_v25 = vadd.f32 %v10439_v8, %v18547_v12  ;;  %v10478_v17 = vmul.f32 %v18547_v12, %v18547_v12  ;;  %v10432_v2 = vrot.slane %v10431_v49, 4  ;;  %v10483_v3 = vadd.f32 %v10482_v18, %v10477_v31 }
 0x8c0   :  { %v10475_v42 = vmul.f32 %v18559_v15, %v18559_v15  ;;  %v10448_v46 = vadd.f32 %v10447_v20, %v18559_v15  ;;  %v10264_v20 = vadd.f32 %v18533_v30, %v18497_v4 }
 0x8c1   :  { %v10441_v61 = vrot.slane %v10440_v25, 4  ;;  %v10492_v22 = vadd.f32 %v10491_v19, %v10478_v17  ;;  %v10433_v38 = vadd.f32 %v10432_v2, %v10431_v49  ;;  %v10484_v39 = vrot.slane %v10483_v3, 4 }
 0x8c2   :  { %v10500_v0 = vadd.f32 %v10499_v52, %v10475_v42 }
 0x8c3   :  { %v10442_v40 = vadd.f32 %v10441_v61, %v10440_v25  ;;  %v10493_v41 = vrot.slane %v10492_v22, 4  ;;  %v10434_v29 = vrot.slane %v10433_v38, 2  ;;  %v10485_v10 = vadd.f32 %v10484_v39, %v10483_v3 }
 0x8c4   :  { %v10378_v5 = vpop.f32.mrf.mxu2 }
 0x8c5   :  { %v10494_v56 = vadd.f32 %v10493_v41, %v10492_v22  ;;  %v10435_v13 = vadd.f32 %v10434_v29, %v10433_v38  ;;  %v10486_v1 = vrot.slane %v10485_v10, 2  ;;  %v10443_v48 = vrot.slane %v10442_v40, 2 }
 0x8c6   :  { %v18573_v58 = vadd.f32 %v10378_v5, %v10267_v36  ;;  %v10260_v29 = vadd.f32 %v18507_v35, %v18495_v45 }
 0x8c7   :  { %v10436_v26 = vrot.slane %v10435_v13, 1  ;;  %v10487_v23 = vadd.f32 %v10486_v1, %v10485_v10  ;;  %v10495_v59 = vrot.slane %v10494_v56, 2  ;;  %v10444_v51 = vadd.f32 %v10443_v48, %v10442_v40 }
 0x8c8   :  { %v10449_v54 = vadd.f32 %v10448_v46, %v18573_v58  ;;  %v10479_v32 = vmul.f32 %v18573_v58, %v18573_v58  ;;  %v10110_v1 = vadd.f32 %v18501_v55, %v18487_v7 }
 0x8c9   :  { %v18578_v6 = vadd.f32 %v10436_v26, %v10435_v13  ;;  %v10488_v62 = vrot.slane %v10487_v23, 1  ;;  %v10496_v18 = vadd.f32 %v10495_v59, %v10494_v56  ;;  %v10445_v19 = vrot.slane %v10444_v51, 1 }
 0x8ca   :  { %v10450_v28 = vrot.slane %v10449_v54, 4  ;;  %v10501_v8 = vadd.f32 %v10500_v0, %v10479_v32  ;;  %v10268_v35 = vadd.f32 %v10250_v16, %v10110_v1 }
 0x8cb   :  { %10517 = vrot.lane.b32.xlu0 %v18578_v6, %s17743_s3  ;;  %v18582_v9 = vadd.f32 %v10488_v62, %v10487_v23  ;;  %v10497_v2 = vrot.slane %v10496_v18, 1  ;;  %v10446_v22 = vadd.f32 %v10445_v19, %v10444_v51 }
 0x8cc   :  { %v10502_v49 = vrot.slane %v10501_v8, 4  ;;  %v10451_v24 = vadd.f32 %v10450_v28, %v10449_v54 }
 0x8cd   :  { %10534 = vrot.lane.b32.xlu2 %v18582_v9, %s17743_s3  ;;  %v10498_v39 = vadd.f32 %v10497_v2, %v10496_v18 }
 0x8ce   :  { %v10452_v25 = vrot.slane %v10451_v24, 2  ;;  %v10503_v17 = vadd.f32 %v10502_v49, %v10501_v8 }
 0x8cf   :  { %v10398_v31 = vpop.f32.mrf.mxu3 }
 0x8d0   :  { %v10453_v3 = vadd.f32 %v10452_v25, %v10451_v24  ;;  %v10504_v61 = vrot.slane %v10503_v17, 2  ;;  %v18601_v56 = vadd.f32 %v10398_v31, %v10256_v43 }
 0x8d2   :  { %v10454_v37 = vrot.slane %v10453_v3, 1  ;;  %v10505_v38 = vadd.f32 %v10504_v61, %v10503_v17  ;;  %v10468_v5 = vmul.f32 %v18601_v56, %v18601_v56 }
 0x8d3   :  { %10519 = vrot.lane.b32.xlu0 %v10446_v22, %s17743_s3 }
 0x8d4   :  { %v10455_v41 = vadd.f32 %v10454_v37, %v10453_v3  ;;  %v10506_v27 = vrot.slane %v10505_v38, 1 }
 0x8d5   :  { %10536 = vrot.lane.b32.xlu2 %v10498_v39, %s17743_s3 }
 0x8d6   :  { %10521 = vrot.lane.b32.xlu1 %v10455_v41, %s17743_s3  ;;  %v18589_v36 = vadd.f32 %v10506_v27, %v10505_v38 }
 0x8d7   :  { %v10401_v40 = vpop.f32.mrf.mxu3 }
 0x8d8   :  { %v18599_v42 = vadd.f32 %v10401_v40, %v10260_v29 }
 0x8da   :  { %v10472_v45 = vmul.f32 %v18599_v42, %v18599_v42  ;;  %v10456_v50 = vadd.f32 %v18599_v42, %v18601_v56 }
 0x8db   :  { %10538 = vrot.lane.b32.xlu0 %v18589_v36, %s17743_s3 }
 0x8dc   :  { %v10508_v30 = vadd.f32 %v10472_v45, %v10468_v5 }
 0x8df   :  { %v10404_v10 = vpop.f32.mrf.mxu3 }
 0x8e0   :  { %v18603_v13 = vadd.f32 %v10404_v10, %v10264_v20 }
 0x8e2   :  { %v10476_v4 = vmul.f32 %v18603_v13, %v18603_v13  ;;  %v10457_v48 = vadd.f32 %v10456_v50, %v18603_v13 }
 0x8e4   :  { %v10509_v7 = vadd.f32 %v10508_v30, %v10476_v4 }
 0x8e7   :  { %v10407_v11 = vpop.f32.mrf.mxu3 }
 0x8e8   :  { %v18616_v52 = vadd.f32 %v10407_v11, %v10268_v35 }
 0x8ea   :  { %v10458_v55 = vadd.f32 %v10457_v48, %v18616_v52  ;;  %v10480_v16 = vmul.f32 %v18616_v52, %v18616_v52 }
 0x8ec   :  { %v10459_v46 = vrot.slane %v10458_v55, 4  ;;  %v10510_v26 = vadd.f32 %v10509_v7, %v10480_v16 }
 0x8ee   :  { %v10460_v23 = vadd.f32 %v10459_v46, %v10458_v55  ;;  %v10511_v59 = vrot.slane %v10510_v26, 4 }
 0x8f0   :  { %v10461_v0 = vrot.slane %v10460_v23, 2  ;;  %v10512_v54 = vadd.f32 %v10511_v59, %v10510_v26 }
 0x8f2   :  { %v10462_v32 = vadd.f32 %v10461_v0, %v10460_v23  ;;  %v10513_v62 = vrot.slane %v10512_v54, 2 }
 0x8f4   :  { %v10463_v51 = vrot.slane %v10462_v32, 1  ;;  %v10514_v8 = vadd.f32 %v10513_v62, %v10512_v54 }
 0x8f6   :  { %v10464_v28 = vadd.f32 %v10463_v51, %v10462_v32  ;;  %v10515_v18 = vrot.slane %v10514_v8, 1 }
 0x8f8   :  { %10523 = vrot.lane.b32.xlu1 %v10464_v28, %s17743_s3  ;;  %v10516_v49 = vadd.f32 %v10515_v18, %v10514_v8 }
 0x900   :  { %10540 = vrot.lane.b32.xlu1 %v10516_v49, %s17743_s3 }
 0x927   :  { %v10535_v24 = vpop.permute.xlu2 %10534 }
 0x92f   :  { %v10537_v37 = vpop.permute.xlu2 %10536 }
 0x930   :  { %v10544_v38 = vsel %vm10525_vm6, %v10535_v24, %v10537_v37 }
 0x931   :  { %v10547_v40 = vadd.f32 %v10544_v38, %v10498_v39 }
 0x93d   :  { %v10518_v31 = vpop.permute.xlu0 %10517 }
 0x945   :  { %v10520_v19 = vpop.permute.xlu0 %10519 }
 0x946   :  { %v10528_v25 = vsel %vm10525_vm6, %v10518_v31, %v10520_v19 }
 0x947   :  { %v10531_v17 = vadd.f32 %v10528_v25, %v10446_v22 }
 0x948   :  { %v10522_v2 = vpop.permute.xlu1 %10521 }
 0x949   :  { %10552 = vrot.lane.b32.xlu0 %v10531_v17, %s17729_s14  ;;  %v10527_v3 = vsel %vm10525_vm6, %v10520_v19, %v10522_v2 }
 0x94a   :  { %v10532_v61 = vadd.f32 %v10527_v3, %v10455_v41 }
 0x94c   :  { %10554 = vrot.lane.b32.xlu1 %v10532_v61, %s17729_s14 }
 0x94d   :  { %v10539_v1 = vpop.permute.xlu0 %10538 }
 0x954   :  { %10568 = vrot.lane.b32.xlu1 %v10547_v40, %s17729_s14 }
 0x96a   :  { %v10524_v27 = vpop.permute.xlu1 %10523 }
 0x96b   :  { %v10529_v22 = vsel %vm10525_vm6, %v10524_v27, %v10518_v31  ;;  %v10526_v41 = vsel %vm10525_vm6, %v10522_v2, %v10524_v27 }
 0x96c   :  { %v10530_v29 = vadd.f32 %v10529_v22, %v18578_v6  ;;  %v10533_v20 = vadd.f32 %v10526_v41, %v10464_v28  ;;  %v10543_v6 = vsel %vm10525_vm6, %v10537_v37, %v10539_v1 }
 0x96d   :  { %v10548_v35 = vadd.f32 %v10543_v6, %v18589_v36 }
 0x96e   :  { %10550 = vrot.lane.b32.xlu2 %v10530_v29, %s17729_s14 }
 0x972   :  { %v10541_v10 = vpop.permute.xlu1 %10540 }
 0x973   :  { %v10545_v43 = vsel %vm10525_vm6, %v10541_v10, %v10535_v24  ;;  %v10542_v45 = vsel %vm10525_vm6, %v10539_v1, %v10541_v10 }
 0x974   :  { %v10546_v39 = vadd.f32 %v10545_v43, %v18582_v9  ;;  %v10549_v5 = vadd.f32 %v10542_v45, %v10516_v49 }
 0x976   :  { %10556 = vrot.lane.b32.xlu2 %v10533_v20, %s17729_s14  ;;  %10566 = vrot.lane.b32.xlu0 %v10546_v39, %s17729_s14 }
 0x97e   :  { %10570 = vrot.lane.b32.xlu2 %v10548_v35, %s17729_s14  ;;  %10572 = vrot.lane.b32.xlu0 %v10549_v5, %s17729_s14 }
 0x9bb   :  { %v10553_v9 = vpop.permute.xlu0 %10552 }
 0x9be   :  { %v10555_v11 = vpop.permute.xlu1 %10554 }
 0x9bf   :  { %v10559_v7 = vsel %vm5659_vm12, %v10553_v9, %v10555_v11 }
 0x9c0   :  { %v10564_v26 = vadd.f32 %v10559_v7, %v10532_v61 }
 0x9c6   :  { %v10569_v32 = vpop.permute.xlu1 %10568 }
 0x9c8   :  { %v10551_v50 = vpop.permute.xlu2 %10550 }
 0x9c9   :  { %v10560_v36 = vsel %vm5659_vm12, %v10551_v50, %v10553_v9 }
 0x9ca   :  { %v10563_v23 = vadd.f32 %v10560_v36, %v10531_v17 }
 0x9cc   :  { %v10584_v51 = vadd.f32 %v10564_v26, %v10563_v23 }
 0x9d0   :  { %v10557_v4 = vpop.permute.xlu2 %10556 }
 0x9d1   :  { %v10558_v30 = vsel %vm5659_vm12, %v10555_v11, %v10557_v4  ;;  %v10561_v48 = vsel %vm5659_vm12, %v10557_v4, %v10551_v50 }
 0x9d2   :  { %v10562_v55 = vadd.f32 %v10561_v48, %v10530_v29  ;;  %v10565_v16 = vadd.f32 %v10558_v30, %v10533_v20 }
 0x9d4   :  { %v10582_v59 = vadd.f32 %v10565_v16, %v10562_v55  ;;  %v10583_v0 = vadd.f32 %v10563_v23, %v10562_v55  ;;  %v10585_v54 = vadd.f32 %v10565_v16, %v10564_v26 }
 0x9d6   :  { %v10590_v8 = vadd.f32 %v10584_v51, %v10582_v59  ;;  %v10591_v18 = vadd.f32 %v10585_v54, %v10583_v0  ;;  %v10426_v54 = vld [vmem:[#allocation23] ss:$2 sm:$0xf] }
 0x9d8   :  { %v10571_v62 = vpop.permute.xlu2 %10570  ;;  %v10594_v61 = vmul.f32 0.001953125, %v10590_v8  ;;  %v10595_v37 = vmul.f32 0.001953125, %v10591_v18 }
 0x9d9   :  { %v10575_v49 = vsel %vm5659_vm12, %v10569_v32, %v10571_v62 }
 0x9da   :  { %v10580_v17 = vadd.f32 %v10575_v49, %v10548_v35  ;;  %v10598_v43 = vmul.f32 %v10594_v61, %v10594_v61 }
 0x9e8   :  { %v10567_v46 = vpop.permute.xlu0 %10566 }
 0x9e9   :  { %v10576_v28 = vsel %vm5659_vm12, %v10567_v46, %v10569_v32 }
 0x9ea   :  { %v10579_v31 = vadd.f32 %v10576_v28, %v10547_v40  ;;  %v10599_v40 = vmul.f32 %v10595_v37, %v10595_v37 }
 0x9ec   :  { %v10588_v38 = vadd.f32 %v10580_v17, %v10579_v31 }
 0x9f0   :  { %v10573_v24 = vpop.permute.xlu0 %10572 }
 0x9f1   :  { %v10574_v19 = vsel %vm5659_vm12, %v10571_v62, %v10573_v24  ;;  %v10577_v25 = vsel %vm5659_vm12, %v10573_v24, %v10567_v46 }
 0x9f2   :  { %v10578_v2 = vadd.f32 %v10577_v25, %v10546_v39  ;;  %v10581_v3 = vadd.f32 %v10574_v19, %v10549_v5 }
 0x9f4   :  { %v10586_v27 = vadd.f32 %v10581_v3, %v10578_v2  ;;  %v10587_v22 = vadd.f32 %v10579_v31, %v10578_v2  ;;  %v10589_v29 = vadd.f32 %v10581_v3, %v10580_v17 }
 0x9f6   :  { %v10592_v41 = vadd.f32 %v10588_v38, %v10586_v27  ;;  %v10593_v10 = vadd.f32 %v10589_v29, %v10587_v22  ;;  %v10428_v27 = vld [vmem:[#allocation23 + $0x1] ss:$2 sm:$0xf] }
 0x9f8   :  { %v10596_v20 = vmul.f32 0.001953125, %v10592_v41  ;;  %v10597_v1 = vmul.f32 0.001953125, %v10593_v10 }
 0x9fa   :  { %v10600_v6 = vsub.f32 %v10596_v20, %v10598_v43  ;;  %v10601_v45 = vsub.f32 %v10597_v1, %v10599_v40 }
 0x9fc   :  { %v10602_v50 = vadd.f32 1e-05, %v10600_v6  ;;  %v10603_v53 = vadd.f32 1e-05, %v10601_v45 }
 0x9fe   :  { %17377 = vrsqrt.f32 %v10602_v50  ;;  %vm10610_vm11 = vweird.f32 %v10602_v50  ;;  %vm10620_vm13 = vweird.f32 %v10603_v53 }
 0x9ff   :  { %17379 = vrsqrt.f32 %v10603_v53 }
 0xa04   :  { %v17378_v39 = vpop.eup %17377 }
 0xa05   :  { %v17380_v35 = vpop.eup %17379  ;;  %v10605_v5 = vmul.f32 %v17378_v39, %v10602_v50  ;;  %vm10611_vm7 = vweird.f32 %v17378_v39 }
 0xa06   :  { %v10615_v9 = vmul.f32 %v17380_v35, %v10603_v53  ;;  %vm10621_vm8 = vweird.f32 %v17380_v35  ;;  %vm10612_vm12 = vmor %vm10610_vm11, %vm10611_vm7 }
 0xa07   :  { %v10606_v4 = vmul.f32 %v17378_v39, %v10605_v5  ;;  %vm10622_vm14 = vmor %vm10620_vm13, %vm10621_vm8 }
 0xa08   :  { %v10616_v11 = vmul.f32 %v17380_v35, %v10615_v9 }
 0xa09   :  { %v10607_v30 = vmul.f32 0.5, %v10606_v4 }
 0xa0a   :  { %v10617_v48 = vmul.f32 0.5, %v10616_v11 }
 0xa0b   :  { %v10608_v7 = vsub.f32 1.5, %v10607_v30 }
 0xa0c   :  { %v10618_v36 = vsub.f32 1.5, %v10617_v48 }
 0xa0d   :  { %v10609_v55 = vmul.f32 %v17378_v39, %v10608_v7 }
 0xa0e   :  { %v10619_v16 = vmul.f32 %v17380_v35, %v10618_v36 }
 0xa0f   :  { %v10613_v46 = vsel %vm10612_vm12, %v17378_v39, %v10609_v55 }
 0xa10   :  { %v10623_v26 = vsel %vm10622_vm14, %v17380_v35, %v10619_v16  ;;  %v10627_v23 = vrot.slane %v10613_v46, 6 }
 0xa11   :  { %v10626_v59 = vrot.slane %v10623_v26, 7  ;;  %v10628_v0 = vrot.slane %v10623_v26, 5 }
 0xa13   :  { %v10629_v32 = vsel %vm1153_vm9, %v10613_v46, %v10626_v59  ;;  %v10630_v62 = vsel %vm1155_vm10, %v10627_v23, %v10628_v0 }
 0xa14   :  { %v10631_v51 = vsel %vm653_vm1, %v10629_v32, %v10630_v62 }
 0xa15   :  { %v10633_v28 = vmul.f32 %v10631_v51, %v10426_v54 }
 0xa17   :  { %v10635_v8 = vperm.slane %v10633_v28, 0  ;;  %v10636_v18 = vperm.slane %v10633_v28, 1  ;;  %v10637_v49 = vperm.slane %v10633_v28, 2  ;;  %v10638_v31 = vperm.slane %v10633_v28, 3 }
 0xa19   :  { %v10644_v24 = vmul.f32 %v10636_v18, %v10595_v37  ;;  %v10645_v19 = vmul.f32 %v10637_v49, %v10594_v61  ;;  %v10646_v25 = vmul.f32 %v10638_v31, %v10595_v37  ;;  %v10643_v17 = vmul.f32 %v10635_v8, %v10594_v61 }
 0xa1a   :  { %v10659_v41 = vmul.f32 %v10635_v8, %v18513_v63  ;;  %v10660_v10 = vmul.f32 %v10636_v18, %v18517_v21  ;;  %v10661_v40 = vmul.f32 %v10637_v49, %v18557_v47  ;;  %v10662_v20 = vmul.f32 %v10638_v31, %v18601_v56 }
 0xa1b   :  { %v10651_v2 = vrot.slane %v10644_v24, 7  ;;  %v10652_v3 = vrot.slane %v10645_v19, 6  ;;  %v10653_v38 = vrot.slane %v10646_v25, 5  ;;  %v10663_v61 = vmul.f32 %v10635_v8, %v18509_v33 }
 0xa1c   :  { %v10664_v1 = vmul.f32 %v10636_v18, %v18511_v14  ;;  %v10665_v6 = vmul.f32 %v10637_v49, %v18555_v60  ;;  %v10666_v45 = vmul.f32 %v10638_v31, %v18599_v42  ;;  %v10667_v50 = vmul.f32 %v10635_v8, %v18515_v34 }
 0xa1d   :  { %v10654_v22 = vsel %vm1153_vm9, %v10643_v17, %v10651_v2  ;;  %v10655_v29 = vsel %vm1155_vm10, %v10652_v3, %v10653_v38  ;;  %v10668_v63 = vmul.f32 %v10636_v18, %v18519_v44  ;;  %v10669_v21 = vmul.f32 %v10637_v49, %v18559_v15 }
 0xa1e   :  { %v10656_v43 = vsel %vm653_vm1, %v10654_v22, %v10655_v29  ;;  %v10670_v53 = vmul.f32 %v10638_v31, %v18603_v13  ;;  %v10671_v33 = vmul.f32 %v10635_v8, %v18543_v57  ;;  %v10672_v14 = vmul.f32 %v10636_v18, %v18547_v12 }
 0xa1f   :  { %v10658_v37 = vsub.f32 %v10428_v27, %v10656_v43  ;;  %v10673_v60 = vmul.f32 %v10637_v49, %v18573_v58  ;;  %v10674_v42 = vmul.f32 %v10638_v31, %v18616_v52 }
 0xa21   :  { %v10676_v47 = vperm.slane %v10658_v37, 0  ;;  %v10677_v39 = vperm.slane %v10658_v37, 1  ;;  %v10678_v56 = vperm.slane %v10658_v37, 2  ;;  %v10679_v35 = vperm.slane %v10658_v37, 3 }
 0xa23   :  { %v10684_v5 = vadd.f32 %v10676_v47, %v10659_v41  ;;  %v10685_v34 = vadd.f32 %v10677_v39, %v10660_v10  ;;  %v10686_v9 = vadd.f32 %v10678_v56, %v10661_v40  ;;  %v10687_v44 = vadd.f32 %v10679_v35, %v10662_v20 }
 0xa24   :  { %v10688_v4 = vadd.f32 %v10676_v47, %v10663_v61  ;;  %v10689_v15 = vadd.f32 %v10677_v39, %v10664_v1  ;;  %v10690_v11 = vadd.f32 %v10678_v56, %v10665_v6  ;;  %v10691_v13 = vadd.f32 %v10679_v35, %v10666_v45 }
 0xa25   :  { %v10692_v30 = vadd.f32 %v10676_v47, %v10667_v50  ;;  %v10693_v48 = vadd.f32 %v10677_v39, %v10668_v63  ;;  %v10694_v7 = vadd.f32 %v10678_v56, %v10669_v21  ;;  %v10695_v36 = vadd.f32 %v10679_v35, %v10670_v53 }
 0xa26   :  { %v10696_v55 = vadd.f32 %v10676_v47, %v10671_v33  ;;  %v10697_v57 = vadd.f32 %v10677_v39, %v10672_v14  ;;  %v10698_v16 = vadd.f32 %v10678_v56, %v10673_v60  ;;  %v10699_v12 = vadd.f32 %v10679_v35, %v10674_v42 }
 0xa27   :  { %v10700_v46 = vmax.f32 %v10684_v5, 0.0  ;;  %v10701_v58 = vmax.f32 %v10685_v34, 0.0  ;;  %v10702_v26 = vmax.f32 %v10686_v9, 0.0  ;;  %v10703_v52 = vmax.f32 %v10687_v44, 0.0 }
 0xa28   :  { %v10704_v23 = vmax.f32 %v10688_v4, 0.0  ;;  %v10705_v59 = vmax.f32 %v10689_v15, 0.0  ;;  %v10706_v0 = vmax.f32 %v10690_v11, 0.0  ;;  %v10707_v54 = vmax.f32 %v10691_v13, 0.0 }
 0xa29   :  { %v10708_v32 = vmax.f32 %v10692_v30, 0.0  ;;  %v10709_v62 = vmax.f32 %v10693_v48, 0.0  ;;  %v10710_v51 = vmax.f32 %v10694_v7, 0.0  ;;  %v10711_v28 = vmax.f32 %v10695_v36, 0.0 }
 0xa2a   :  { %v10712_v8 = vmax.f32 %v10696_v55, 0.0  ;;  %v10713_v18 = vmax.f32 %v10697_v57, 0.0  ;;  %v10716_v49 = vpack.c.bf16 %v10701_v58, %v10700_v46  ;;  %v10717_v31 = vpack.c.bf16 %v10703_v52, %v10702_v26 }
 0xa2b   :  { %v10718_v24 = vpack.c.bf16 %v10705_v59, %v10704_v23  ;;  %v10714_v19 = vmax.f32 %v10698_v16, 0.0  ;;  %v10715_v25 = vmax.f32 %v10699_v12, 0.0  ;;  %v10719_v17 = vpack.c.bf16 %v10707_v54, %v10706_v0 }
 0xa2c   :  { %v10720_v2 = vpack.c.bf16 %v10709_v62, %v10708_v32  ;;  %10724 = vst [vmem:[#allocation7] sm:$0xff] %v10716_v49  ;;  %v10721_v3 = vpack.c.bf16 %v10711_v28, %v10710_v51  ;;  %v10722_v38 = vpack.c.bf16 %v10713_v18, %v10712_v8 }
 0xa2d   :  { %10725 = vst [vmem:[#allocation7 + $0x8] sm:$0xff] %v10717_v31  ;;  %v10723_v27 = vpack.c.bf16 %v10715_v25, %v10714_v19 }
 0xa2e   :  { %10726 = vst [vmem:[#allocation7 + $0x10] sm:$0xff] %v10718_v24 }
 0xa2f   :  { %10727 = vst [vmem:[#allocation7 + $0x18] sm:$0xff] %v10719_v17 }
 0xa30   :  { %10728 = vst [vmem:[#allocation7 + $0x20] sm:$0xff] %v10720_v2 }
 0xa31   :  { %10729 = vst [vmem:[#allocation7 + $0x28] sm:$0xff] %v10721_v3 }
 0xa32   :  { %10730 = vst [vmem:[#allocation7 + $0x30] sm:$0xff] %v10722_v38 }
 0xa33   :  { %10731 = vst [vmem:[#allocation7 + $0x38] sm:$0xff] %v10723_v27 }
 0xa34   :  { %17723 = dma.done.wait [#allocation8 + $0x1], 8192 }
 0xa35   :  { %17724 = vsyncadd [#allocation8 + $0x1], 4294959104  ;;  %v16005_v22 = vld [vmem:[#allocation3 + $0x70] sm:$0xf]  ;;  %v17302_v29 = vld [vmem:[#allocation3 + $0x74] sm:$0xf0] }
 0xa36   :  { %v16069_v41 = vld [vmem:[#allocation3 + $0xf0] sm:$0xf]  ;;  %v16006_v10 = vor.u32 %v17302_v29, %v16005_v22  ;;  %v17318_v43 = vld [vmem:[#allocation3 + $0xf4] sm:$0xf0]  ;;  %v15997_v45 = vld [vmem:[#allocation3 + $0x60] sm:$0xf] }
 0xa37   :  { %v16133_v40 = vld [vmem:[#allocation3 + $0x170] sm:$0xf]  ;;  %v17334_v20 = vld [vmem:[#allocation3 + $0x174] sm:$0xf0]  ;;  %v16070_v61 = vor.u32 %v17318_v43, %v16069_v41  ;;  %v17300_v63 = vld [vmem:[#allocation3 + $0x64] sm:$0xf0] }
 0xa38   :  { %v16134_v37 = vor.u32 %v17334_v20, %v16133_v40  ;;  %v16197_v1 = vld [vmem:[#allocation3 + $0x1f0] sm:$0xf]  ;;  %v17350_v6 = vld [vmem:[#allocation3 + $0x1f4] sm:$0xf0]  ;;  %11167 = vmatpush.bf16.msrb.mxu0 %v16006_v10  ;;  %v16061_v21 = vld [vmem:[#allocation3 + $0xe0] sm:$0xf]  ;;  %v15998_v47 = vor.u32 %v17300_v63, %v15997_v45 }
 0xa39   :  { %v16198_v50 = vor.u32 %v17350_v6, %v16197_v1  ;;  %v17316_v53 = vld [vmem:[#allocation3 + $0xe4] sm:$0xf0]  ;;  %11186 = vmatpush.bf16.msrb.mxu1 %v16070_v61  ;;  %v16125_v56 = vld [vmem:[#allocation3 + $0x160] sm:$0xf]  ;;  %v15989_v42 = vld [vmem:[#allocation3 + $0x50] sm:$0xf] }
 0xa3a   :  { %11205 = vmatpush.bf16.msrb.mxu2 %v16134_v37  ;;  %v16062_v39 = vor.u32 %v17316_v53, %v16061_v21  ;;  %v17332_v35 = vld [vmem:[#allocation3 + $0x164] sm:$0xf0]  ;;  %v16189_v33 = vld [vmem:[#allocation3 + $0x1e0] sm:$0xf]  ;;  %v17298_v5 = vld [vmem:[#allocation3 + $0x54] sm:$0xf0] }
 0xa3b   :  { %11224 = vmatpush.bf16.msrb.mxu3 %v16198_v50  ;;  %v16126_v14 = vor.u32 %v17332_v35, %v16125_v56  ;;  %v17348_v60 = vld [vmem:[#allocation3 + $0x1e4] sm:$0xf0]  ;;  %v16053_v9 = vld [vmem:[#allocation3 + $0xd0] sm:$0xf]  ;;  %v17314_v44 = vld [vmem:[#allocation3 + $0xd4] sm:$0xf0]  ;;  %v15990_v15 = vor.u32 %v17298_v5, %v15989_v42 }
 0xa3c   :  { %v16190_v34 = vor.u32 %v17348_v60, %v16189_v33  ;;  %v16117_v4 = vld [vmem:[#allocation3 + $0x150] sm:$0xf]  ;;  %11168 = vmatpush.bf16.msrb.mxu0 %v15998_v47  ;;  %v17330_v11 = vld [vmem:[#allocation3 + $0x154] sm:$0xf0]  ;;  %v16054_v48 = vor.u32 %v17314_v44, %v16053_v9  ;;  %v15981_v36 = vld [vmem:[#allocation3 + $0x40] sm:$0xf] }
 0xa3d   :  { %v16181_v13 = vld [vmem:[#allocation3 + $0x1d0] sm:$0xf]  ;;  %v17346_v30 = vld [vmem:[#allocation3 + $0x1d4] sm:$0xf0]  ;;  %11187 = vmatpush.bf16.msrb.mxu1 %v16062_v39  ;;  %v16118_v7 = vor.u32 %v17330_v11, %v16117_v4  ;;  %v17296_v55 = vld [vmem:[#allocation3 + $0x44] sm:$0xf0] }
 0xa3e   :  { %11206 = vmatpush.bf16.msrb.mxu2 %v16126_v14  ;;  %v16045_v57 = vld [vmem:[#allocation3 + $0xc0] sm:$0xf]  ;;  %v16182_v16 = vor.u32 %v17346_v30, %v16181_v13  ;;  %v17312_v12 = vld [vmem:[#allocation3 + $0xc4] sm:$0xf0]  ;;  %v15982_v23 = vor.u32 %v17296_v55, %v15981_v36  ;;  %v15973_v54 = vld [vmem:[#allocation3 + $0x30] sm:$0xf] }
 0xa3f   :  { %11225 = vmatpush.bf16.msrb.mxu3 %v16190_v34  ;;  %v16109_v46 = vld [vmem:[#allocation3 + $0x140] sm:$0xf]  ;;  %v17328_v58 = vld [vmem:[#allocation3 + $0x144] sm:$0xf0]  ;;  %v16046_v59 = vor.u32 %v17312_v12, %v16045_v57  ;;  %v17294_v32 = vld [vmem:[#allocation3 + $0x34] sm:$0xf0] }
 0xa40   :  { %v16173_v26 = vld [vmem:[#allocation3 + $0x1c0] sm:$0xf]  ;;  %v17344_v52 = vld [vmem:[#allocation3 + $0x1c4] sm:$0xf0]  ;;  %11169 = vmatpush.bf16.msrb.mxu0 %v15990_v15  ;;  %v16110_v0 = vor.u32 %v17328_v58, %v16109_v46  ;;  %v16037_v62 = vld [vmem:[#allocation3 + $0xb0] sm:$0xf]  ;;  %v15974_v24 = vor.u32 %v17294_v32, %v15973_v54 }
 0xa41   :  { %11188 = vmatpush.bf16.msrb.mxu1 %v16054_v48  ;;  %v16174_v51 = vor.u32 %v17344_v52, %v16173_v26  ;;  %v17310_v28 = vld [vmem:[#allocation3 + $0xb4] sm:$0xf0]  ;;  %v16101_v8 = vld [vmem:[#allocation3 + $0x130] sm:$0xf]  ;;  %v15965_v17 = vld [vmem:[#allocation3 + $0x20] sm:$0xf] }
 0xa42   :  { %11207 = vmatpush.bf16.msrb.mxu2 %v16118_v7  ;;  %v17326_v18 = vld [vmem:[#allocation3 + $0x134] sm:$0xf0]  ;;  %v16165_v49 = vld [vmem:[#allocation3 + $0x1b0] sm:$0xf]  ;;  %v16038_v19 = vor.u32 %v17310_v28, %v16037_v62  ;;  %v17292_v2 = vld [vmem:[#allocation3 + $0x24] sm:$0xf0] }
 0xa43   :  { %11226 = vmatpush.bf16.msrb.mxu3 %v16182_v16  ;;  %v17342_v31 = vld [vmem:[#allocation3 + $0x1b4] sm:$0xf0]  ;;  %v16102_v25 = vor.u32 %v17326_v18, %v16101_v8  ;;  %v16029_v3 = vld [vmem:[#allocation3 + $0xa0] sm:$0xf]  ;;  %v17308_v27 = vld [vmem:[#allocation3 + $0xa4] sm:$0xf0]  ;;  %v15966_v43 = vor.u32 %v17292_v2, %v15965_v17 }
 0xa44   :  { %11170 = vmatpush.bf16.msrb.mxu0 %v15982_v23  ;;  %v16166_v38 = vor.u32 %v17342_v31, %v16165_v49  ;;  %v16093_v22 = vld [vmem:[#allocation3 + $0x120] sm:$0xf]  ;;  %v17324_v29 = vld [vmem:[#allocation3 + $0x124] sm:$0xf0]  ;;  %v16030_v40 = vor.u32 %v17308_v27, %v16029_v3  ;;  %v15957_v61 = vld [vmem:[#allocation3 + $0x10] sm:$0xf] }
 0xa45   :  { %11189 = vmatpush.bf16.msrb.mxu1 %v16046_v59  ;;  %v16157_v41 = vld [vmem:[#allocation3 + $0x1a0] sm:$0xf]  ;;  %v17340_v10 = vld [vmem:[#allocation3 + $0x1a4] sm:$0xf0]  ;;  %v16094_v20 = vor.u32 %v17324_v29, %v16093_v22  ;;  %v17290_v37 = vld [vmem:[#allocation3 + $0x14] sm:$0xf0] }
 0xa46   :  { %11208 = vmatpush.bf16.msrb.mxu2 %v16110_v0  ;;  %v16021_v1 = vld [vmem:[#allocation3 + $0x90] sm:$0xf]  ;;  %v16158_v6 = vor.u32 %v17340_v10, %v16157_v41  ;;  %v17306_v45 = vld [vmem:[#allocation3 + $0x94] sm:$0xf0]  ;;  %v15949_v47 = vld [vmem:[#allocation3] sm:$0xf]  ;;  %v15958_v39 = vor.u32 %v17290_v37, %v15957_v61 }
 0xa47   :  { %11227 = vmatpush.bf16.msrb.mxu3 %v16174_v51  ;;  %v16085_v50 = vld [vmem:[#allocation3 + $0x110] sm:$0xf]  ;;  %v17322_v63 = vld [vmem:[#allocation3 + $0x114] sm:$0xf0]  ;;  %v17288_v56 = vld [vmem:[#allocation3 + $0x4] sm:$0xf0]  ;;  %v16022_v14 = vor.u32 %v17306_v45, %v16021_v1 }
 0xa48   :  { %11171 = vmatpush.bf16.msrb.mxu0 %v15974_v24  ;;  %v16149_v21 = vld [vmem:[#allocation3 + $0x190] sm:$0xf]  ;;  %v17338_v53 = vld [vmem:[#allocation3 + $0x194] sm:$0xf0]  ;;  %v16013_v35 = vld [vmem:[#allocation3 + $0x80] sm:$0xf]  ;;  %v16086_v60 = vor.u32 %v17322_v63, %v16085_v50  ;;  %v15950_v7 = vor.u32 %v17288_v56, %v15949_v47 }
 0xa49   :  { %11190 = vmatpush.bf16.msrb.mxu1 %v16038_v19  ;;  %v17304_v33 = vld [vmem:[#allocation3 + $0x84] sm:$0xf0]  ;;  %v16077_v42 = vld [vmem:[#allocation3 + $0x100] sm:$0xf]  ;;  %v16150_v9 = vor.u32 %v17338_v53, %v16149_v21  ;;  %v17281_v15 = vld [vmem:[#allocation7 + $0xc] sm:$0xf0] }
 0xa4a   :  { %11209 = vmatpush.bf16.msrb.mxu2 %v16102_v25  ;;  %v17320_v5 = vld [vmem:[#allocation3 + $0x104] sm:$0xf0]  ;;  %v16141_v34 = vld [vmem:[#allocation3 + $0x180] sm:$0xf]  ;;  %v17279_v11 = vld [vmem:[#allocation7 + $0x4] sm:$0xf]  ;;  %v16014_v16 = vor.u32 %v17304_v33, %v16013_v35 }
 0xa4b   :  { %11228 = vmatpush.bf16.msrb.mxu3 %v16166_v38  ;;  %v17336_v44 = vld [vmem:[#allocation3 + $0x184] sm:$0xf0]  ;;  %v15917_v4 = vld [vmem:[#allocation7] sm:$0xf]  ;;  %v15919_v13 = vld [vmem:[#allocation7 + $0x10] sm:$0xf0]  ;;  %v16078_v12 = vor.u32 %v17320_v5, %v16077_v42 }
 0xa4c   :  { %11172 = vmatpush.bf16.msrb.mxu0 %v15966_v43  ;;  %v17301_v30 = vld [vmem:[#allocation3 + $0x74] sm:$0xf]  ;;  %v16007_v48 = vld [vmem:[#allocation3 + $0x78] sm:$0xf0]  ;;  %v15925_v36 = vld [vmem:[#allocation7 + $0x8] sm:$0xf]  ;;  %v16142_v52 = vor.u32 %v17336_v44, %v16141_v34  ;;  %v18689_v32 = vor.u32 %v17281_v15, %v15917_v4  ;;  %v18691_v18 = vor.u32 %v17279_v11, %v15919_v13 }
 0xa4d   :  { %11191 = vmatpush.bf16.msrb.mxu1 %v16030_v40  ;;  %v17317_v55 = vld [vmem:[#allocation3 + $0xf4] sm:$0xf]  ;;  %v16071_v57 = vld [vmem:[#allocation3 + $0xf8] sm:$0xf0]  ;;  %v17282_v46 = vld [vmem:[#allocation7 + $0x14] sm:$0xf0]  ;;  %v16010_v23 = vor.u32 %v17301_v30, %v16007_v48 }
 0xa4e   :  { %11210 = vmatpush.bf16.msrb.mxu2 %v16094_v20  ;;  %v17280_v58 = vld [vmem:[#allocation7 + $0xc] sm:$0xf]  ;;  %v15927_v26 = vld [vmem:[#allocation7 + $0x18] sm:$0xf0]  ;;  %v17333_v59 = vld [vmem:[#allocation3 + $0x174] sm:$0xf]  ;;  %v16074_v62 = vor.u32 %v17317_v55, %v16071_v57  ;;  %v18693_v49 = vor.u32 %v17282_v46, %v15925_v36 }
 0xa4f   :  { %11229 = vmatpush.bf16.msrb.mxu3 %v16158_v6  ;;  %v16135_v0 = vld [vmem:[#allocation3 + $0x178] sm:$0xf0]  ;;  %v17349_v54 = vld [vmem:[#allocation3 + $0x1f4] sm:$0xf]  ;;  %v17299_v28 = vld [vmem:[#allocation3 + $0x64] sm:$0xf]  ;;  %v18695_v19 = vor.u32 %v17280_v58, %v15927_v26 }
 0xa50   :  { %11173 = vmatpush.bf16.msrb.mxu0 %v15958_v39  ;;  %v16199_v51 = vld [vmem:[#allocation3 + $0x1f8] sm:$0xf0]  ;;  %v15999_v8 = vld [vmem:[#allocation3 + $0x68] sm:$0xf0]  ;;  %v17315_v31 = vld [vmem:[#allocation3 + $0xe4] sm:$0xf]  ;;  %v16138_v25 = vor.u32 %v17333_v59, %v16135_v0 }
 0xa51   :  { %11192 = vmatpush.bf16.msrb.mxu1 %v16022_v14  ;;  %v16063_v24 = vld [vmem:[#allocation3 + $0xe8] sm:$0xf0]  ;;  %v16202_v17 = vor.u32 %v17349_v54, %v16199_v51  ;;  %v16002_v2 = vor.u32 %v17299_v28, %v15999_v8  ;;  %v17331_v3 = vld [vmem:[#allocation3 + $0x164] sm:$0xf]  ;;  %v17297_v41 = vld [vmem:[#allocation3 + $0x54] sm:$0xf] }
 0xa52   :  { %11211 = vmatpush.bf16.msrb.mxu2 %v16086_v60  ;;  %v16127_v38 = vld [vmem:[#allocation3 + $0x168] sm:$0xf0]  ;;  %v17347_v27 = vld [vmem:[#allocation3 + $0x1e4] sm:$0xf]  ;;  %v16066_v22 = vor.u32 %v17315_v31, %v16063_v24  ;;  %v15991_v10 = vld [vmem:[#allocation3 + $0x58] sm:$0xf0] }
 0xa53   :  { %11230 = vmatpush.bf16.msrb.mxu3 %v16150_v9  ;;  %v16191_v29 = vld [vmem:[#allocation3 + $0x1e8] sm:$0xf0]  ;;  %v17313_v43 = vld [vmem:[#allocation3 + $0xd4] sm:$0xf]  ;;  %v16055_v40 = vld [vmem:[#allocation3 + $0xd8] sm:$0xf0]  ;;  %v16130_v20 = vor.u32 %v17331_v3, %v16127_v38  ;;  %v15994_v37 = vor.u32 %v17297_v41, %v15991_v10 }
 0xa54   :  { %11174 = vmatpush.bf16.msrb.mxu0 %v15950_v7  ;;  %v16194_v61 = vor.u32 %v17347_v27, %v16191_v29  ;;  %v17329_v1 = vld [vmem:[#allocation3 + $0x154] sm:$0xf]  ;;  %v16119_v6 = vld [vmem:[#allocation3 + $0x158] sm:$0xf0]  ;;  %v16058_v50 = vor.u32 %v17313_v43, %v16055_v40  ;;  %v17295_v21 = vld [vmem:[#allocation3 + $0x44] sm:$0xf] }
 0xa55   :  { %11193 = vmatpush.bf16.msrb.mxu1 %v16014_v16  ;;  %v17345_v45 = vld [vmem:[#allocation3 + $0x1d4] sm:$0xf]  ;;  %v16183_v63 = vld [vmem:[#allocation3 + $0x1d8] sm:$0xf0]  ;;  %v15983_v53 = vld [vmem:[#allocation3 + $0x48] sm:$0xf0]  ;;  %v16122_v56 = vor.u32 %v17329_v1, %v16119_v6 }
 0xa56   :  { %11212 = vmatpush.bf16.msrb.mxu2 %v16078_v12  ;;  %v17311_v47 = vld [vmem:[#allocation3 + $0xc4] sm:$0xf]  ;;  %v16047_v39 = vld [vmem:[#allocation3 + $0xc8] sm:$0xf0]  ;;  %v16186_v60 = vor.u32 %v17345_v45, %v16183_v63  ;;  %v15986_v42 = vor.u32 %v17295_v21, %v15983_v53  ;;  %v15933_v34 = vld [vmem:[#allocation7 + $0x20] sm:$0xf] }
 0xa57   :  { %11231 = vmatpush.bf16.msrb.mxu3 %v16142_v52  ;;  %11175 = vmatmul.bf16.vlgmr.msrb.gmra.mxu0 %v18689_v32  ;;  %v17327_v35 = vld [vmem:[#allocation3 + $0x144] sm:$0xf]  ;;  %v16111_v33 = vld [vmem:[#allocation3 + $0x148] sm:$0xf0]  ;;  %v17285_v9 = vld [vmem:[#allocation7 + $0x2c] sm:$0xf0]  ;;  %v16050_v44 = vor.u32 %v17311_v47, %v16047_v39 }
 0xa58   :  { %11243 = vmatpush.bf16.msra.mxu0 %v16010_v23  ;;  %11194 = vmatmul.bf16.vlgmr.msrb.gmra.mxu1 %v18691_v18  ;;  %v17343_v14 = vld [vmem:[#allocation3 + $0x1c4] sm:$0xf]  ;;  %v16175_v5 = vld [vmem:[#allocation3 + $0x1c8] sm:$0xf0]  ;;  %v15935_v15 = vld [vmem:[#allocation7 + $0x30] sm:$0xf0]  ;;  %v16114_v36 = vor.u32 %v17327_v35, %v16111_v33  ;;  %v18701_v23 = vor.u32 %v17285_v9, %v15933_v34 }
 0xa59   :  { %11262 = vmatpush.bf16.msra.mxu1 %v16074_v62  ;;  %11213 = vmatmul.bf16.vlgmr.msrb.gmra.mxu2 %v18693_v49  ;;  %v17283_v4 = vld [vmem:[#allocation7 + $0x24] sm:$0xf]  ;;  %v17293_v11 = vld [vmem:[#allocation3 + $0x34] sm:$0xf]  ;;  %v15975_v13 = vld [vmem:[#allocation3 + $0x38] sm:$0xf0]  ;;  %v16178_v12 = vor.u32 %v17343_v14, %v16175_v5 }
 0xa5a   :  { %11232 = vmatmul.bf16.vlgmr.msrb.gmra.mxu3 %v18695_v19  ;;  %11281 = vmatpush.bf16.msra.mxu2 %v16138_v25  ;;  %v15941_v30 = vld [vmem:[#allocation7 + $0x28] sm:$0xf]  ;;  %v17309_v48 = vld [vmem:[#allocation3 + $0xb4] sm:$0xf]  ;;  %v16039_v7 = vld [vmem:[#allocation3 + $0xb8] sm:$0xf0]  ;;  %v15978_v46 = vor.u32 %v17293_v11, %v15975_v13  ;;  %v18703_v51 = vor.u32 %v17283_v4, %v15935_v15 }
 0xa5b   :  { %11300 = vmatpush.bf16.msra.mxu3 %v16202_v17  ;;  %v17286_v55 = vld [vmem:[#allocation7 + $0x34] sm:$0xf0]  ;;  %v17284_v57 = vld [vmem:[#allocation7 + $0x2c] sm:$0xf]  ;;  %v15943_v16 = vld [vmem:[#allocation7 + $0x38] sm:$0xf0]  ;;  %v16042_v59 = vor.u32 %v17309_v48, %v16039_v7 }
 0xa5c   :  { %11244 = vmatpush.bf16.msra.mxu0 %v16002_v2  ;;  %v17325_v58 = vld [vmem:[#allocation3 + $0x134] sm:$0xf]  ;;  %v16103_v26 = vld [vmem:[#allocation3 + $0x138] sm:$0xf0]  ;;  %v17291_v54 = vld [vmem:[#allocation3 + $0x24] sm:$0xf]  ;;  %v18705_v28 = vor.u32 %v17286_v55, %v15941_v30  ;;  %v15946_v24 = vor.u32 %v17284_v57, %v15943_v16 }
 0xa5d   :  { %11263 = vmatpush.bf16.msra.mxu1 %v16066_v22  ;;  %v17341_v52 = vld [vmem:[#allocation3 + $0x1b4] sm:$0xf]  ;;  %v16167_v0 = vld [vmem:[#allocation3 + $0x1b8] sm:$0xf0]  ;;  %v15967_v62 = vld [vmem:[#allocation3 + $0x28] sm:$0xf0]  ;;  %v16106_v25 = vor.u32 %v17325_v58, %v16103_v26 }
 0xa5e   :  { %11282 = vmatpush.bf16.msra.mxu2 %v16130_v20  ;;  %v17307_v8 = vld [vmem:[#allocation3 + $0xa4] sm:$0xf]  ;;  %v16031_v31 = vld [vmem:[#allocation3 + $0xa8] sm:$0xf0]  ;;  %v16170_v17 = vor.u32 %v17341_v52, %v16167_v0  ;;  %v15970_v2 = vor.u32 %v17291_v54, %v15967_v62  ;;  %v17289_v41 = vld [vmem:[#allocation3 + $0x14] sm:$0xf] }
 0xa5f   :  { %11301 = vmatpush.bf16.msra.mxu3 %v16194_v61  ;;  %v17323_v3 = vld [vmem:[#allocation3 + $0x124] sm:$0xf]  ;;  %v16095_v38 = vld [vmem:[#allocation3 + $0x128] sm:$0xf0]  ;;  %v16034_v22 = vor.u32 %v17307_v8, %v16031_v31  ;;  %v15959_v10 = vld [vmem:[#allocation3 + $0x18] sm:$0xf0] }
 0xa60   :  { %11245 = vmatpush.bf16.msra.mxu0 %v15994_v37  ;;  %v17339_v27 = vld [vmem:[#allocation3 + $0x1a4] sm:$0xf]  ;;  %v16159_v29 = vld [vmem:[#allocation3 + $0x1a8] sm:$0xf0]  ;;  %v17305_v43 = vld [vmem:[#allocation3 + $0x94] sm:$0xf]  ;;  %v16098_v20 = vor.u32 %v17323_v3, %v16095_v38  ;;  %v15962_v37 = vor.u32 %v17289_v41, %v15959_v10 }
 0xa61   :  { %11264 = vmatpush.bf16.msra.mxu1 %v16058_v50  ;;  %v16023_v40 = vld [vmem:[#allocation3 + $0x98] sm:$0xf0]  ;;  %v16162_v61 = vor.u32 %v17339_v27, %v16159_v29  ;;  %v17321_v1 = vld [vmem:[#allocation3 + $0x114] sm:$0xf]  ;;  %v17287_v21 = vld [vmem:[#allocation3 + $0x4] sm:$0xf] }
 0xa62   :  { %11283 = vmatpush.bf16.msra.mxu2 %v16122_v56  ;;  %v16087_v6 = vld [vmem:[#allocation3 + $0x118] sm:$0xf0]  ;;  %v17337_v45 = vld [vmem:[#allocation3 + $0x194] sm:$0xf]  ;;  %v16026_v50 = vor.u32 %v17305_v43, %v16023_v40  ;;  %v15951_v53 = vld [vmem:[#allocation3 + $0x8] sm:$0xf0] }
 0xa63   :  { %11302 = vmatpush.bf16.msra.mxu3 %v16186_v60  ;;  %v16151_v63 = vld [vmem:[#allocation3 + $0x198] sm:$0xf0]  ;;  %v17303_v47 = vld [vmem:[#allocation3 + $0x84] sm:$0xf]  ;;  %v16015_v39 = vld [vmem:[#allocation3 + $0x88] sm:$0xf0]  ;;  %v16090_v56 = vor.u32 %v17321_v1, %v16087_v6  ;;  %v15954_v33 = vor.u32 %v17287_v21, %v15951_v53 }
 0xa64   :  { %11246 = vmatpush.bf16.msra.mxu0 %v15986_v42  ;;  %v16154_v35 = vor.u32 %v17337_v45, %v16151_v63  ;;  %v17319_v14 = vld [vmem:[#allocation3 + $0x104] sm:$0xf]  ;;  %v16079_v60 = vld [vmem:[#allocation3 + $0x108] sm:$0xf0]  ;;  %v16018_v42 = vor.u32 %v17303_v47, %v16015_v39  ;;  %v11333_v39 = vld [vmem:[#allocation18 + $0x10] sm:$0xff]  ;;  %vm11486_vm1 = vcmask 228352  }
 0xa65   :  { %11265 = vmatpush.bf16.msra.mxu1 %v16050_v44  ;;  %v17335_v5 = vld [vmem:[#allocation3 + $0x184] sm:$0xf]  ;;  %v16143_v34 = vld [vmem:[#allocation3 + $0x188] sm:$0xf0]  ;;  %v16082_v9 = vor.u32 %v17319_v14, %v16079_v60  ;;  %s17744_s4 = smov [#allocation26]   ;;  %s11500_s7 = sshll.u32 %s18757_s13, 4  ;;  %s11501_s7 = int_to_ptr.hbm [resolvable:$true] %s11500_s7 }
 0xa66   :  { %11284 = vmatpush.bf16.msra.mxu2 %v16114_v36  ;;  %v16146_v44 = vor.u32 %v17335_v5, %v16143_v34  ;;  %v11331_v29 = vld [vmem:[#allocation18] sm:$0xff]  ;;  %v11332_v1 = vld [vmem:[#allocation18 + $0x8] sm:$0xff]  ;;  %v11343_v5 = vld [vmem:[#allocation18 + $0x38] sm:$0xff]  ;;  %s11498_s14 = sshll.u32 %s17744_s4, 4  ;;  %s11499_s14 = int_to_ptr.vmem [resolvable:$true] %s11498_s14 }
 0xa67   :  { %11303 = vmatpush.bf16.msra.mxu3 %v16178_v12  ;;  %11180 = vmatmul.bf16.gmra.mxu0 %v18701_v23  ;;  %v11335_v34 = vld [vmem:[#allocation18 + $0x20] sm:$0xff] }
 0xa68   :  { %11247 = vmatpush.bf16.msra.mxu0 %v15978_v46  ;;  %11199 = vmatmul.bf16.gmra.mxu1 %v18703_v51 }
 0xa69   :  { %11266 = vmatpush.bf16.msra.mxu1 %v16042_v59  ;;  %11218 = vmatmul.bf16.gmra.mxu2 %v18705_v28 }
 0xa6a   :  { %11237 = vmatmul.bf16.gmra.mxu3 %v15946_v24  ;;  %11285 = vmatpush.bf16.msra.mxu2 %v16106_v25 }
 0xa6b   :  { %11304 = vmatpush.bf16.msra.mxu3 %v16170_v17 }
 0xa6c   :  { %11248 = vmatpush.bf16.msra.mxu0 %v15970_v2 }
 0xa6d   :  { %11267 = vmatpush.bf16.msra.mxu1 %v16034_v22 }
 0xa6e   :  { %11286 = vmatpush.bf16.msra.mxu2 %v16098_v20 }
 0xa6f   :  { %11305 = vmatpush.bf16.msra.mxu3 %v16162_v61 }
 0xa70   :  { %11249 = vmatpush.bf16.msra.mxu0 %v15962_v37 }
 0xa71   :  { %11268 = vmatpush.bf16.msra.mxu1 %v16026_v50 }
 0xa72   :  { %11287 = vmatpush.bf16.msra.mxu2 %v16090_v56 }
 0xa73   :  { %11306 = vmatpush.bf16.msra.mxu3 %v16154_v35 }
 0xa74   :  { %11250 = vmatpush.bf16.msra.mxu0 %v15954_v33 }
 0xa75   :  { %11269 = vmatpush.bf16.msra.mxu1 %v16018_v42  ;;  %v11334_v42 = vld [vmem:[#allocation18 + $0x18] sm:$0xff] }
 0xa76   :  { %11288 = vmatpush.bf16.msra.mxu2 %v16082_v9  ;;  %v11344_v9 = vld [vmem:[#allocation18 + $0x40] sm:$0xff] }
 0xa77   :  { %11307 = vmatpush.bf16.msra.mxu3 %v16146_v44  ;;  %11251 = vmatmul.bf16.vlgmr.msra.gmra.mxu0 %v18689_v32  ;;  %v11336_v44 = vld [vmem:[#allocation18 + $0x28] sm:$0xff] }
 0xa78   :  { %11270 = vmatmul.bf16.vlgmr.msra.gmra.mxu1 %v18691_v18 }
 0xa79   :  { %11289 = vmatmul.bf16.vlgmr.msra.gmra.mxu2 %v18693_v49 }
 0xa7a   :  { %11308 = vmatmul.bf16.vlgmr.msra.gmra.mxu3 %v18695_v19 }
 0xa87   :  { %11256 = vmatmul.bf16.gmra.mxu0 %v18701_v23 }
 0xa88   :  { %11275 = vmatmul.bf16.gmra.mxu1 %v18703_v51 }
 0xa89   :  { %11294 = vmatmul.bf16.gmra.mxu2 %v18705_v28 }
 0xa8a   :  { %11313 = vmatmul.bf16.gmra.mxu3 %v15946_v24 }
 0xad4   :  { %v11176_v4 = vpop.f32.mrf.mxu0 }
 0xad5   :  { %v11195_v15 = vpop.f32.mrf.mxu1 }
 0xad6   :  { %v11196_v11 = vadd.f32 %v11195_v15, %v11176_v4  ;;  %v11345_v4 = vld [vmem:[#allocation18 + $0x48] sm:$0xff]  ;;  %v11337_v15 = vld [vmem:[#allocation18 + $0x30] sm:$0xff] }
 0xadc   :  { %v11214_v13 = vpop.f32.mrf.mxu2  ;;  %v11178_v32 = vpop.f32.mrf.mxu0 }
 0xadd   :  { %v11215_v30 = vadd.f32 %v11214_v13, %v11196_v11  ;;  %v11233_v48 = vpop.f32.mrf.mxu3  ;;  %v11197_v7 = vpop.f32.mrf.mxu1  ;;  %v11346_v11 = vld [vmem:[#allocation18 + $0x50] sm:$0xff]  ;;  %v11347_v13 = vld [vmem:[#allocation18 + $0x58] sm:$0xff] }
 0xade   :  { %v11198_v49 = vadd.f32 %v11197_v7, %v11178_v32 }
 0xadf   :  { %v11234_v18 = vadd.f32 %v11233_v48, %v11215_v30  ;;  %v11348_v30 = vld [vmem:[#allocation18 + $0x60] sm:$0xff]  ;;  %v11349_v48 = vld [vmem:[#allocation18 + $0x68] sm:$0xff] }
 0xae1   :  { %11319 = vst [vmem:[#allocation4 + $0xb0] sm:$0xff] %v11234_v18 }
 0xae4   :  { %v11216_v36 = vpop.f32.mrf.mxu2  ;;  %v11181_v57 = vpop.f32.mrf.mxu0 }
 0xae5   :  { %v11217_v19 = vadd.f32 %v11216_v36, %v11198_v49  ;;  %v11235_v55 = vpop.f32.mrf.mxu3  ;;  %v11200_v16 = vpop.f32.mrf.mxu1 }
 0xae6   :  { %v11201_v46 = vadd.f32 %v11200_v16, %v11181_v57 }
 0xae7   :  { %v11236_v12 = vadd.f32 %v11235_v55, %v11217_v19 }
 0xae9   :  { %11321 = vst [vmem:[#allocation4 + $0x20] sm:$0xff] %v11236_v12 }
 0xaec   :  { %v11219_v58 = vpop.f32.mrf.mxu2  ;;  %v11183_v23 = vpop.f32.mrf.mxu0 }
 0xaed   :  { %v11220_v26 = vadd.f32 %v11219_v58, %v11201_v46  ;;  %v11238_v52 = vpop.f32.mrf.mxu3  ;;  %v11202_v59 = vpop.f32.mrf.mxu1 }
 0xaee   :  { %v11203_v54 = vadd.f32 %v11202_v59, %v11183_v23 }
 0xaef   :  { %v11239_v0 = vadd.f32 %v11238_v52, %v11220_v26 }
 0xaf4   :  { %v11221_v62 = vpop.f32.mrf.mxu2  ;;  %v11252_v8 = vpop.f32.mrf.mxu0 }
 0xaf5   :  { %v11222_v51 = vadd.f32 %v11221_v62, %v11203_v54  ;;  %v11240_v28 = vpop.f32.mrf.mxu3  ;;  %v11271_v31 = vpop.f32.mrf.mxu1 }
 0xaf6   :  { %v11272_v25 = vadd.f32 %v11271_v31, %v11252_v8 }
 0xaf7   :  { %v11241_v24 = vadd.f32 %v11240_v28, %v11222_v51 }
 0xaf9   :  { %11442 = vmatpush.msrb.mxu1 %v11241_v24 }
 0xafb   :  { %11443 = vmatpush.msrb.mxu1 %v11239_v0 }
 0xafc   :  { %v11290_v17 = vpop.f32.mrf.mxu2  ;;  %v11254_v38 = vpop.f32.mrf.mxu0 }
 0xafd   :  { %v11291_v2 = vadd.f32 %v11290_v17, %v11272_v25  ;;  %v11309_v3 = vpop.f32.mrf.mxu3  ;;  %11444 = vmatpush.msrb.mxu1 %v11236_v12  ;;  %v11273_v27 = vpop.f32.mrf.mxu1 }
 0xafe   :  { %v11274_v41 = vadd.f32 %v11273_v27, %v11254_v38 }
 0xaff   :  { %v11310_v22 = vadd.f32 %v11309_v3, %v11291_v2  ;;  %11445 = vmatpush.msrb.mxu1 %v11234_v18  ;;  %v17382_v18 = vld [vmem:[#allocation24] ss:$0 sm:$0xff] }
 0xb00   :  { %16210 = vmatmul.msk.f32.vlgmr.msrb.gmra.mxu1 %vm410_vm0, %v11331_v29 }
 0xb01   :  { %11320 = vst [vmem:[#allocation4 + $0xd0] sm:$0xff] %v11310_v22 }
 0xb04   :  { %v11292_v10 = vpop.f32.mrf.mxu2  ;;  %v11257_v20 = vpop.f32.mrf.mxu0 }
 0xb05   :  { %v11293_v43 = vadd.f32 %v11292_v10, %v11274_v41  ;;  %v11311_v40 = vpop.f32.mrf.mxu3  ;;  %v11276_v61 = vpop.f32.mrf.mxu1 }
 0xb06   :  { %v11277_v6 = vadd.f32 %v11276_v61, %v11257_v20 }
 0xb07   :  { %v11312_v37 = vadd.f32 %v11311_v40, %v11293_v43 }
 0xb08   :  { %16211 = vmatmul.msk.f32.gmra.mxu1 %vm410_vm0, %v11332_v1 }
 0xb09   :  { %11322 = vst [vmem:[#allocation4 + $0xc8] sm:$0xff] %v11312_v37 }
 0xb0c   :  { %v11295_v45 = vpop.f32.mrf.mxu2  ;;  %v11259_v53 = vpop.f32.mrf.mxu0 }
 0xb0d   :  { %v11296_v50 = vadd.f32 %v11295_v45, %v11277_v6  ;;  %v11314_v63 = vpop.f32.mrf.mxu3  ;;  %v11278_v47 = vpop.f32.mrf.mxu1 }
 0xb0e   :  { %v11279_v56 = vadd.f32 %v11278_v47, %v11259_v53 }
 0xb0f   :  { %v11315_v21 = vadd.f32 %v11314_v63, %v11296_v50 }
 0xb10   :  { %16212 = vmatmul.msk.f32.gmra.mxu1 %vm410_vm0, %v11333_v39 }
 0xb14   :  { %v11297_v35 = vpop.f32.mrf.mxu2 }
 0xb15   :  { %v11298_v33 = vadd.f32 %v11297_v35, %v11279_v56  ;;  %v11316_v14 = vpop.f32.mrf.mxu3 }
 0xb17   :  { %v11317_v60 = vadd.f32 %v11316_v14, %v11298_v33 }
 0xb18   :  { %16213 = vmatmul.msk.f32.gmra.mxu1 %vm410_vm0, %v11334_v42 }
 0xb19   :  { %11383 = vmatpush.msrb.mxu0 %v11317_v60 }
 0xb1b   :  { %11384 = vmatpush.msrb.mxu0 %v11315_v21 }
 0xb1d   :  { %11385 = vmatpush.msrb.mxu0 %v11312_v37 }
 0xb1f   :  { %11386 = vmatpush.msrb.mxu0 %v11310_v22 }
 0xb20   :  { %16203 = vmatmul.msk.f32.vlgmr.msrb.gmra.mxu0 %vm410_vm0, %v11343_v5  ;;  %16214 = vmatmul.msk.f32.gmra.mxu1 %vm410_vm0, %v11335_v34 }
 0xb28   :  { %16204 = vmatmul.msk.f32.gmra.mxu0 %vm410_vm0, %v11344_v9  ;;  %16215 = vmatmul.msk.f32.gmra.mxu1 %vm410_vm0, %v11336_v44 }
 0xb30   :  { %16205 = vmatmul.msk.f32.gmra.mxu0 %vm410_vm0, %v11345_v4  ;;  %16216 = vmatmul.msk.f32.gmra.mxu1 %vm410_vm0, %v11337_v15 }
 0xb38   :  { %16206 = vmatmul.msk.f32.gmra.mxu0 %vm410_vm0, %v11346_v11 }
 0xb40   :  { %16207 = vmatmul.msk.f32.gmra.mxu0 %vm410_vm0, %v11347_v13 }
 0xb48   :  { %16208 = vmatmul.msk.f32.gmra.mxu0 %vm410_vm0, %v11348_v30 }
 0xb50   :  { %16209 = vmatmul.msk.f32.gmra.mxu0 %vm410_vm0, %v11349_v48 }
 0xb7d   :  { %v11447_v32 = vpop.f32.mrf.mxu1 }
 0xb85   :  { %v11450_v7 = vpop.f32.mrf.mxu1 }
 0xb8d   :  { %v11453_v55 = vpop.f32.mrf.mxu1 }
 0xb95   :  { %v11456_v26 = vpop.f32.mrf.mxu1 }
 0xb9d   :  { %v11388_v49 = vpop.f32.mrf.mxu0  ;;  %v11459_v62 = vpop.f32.mrf.mxu1 }
 0xb9e   :  { %v11448_v36 = vadd.f32 %v11447_v32, %v11388_v49 }
 0xba0   :  { %v11472_v19 = vadd.f32 %v17382_v18, %v11448_v36 }
 0xba2   :  { %17383 = vtanh.f32 %v11472_v19 }
 0xba5   :  { %v11391_v57 = vpop.f32.mrf.mxu0  ;;  %v11462_v17 = vpop.f32.mrf.mxu1 }
 0xba6   :  { %v11451_v16 = vadd.f32 %v11450_v7, %v11391_v57 }
 0xba8   :  { %v17384_v12 = vpop.eup %17383  ;;  %v11473_v46 = vadd.f32 %v17382_v18, %v11451_v16 }
 0xba9   :  { %11487 = vst.msk [vmem:[#allocation26] sm:$0xff] %vm11486_vm1, %v17384_v12 }
 0xbaa   :  { %17385 = vtanh.f32 %v11473_v46 }
 0xbad   :  { %v11394_v58 = vpop.f32.mrf.mxu0  ;;  %v11465_v22 = vpop.f32.mrf.mxu1 }
 0xbae   :  { %v11454_v52 = vadd.f32 %v11453_v55, %v11394_v58 }
 0xbb0   :  { %v17386_v23 = vpop.eup %17385  ;;  %v11474_v59 = vadd.f32 %v17382_v18, %v11454_v52 }
 0xbb1   :  { %11488 = vst.msk [vmem:[#allocation26 + $0x8] sm:$0xff] %vm11486_vm1, %v17386_v23 }
 0xbb2   :  { %17387 = vtanh.f32 %v11474_v59 }
 0xbb5   :  { %v11397_v0 = vpop.f32.mrf.mxu0 }
 0xbb6   :  { %v11457_v54 = vadd.f32 %v11456_v26, %v11397_v0 }
 0xbb8   :  { %v17388_v51 = vpop.eup %17387  ;;  %v11475_v28 = vadd.f32 %v17382_v18, %v11457_v54 }
 0xbb9   :  { %11489 = vst.msk [vmem:[#allocation26 + $0x10] sm:$0xff] %vm11486_vm1, %v17388_v51 }
 0xbba   :  { %17389 = vtanh.f32 %v11475_v28 }
 0xbbd   :  { %v11400_v8 = vpop.f32.mrf.mxu0 }
 0xbbe   :  { %v11460_v31 = vadd.f32 %v11459_v62, %v11400_v8 }
 0xbc0   :  { %v17390_v24 = vpop.eup %17389  ;;  %v11476_v25 = vadd.f32 %v17382_v18, %v11460_v31 }
 0xbc1   :  { %11490 = vst.msk [vmem:[#allocation26 + $0x18] sm:$0xff] %vm11486_vm1, %v17390_v24 }
 0xbc2   :  { %17391 = vtanh.f32 %v11476_v25 }
 0xbc5   :  { %v11403_v2 = vpop.f32.mrf.mxu0 }
 0xbc6   :  { %v11463_v3 = vadd.f32 %v11462_v17, %v11403_v2 }
 0xbc8   :  { %v17392_v38 = vpop.eup %17391  ;;  %v11477_v27 = vadd.f32 %v17382_v18, %v11463_v3 }
 0xbc9   :  { %11491 = vst.msk [vmem:[#allocation26 + $0x20] sm:$0xff] %vm11486_vm1, %v17392_v38 }
 0xbca   :  { %17393 = vtanh.f32 %v11477_v27 }
 0xbcd   :  { %v11406_v29 = vpop.f32.mrf.mxu0 }
 0xbce   :  { %v11466_v41 = vadd.f32 %v11465_v22, %v11406_v29 }
 0xbd0   :  { %v17394_v10 = vpop.eup %17393  ;;  %v11478_v43 = vadd.f32 %v17382_v18, %v11466_v41 }
 0xbd1   :  { %11492 = vst.msk [vmem:[#allocation26 + $0x28] sm:$0xff] %vm11486_vm1, %v17394_v10 }
 0xbd2   :  { %17395 = vtanh.f32 %v11478_v43 }
 0xbd8   :  { %v17396_v40 = vpop.eup %17395 }
 0xbd9   :  { %11493 = vst.msk [vmem:[#allocation26 + $0x30] sm:$0xff] %vm11486_vm1, %v17396_v40 }
 0xbda   :  { %11506 = dma.vmem_to_hbm [thread:$0]  %s11499_s14, 896, %s11501_s7, [#allocation11], %s17731_s22, %s17731_s22, %s17732_s23  }
 0xbdb   :  { %17725 = dma.done.wait [#allocation11], 896  }
 0xbdc   :  { %17726 = vsyncadd [#allocation11], 4294966400 }
 0xbdd   :  { %11511 = vsyncpa [#allocation10], 1 }
 0xbde   :  { %11512 = vsyncpa [#allocation13], 1 }
 0xbdf   :  { %11513 = vsyncpa [#allocation16], 1 }
 0xbe0   :  { %11514 = vsyncpa [#allocation19], 1 }
 0xbe1   :  { %11515 = vsyncpa [#allocation22], 1 }
 0xbe2   :  { %11516 = vsyncpa [#allocation25], 1 }
 0xbe3   :  { %11517 = vsyncpa [#allocation11], 1 }
 0xbe4   :  { %11518 = vsyncmov [#allocation8] }
 0xbe7   :  { %s11519_s13 = vpop.sfrf %11518 }
 0xbe8   :  { %p16217_p0 = scmp.ne.s32.totalorder %s11519_s13, 0 }
 0xbea   :  { %11523 = shalt.err (%p16217_p0)  }
 0xbeb   :  { %11525 = vsyncmov [#allocation8 + $0x1] }
 0xbee   :  { %s11526_s28 = vpop.sfrf %11525 }
 0xbef   :  { %p16218_p1 = scmp.ne.s32.totalorder %s11526_s28, 0 }
 0xbf1   :  { %11530 = shalt.err (%p16218_p1)  }

</bundles_post_ra>
